<compile_context>
chip_gen: v7x
topology: tpu7x:2x2x1
jax: 0.10.0
libtpu: 0.0.40
codegen_flags: <defaults>
</compile_context>

<pallas_src>
import functools

import jax
import jax.numpy as jnp
import numpy as np
from jax.experimental import pallas as pl
from jax.experimental.pallas import tpu as pltpu

EPS = 1e-5
# (cin, cout, kernel, stride) for the three conv layers of the PyTorch module.
_ARCH = ((4, 32, 8, 4), (32, 64, 4, 2), (64, 64, 3, 1))


def _out_size(s, k, st):
    return (s - k) // st + 1


# ---------------------------------------------------------------------------
# In-kernel building blocks
# ---------------------------------------------------------------------------
def _conv_bn_relu(a_in, l_ref, b_ref, gamma, beta, cout, eps):
    """One fused conv + BatchNorm2d(train) + ReLU layer on row-form activations.

    a_in : (n*H, W*Cin) bf16, rows=(n, h), lanes=(w, cin)
    l_ref: (kh, n*OH, n*H) bf16 0/1 row selectors (vertical window + stride)
    b_ref: (kh, W*Cin, OW*Cout) bf16 width-Toeplitz conv matrices
    gamma, beta: (1, Cout) f32
    Returns (n*OH, OW*Cout) f32 activations (already row-form for next layer).
    """
    kh = l_ref.shape[0]
    m_out = l_ref.shape[1]
    w_out = b_ref.shape[2]
    nblk = w_out // cout            # = OW (channel blocks along lanes)
    count = float(m_out * nblk)     # = n * OH * OW elements per channel

    # Convolution: sum over kernel rows of (row-gather) @ (width-Toeplitz).
    y = jnp.zeros((m_out, w_out), jnp.float32)
    for i in range(kh):             # static unroll
        rows = jnp.dot(l_ref[i], a_in,
                       preferred_element_type=jnp.float32).astype(jnp.bfloat16)
        y = y + jnp.dot(rows, b_ref[i], preferred_element_type=jnp.float32)

    # BatchNorm2d training mode: biased batch variance, stats over (n, oh, ow).
    # Channels repeat every `cout` lanes (ow-major blocks) -> block-sum lanes.
    s1 = jnp.sum(y, axis=0, keepdims=True)          # (1, OW*Cout)
    s2 = jnp.sum(y * y, axis=0, keepdims=True)      # one-pass sum of squares
    cs1 = s1[:, 0:cout]
    cs2 = s2[:, 0:cout]
    for b in range(1, nblk):
        cs1 = cs1 + s1[:, b * cout:(b + 1) * cout]
        cs2 = cs2 + s2[:, b * cout:(b + 1) * cout]
    mean = cs1 / count
    var = cs2 / count - mean * mean
    scale = gamma * jax.lax.rsqrt(var + eps)        # gamma folded into rsqrt
    shift = beta - mean * scale
    scale_b = jnp.concatenate([scale] * nblk, axis=1)
    shift_b = jnp.concatenate([shift] * nblk, axis=1)
    return jnp.maximum(y * scale_b + shift_b, 0.0)  # ReLU


def _cnn_kernel(x_ref, l1_ref, b1_ref, l2_ref, b2_ref, l3_ref, b3_ref,
                l4_ref, p_ref, gb_ref, o_ref, *, couts, eps):
    bf16 = jnp.bfloat16
    c1, c2, c3 = couts

    x = x_ref[...].astype(bf16)                                    # (n*52, 208)
    a1 = _conv_bn_relu(x, l1_ref, b1_ref,
                       gb_ref[0:1, 0:c1], gb_ref[1:2, 0:c1], c1, eps).astype(bf16)
    a2 = _conv_bn_relu(a1, l2_ref, b2_ref,
                       gb_ref[2:3, 0:c2], gb_ref[3:4, 0:c2], c2, eps).astype(bf16)
    a3 = _conv_bn_relu(a2, l3_ref, b3_ref,
                       gb_ref[4:5, 0:c3], gb_ref[5:6, 0:c3], c3, eps).astype(bf16)

    # Flatten to PyTorch NCHW view order: out[n, c*OH*OW + oh*OW + ow].
    out = jnp.zeros(o_ref.shape, jnp.float32)
    for oh in range(l4_ref.shape[0]):
        sel = jnp.dot(l4_ref[oh], a3,
                      preferred_element_type=jnp.float32).astype(bf16)   # (n, OW*C)
        out = out + jnp.dot(sel, p_ref[oh], preferred_element_type=jnp.float32)
    o_ref[...] = out


# ---------------------------------------------------------------------------
# One-time host-side packing of the PyTorch-style parameters
# ---------------------------------------------------------------------------
def prepare_kernel_params(params, n, h, w):
    """Pack (w, b, gamma, beta) per layer into the fused kernel operands:
    row selectors L, width-Toeplitz conv matrices B, packed gamma/beta and the
    final NCHW-flatten permutation.  The conv bias is dropped (it is exactly
    cancelled by training-mode BN mean subtraction)."""
    names = ("l1", "l2", "l3")
    Ls, Bs = [], []
    hh, ww = h, w
    for lname, (cin, cout, k, st) in zip(names, _ARCH):
        wgt = np.asarray(params[lname][0], np.float32)     # (cout, cin, k, k)
        oh, ow = _out_size(hh, k, st), _out_size(ww, k, st)
        # L[i, n*OH+oh, n*H + st*oh + i] = 1  (vertical window + stride)
        L = np.zeros((k, n * oh, n * hh), np.float32)
        for i in range(k):
            for nn in range(n):
                for o in range(oh):
                    L[i, nn * oh + o, nn * hh + st * o + i] = 1.0
        # B[i, wc*Cin + c, o*Cout + co] = wgt[co, c, i, wc - st*o]
        B = np.zeros((k, ww * cin, ow * cout), np.float32)
        for i in range(k):
            for o in range(ow):
                for j in range(k):
                    wc = st * o + j
                    B[i, wc * cin:(wc + 1) * cin,
                      o * cout:(o + 1) * cout] = wgt[:, :, i, j].T
        Ls.append(jnp.asarray(L, jnp.bfloat16))
        Bs.append(jnp.asarray(B, jnp.bfloat16))
        hh, ww = oh, ow

    # gamma / beta packed as (6, 64) f32 (layer 1 uses only the first 32 lanes).
    gb = np.zeros((6, 64), np.float32)
    for li, lname in enumerate(names):
        _, _, gamma, beta = params[lname]
        cout = _ARCH[li][1]
        gb[2 * li, :cout] = np.asarray(gamma, np.float32)
        gb[2 * li + 1, :cout] = np.asarray(beta, np.float32)

    # Final flatten: out[n, co*OH*OW + oh*OW + ow] = a3[n*OH + oh, ow*C + co]
    oh3, ow3, c3 = hh, ww, _ARCH[-1][1]
    L4 = np.zeros((oh3, n, n * oh3), np.float32)
    for o in range(oh3):
        for nn in range(n):
            L4[o, nn, nn * oh3 + o] = 1.0
    P = np.zeros((oh3, ow3 * c3, c3 * oh3 * ow3), np.float32)
    for o in range(oh3):
        for q in range(ow3):
            for co in range(c3):
                P[o, q * c3 + co, co * oh3 * ow3 + o * ow3 + q] = 1.0

    return {
        "L1": Ls[0], "B1": Bs[0], "L2": Ls[1], "B2": Bs[1], "L3": Ls[2], "B3": Bs[2],
        "L4": jnp.asarray(L4, jnp.bfloat16), "P": jnp.asarray(P, jnp.bfloat16),
        "GB": jnp.asarray(gb, jnp.float32),
    }


# ---------------------------------------------------------------------------
# Forward: one layout transform + one fused pallas_call
# ---------------------------------------------------------------------------
def cnn_forward(x, kp):
    n, c, h, w = x.shape
    # NCHW -> row form: rows = (n, h), lanes = (w, c) (channels-last on lanes).
    x2d = x.transpose(0, 2, 3, 1).reshape(n * h, w * c).astype(jnp.float32)
    vmem = pl.BlockSpec(memory_space=pltpu.MemorySpace.VMEM)
    couts = tuple(a[1] for a in _ARCH)
    return pl.pallas_call(
        functools.partial(_cnn_kernel, couts=couts, eps=EPS),
        out_shape=jax.ShapeDtypeStruct((n, kp["P"].shape[2]), jnp.float32),
        in_specs=[vmem] * 10,
        out_specs=vmem,
    )(x2d, kp["L1"], kp["B1"], kp["L2"], kp["B2"], kp["L3"], kp["B3"],
      kp["L4"], kp["P"], kp["GB"])


# ---------------------------------------------------------------------------
# Pure-JAX reference (for the in-script sanity check)
# ---------------------------------------------------------------------------
def _ref_layer(x, w, b, gamma, beta, stride):
    y = jax.lax.conv_general_dilated(
        x, w, (stride, stride), "VALID",
        dimension_numbers=("NCHW", "OIHW", "NCHW"),
        precision=jax.lax.Precision.HIGHEST)
    y = y + b.reshape(1, -1, 1, 1)
    mean = jnp.mean(y, axis=(0, 2, 3), keepdims=True)
    var = jnp.mean((y - mean) ** 2, axis=(0, 2, 3), keepdims=True)
    yhat = (y - mean) * jax.lax.rsqrt(var + EPS)
    return jnp.maximum(
        yhat * gamma.reshape(1, -1, 1, 1) + beta.reshape(1, -1, 1, 1), 0.0)


def cnn_forward_ref(x, params):
    x = _ref_layer(x, *params["l1"], stride=4)
    x = _ref_layer(x, *params["l2"], stride=2)
    x = _ref_layer(x, *params["l3"], stride=1)
    return x.reshape(x.shape[0], -1)


# ---------------------------------------------------------------------------
# Deterministic parameter init (shapes from the PyTorch module __init__)
# ---------------------------------------------------------------------------
def init_params(key, in_channel=4):
    def conv_bn(key, cout, cin, kh, kw):
        kw_, kb_, kg_, kbt_ = jax.random.split(key, 4)
        fan_in = cin * kh * kw
        w = jax.random.normal(kw_, (cout, cin, kh, kw), jnp.float32) / np.sqrt(fan_in)
        b = jax.random.normal(kb_, (cout,), jnp.float32) * 0.1
        gamma = 1.0 + 0.1 * jax.random.normal(kg_, (cout,), jnp.float32)
        beta = 0.1 * jax.random.normal(kbt_, (cout,), jnp.float32)
        return (w, b, gamma, beta)

    k1, k2, k3 = jax.random.split(key, 3)
    return {
        "l1": conv_bn(k1, 32, in_channel, 8, 8),
        "l2": conv_bn(k2, 64, 32, 4, 4),
        "l3": conv_bn(k3, 64, 64, 3, 3),
    }


if __name__ == "__main__":
    key = jax.random.PRNGKey(0)
    kx, kpk = jax.random.split(key)

    # Small input consistent with the conv stack: 52x52 -> 12x12 -> 5x5 -> 3x3
    N, C, H, W = 2, 4, 52, 52
    x = jax.random.normal(kx, (N, C, H, W), jnp.float32)
    params = init_params(kpk, in_channel=C)

    kparams = prepare_kernel_params(params, N, H, W)   # one-time weight packing
    fwd = jax.jit(cnn_forward)

    out = jax.block_until_ready(fwd(x, kparams))
    assert out.shape == (N, 64 * 3 * 3), out.shape

    ref = jax.block_until_ready(cnn_forward_ref(x, params))
    np.testing.assert_allclose(np.asarray(out), np.asarray(ref), atol=5e-2, rtol=5e-2)

    print("KERNEL_OK")
</pallas_src>

<mosaic_0001>
module attributes {stable_mosaic.version = 11 : i64} {
  func.func @_cnn_kernel(%arg0: memref<104x208xf32, #tpu.memory_space<vmem>>, %arg1: memref<8x24x104xbf16, #tpu.memory_space<vmem>>, %arg2: memref<8x208x384xbf16, #tpu.memory_space<vmem>>, %arg3: memref<4x10x24xbf16, #tpu.memory_space<vmem>>, %arg4: memref<4x384x320xbf16, #tpu.memory_space<vmem>>, %arg5: memref<3x6x10xbf16, #tpu.memory_space<vmem>>, %arg6: memref<3x320x192xbf16, #tpu.memory_space<vmem>>, %arg7: memref<3x2x6xbf16, #tpu.memory_space<vmem>>, %arg8: memref<3x192x576xbf16, #tpu.memory_space<vmem>>, %arg9: memref<6x64xf32, #tpu.memory_space<vmem>>, %arg10: memref<2x576xf32, #tpu.memory_space<vmem>>) attributes {dimension_semantics = [], scalar_prefetch = 0 : i64, scratch_operands = 0 : i64, tpu.core_type = #tpu.core_type<tc>} {
    %c0 = arith.constant 0 : index
    %c0_0 = arith.constant 0 : index
    %0 = vector.load %arg0[%c0, %c0_0] : memref<104x208xf32, #tpu.memory_space<vmem>>, vector<104x208xf32>
    %1 = arith.truncf %0 : vector<104x208xf32> to vector<104x208xbf16>
    %c0_1 = arith.constant 0 : index
    %c0_2 = arith.constant 0 : index
    %2 = vector.load %arg9[%c0_1, %c0_2] : memref<6x64xf32, #tpu.memory_space<vmem>>, vector<1x32xf32>
    %c1 = arith.constant 1 : index
    %c0_3 = arith.constant 0 : index
    %3 = vector.load %arg9[%c1, %c0_3] : memref<6x64xf32, #tpu.memory_space<vmem>>, vector<1x32xf32>
    %cst = arith.constant 0.000000e+00 : f32
    %4 = vector.broadcast %cst : f32 to vector<24x384xf32>
    %c0_4 = arith.constant 0 : index
    %c0_5 = arith.constant 0 : index
    %c0_6 = arith.constant 0 : index
    %5 = vector.load %arg1[%c0_4, %c0_5, %c0_6] : memref<8x24x104xbf16, #tpu.memory_space<vmem>>, vector<1x24x104xbf16>
    %6 = vector.shape_cast %5 : vector<1x24x104xbf16> to vector<24x104xbf16>
    %cst_7 = arith.constant dense<0.000000e+00> : vector<24x208xf32>
    %7 = tpu.matmul %6, %1, %cst_7 {dimension_numbers = #tpu.dot_dimension_numbers<[1], [0], [0], [1], [0, 0, 1, 1], [], []>} : vector<24x104xbf16>, vector<104x208xbf16>, vector<24x208xf32> -> vector<24x208xf32>
    %8 = arith.truncf %7 : vector<24x208xf32> to vector<24x208xbf16>
    %c0_8 = arith.constant 0 : index
    %c0_9 = arith.constant 0 : index
    %c0_10 = arith.constant 0 : index
    %9 = vector.load %arg2[%c0_8, %c0_9, %c0_10] : memref<8x208x384xbf16, #tpu.memory_space<vmem>>, vector<1x208x384xbf16>
    %10 = vector.shape_cast %9 : vector<1x208x384xbf16> to vector<208x384xbf16>
    %cst_11 = arith.constant dense<0.000000e+00> : vector<24x384xf32>
    %11 = tpu.matmul %8, %10, %cst_11 {dimension_numbers = #tpu.dot_dimension_numbers<[1], [0], [0], [1], [0, 0, 1, 1], [], []>} : vector<24x208xbf16>, vector<208x384xbf16>, vector<24x384xf32> -> vector<24x384xf32>
    %12 = arith.addf %4, %11 : vector<24x384xf32>
    %c1_12 = arith.constant 1 : index
    %c0_13 = arith.constant 0 : index
    %c0_14 = arith.constant 0 : index
    %13 = vector.load %arg1[%c1_12, %c0_13, %c0_14] : memref<8x24x104xbf16, #tpu.memory_space<vmem>>, vector<1x24x104xbf16>
    %14 = vector.shape_cast %13 : vector<1x24x104xbf16> to vector<24x104xbf16>
    %cst_15 = arith.constant dense<0.000000e+00> : vector<24x208xf32>
    %15 = tpu.matmul %14, %1, %cst_15 {dimension_numbers = #tpu.dot_dimension_numbers<[1], [0], [0], [1], [0, 0, 1, 1], [], []>} : vector<24x104xbf16>, vector<104x208xbf16>, vector<24x208xf32> -> vector<24x208xf32>
    %16 = arith.truncf %15 : vector<24x208xf32> to vector<24x208xbf16>
    %c1_16 = arith.constant 1 : index
    %c0_17 = arith.constant 0 : index
    %c0_18 = arith.constant 0 : index
    %17 = vector.load %arg2[%c1_16, %c0_17, %c0_18] : memref<8x208x384xbf16, #tpu.memory_space<vmem>>, vector<1x208x384xbf16>
    %18 = vector.shape_cast %17 : vector<1x208x384xbf16> to vector<208x384xbf16>
    %cst_19 = arith.constant dense<0.000000e+00> : vector<24x384xf32>
    %19 = tpu.matmul %16, %18, %cst_19 {dimension_numbers = #tpu.dot_dimension_numbers<[1], [0], [0], [1], [0, 0, 1, 1], [], []>} : vector<24x208xbf16>, vector<208x384xbf16>, vector<24x384xf32> -> vector<24x384xf32>
    %20 = arith.addf %12, %19 : vector<24x384xf32>
    %c2 = arith.constant 2 : index
    %c0_20 = arith.constant 0 : index
    %c0_21 = arith.constant 0 : index
    %21 = vector.load %arg1[%c2, %c0_20, %c0_21] : memref<8x24x104xbf16, #tpu.memory_space<vmem>>, vector<1x24x104xbf16>
    %22 = vector.shape_cast %21 : vector<1x24x104xbf16> to vector<24x104xbf16>
    %cst_22 = arith.constant dense<0.000000e+00> : vector<24x208xf32>
    %23 = tpu.matmul %22, %1, %cst_22 {dimension_numbers = #tpu.dot_dimension_numbers<[1], [0], [0], [1], [0, 0, 1, 1], [], []>} : vector<24x104xbf16>, vector<104x208xbf16>, vector<24x208xf32> -> vector<24x208xf32>
    %24 = arith.truncf %23 : vector<24x208xf32> to vector<24x208xbf16>
    %c2_23 = arith.constant 2 : index
    %c0_24 = arith.constant 0 : index
    %c0_25 = arith.constant 0 : index
    %25 = vector.load %arg2[%c2_23, %c0_24, %c0_25] : memref<8x208x384xbf16, #tpu.memory_space<vmem>>, vector<1x208x384xbf16>
    %26 = vector.shape_cast %25 : vector<1x208x384xbf16> to vector<208x384xbf16>
    %cst_26 = arith.constant dense<0.000000e+00> : vector<24x384xf32>
    %27 = tpu.matmul %24, %26, %cst_26 {dimension_numbers = #tpu.dot_dimension_numbers<[1], [0], [0], [1], [0, 0, 1, 1], [], []>} : vector<24x208xbf16>, vector<208x384xbf16>, vector<24x384xf32> -> vector<24x384xf32>
    %28 = arith.addf %20, %27 : vector<24x384xf32>
    %c3 = arith.constant 3 : index
    %c0_27 = arith.constant 0 : index
    %c0_28 = arith.constant 0 : index
    %29 = vector.load %arg1[%c3, %c0_27, %c0_28] : memref<8x24x104xbf16, #tpu.memory_space<vmem>>, vector<1x24x104xbf16>
    %30 = vector.shape_cast %29 : vector<1x24x104xbf16> to vector<24x104xbf16>
    %cst_29 = arith.constant dense<0.000000e+00> : vector<24x208xf32>
    %31 = tpu.matmul %30, %1, %cst_29 {dimension_numbers = #tpu.dot_dimension_numbers<[1], [0], [0], [1], [0, 0, 1, 1], [], []>} : vector<24x104xbf16>, vector<104x208xbf16>, vector<24x208xf32> -> vector<24x208xf32>
    %32 = arith.truncf %31 : vector<24x208xf32> to vector<24x208xbf16>
    %c3_30 = arith.constant 3 : index
    %c0_31 = arith.constant 0 : index
    %c0_32 = arith.constant 0 : index
    %33 = vector.load %arg2[%c3_30, %c0_31, %c0_32] : memref<8x208x384xbf16, #tpu.memory_space<vmem>>, vector<1x208x384xbf16>
    %34 = vector.shape_cast %33 : vector<1x208x384xbf16> to vector<208x384xbf16>
    %cst_33 = arith.constant dense<0.000000e+00> : vector<24x384xf32>
    %35 = tpu.matmul %32, %34, %cst_33 {dimension_numbers = #tpu.dot_dimension_numbers<[1], [0], [0], [1], [0, 0, 1, 1], [], []>} : vector<24x208xbf16>, vector<208x384xbf16>, vector<24x384xf32> -> vector<24x384xf32>
    %36 = arith.addf %28, %35 : vector<24x384xf32>
    %c4 = arith.constant 4 : index
    %c0_34 = arith.constant 0 : index
    %c0_35 = arith.constant 0 : index
    %37 = vector.load %arg1[%c4, %c0_34, %c0_35] : memref<8x24x104xbf16, #tpu.memory_space<vmem>>, vector<1x24x104xbf16>
    %38 = vector.shape_cast %37 : vector<1x24x104xbf16> to vector<24x104xbf16>
    %cst_36 = arith.constant dense<0.000000e+00> : vector<24x208xf32>
    %39 = tpu.matmul %38, %1, %cst_36 {dimension_numbers = #tpu.dot_dimension_numbers<[1], [0], [0], [1], [0, 0, 1, 1], [], []>} : vector<24x104xbf16>, vector<104x208xbf16>, vector<24x208xf32> -> vector<24x208xf32>
    %40 = arith.truncf %39 : vector<24x208xf32> to vector<24x208xbf16>
    %c4_37 = arith.constant 4 : index
    %c0_38 = arith.constant 0 : index
    %c0_39 = arith.constant 0 : index
    %41 = vector.load %arg2[%c4_37, %c0_38, %c0_39] : memref<8x208x384xbf16, #tpu.memory_space<vmem>>, vector<1x208x384xbf16>
    %42 = vector.shape_cast %41 : vector<1x208x384xbf16> to vector<208x384xbf16>
    %cst_40 = arith.constant dense<0.000000e+00> : vector<24x384xf32>
    %43 = tpu.matmul %40, %42, %cst_40 {dimension_numbers = #tpu.dot_dimension_numbers<[1], [0], [0], [1], [0, 0, 1, 1], [], []>} : vector<24x208xbf16>, vector<208x384xbf16>, vector<24x384xf32> -> vector<24x384xf32>
    %44 = arith.addf %36, %43 : vector<24x384xf32>
    %c5 = arith.constant 5 : index
    %c0_41 = arith.constant 0 : index
    %c0_42 = arith.constant 0 : index
    %45 = vector.load %arg1[%c5, %c0_41, %c0_42] : memref<8x24x104xbf16, #tpu.memory_space<vmem>>, vector<1x24x104xbf16>
    %46 = vector.shape_cast %45 : vector<1x24x104xbf16> to vector<24x104xbf16>
    %cst_43 = arith.constant dense<0.000000e+00> : vector<24x208xf32>
    %47 = tpu.matmul %46, %1, %cst_43 {dimension_numbers = #tpu.dot_dimension_numbers<[1], [0], [0], [1], [0, 0, 1, 1], [], []>} : vector<24x104xbf16>, vector<104x208xbf16>, vector<24x208xf32> -> vector<24x208xf32>
    %48 = arith.truncf %47 : vector<24x208xf32> to vector<24x208xbf16>
    %c5_44 = arith.constant 5 : index
    %c0_45 = arith.constant 0 : index
    %c0_46 = arith.constant 0 : index
    %49 = vector.load %arg2[%c5_44, %c0_45, %c0_46] : memref<8x208x384xbf16, #tpu.memory_space<vmem>>, vector<1x208x384xbf16>
    %50 = vector.shape_cast %49 : vector<1x208x384xbf16> to vector<208x384xbf16>
    %cst_47 = arith.constant dense<0.000000e+00> : vector<24x384xf32>
    %51 = tpu.matmul %48, %50, %cst_47 {dimension_numbers = #tpu.dot_dimension_numbers<[1], [0], [0], [1], [0, 0, 1, 1], [], []>} : vector<24x208xbf16>, vector<208x384xbf16>, vector<24x384xf32> -> vector<24x384xf32>
    %52 = arith.addf %44, %51 : vector<24x384xf32>
    %c6 = arith.constant 6 : index
    %c0_48 = arith.constant 0 : index
    %c0_49 = arith.constant 0 : index
    %53 = vector.load %arg1[%c6, %c0_48, %c0_49] : memref<8x24x104xbf16, #tpu.memory_space<vmem>>, vector<1x24x104xbf16>
    %54 = vector.shape_cast %53 : vector<1x24x104xbf16> to vector<24x104xbf16>
    %cst_50 = arith.constant dense<0.000000e+00> : vector<24x208xf32>
    %55 = tpu.matmul %54, %1, %cst_50 {dimension_numbers = #tpu.dot_dimension_numbers<[1], [0], [0], [1], [0, 0, 1, 1], [], []>} : vector<24x104xbf16>, vector<104x208xbf16>, vector<24x208xf32> -> vector<24x208xf32>
    %56 = arith.truncf %55 : vector<24x208xf32> to vector<24x208xbf16>
    %c6_51 = arith.constant 6 : index
    %c0_52 = arith.constant 0 : index
    %c0_53 = arith.constant 0 : index
    %57 = vector.load %arg2[%c6_51, %c0_52, %c0_53] : memref<8x208x384xbf16, #tpu.memory_space<vmem>>, vector<1x208x384xbf16>
    %58 = vector.shape_cast %57 : vector<1x208x384xbf16> to vector<208x384xbf16>
    %cst_54 = arith.constant dense<0.000000e+00> : vector<24x384xf32>
    %59 = tpu.matmul %56, %58, %cst_54 {dimension_numbers = #tpu.dot_dimension_numbers<[1], [0], [0], [1], [0, 0, 1, 1], [], []>} : vector<24x208xbf16>, vector<208x384xbf16>, vector<24x384xf32> -> vector<24x384xf32>
    %60 = arith.addf %52, %59 : vector<24x384xf32>
    %c7 = arith.constant 7 : index
    %c0_55 = arith.constant 0 : index
    %c0_56 = arith.constant 0 : index
    %61 = vector.load %arg1[%c7, %c0_55, %c0_56] : memref<8x24x104xbf16, #tpu.memory_space<vmem>>, vector<1x24x104xbf16>
    %62 = vector.shape_cast %61 : vector<1x24x104xbf16> to vector<24x104xbf16>
    %cst_57 = arith.constant dense<0.000000e+00> : vector<24x208xf32>
    %63 = tpu.matmul %62, %1, %cst_57 {dimension_numbers = #tpu.dot_dimension_numbers<[1], [0], [0], [1], [0, 0, 1, 1], [], []>} : vector<24x104xbf16>, vector<104x208xbf16>, vector<24x208xf32> -> vector<24x208xf32>
    %64 = arith.truncf %63 : vector<24x208xf32> to vector<24x208xbf16>
    %c7_58 = arith.constant 7 : index
    %c0_59 = arith.constant 0 : index
    %c0_60 = arith.constant 0 : index
    %65 = vector.load %arg2[%c7_58, %c0_59, %c0_60] : memref<8x208x384xbf16, #tpu.memory_space<vmem>>, vector<1x208x384xbf16>
    %66 = vector.shape_cast %65 : vector<1x208x384xbf16> to vector<208x384xbf16>
    %cst_61 = arith.constant dense<0.000000e+00> : vector<24x384xf32>
    %67 = tpu.matmul %64, %66, %cst_61 {dimension_numbers = #tpu.dot_dimension_numbers<[1], [0], [0], [1], [0, 0, 1, 1], [], []>} : vector<24x208xbf16>, vector<208x384xbf16>, vector<24x384xf32> -> vector<24x384xf32>
    %68 = arith.addf %60, %67 : vector<24x384xf32>
    %cst_62 = arith.constant dense<0.000000e+00> : vector<384xf32>
    %69 = vector.multi_reduction <add>, %68, %cst_62 [0] : vector<24x384xf32> to vector<384xf32>
    %70 = vector.shape_cast %69 : vector<384xf32> to vector<1x384xf32>
    %71 = arith.mulf %68, %68 : vector<24x384xf32>
    %cst_63 = arith.constant dense<0.000000e+00> : vector<384xf32>
    %72 = vector.multi_reduction <add>, %71, %cst_63 [0] : vector<24x384xf32> to vector<384xf32>
    %73 = vector.shape_cast %72 : vector<384xf32> to vector<1x384xf32>
    %74 = vector.extract_strided_slice %70 {offsets = [0, 0], sizes = [1, 32], strides = [1, 1]} : vector<1x384xf32> to vector<1x32xf32>
    %75 = vector.extract_strided_slice %73 {offsets = [0, 0], sizes = [1, 32], strides = [1, 1]} : vector<1x384xf32> to vector<1x32xf32>
    %76 = vector.extract_strided_slice %70 {offsets = [0, 32], sizes = [1, 32], strides = [1, 1]} : vector<1x384xf32> to vector<1x32xf32>
    %77 = arith.addf %74, %76 : vector<1x32xf32>
    %78 = vector.extract_strided_slice %73 {offsets = [0, 32], sizes = [1, 32], strides = [1, 1]} : vector<1x384xf32> to vector<1x32xf32>
    %79 = arith.addf %75, %78 : vector<1x32xf32>
    %80 = vector.extract_strided_slice %70 {offsets = [0, 64], sizes = [1, 32], strides = [1, 1]} : vector<1x384xf32> to vector<1x32xf32>
    %81 = arith.addf %77, %80 : vector<1x32xf32>
    %82 = vector.extract_strided_slice %73 {offsets = [0, 64], sizes = [1, 32], strides = [1, 1]} : vector<1x384xf32> to vector<1x32xf32>
    %83 = arith.addf %79, %82 : vector<1x32xf32>
    %84 = vector.extract_strided_slice %70 {offsets = [0, 96], sizes = [1, 32], strides = [1, 1]} : vector<1x384xf32> to vector<1x32xf32>
    %85 = arith.addf %81, %84 : vector<1x32xf32>
    %86 = vector.extract_strided_slice %73 {offsets = [0, 96], sizes = [1, 32], strides = [1, 1]} : vector<1x384xf32> to vector<1x32xf32>
    %87 = arith.addf %83, %86 : vector<1x32xf32>
    %88 = vector.extract_strided_slice %70 {offsets = [0, 128], sizes = [1, 32], strides = [1, 1]} : vector<1x384xf32> to vector<1x32xf32>
    %89 = arith.addf %85, %88 : vector<1x32xf32>
    %90 = vector.extract_strided_slice %73 {offsets = [0, 128], sizes = [1, 32], strides = [1, 1]} : vector<1x384xf32> to vector<1x32xf32>
    %91 = arith.addf %87, %90 : vector<1x32xf32>
    %92 = vector.extract_strided_slice %70 {offsets = [0, 160], sizes = [1, 32], strides = [1, 1]} : vector<1x384xf32> to vector<1x32xf32>
    %93 = arith.addf %89, %92 : vector<1x32xf32>
    %94 = vector.extract_strided_slice %73 {offsets = [0, 160], sizes = [1, 32], strides = [1, 1]} : vector<1x384xf32> to vector<1x32xf32>
    %95 = arith.addf %91, %94 : vector<1x32xf32>
    %96 = vector.extract_strided_slice %70 {offsets = [0, 192], sizes = [1, 32], strides = [1, 1]} : vector<1x384xf32> to vector<1x32xf32>
    %97 = arith.addf %93, %96 : vector<1x32xf32>
    %98 = vector.extract_strided_slice %73 {offsets = [0, 192], sizes = [1, 32], strides = [1, 1]} : vector<1x384xf32> to vector<1x32xf32>
    %99 = arith.addf %95, %98 : vector<1x32xf32>
    %100 = vector.extract_strided_slice %70 {offsets = [0, 224], sizes = [1, 32], strides = [1, 1]} : vector<1x384xf32> to vector<1x32xf32>
    %101 = arith.addf %97, %100 : vector<1x32xf32>
    %102 = vector.extract_strided_slice %73 {offsets = [0, 224], sizes = [1, 32], strides = [1, 1]} : vector<1x384xf32> to vector<1x32xf32>
    %103 = arith.addf %99, %102 : vector<1x32xf32>
    %104 = vector.extract_strided_slice %70 {offsets = [0, 256], sizes = [1, 32], strides = [1, 1]} : vector<1x384xf32> to vector<1x32xf32>
    %105 = arith.addf %101, %104 : vector<1x32xf32>
    %106 = vector.extract_strided_slice %73 {offsets = [0, 256], sizes = [1, 32], strides = [1, 1]} : vector<1x384xf32> to vector<1x32xf32>
    %107 = arith.addf %103, %106 : vector<1x32xf32>
    %108 = vector.extract_strided_slice %70 {offsets = [0, 288], sizes = [1, 32], strides = [1, 1]} : vector<1x384xf32> to vector<1x32xf32>
    %109 = arith.addf %105, %108 : vector<1x32xf32>
    %110 = vector.extract_strided_slice %73 {offsets = [0, 288], sizes = [1, 32], strides = [1, 1]} : vector<1x384xf32> to vector<1x32xf32>
    %111 = arith.addf %107, %110 : vector<1x32xf32>
    %112 = vector.extract_strided_slice %70 {offsets = [0, 320], sizes = [1, 32], strides = [1, 1]} : vector<1x384xf32> to vector<1x32xf32>
    %113 = arith.addf %109, %112 : vector<1x32xf32>
    %114 = vector.extract_strided_slice %73 {offsets = [0, 320], sizes = [1, 32], strides = [1, 1]} : vector<1x384xf32> to vector<1x32xf32>
    %115 = arith.addf %111, %114 : vector<1x32xf32>
    %116 = vector.extract_strided_slice %70 {offsets = [0, 352], sizes = [1, 32], strides = [1, 1]} : vector<1x384xf32> to vector<1x32xf32>
    %117 = arith.addf %113, %116 : vector<1x32xf32>
    %118 = vector.extract_strided_slice %73 {offsets = [0, 352], sizes = [1, 32], strides = [1, 1]} : vector<1x384xf32> to vector<1x32xf32>
    %119 = arith.addf %115, %118 : vector<1x32xf32>
    %cst_64 = arith.constant 2.880000e+02 : f32
    %120 = vector.broadcast %cst_64 : f32 to vector<1x32xf32>
    %121 = arith.divf %117, %120 : vector<1x32xf32>
    %cst_65 = arith.constant 2.880000e+02 : f32
    %122 = vector.broadcast %cst_65 : f32 to vector<1x32xf32>
    %123 = arith.divf %119, %122 : vector<1x32xf32>
    %124 = arith.mulf %121, %121 : vector<1x32xf32>
    %125 = arith.subf %123, %124 : vector<1x32xf32>
    %cst_66 = arith.constant 9.99999974E-6 : f32
    %126 = vector.broadcast %cst_66 : f32 to vector<1x32xf32>
    %127 = arith.addf %125, %126 : vector<1x32xf32>
    %128 = math.rsqrt %127 : vector<1x32xf32>
    %129 = arith.mulf %2, %128 : vector<1x32xf32>
    %130 = arith.mulf %121, %129 : vector<1x32xf32>
    %131 = arith.subf %3, %130 : vector<1x32xf32>
    %132 = tpu.concatenate %129, %129, %129, %129, %129, %129, %129, %129, %129, %129, %129, %129 in 1 : vector<1x32xf32>, vector<1x32xf32>, vector<1x32xf32>, vector<1x32xf32>, vector<1x32xf32>, vector<1x32xf32>, vector<1x32xf32>, vector<1x32xf32>, vector<1x32xf32>, vector<1x32xf32>, vector<1x32xf32>, vector<1x32xf32> -> vector<1x384xf32>
    %133 = tpu.concatenate %131, %131, %131, %131, %131, %131, %131, %131, %131, %131, %131, %131 in 1 : vector<1x32xf32>, vector<1x32xf32>, vector<1x32xf32>, vector<1x32xf32>, vector<1x32xf32>, vector<1x32xf32>, vector<1x32xf32>, vector<1x32xf32>, vector<1x32xf32>, vector<1x32xf32>, vector<1x32xf32>, vector<1x32xf32> -> vector<1x384xf32>
    %134 = vector.broadcast %132 : vector<1x384xf32> to vector<24x384xf32>
    %135 = arith.mulf %68, %134 : vector<24x384xf32>
    %136 = vector.broadcast %133 : vector<1x384xf32> to vector<24x384xf32>
    %137 = arith.addf %135, %136 : vector<24x384xf32>
    %cst_67 = arith.constant 0.000000e+00 : f32
    %138 = vector.broadcast %cst_67 : f32 to vector<24x384xf32>
    %139 = arith.maximumf %137, %138 : vector<24x384xf32>
    %140 = arith.truncf %139 : vector<24x384xf32> to vector<24x384xbf16>
    %c2_68 = arith.constant 2 : index
    %c0_69 = arith.constant 0 : index
    %141 = vector.load %arg9[%c2_68, %c0_69] : memref<6x64xf32, #tpu.memory_space<vmem>>, vector<1x64xf32>
    %c3_70 = arith.constant 3 : index
    %c0_71 = arith.constant 0 : index
    %142 = vector.load %arg9[%c3_70, %c0_71] : memref<6x64xf32, #tpu.memory_space<vmem>>, vector<1x64xf32>
    %cst_72 = arith.constant 0.000000e+00 : f32
    %143 = vector.broadcast %cst_72 : f32 to vector<10x320xf32>
    %c0_73 = arith.constant 0 : index
    %c0_74 = arith.constant 0 : index
    %c0_75 = arith.constant 0 : index
    %144 = vector.load %arg3[%c0_73, %c0_74, %c0_75] : memref<4x10x24xbf16, #tpu.memory_space<vmem>>, vector<1x10x24xbf16>
    %145 = vector.shape_cast %144 : vector<1x10x24xbf16> to vector<10x24xbf16>
    %cst_76 = arith.constant dense<0.000000e+00> : vector<10x384xf32>
    %146 = tpu.matmul %145, %140, %cst_76 {dimension_numbers = #tpu.dot_dimension_numbers<[1], [0], [0], [1], [0, 0, 1, 1], [], []>} : vector<10x24xbf16>, vector<24x384xbf16>, vector<10x384xf32> -> vector<10x384xf32>
    %147 = arith.truncf %146 : vector<10x384xf32> to vector<10x384xbf16>
    %c0_77 = arith.constant 0 : index
    %c0_78 = arith.constant 0 : index
    %c0_79 = arith.constant 0 : index
    %148 = vector.load %arg4[%c0_77, %c0_78, %c0_79] : memref<4x384x320xbf16, #tpu.memory_space<vmem>>, vector<1x384x320xbf16>
    %149 = vector.shape_cast %148 : vector<1x384x320xbf16> to vector<384x320xbf16>
    %cst_80 = arith.constant dense<0.000000e+00> : vector<10x320xf32>
    %150 = tpu.matmul %147, %149, %cst_80 {dimension_numbers = #tpu.dot_dimension_numbers<[1], [0], [0], [1], [0, 0, 1, 1], [], []>} : vector<10x384xbf16>, vector<384x320xbf16>, vector<10x320xf32> -> vector<10x320xf32>
    %151 = arith.addf %143, %150 : vector<10x320xf32>
    %c1_81 = arith.constant 1 : index
    %c0_82 = arith.constant 0 : index
    %c0_83 = arith.constant 0 : index
    %152 = vector.load %arg3[%c1_81, %c0_82, %c0_83] : memref<4x10x24xbf16, #tpu.memory_space<vmem>>, vector<1x10x24xbf16>
    %153 = vector.shape_cast %152 : vector<1x10x24xbf16> to vector<10x24xbf16>
    %cst_84 = arith.constant dense<0.000000e+00> : vector<10x384xf32>
    %154 = tpu.matmul %153, %140, %cst_84 {dimension_numbers = #tpu.dot_dimension_numbers<[1], [0], [0], [1], [0, 0, 1, 1], [], []>} : vector<10x24xbf16>, vector<24x384xbf16>, vector<10x384xf32> -> vector<10x384xf32>
    %155 = arith.truncf %154 : vector<10x384xf32> to vector<10x384xbf16>
    %c1_85 = arith.constant 1 : index
    %c0_86 = arith.constant 0 : index
    %c0_87 = arith.constant 0 : index
    %156 = vector.load %arg4[%c1_85, %c0_86, %c0_87] : memref<4x384x320xbf16, #tpu.memory_space<vmem>>, vector<1x384x320xbf16>
    %157 = vector.shape_cast %156 : vector<1x384x320xbf16> to vector<384x320xbf16>
    %cst_88 = arith.constant dense<0.000000e+00> : vector<10x320xf32>
    %158 = tpu.matmul %155, %157, %cst_88 {dimension_numbers = #tpu.dot_dimension_numbers<[1], [0], [0], [1], [0, 0, 1, 1], [], []>} : vector<10x384xbf16>, vector<384x320xbf16>, vector<10x320xf32> -> vector<10x320xf32>
    %159 = arith.addf %151, %158 : vector<10x320xf32>
    %c2_89 = arith.constant 2 : index
    %c0_90 = arith.constant 0 : index
    %c0_91 = arith.constant 0 : index
    %160 = vector.load %arg3[%c2_89, %c0_90, %c0_91] : memref<4x10x24xbf16, #tpu.memory_space<vmem>>, vector<1x10x24xbf16>
    %161 = vector.shape_cast %160 : vector<1x10x24xbf16> to vector<10x24xbf16>
    %cst_92 = arith.constant dense<0.000000e+00> : vector<10x384xf32>
    %162 = tpu.matmul %161, %140, %cst_92 {dimension_numbers = #tpu.dot_dimension_numbers<[1], [0], [0], [1], [0, 0, 1, 1], [], []>} : vector<10x24xbf16>, vector<24x384xbf16>, vector<10x384xf32> -> vector<10x384xf32>
    %163 = arith.truncf %162 : vector<10x384xf32> to vector<10x384xbf16>
    %c2_93 = arith.constant 2 : index
    %c0_94 = arith.constant 0 : index
    %c0_95 = arith.constant 0 : index
    %164 = vector.load %arg4[%c2_93, %c0_94, %c0_95] : memref<4x384x320xbf16, #tpu.memory_space<vmem>>, vector<1x384x320xbf16>
    %165 = vector.shape_cast %164 : vector<1x384x320xbf16> to vector<384x320xbf16>
    %cst_96 = arith.constant dense<0.000000e+00> : vector<10x320xf32>
    %166 = tpu.matmul %163, %165, %cst_96 {dimension_numbers = #tpu.dot_dimension_numbers<[1], [0], [0], [1], [0, 0, 1, 1], [], []>} : vector<10x384xbf16>, vector<384x320xbf16>, vector<10x320xf32> -> vector<10x320xf32>
    %167 = arith.addf %159, %166 : vector<10x320xf32>
    %c3_97 = arith.constant 3 : index
    %c0_98 = arith.constant 0 : index
    %c0_99 = arith.constant 0 : index
    %168 = vector.load %arg3[%c3_97, %c0_98, %c0_99] : memref<4x10x24xbf16, #tpu.memory_space<vmem>>, vector<1x10x24xbf16>
    %169 = vector.shape_cast %168 : vector<1x10x24xbf16> to vector<10x24xbf16>
    %cst_100 = arith.constant dense<0.000000e+00> : vector<10x384xf32>
    %170 = tpu.matmul %169, %140, %cst_100 {dimension_numbers = #tpu.dot_dimension_numbers<[1], [0], [0], [1], [0, 0, 1, 1], [], []>} : vector<10x24xbf16>, vector<24x384xbf16>, vector<10x384xf32> -> vector<10x384xf32>
    %171 = arith.truncf %170 : vector<10x384xf32> to vector<10x384xbf16>
    %c3_101 = arith.constant 3 : index
    %c0_102 = arith.constant 0 : index
    %c0_103 = arith.constant 0 : index
    %172 = vector.load %arg4[%c3_101, %c0_102, %c0_103] : memref<4x384x320xbf16, #tpu.memory_space<vmem>>, vector<1x384x320xbf16>
    %173 = vector.shape_cast %172 : vector<1x384x320xbf16> to vector<384x320xbf16>
    %cst_104 = arith.constant dense<0.000000e+00> : vector<10x320xf32>
    %174 = tpu.matmul %171, %173, %cst_104 {dimension_numbers = #tpu.dot_dimension_numbers<[1], [0], [0], [1], [0, 0, 1, 1], [], []>} : vector<10x384xbf16>, vector<384x320xbf16>, vector<10x320xf32> -> vector<10x320xf32>
    %175 = arith.addf %167, %174 : vector<10x320xf32>
    %cst_105 = arith.constant dense<0.000000e+00> : vector<320xf32>
    %176 = vector.multi_reduction <add>, %175, %cst_105 [0] : vector<10x320xf32> to vector<320xf32>
    %177 = vector.shape_cast %176 : vector<320xf32> to vector<1x320xf32>
    %178 = arith.mulf %175, %175 : vector<10x320xf32>
    %cst_106 = arith.constant dense<0.000000e+00> : vector<320xf32>
    %179 = vector.multi_reduction <add>, %178, %cst_106 [0] : vector<10x320xf32> to vector<320xf32>
    %180 = vector.shape_cast %179 : vector<320xf32> to vector<1x320xf32>
    %181 = vector.extract_strided_slice %177 {offsets = [0, 0], sizes = [1, 64], strides = [1, 1]} : vector<1x320xf32> to vector<1x64xf32>
    %182 = vector.extract_strided_slice %180 {offsets = [0, 0], sizes = [1, 64], strides = [1, 1]} : vector<1x320xf32> to vector<1x64xf32>
    %183 = vector.extract_strided_slice %177 {offsets = [0, 64], sizes = [1, 64], strides = [1, 1]} : vector<1x320xf32> to vector<1x64xf32>
    %184 = arith.addf %181, %183 : vector<1x64xf32>
    %185 = vector.extract_strided_slice %180 {offsets = [0, 64], sizes = [1, 64], strides = [1, 1]} : vector<1x320xf32> to vector<1x64xf32>
    %186 = arith.addf %182, %185 : vector<1x64xf32>
    %187 = vector.extract_strided_slice %177 {offsets = [0, 128], sizes = [1, 64], strides = [1, 1]} : vector<1x320xf32> to vector<1x64xf32>
    %188 = arith.addf %184, %187 : vector<1x64xf32>
    %189 = vector.extract_strided_slice %180 {offsets = [0, 128], sizes = [1, 64], strides = [1, 1]} : vector<1x320xf32> to vector<1x64xf32>
    %190 = arith.addf %186, %189 : vector<1x64xf32>
    %191 = vector.extract_strided_slice %177 {offsets = [0, 192], sizes = [1, 64], strides = [1, 1]} : vector<1x320xf32> to vector<1x64xf32>
    %192 = arith.addf %188, %191 : vector<1x64xf32>
    %193 = vector.extract_strided_slice %180 {offsets = [0, 192], sizes = [1, 64], strides = [1, 1]} : vector<1x320xf32> to vector<1x64xf32>
    %194 = arith.addf %190, %193 : vector<1x64xf32>
    %195 = vector.extract_strided_slice %177 {offsets = [0, 256], sizes = [1, 64], strides = [1, 1]} : vector<1x320xf32> to vector<1x64xf32>
    %196 = arith.addf %192, %195 : vector<1x64xf32>
    %197 = vector.extract_strided_slice %180 {offsets = [0, 256], sizes = [1, 64], strides = [1, 1]} : vector<1x320xf32> to vector<1x64xf32>
    %198 = arith.addf %194, %197 : vector<1x64xf32>
    %cst_107 = arith.constant 5.000000e+01 : f32
    %199 = vector.broadcast %cst_107 : f32 to vector<1x64xf32>
    %200 = arith.divf %196, %199 : vector<1x64xf32>
    %cst_108 = arith.constant 5.000000e+01 : f32
    %201 = vector.broadcast %cst_108 : f32 to vector<1x64xf32>
    %202 = arith.divf %198, %201 : vector<1x64xf32>
    %203 = arith.mulf %200, %200 : vector<1x64xf32>
    %204 = arith.subf %202, %203 : vector<1x64xf32>
    %cst_109 = arith.constant 9.99999974E-6 : f32
    %205 = vector.broadcast %cst_109 : f32 to vector<1x64xf32>
    %206 = arith.addf %204, %205 : vector<1x64xf32>
    %207 = math.rsqrt %206 : vector<1x64xf32>
    %208 = arith.mulf %141, %207 : vector<1x64xf32>
    %209 = arith.mulf %200, %208 : vector<1x64xf32>
    %210 = arith.subf %142, %209 : vector<1x64xf32>
    %211 = tpu.concatenate %208, %208, %208, %208, %208 in 1 : vector<1x64xf32>, vector<1x64xf32>, vector<1x64xf32>, vector<1x64xf32>, vector<1x64xf32> -> vector<1x320xf32>
    %212 = tpu.concatenate %210, %210, %210, %210, %210 in 1 : vector<1x64xf32>, vector<1x64xf32>, vector<1x64xf32>, vector<1x64xf32>, vector<1x64xf32> -> vector<1x320xf32>
    %213 = vector.broadcast %211 : vector<1x320xf32> to vector<10x320xf32>
    %214 = arith.mulf %175, %213 : vector<10x320xf32>
    %215 = vector.broadcast %212 : vector<1x320xf32> to vector<10x320xf32>
    %216 = arith.addf %214, %215 : vector<10x320xf32>
    %cst_110 = arith.constant 0.000000e+00 : f32
    %217 = vector.broadcast %cst_110 : f32 to vector<10x320xf32>
    %218 = arith.maximumf %216, %217 : vector<10x320xf32>
    %219 = arith.truncf %218 : vector<10x320xf32> to vector<10x320xbf16>
    %c4_111 = arith.constant 4 : index
    %c0_112 = arith.constant 0 : index
    %220 = vector.load %arg9[%c4_111, %c0_112] : memref<6x64xf32, #tpu.memory_space<vmem>>, vector<1x64xf32>
    %c5_113 = arith.constant 5 : index
    %c0_114 = arith.constant 0 : index
    %221 = vector.load %arg9[%c5_113, %c0_114] : memref<6x64xf32, #tpu.memory_space<vmem>>, vector<1x64xf32>
    %cst_115 = arith.constant 0.000000e+00 : f32
    %222 = vector.broadcast %cst_115 : f32 to vector<6x192xf32>
    %c0_116 = arith.constant 0 : index
    %c0_117 = arith.constant 0 : index
    %c0_118 = arith.constant 0 : index
    %223 = vector.load %arg5[%c0_116, %c0_117, %c0_118] : memref<3x6x10xbf16, #tpu.memory_space<vmem>>, vector<1x6x10xbf16>
    %224 = vector.shape_cast %223 : vector<1x6x10xbf16> to vector<6x10xbf16>
    %cst_119 = arith.constant dense<0.000000e+00> : vector<6x320xf32>
    %225 = tpu.matmul %224, %219, %cst_119 {dimension_numbers = #tpu.dot_dimension_numbers<[1], [0], [0], [1], [0, 0, 1, 1], [], []>} : vector<6x10xbf16>, vector<10x320xbf16>, vector<6x320xf32> -> vector<6x320xf32>
    %226 = arith.truncf %225 : vector<6x320xf32> to vector<6x320xbf16>
    %c0_120 = arith.constant 0 : index
    %c0_121 = arith.constant 0 : index
    %c0_122 = arith.constant 0 : index
    %227 = vector.load %arg6[%c0_120, %c0_121, %c0_122] : memref<3x320x192xbf16, #tpu.memory_space<vmem>>, vector<1x320x192xbf16>
    %228 = vector.shape_cast %227 : vector<1x320x192xbf16> to vector<320x192xbf16>
    %cst_123 = arith.constant dense<0.000000e+00> : vector<6x192xf32>
    %229 = tpu.matmul %226, %228, %cst_123 {dimension_numbers = #tpu.dot_dimension_numbers<[1], [0], [0], [1], [0, 0, 1, 1], [], []>} : vector<6x320xbf16>, vector<320x192xbf16>, vector<6x192xf32> -> vector<6x192xf32>
    %230 = arith.addf %222, %229 : vector<6x192xf32>
    %c1_124 = arith.constant 1 : index
    %c0_125 = arith.constant 0 : index
    %c0_126 = arith.constant 0 : index
    %231 = vector.load %arg5[%c1_124, %c0_125, %c0_126] : memref<3x6x10xbf16, #tpu.memory_space<vmem>>, vector<1x6x10xbf16>
    %232 = vector.shape_cast %231 : vector<1x6x10xbf16> to vector<6x10xbf16>
    %cst_127 = arith.constant dense<0.000000e+00> : vector<6x320xf32>
    %233 = tpu.matmul %232, %219, %cst_127 {dimension_numbers = #tpu.dot_dimension_numbers<[1], [0], [0], [1], [0, 0, 1, 1], [], []>} : vector<6x10xbf16>, vector<10x320xbf16>, vector<6x320xf32> -> vector<6x320xf32>
    %234 = arith.truncf %233 : vector<6x320xf32> to vector<6x320xbf16>
    %c1_128 = arith.constant 1 : index
    %c0_129 = arith.constant 0 : index
    %c0_130 = arith.constant 0 : index
    %235 = vector.load %arg6[%c1_128, %c0_129, %c0_130] : memref<3x320x192xbf16, #tpu.memory_space<vmem>>, vector<1x320x192xbf16>
    %236 = vector.shape_cast %235 : vector<1x320x192xbf16> to vector<320x192xbf16>
    %cst_131 = arith.constant dense<0.000000e+00> : vector<6x192xf32>
    %237 = tpu.matmul %234, %236, %cst_131 {dimension_numbers = #tpu.dot_dimension_numbers<[1], [0], [0], [1], [0, 0, 1, 1], [], []>} : vector<6x320xbf16>, vector<320x192xbf16>, vector<6x192xf32> -> vector<6x192xf32>
    %238 = arith.addf %230, %237 : vector<6x192xf32>
    %c2_132 = arith.constant 2 : index
    %c0_133 = arith.constant 0 : index
    %c0_134 = arith.constant 0 : index
    %239 = vector.load %arg5[%c2_132, %c0_133, %c0_134] : memref<3x6x10xbf16, #tpu.memory_space<vmem>>, vector<1x6x10xbf16>
    %240 = vector.shape_cast %239 : vector<1x6x10xbf16> to vector<6x10xbf16>
    %cst_135 = arith.constant dense<0.000000e+00> : vector<6x320xf32>
    %241 = tpu.matmul %240, %219, %cst_135 {dimension_numbers = #tpu.dot_dimension_numbers<[1], [0], [0], [1], [0, 0, 1, 1], [], []>} : vector<6x10xbf16>, vector<10x320xbf16>, vector<6x320xf32> -> vector<6x320xf32>
    %242 = arith.truncf %241 : vector<6x320xf32> to vector<6x320xbf16>
    %c2_136 = arith.constant 2 : index
    %c0_137 = arith.constant 0 : index
    %c0_138 = arith.constant 0 : index
    %243 = vector.load %arg6[%c2_136, %c0_137, %c0_138] : memref<3x320x192xbf16, #tpu.memory_space<vmem>>, vector<1x320x192xbf16>
    %244 = vector.shape_cast %243 : vector<1x320x192xbf16> to vector<320x192xbf16>
    %cst_139 = arith.constant dense<0.000000e+00> : vector<6x192xf32>
    %245 = tpu.matmul %242, %244, %cst_139 {dimension_numbers = #tpu.dot_dimension_numbers<[1], [0], [0], [1], [0, 0, 1, 1], [], []>} : vector<6x320xbf16>, vector<320x192xbf16>, vector<6x192xf32> -> vector<6x192xf32>
    %246 = arith.addf %238, %245 : vector<6x192xf32>
    %cst_140 = arith.constant dense<0.000000e+00> : vector<192xf32>
    %247 = vector.multi_reduction <add>, %246, %cst_140 [0] : vector<6x192xf32> to vector<192xf32>
    %248 = vector.shape_cast %247 : vector<192xf32> to vector<1x192xf32>
    %249 = arith.mulf %246, %246 : vector<6x192xf32>
    %cst_141 = arith.constant dense<0.000000e+00> : vector<192xf32>
    %250 = vector.multi_reduction <add>, %249, %cst_141 [0] : vector<6x192xf32> to vector<192xf32>
    %251 = vector.shape_cast %250 : vector<192xf32> to vector<1x192xf32>
    %252 = vector.extract_strided_slice %248 {offsets = [0, 0], sizes = [1, 64], strides = [1, 1]} : vector<1x192xf32> to vector<1x64xf32>
    %253 = vector.extract_strided_slice %251 {offsets = [0, 0], sizes = [1, 64], strides = [1, 1]} : vector<1x192xf32> to vector<1x64xf32>
    %254 = vector.extract_strided_slice %248 {offsets = [0, 64], sizes = [1, 64], strides = [1, 1]} : vector<1x192xf32> to vector<1x64xf32>
    %255 = arith.addf %252, %254 : vector<1x64xf32>
    %256 = vector.extract_strided_slice %251 {offsets = [0, 64], sizes = [1, 64], strides = [1, 1]} : vector<1x192xf32> to vector<1x64xf32>
    %257 = arith.addf %253, %256 : vector<1x64xf32>
    %258 = vector.extract_strided_slice %248 {offsets = [0, 128], sizes = [1, 64], strides = [1, 1]} : vector<1x192xf32> to vector<1x64xf32>
    %259 = arith.addf %255, %258 : vector<1x64xf32>
    %260 = vector.extract_strided_slice %251 {offsets = [0, 128], sizes = [1, 64], strides = [1, 1]} : vector<1x192xf32> to vector<1x64xf32>
    %261 = arith.addf %257, %260 : vector<1x64xf32>
    %cst_142 = arith.constant 1.800000e+01 : f32
    %262 = vector.broadcast %cst_142 : f32 to vector<1x64xf32>
    %263 = arith.divf %259, %262 : vector<1x64xf32>
    %cst_143 = arith.constant 1.800000e+01 : f32
    %264 = vector.broadcast %cst_143 : f32 to vector<1x64xf32>
    %265 = arith.divf %261, %264 : vector<1x64xf32>
    %266 = arith.mulf %263, %263 : vector<1x64xf32>
    %267 = arith.subf %265, %266 : vector<1x64xf32>
    %cst_144 = arith.constant 9.99999974E-6 : f32
    %268 = vector.broadcast %cst_144 : f32 to vector<1x64xf32>
    %269 = arith.addf %267, %268 : vector<1x64xf32>
    %270 = math.rsqrt %269 : vector<1x64xf32>
    %271 = arith.mulf %220, %270 : vector<1x64xf32>
    %272 = arith.mulf %263, %271 : vector<1x64xf32>
    %273 = arith.subf %221, %272 : vector<1x64xf32>
    %274 = tpu.concatenate %271, %271, %271 in 1 : vector<1x64xf32>, vector<1x64xf32>, vector<1x64xf32> -> vector<1x192xf32>
    %275 = tpu.concatenate %273, %273, %273 in 1 : vector<1x64xf32>, vector<1x64xf32>, vector<1x64xf32> -> vector<1x192xf32>
    %276 = vector.broadcast %274 : vector<1x192xf32> to vector<6x192xf32>
    %277 = arith.mulf %246, %276 : vector<6x192xf32>
    %278 = vector.broadcast %275 : vector<1x192xf32> to vector<6x192xf32>
    %279 = arith.addf %277, %278 : vector<6x192xf32>
    %cst_145 = arith.constant 0.000000e+00 : f32
    %280 = vector.broadcast %cst_145 : f32 to vector<6x192xf32>
    %281 = arith.maximumf %279, %280 : vector<6x192xf32>
    %282 = arith.truncf %281 : vector<6x192xf32> to vector<6x192xbf16>
    %cst_146 = arith.constant 0.000000e+00 : f32
    %283 = vector.broadcast %cst_146 : f32 to vector<2x576xf32>
    %c0_147 = arith.constant 0 : index
    %c0_148 = arith.constant 0 : index
    %c0_149 = arith.constant 0 : index
    %284 = vector.load %arg7[%c0_147, %c0_148, %c0_149] : memref<3x2x6xbf16, #tpu.memory_space<vmem>>, vector<1x2x6xbf16>
    %285 = vector.shape_cast %284 : vector<1x2x6xbf16> to vector<2x6xbf16>
    %cst_150 = arith.constant dense<0.000000e+00> : vector<2x192xf32>
    %286 = tpu.matmul %285, %282, %cst_150 {dimension_numbers = #tpu.dot_dimension_numbers<[1], [0], [0], [1], [0, 0, 1, 1], [], []>} : vector<2x6xbf16>, vector<6x192xbf16>, vector<2x192xf32> -> vector<2x192xf32>
    %287 = arith.truncf %286 : vector<2x192xf32> to vector<2x192xbf16>
    %c0_151 = arith.constant 0 : index
    %c0_152 = arith.constant 0 : index
    %c0_153 = arith.constant 0 : index
    %288 = vector.load %arg8[%c0_151, %c0_152, %c0_153] : memref<3x192x576xbf16, #tpu.memory_space<vmem>>, vector<1x192x576xbf16>
    %289 = vector.shape_cast %288 : vector<1x192x576xbf16> to vector<192x576xbf16>
    %cst_154 = arith.constant dense<0.000000e+00> : vector<2x576xf32>
    %290 = tpu.matmul %287, %289, %cst_154 {dimension_numbers = #tpu.dot_dimension_numbers<[1], [0], [0], [1], [0, 0, 1, 1], [], []>} : vector<2x192xbf16>, vector<192x576xbf16>, vector<2x576xf32> -> vector<2x576xf32>
    %291 = arith.addf %283, %290 : vector<2x576xf32>
    %c1_155 = arith.constant 1 : index
    %c0_156 = arith.constant 0 : index
    %c0_157 = arith.constant 0 : index
    %292 = vector.load %arg7[%c1_155, %c0_156, %c0_157] : memref<3x2x6xbf16, #tpu.memory_space<vmem>>, vector<1x2x6xbf16>
    %293 = vector.shape_cast %292 : vector<1x2x6xbf16> to vector<2x6xbf16>
    %cst_158 = arith.constant dense<0.000000e+00> : vector<2x192xf32>
    %294 = tpu.matmul %293, %282, %cst_158 {dimension_numbers = #tpu.dot_dimension_numbers<[1], [0], [0], [1], [0, 0, 1, 1], [], []>} : vector<2x6xbf16>, vector<6x192xbf16>, vector<2x192xf32> -> vector<2x192xf32>
    %295 = arith.truncf %294 : vector<2x192xf32> to vector<2x192xbf16>
    %c1_159 = arith.constant 1 : index
    %c0_160 = arith.constant 0 : index
    %c0_161 = arith.constant 0 : index
    %296 = vector.load %arg8[%c1_159, %c0_160, %c0_161] : memref<3x192x576xbf16, #tpu.memory_space<vmem>>, vector<1x192x576xbf16>
    %297 = vector.shape_cast %296 : vector<1x192x576xbf16> to vector<192x576xbf16>
    %cst_162 = arith.constant dense<0.000000e+00> : vector<2x576xf32>
    %298 = tpu.matmul %295, %297, %cst_162 {dimension_numbers = #tpu.dot_dimension_numbers<[1], [0], [0], [1], [0, 0, 1, 1], [], []>} : vector<2x192xbf16>, vector<192x576xbf16>, vector<2x576xf32> -> vector<2x576xf32>
    %299 = arith.addf %291, %298 : vector<2x576xf32>
    %c2_163 = arith.constant 2 : index
    %c0_164 = arith.constant 0 : index
    %c0_165 = arith.constant 0 : index
    %300 = vector.load %arg7[%c2_163, %c0_164, %c0_165] : memref<3x2x6xbf16, #tpu.memory_space<vmem>>, vector<1x2x6xbf16>
    %301 = vector.shape_cast %300 : vector<1x2x6xbf16> to vector<2x6xbf16>
    %cst_166 = arith.constant dense<0.000000e+00> : vector<2x192xf32>
    %302 = tpu.matmul %301, %282, %cst_166 {dimension_numbers = #tpu.dot_dimension_numbers<[1], [0], [0], [1], [0, 0, 1, 1], [], []>} : vector<2x6xbf16>, vector<6x192xbf16>, vector<2x192xf32> -> vector<2x192xf32>
    %303 = arith.truncf %302 : vector<2x192xf32> to vector<2x192xbf16>
    %c2_167 = arith.constant 2 : index
    %c0_168 = arith.constant 0 : index
    %c0_169 = arith.constant 0 : index
    %304 = vector.load %arg8[%c2_167, %c0_168, %c0_169] : memref<3x192x576xbf16, #tpu.memory_space<vmem>>, vector<1x192x576xbf16>
    %305 = vector.shape_cast %304 : vector<1x192x576xbf16> to vector<192x576xbf16>
    %cst_170 = arith.constant dense<0.000000e+00> : vector<2x576xf32>
    %306 = tpu.matmul %303, %305, %cst_170 {dimension_numbers = #tpu.dot_dimension_numbers<[1], [0], [0], [1], [0, 0, 1, 1], [], []>} : vector<2x192xbf16>, vector<192x576xbf16>, vector<2x576xf32> -> vector<2x576xf32>
    %307 = arith.addf %299, %306 : vector<2x576xf32>
    %c0_171 = arith.constant 0 : index
    %c0_172 = arith.constant 0 : index
    %308 = vector.load %arg10[%c0_171, %c0_172] : memref<2x576xf32, #tpu.memory_space<vmem>>, vector<2x576xf32>
    tpu.vector_store %arg10[%c0_171, %c0_172], %307 {strides = array<i32>} : memref<2x576xf32, #tpu.memory_space<vmem>>, vector<2x576xf32>,
    return
  }
}

</mosaic_0001>

<bundles_post_ra>
// kernel: cnn_forward.1
= control target key start
LH: loop header
LB: loop body
LE: loop exit
PB: predicated region body
PF: predicated region fallthrough
CT: control target
= control target key end

     0   :  { %v13786_v7 = vmov 0   ;;  %vm97_vm0 = vcmask 1043456   ;;  %vm90_vm1 = vcmask 850944   ;;  %vm545_vm2 = vcmask 654336   ;;  %s17546_s0 = inlined_call_operand.vmem [shape: f32[104,208], index: 0, kind: input, shape index: {}]   ;;  %s17547_s1 = inlined_call_operand.vmem [shape: bf16[8,24,104], index: 1, kind: input, shape index: {}]   ;;  %s17548_s2 = inlined_call_operand.vmem [shape: bf16[8,208,384], index: 2, kind: input, shape index: {}]   ;;  %s17549_s3 = inlined_call_operand.vmem [shape: bf16[4,10,24], index: 3, kind: input, shape index: {}]   ;;  %s17550_s4 = inlined_call_operand.vmem [shape: bf16[4,384,320], index: 4, kind: input, shape index: {}]   ;;  %s17551_s5 = inlined_call_operand.vmem [shape: bf16[3,6,10], index: 5, kind: input, shape index: {}]   ;;  %s17552_s6 = inlined_call_operand.vmem [shape: bf16[3,320,192], index: 6, kind: input, shape index: {}]   ;;  %s17553_s7 = inlined_call_operand.vmem [shape: bf16[3,2,6], index: 7, kind: input, shape index: {}]   ;;  %s17554_s8 = inlined_call_operand.vmem [shape: bf16[3,192,576], index: 8, kind: input, shape index: {}]   ;;  %s17555_s9 = inlined_call_operand.vmem [shape: f32[6,64], index: 9, kind: input, shape index: {}]   ;;  %s17556_s10 = inlined_call_operand.hbm [shape: f32[2,576], index: 10, kind: output, shape index: {}]  }
   0x1   :  { %v38_v0 = vld [vmem:[%s17546_s0 + $0x8] sm:$0xff]  ;;  %v40_v1 = vld [vmem:[%s17546_s0 + $0x18] sm:$0xff]  ;;  %v37_v2 = vld [vmem:[%s17546_s0] sm:$0xff]  ;;  %261 = vmatprep.mubr.bf16.mxu1 %v13786_v7  ;;  %136 = vmatprep.mubr.bf16.mxu0 %v13786_v7 }
   0x2   :  { %v13858_v3 = vpack.c.bf16 %v40_v1, %v38_v0  ;;  %v39_v4 = vld [vmem:[%s17546_s0 + $0x10] sm:$0xff]  ;;  %v42_v5 = vld [vmem:[%s17546_s0 + $0x28] sm:$0xff]  ;;  %v44_v6 = vld [vmem:[%s17546_s0 + $0x38] sm:$0xff] }
   0x3   :  { %v13871_v8 = vpack.c.bf16 %v39_v4, %v37_v2  ;;  %v13873_v9 = vpack.c.bf16 %v44_v6, %v42_v5  ;;  %v41_v10 = vld [vmem:[%s17546_s0 + $0x20] sm:$0xff]  ;;  %v43_v11 = vld [vmem:[%s17546_s0 + $0x30] sm:$0xff]  ;;  %v46_v12 = vld [vmem:[%s17546_s0 + $0x48] sm:$0xff] }
   0x4   :  { %229 = vmatprep.subr.bf16.mxu1 %v13858_v3  ;;  %v48_v13 = vld [vmem:[%s17546_s0 + $0x58] sm:$0xff]  ;;  %104 = vmatprep.subr.bf16.mxu0 %v13858_v3  ;;  %v13890_v14 = vpack.c.bf16 %v43_v11, %v41_v10  ;;  %v45_v16 = vld [vmem:[%s17546_s0 + $0x40] sm:$0xff]  ;;  %v47_v17 = vld [vmem:[%s17546_s0 + $0x50] sm:$0xff] }
   0x5   :  { %230 = vmatpush1.bf16.msra.mxu1 %v13871_v8  ;;  %105 = vmatpush1.bf16.msra.mxu0 %v13871_v8  ;;  %v13894_v15 = vpack.c.bf16 %v48_v13, %v46_v12  ;;  %v50_v18 = vld [vmem:[%s17546_s0 + $0x68] sm:$0xff]  ;;  %v52_v19 = vld [vmem:[%s17546_s0 + $0x78] sm:$0xff]  ;;  %v13910_v20 = vpack.c.bf16 %v47_v17, %v45_v16  ;;  %v49_v21 = vld [vmem:[%s17546_s0 + $0x60] sm:$0xff] }
   0x6   :  { %231 = vmatprep.subr.bf16.mxu1 %v13873_v9  ;;  %106 = vmatprep.subr.bf16.mxu0 %v13873_v9  ;;  %v51_v22 = vld [vmem:[%s17546_s0 + $0x70] sm:$0xff]  ;;  %v13920_v23 = vpack.c.bf16 %v52_v19, %v50_v18  ;;  %v54_v24 = vld [vmem:[%s17546_s0 + $0x88] sm:$0xff]  ;;  %v56_v25 = vld [vmem:[%s17546_s0 + $0x98] sm:$0xff] }
   0x7   :  { %v53_v26 = vld [vmem:[%s17546_s0 + $0x80] sm:$0xff]  ;;  %v13933_v27 = vpack.c.bf16 %v51_v22, %v49_v21  ;;  %v55_v28 = vld [vmem:[%s17546_s0 + $0x90] sm:$0xff]  ;;  %v13940_v29 = vpack.c.bf16 %v56_v25, %v54_v24  ;;  %v58_v30 = vld [vmem:[%s17546_s0 + $0xa8] sm:$0xff] }
   0x8   :  { %v60_v31 = vld [vmem:[%s17546_s0 + $0xb8] sm:$0xff]  ;;  %v13950_v32 = vpack.c.bf16 %v55_v28, %v53_v26  ;;  %v57_v33 = vld [vmem:[%s17546_s0 + $0xa0] sm:$0xff]  ;;  %v59_v35 = vld [vmem:[%s17546_s0 + $0xb0] sm:$0xff] }
   0x9   :  { %232 = vmatpush1.bf16.msra.mxu1 %v13890_v14  ;;  %107 = vmatpush1.bf16.msra.mxu0 %v13890_v14  ;;  %v13957_v34 = vpack.c.bf16 %v60_v31, %v58_v30  ;;  %v61_v36 = vld [vmem:[%s17546_s0 + $0xc0] sm:$0xff]  ;;  %v62_v37 = vld [vmem:[%s17546_s0 + $0xc8] sm:$0xff]  ;;  %v13970_v38 = vpack.c.bf16 %v59_v35, %v57_v33  ;;  %v12512_v48 = vld [vmem:[%s17548_s2 + $0x150] ss:$12 sps:$4 sm:$0xff]  }
   0xa   :  { %233 = vmatprep.subr.bf16.mxu1 %v13894_v15  ;;  %108 = vmatprep.subr.bf16.mxu0 %v13894_v15  ;;  %v75_v39 = vpack.c.bf16 %v61_v36, %v61_v36  ;;  %v13974_v40 = vpack.c.bf16 %v62_v37, %v62_v37  ;;  %v12510_v42 = vld [vmem:[%s17548_s2 + $0x13c] ss:$12 sps:$4 sm:$0xff]   ;;  %v12504_v43 = vld [vmem:[%s17547_s1 + $0xc] sm:$0xff]   ;;  %v12506_v44 = vld [vmem:[%s17547_s1] sm:$0xff]  }
   0xb   :  { %v12508_v45 = vld [vmem:[%s17548_s2 + $0x138] ss:$12 sps:$4 sm:$0xff]   ;;  %v12511_v46 = vld [vmem:[%s17548_s2 + $0x140] ss:$12 sps:$4 sm:$0xff]   ;;  %v12505_v49 = vld [vmem:[%s17547_s1 + $0x14] ss:$0 sps:$4 sm:$0xff]  }
   0xc   :  { %v13979_v41 = vsel %vm97_vm0, %v75_v39, 0  ;;  %v12514_v47 = vld [vmem:[%s17548_s2 + $0x154] ss:$12 sps:$4 sm:$0xff]   ;;  %v12515_v50 = vld [vmem:[%s17548_s2 + $0x158] ss:$12 sps:$4 sm:$0xff]  }
   0xd   :  { %234 = vmatpush1.bf16.msra.mxu1 %v13910_v20  ;;  %109 = vmatpush1.bf16.msra.mxu0 %v13910_v20  ;;  %v12518_v51 = vld [vmem:[%s17548_s2 + $0x16c] ss:$12 sps:$4 sm:$0xff]   ;;  %v12507_v52 = vld [vmem:[%s17547_s1 + $0x8] ss:$0 sps:$4 sm:$0xff]   ;;  %v12519_v54 = vld [vmem:[%s17548_s2 + $0x170] ss:$12 sps:$4 sm:$0xff]  }
   0xe   :  { %235 = vmatprep.subr.bf16.mxu1 %v13920_v23  ;;  %110 = vmatprep.subr.bf16.mxu0 %v13920_v23  ;;  %v12516_v53 = vld [vmem:[%s17548_s2 + $0x168] ss:$12 sps:$4 sm:$0xff]   ;;  %v12522_v55 = vld [vmem:[%s17548_s2 + $0x184] ss:$12 sps:$4 sm:$0xff]   ;;  %v12520_v56 = vld [vmem:[%s17548_s2 + $0x180] ss:$12 sps:$4 sm:$0xff]  }
   0xf   :  { %v12523_v57 = vld [vmem:[%s17548_s2 + $0x188] ss:$12 sps:$4 sm:$0xff]   ;;  %v12524_v59 = vld [vmem:[%s17548_s2 + $0x198] ss:$12 sps:$4 sm:$0xff]   ;;  %v12527_v60 = vld [vmem:[%s17548_s2 + $0x1a0] ss:$12 sps:$4 sm:$0xff]  }
  0x10   :  { %v12526_v58 = vld [vmem:[%s17548_s2 + $0x19c] ss:$12 sps:$4 sm:$0xff]   ;;  %v12530_v61 = vld [vmem:[%s17548_s2 + $0x1b4] ss:$12 sps:$4 sm:$0xff]   ;;  %v12531_v63 = vld [vmem:[%s17548_s2 + $0x1b8] ss:$12 sps:$4 sm:$0xff]  }
  0x11   :  { %236 = vmatpush1.bf16.msra.mxu1 %v13933_v27  ;;  %111 = vmatpush1.bf16.msra.mxu0 %v13933_v27  ;;  %v12528_v62 = vld [vmem:[%s17548_s2 + $0x1b0] ss:$12 sps:$4 sm:$0xff]   ;;  %v12534_v0 = vld [vmem:[%s17548_s2 + $0x1cc] ss:$12 sps:$4 sm:$0xff]   ;;  %v12532_v1 = vld [vmem:[%s17548_s2 + $0x1c8] ss:$12 sps:$4 sm:$0xff]  }
  0x12   :  { %237 = vmatprep.subr.bf16.mxu1 %v13940_v29  ;;  %112 = vmatprep.subr.bf16.mxu0 %v13940_v29  ;;  %v12535_v2 = vld [vmem:[%s17548_s2 + $0x1d0] ss:$12 sps:$4 sm:$0xff]   ;;  %v12536_v5 = vld [vmem:[%s17548_s2 + $0x1e0] ss:$12 sps:$4 sm:$0xff]   ;;  %v12539_v6 = vld [vmem:[%s17548_s2 + $0x1e8] ss:$12 sps:$4 sm:$0xff]  }
  0x13   :  { %v12538_v4 = vld [vmem:[%s17548_s2 + $0x1e4] ss:$12 sps:$4 sm:$0xff]   ;;  %v12542_v10 = vld [vmem:[%s17548_s2 + $0x1fc] ss:$12 sps:$4 sm:$0xff]   ;;  %v12543_v12 = vld [vmem:[%s17548_s2 + $0x200] ss:$12 sps:$4 sm:$0xff]  }
  0x14   :  { %v12540_v11 = vld [vmem:[%s17548_s2 + $0x1f8] ss:$12 sps:$4 sm:$0xff]   ;;  %v12546_v13 = vld [vmem:[%s17548_s2 + $0x214] ss:$12 sps:$4 sm:$0xff]   ;;  %v12544_v16 = vld [vmem:[%s17548_s2 + $0x210] ss:$12 sps:$4 sm:$0xff]  }
  0x15   :  { %238 = vmatpush1.bf16.msra.mxu1 %v13950_v32  ;;  %113 = vmatpush1.bf16.msra.mxu0 %v13950_v32  ;;  %v12547_v17 = vld [vmem:[%s17548_s2 + $0x218] ss:$12 sps:$4 sm:$0xff]   ;;  %v12548_v19 = vld [vmem:[%s17548_s2 + $0x228] ss:$12 sps:$4 sm:$0xff]   ;;  %v12551_v21 = vld [vmem:[%s17548_s2 + $0x230] ss:$12 sps:$4 sm:$0xff]  }
  0x16   :  { %239 = vmatprep.subr.bf16.mxu1 %v13957_v34  ;;  %114 = vmatprep.subr.bf16.mxu0 %v13957_v34  ;;  %v12550_v18 = vld [vmem:[%s17548_s2 + $0x22c] ss:$12 sps:$4 sm:$0xff]   ;;  %v12554_v22 = vld [vmem:[%s17548_s2 + $0x244] ss:$12 sps:$4 sm:$0xff]   ;;  %v12555_v25 = vld [vmem:[%s17548_s2 + $0x248] ss:$12 sps:$4 sm:$0xff]  }
  0x17   :  { %v12552_v24 = vld [vmem:[%s17548_s2 + $0x240] ss:$12 sps:$4 sm:$0xff]   ;;  %v12558_v26 = vld [vmem:[%s17548_s2 + $0x25c] ss:$12 sps:$4 sm:$0xff]   ;;  %v12556_v28 = vld [vmem:[%s17548_s2 + $0x258] ss:$12 sps:$4 sm:$0xff]  }
  0x18   :  { %v12559_v30 = vld [vmem:[%s17548_s2 + $0x260] ss:$12 sps:$4 sm:$0xff]   ;;  %v12562_v31 = vld [vmem:[%s17548_s2 + $0x4] ss:$12 sps:$4 sm:$0xff]  }
  0x19   :  { %240 = vmatpush1.bf16.msra.mxu1 %v13970_v38  ;;  %115 = vmatpush1.bf16.msra.mxu0 %v13970_v38 }
  0x1a   :  { %10108 = vmatprep.subr.msk.bf16.mxu1 %vm97_vm0, %v13974_v40  ;;  %10100 = vmatprep.subr.msk.bf16.mxu0 %vm97_vm0, %v13974_v40 }
  0x1d   :  { %242 = vmatpush1.bf16.msra.mxu1 %v13979_v41  ;;  %117 = vmatpush1.bf16.msra.mxu0 %v13979_v41 }
  0x1e   :  { %552 = vmatprep.subr.bf16.mxu0 %v12510_v42  ;;  %603 = vmatprep.subr.bf16.mxu1 %v13786_v7  ;;  %v12560_v42 = vld [vmem:[%s17548_s2] ss:$12 sps:$4 sm:$0xff]  }
  0x20   :  { %10109 = vmatmul.mubr.msk.bf16.vlgmr.msra.gmra.mrb[0].mxu1 %vm90_vm1, %v12504_v43  ;;  %10101 = vmatmul.mubr.msk.bf16.vlgmr.msra.gmra.mrb[0].mxu0 %vm90_vm1, %v12506_v44  ;;  %v12563_v43 = vld [vmem:[%s17548_s2 + $0x8] ss:$12 sps:$4 sm:$0xff]  }
  0x21   :  { %271 = vmatprep.mubr.bf16.mxu1 %v13786_v7  ;;  %146 = vmatprep.mubr.bf16.mxu0 %v13786_v7 }
  0x22   :  { %553 = vmatpush1.bf16.msra.mxu0 %v12508_v45  ;;  %604 = vmatpush1.bf16.msra.mxu1 %v12511_v46 }
  0x23   :  { %554 = vmatprep.subr.bf16.mxu0 %v12514_v47  ;;  %605 = vmatprep.subr.bf16.mxu1 %v13786_v7  ;;  %v12566_v47 = vld [vmem:[%s17548_s2 + $0x1c] ss:$12 sps:$4 sm:$0xff]  }
  0x26   :  { %555 = vmatpush1.bf16.msra.mxu0 %v12512_v48  ;;  %606 = vmatpush1.bf16.msra.mxu1 %v12515_v50 }
  0x27   :  { %556 = vmatprep.subr.bf16.mxu0 %v12518_v51  ;;  %607 = vmatprep.subr.bf16.mxu1 %v13786_v7 }
  0x28   :  { %10110 = vmatmul.mubr.msk.bf16.gmra.mrb[4].mxu1 %vm90_vm1, %v12505_v49  ;;  %10102 = vmatmul.mubr.msk.bf16.gmra.mrb[4].mxu0 %vm90_vm1, %v12507_v52  ;;  %v12564_v52 = vld [vmem:[%s17548_s2 + $0x18] ss:$12 sps:$4 sm:$0xff]  }
  0x2a   :  { %557 = vmatpush1.bf16.msra.mxu0 %v12516_v53  ;;  %608 = vmatpush1.bf16.msra.mxu1 %v12519_v54  ;;  %v12567_v53 = vld [vmem:[%s17548_s2 + $0x20] ss:$12 sps:$4 sm:$0xff]  }
  0x2b   :  { %558 = vmatprep.subr.bf16.mxu0 %v12522_v55  ;;  %609 = vmatprep.subr.bf16.mxu1 %v13786_v7  ;;  %v12570_v54 = vld [vmem:[%s17548_s2 + $0x34] ss:$12 sps:$4 sm:$0xff]  }
  0x2e   :  { %559 = vmatpush1.bf16.msra.mxu0 %v12520_v56  ;;  %610 = vmatpush1.bf16.msra.mxu1 %v12523_v57 }
  0x2f   :  { %560 = vmatprep.subr.bf16.mxu0 %v12526_v58  ;;  %611 = vmatprep.subr.bf16.mxu1 %v13786_v7 }
  0x32   :  { %561 = vmatpush1.bf16.msra.mxu0 %v12524_v59  ;;  %612 = vmatpush1.bf16.msra.mxu1 %v12527_v60  ;;  %v12568_v59 = vld [vmem:[%s17548_s2 + $0x30] ss:$12 sps:$4 sm:$0xff]   ;;  %v12571_v60 = vld [vmem:[%s17548_s2 + $0x38] ss:$12 sps:$4 sm:$0xff]  }
  0x33   :  { %562 = vmatprep.subr.bf16.mxu0 %v12530_v61  ;;  %613 = vmatprep.subr.bf16.mxu1 %v13786_v7 }
  0x36   :  { %563 = vmatpush1.bf16.msra.mxu0 %v12528_v62  ;;  %614 = vmatpush1.bf16.msra.mxu1 %v12531_v63 }
  0x37   :  { %564 = vmatprep.subr.bf16.mxu0 %v12534_v0  ;;  %615 = vmatprep.subr.bf16.mxu1 %v13786_v7  ;;  %v12574_v0 = vld [vmem:[%s17548_s2 + $0x4c] ss:$12 sps:$4 sm:$0xff]  }
  0x3a   :  { %565 = vmatpush1.bf16.msra.mxu0 %v12532_v1  ;;  %616 = vmatpush1.bf16.msra.mxu1 %v12535_v2 }
  0x3b   :  { %566 = vmatprep.subr.bf16.mxu0 %v12538_v4  ;;  %617 = vmatprep.subr.bf16.mxu1 %v13786_v7 }
  0x3e   :  { %567 = vmatpush1.bf16.msra.mxu0 %v12536_v5  ;;  %618 = vmatpush1.bf16.msra.mxu1 %v12539_v6  ;;  %v12572_v5 = vld [vmem:[%s17548_s2 + $0x48] ss:$12 sps:$4 sm:$0xff]   ;;  %v12575_v6 = vld [vmem:[%s17548_s2 + $0x50] ss:$12 sps:$4 sm:$0xff]  }
  0x3f   :  { %568 = vmatprep.subr.bf16.mxu0 %v12542_v10  ;;  %619 = vmatprep.subr.bf16.mxu1 %v13786_v7  ;;  %v12578_v10 = vld [vmem:[%s17548_s2 + $0x64] ss:$12 sps:$4 sm:$0xff]  }
  0x42   :  { %569 = vmatpush1.bf16.msra.mxu0 %v12540_v11  ;;  %620 = vmatpush1.bf16.msra.mxu1 %v12543_v12  ;;  %v12576_v11 = vld [vmem:[%s17548_s2 + $0x60] ss:$12 sps:$4 sm:$0xff]   ;;  %v12579_v12 = vld [vmem:[%s17548_s2 + $0x68] ss:$12 sps:$4 sm:$0xff]  }
  0x43   :  { %570 = vmatprep.subr.bf16.mxu0 %v12546_v13  ;;  %621 = vmatprep.subr.bf16.mxu1 %v13786_v7  ;;  %v12582_v13 = vld [vmem:[%s17548_s2 + $0x7c] ss:$12 sps:$4 sm:$0xff]  }
  0x46   :  { %571 = vmatpush1.bf16.msra.mxu0 %v12544_v16  ;;  %622 = vmatpush1.bf16.msra.mxu1 %v12547_v17  ;;  %v12580_v16 = vld [vmem:[%s17548_s2 + $0x78] ss:$12 sps:$4 sm:$0xff]   ;;  %v12583_v17 = vld [vmem:[%s17548_s2 + $0x80] ss:$12 sps:$4 sm:$0xff]  }
  0x47   :  { %572 = vmatprep.subr.bf16.mxu0 %v12550_v18  ;;  %623 = vmatprep.subr.bf16.mxu1 %v13786_v7  ;;  %v12586_v18 = vld [vmem:[%s17548_s2 + $0x94] ss:$12 sps:$4 sm:$0xff]  }
  0x4a   :  { %573 = vmatpush1.bf16.msra.mxu0 %v12548_v19  ;;  %624 = vmatpush1.bf16.msra.mxu1 %v12551_v21  ;;  %v12584_v19 = vld [vmem:[%s17548_s2 + $0x90] ss:$12 sps:$4 sm:$0xff]   ;;  %v12587_v21 = vld [vmem:[%s17548_s2 + $0x98] ss:$12 sps:$4 sm:$0xff]  }
  0x4b   :  { %574 = vmatprep.subr.bf16.mxu0 %v12554_v22  ;;  %625 = vmatprep.subr.bf16.mxu1 %v13786_v7  ;;  %v12590_v22 = vld [vmem:[%s17548_s2 + $0xac] ss:$12 sps:$4 sm:$0xff]  }
  0x4e   :  { %575 = vmatpush1.bf16.msra.mxu0 %v12552_v24  ;;  %626 = vmatpush1.bf16.msra.mxu1 %v12555_v25  ;;  %v12588_v24 = vld [vmem:[%s17548_s2 + $0xa8] ss:$12 sps:$4 sm:$0xff]   ;;  %v12591_v25 = vld [vmem:[%s17548_s2 + $0xb0] ss:$12 sps:$4 sm:$0xff]  }
  0x4f   :  { %627 = vmatprep.subr.bf16.mxu1 %v13786_v7  ;;  %576 = vmatprep.subr.bf16.mxu0 %v12558_v26  ;;  %v12594_v26 = vld [vmem:[%s17548_s2 + $0xc4] ss:$12 sps:$4 sm:$0xff]  }
  0x52   :  { %577 = vmatpush1.bf16.msra.mxu0 %v12556_v28  ;;  %628 = vmatpush1.bf16.msra.mxu1 %v12559_v30  ;;  %v12592_v28 = vld [vmem:[%s17548_s2 + $0xc0] ss:$12 sps:$4 sm:$0xff]   ;;  %v12595_v30 = vld [vmem:[%s17548_s2 + $0xc8] ss:$12 sps:$4 sm:$0xff]  }
  0x53   :  { %916 = vmatprep.subr.bf16.mxu1 %v13786_v7  ;;  %865 = vmatprep.subr.bf16.mxu0 %v12562_v31  ;;  %v12598_v31 = vld [vmem:[%s17548_s2 + $0xdc] ss:$12 sps:$4 sm:$0xff]  }
  0xf3   :  { %v263_v33 = vpop.f32.mrb[0].mxu1  ;;  %v138_v35 = vpop.f32.mrb[0].mxu0 }
  0xf4   :  { %v265_v36 = vpop.f32.mrb[1].mxu1  ;;  %v140_v37 = vpop.f32.mrb[1].mxu0 }
  0xf5   :  { %v267_v39 = vpop.f32.mrb[2].mxu1  ;;  %v142_v44 = vpop.f32.mrb[2].mxu0 }
  0xf6   :  { %v280_v45 = vpack.c.bf16 %v267_v39, %v263_v33  ;;  %v269_v46 = vpop.f32.mrb[3].mxu1  ;;  %v14149_v48 = vpack.c.bf16 %v142_v44, %v138_v35  ;;  %v144_v49 = vpop.f32.mrb[3].mxu0  ;;  %v12596_v33 = vld [vmem:[%s17548_s2 + $0xd8] ss:$12 sps:$4 sm:$0xff]   ;;  %v12599_v35 = vld [vmem:[%s17548_s2 + $0xe0] ss:$12 sps:$4 sm:$0xff]  }
  0xf7   :  { %v281_v50 = vpack.c.bf16 %v269_v46, %v265_v36  ;;  %v156_v51 = vpack.c.bf16 %v144_v49, %v140_v37  ;;  %v12602_v36 = vld [vmem:[%s17548_s2 + $0xf4] ss:$12 sps:$4 sm:$0xff]   ;;  %v12600_v37 = vld [vmem:[%s17548_s2 + $0xf0] ss:$12 sps:$4 sm:$0xff]   ;;  %v12603_v39 = vld [vmem:[%s17548_s2 + $0xf8] ss:$12 sps:$4 sm:$0xff]  }
  0xf8   :  { %v12607_v44 = vld [vmem:[%s17548_s2 + $0x110] ss:$12 sps:$4 sm:$0xff]   ;;  %v12608_v46 = vld [vmem:[%s17548_s2 + $0x120] ss:$12 sps:$4 sm:$0xff]  }
  0xf9   :  { %10202 = vmatprep.mubr.msk.bf16.mxu0 %vm545_vm2, %v281_v50  ;;  %10204 = vmatprep.mubr.msk.bf16.mxu1 %vm545_vm2, %v281_v50  ;;  %v12617_v50 = vld [vmem:[%s17548_s2 + $0x278] ss:$12 sps:$4 sm:$0xff]  }
  0xfa   :  { %585 = vmatmul.mubr.bf16.vlgmr.msra.gmra.mrb[8].mxu0 %v280_v45  ;;  %636 = vmatmul.mubr.bf16.vlgmr.msra.gmra.mrb[8].mxu1 %v280_v45  ;;  %v12610_v45 = vld [vmem:[%s17548_s2 + $0x124] ss:$12 sps:$4 sm:$0xff]  }
  0xfb   :  { %866 = vmatpush1.bf16.msra.mxu0 %v12560_v42  ;;  %917 = vmatpush1.bf16.msra.mxu1 %v12563_v43  ;;  %v273_v55 = vpop.f32.mrb[4].mxu1  ;;  %v14162_v56 = vpop.f32.mrb[4].mxu0  ;;  %v12606_v42 = vld [vmem:[%s17548_s2 + $0x10c] ss:$12 sps:$4 sm:$0xff]   ;;  %v12604_v43 = vld [vmem:[%s17548_s2 + $0x108] ss:$12 sps:$4 sm:$0xff]  }
  0xfc   :  { %867 = vmatprep.subr.bf16.mxu0 %v12566_v47  ;;  %918 = vmatprep.subr.bf16.mxu1 %v13786_v7  ;;  %v275_v57 = vpop.f32.mrb[5].mxu1  ;;  %v14165_v58 = vpop.f32.mrb[5].mxu0  ;;  %v282_v1 = vpack.c.bf16 %v273_v55, %v273_v55  ;;  %v12611_v47 = vld [vmem:[%s17548_s2 + $0x128] ss:$12 sps:$4 sm:$0xff]   ;;  %v12637_v55 = vld [vmem:[%s17548_s2 + $0x2f0] ss:$12 sps:$4 sm:$0xff]  }
  0xfd   :  { %v283_v61 = vpack.c.bf16 %v275_v57, %v275_v57  ;;  %v277_v62 = vpop.f32.mrb[6].mxu1  ;;  %v152_v63 = vpop.f32.mrb[6].mxu0  ;;  %v158_v49 = vpack.c.bf16 %v14165_v58, %v14165_v58  ;;  %v12641_v57 = vld [vmem:[%s17548_s2 + $0x308] ss:$12 sps:$4 sm:$0xff]   ;;  %v12612_v58 = vld [vmem:[%s17547_s1 + $0x18] sm:$0xff]  }
  0xfe   :  { %v278_v2 = vpop.f32.mrb[7].mxu1  ;;  %v153_v4 = vpop.f32.mrb[7].mxu0  ;;  %v12618_v62 = vld [vmem:[%s17548_s2 + $0x288] ss:$12 sps:$4 sm:$0xff]   ;;  %v12624_v63 = vld [vmem:[%s17548_s2 + $0x2a4] ss:$12 sps:$4 sm:$0xff]  }
  0xff   :  { %868 = vmatpush1.bf16.msra.mxu0 %v12564_v52  ;;  %919 = vmatpush1.bf16.msra.mxu1 %v12567_v53  ;;  %v157_v52 = vpack.c.bf16 %v14162_v56, %v14162_v56  ;;  %v12629_v53 = vld [vmem:[%s17548_s2 + $0x2c0] ss:$12 sps:$4 sm:$0xff]   ;;  %v12628_v4 = vld [vmem:[%s17548_s2 + $0x2bc] ss:$12 sps:$4 sm:$0xff]  }
 0x100   :  { %869 = vmatprep.subr.bf16.mxu0 %v12570_v54  ;;  %920 = vmatprep.subr.bf16.mxu1 %v13786_v7  ;;  %v12633_v54 = vld [vmem:[%s17548_s2 + $0x2d8] ss:$12 sps:$4 sm:$0xff]   ;;  %v12616_v56 = vld [vmem:[%s17548_s2 + $0x274] ss:$12 sps:$4 sm:$0xff]  }
 0x101   :  { %10203 = vmatprep.mubr.msk.bf16.mxu0 %vm545_vm2, %v283_v61  ;;  %10205 = vmatprep.mubr.msk.bf16.mxu1 %vm545_vm2, %v283_v61  ;;  %v12645_v61 = vld [vmem:[%s17548_s2 + $0x320] ss:$12 sps:$4 sm:$0xff]  }
 0x102   :  { %595 = vmatmul.mubr.bf16.gmra.mrb[12].mxu0 %v282_v1  ;;  %644 = vmatmul.mubr.bf16.gmra.mrb[12].mxu1 %v282_v1  ;;  %v12613_v1 = vld [vmem:[%s17547_s1 + $0x20] ss:$0 sps:$4 sm:$0xff]  }
 0x103   :  { %870 = vmatpush1.bf16.msra.mxu0 %v12568_v59  ;;  %921 = vmatpush1.bf16.msra.mxu1 %v12571_v60  ;;  %v12614_v59 = vld [vmem:[%s17548_s2 + $0x270] ss:$12 sps:$4 sm:$0xff]   ;;  %v12620_v60 = vld [vmem:[%s17548_s2 + $0x28c] ss:$12 sps:$4 sm:$0xff]  }
 0x104   :  { %871 = vmatprep.subr.bf16.mxu0 %v12574_v0  ;;  %922 = vmatprep.subr.bf16.mxu1 %v13786_v7  ;;  %v12649_v0 = vld [vmem:[%s17548_s2 + $0x338] ss:$12 sps:$4 sm:$0xff]   ;;  %v12622_v2 = vld [vmem:[%s17548_s2 + $0x2a0] ss:$12 sps:$4 sm:$0xff]  }
 0x105   :  { %10245 = vmatprep.mubr.msk.bf16.mxu0 %vm545_vm2, %v156_v51  ;;  %10247 = vmatprep.mubr.msk.bf16.mxu1 %vm545_vm2, %v156_v51  ;;  %v12621_v51 = vld [vmem:[%s17548_s2 + $0x290] ss:$12 sps:$4 sm:$0xff]  }
 0x107   :  { %872 = vmatpush1.bf16.msra.mxu0 %v12572_v5  ;;  %923 = vmatpush1.bf16.msra.mxu1 %v12575_v6  ;;  %v12653_v5 = vld [vmem:[%s17548_s2 + $0x350] ss:$12 sps:$4 sm:$0xff]   ;;  %v12626_v6 = vld [vmem:[%s17548_s2 + $0x2b8] ss:$12 sps:$4 sm:$0xff]  }
 0x108   :  { %873 = vmatprep.subr.bf16.mxu0 %v12578_v10  ;;  %924 = vmatprep.subr.bf16.mxu1 %v13786_v7  ;;  %v12632_v10 = vld [vmem:[%s17548_s2 + $0x2d4] ss:$12 sps:$4 sm:$0xff]  }
 0x10b   :  { %874 = vmatpush1.bf16.msra.mxu0 %v12576_v11  ;;  %925 = vmatpush1.bf16.msra.mxu1 %v12579_v12  ;;  %v12657_v11 = vld [vmem:[%s17548_s2 + $0x368] ss:$12 sps:$4 sm:$0xff]   ;;  %v12630_v12 = vld [vmem:[%s17548_s2 + $0x2d0] ss:$12 sps:$4 sm:$0xff]  }
 0x10c   :  { %875 = vmatprep.subr.bf16.mxu0 %v12582_v13  ;;  %926 = vmatprep.subr.bf16.mxu1 %v13786_v7  ;;  %v12636_v13 = vld [vmem:[%s17548_s2 + $0x2ec] ss:$12 sps:$4 sm:$0xff]  }
 0x10f   :  { %876 = vmatpush1.bf16.msra.mxu0 %v12580_v16  ;;  %927 = vmatpush1.bf16.msra.mxu1 %v12583_v17  ;;  %v12661_v16 = vld [vmem:[%s17548_s2 + $0x380] ss:$12 sps:$4 sm:$0xff]   ;;  %v12634_v17 = vld [vmem:[%s17548_s2 + $0x2e8] ss:$12 sps:$4 sm:$0xff]  }
 0x110   :  { %877 = vmatprep.subr.bf16.mxu0 %v12586_v18  ;;  %928 = vmatprep.subr.bf16.mxu1 %v13786_v7  ;;  %v12640_v18 = vld [vmem:[%s17548_s2 + $0x304] ss:$12 sps:$4 sm:$0xff]  }
 0x113   :  { %878 = vmatpush1.bf16.msra.mxu0 %v12584_v19  ;;  %929 = vmatpush1.bf16.msra.mxu1 %v12587_v21  ;;  %v12638_v19 = vld [vmem:[%s17548_s2 + $0x300] ss:$12 sps:$4 sm:$0xff]   ;;  %v12644_v21 = vld [vmem:[%s17548_s2 + $0x31c] ss:$12 sps:$4 sm:$0xff]  }
 0x114   :  { %879 = vmatprep.subr.bf16.mxu0 %v12590_v22  ;;  %930 = vmatprep.subr.bf16.mxu1 %v13786_v7  ;;  %v12642_v22 = vld [vmem:[%s17548_s2 + $0x318] ss:$12 sps:$4 sm:$0xff]  }
 0x117   :  { %880 = vmatpush1.bf16.msra.mxu0 %v12588_v24  ;;  %931 = vmatpush1.bf16.msra.mxu1 %v12591_v25  ;;  %v12648_v24 = vld [vmem:[%s17548_s2 + $0x334] ss:$12 sps:$4 sm:$0xff]   ;;  %v12646_v25 = vld [vmem:[%s17548_s2 + $0x330] ss:$12 sps:$4 sm:$0xff]  }
 0x118   :  { %881 = vmatprep.subr.bf16.mxu0 %v12594_v26  ;;  %932 = vmatprep.subr.bf16.mxu1 %v13786_v7  ;;  %v12652_v26 = vld [vmem:[%s17548_s2 + $0x34c] ss:$12 sps:$4 sm:$0xff]  }
 0x11b   :  { %882 = vmatpush1.bf16.msra.mxu0 %v12592_v28  ;;  %933 = vmatpush1.bf16.msra.mxu1 %v12595_v30  ;;  %v12650_v28 = vld [vmem:[%s17548_s2 + $0x348] ss:$12 sps:$4 sm:$0xff]   ;;  %v12656_v30 = vld [vmem:[%s17548_s2 + $0x364] ss:$12 sps:$4 sm:$0xff]  }
 0x11c   :  { %883 = vmatprep.subr.bf16.mxu0 %v12598_v31  ;;  %934 = vmatprep.subr.bf16.mxu1 %v13786_v7  ;;  %v12654_v31 = vld [vmem:[%s17548_s2 + $0x360] ss:$12 sps:$4 sm:$0xff]  }
 0x11f   :  { %884 = vmatpush1.bf16.msra.mxu0 %v12596_v33  ;;  %935 = vmatpush1.bf16.msra.mxu1 %v12599_v35  ;;  %v12660_v33 = vld [vmem:[%s17548_s2 + $0x37c] ss:$12 sps:$4 sm:$0xff]   ;;  %v12658_v35 = vld [vmem:[%s17548_s2 + $0x378] ss:$12 sps:$4 sm:$0xff]  }
 0x120   :  { %885 = vmatprep.subr.bf16.mxu0 %v12602_v36  ;;  %936 = vmatprep.subr.bf16.mxu1 %v13786_v7  ;;  %v12664_v36 = vld [vmem:[%s17548_s2 + $0x394] ss:$12 sps:$4 sm:$0xff]  }
 0x123   :  { %886 = vmatpush1.bf16.msra.mxu0 %v12600_v37  ;;  %937 = vmatpush1.bf16.msra.mxu1 %v12603_v39  ;;  %v12665_v37 = vld [vmem:[%s17548_s2 + $0x398] ss:$12 sps:$4 sm:$0xff]   ;;  %v12662_v39 = vld [vmem:[%s17548_s2 + $0x390] ss:$12 sps:$4 sm:$0xff]  }
 0x124   :  { %887 = vmatprep.subr.bf16.mxu0 %v12606_v42  ;;  %938 = vmatprep.subr.bf16.mxu1 %v13786_v7 }
 0x127   :  { %888 = vmatpush1.bf16.msra.mxu0 %v12604_v43  ;;  %939 = vmatpush1.bf16.msra.mxu1 %v12607_v44 }
 0x128   :  { %889 = vmatprep.subr.bf16.mxu0 %v12610_v45  ;;  %940 = vmatprep.subr.bf16.mxu1 %v13786_v7 }
 0x12b   :  { %890 = vmatpush1.bf16.msra.mxu0 %v12608_v46  ;;  %941 = vmatpush1.bf16.msra.mxu1 %v12611_v47 }
 0x12c   :  { %982 = vmatprep.subr.bf16.mxu0 %v13858_v3  ;;  %1355 = vmatprep.subr.bf16.mxu1 %v13786_v7 }
 0x12e   :  { %898 = vmatmul.mubr.bf16.vlgmr.msra.gmra.mrb[8].mxu0 %v14149_v48  ;;  %949 = vmatmul.mubr.bf16.vlgmr.msra.gmra.mrb[8].mxu1 %v14149_v48  ;;  %v12625_v48 = vld [vmem:[%s17548_s2 + $0x2a8] ss:$12 sps:$4 sm:$0xff]  }
 0x12f   :  { %983 = vmatpush1.bf16.msra.mxu0 %v13871_v8  ;;  %10246 = vmatprep.mubr.msk.bf16.mxu0 %vm545_vm2, %v158_v49 }
 0x130   :  { %984 = vmatprep.subr.bf16.mxu0 %v13873_v9  ;;  %10248 = vmatprep.mubr.msk.bf16.mxu1 %vm545_vm2, %v158_v49 }
 0x131   :  { %1356 = vmatpush1.bf16.msra.mxu1 %v12617_v50 }
 0x132   :  { %1357 = vmatprep.subr.bf16.mxu1 %v13786_v7 }
 0x133   :  { %985 = vmatpush1.bf16.msra.mxu0 %v13890_v14 }
 0x134   :  { %986 = vmatprep.subr.bf16.mxu0 %v13894_v15 }
 0x135   :  { %1358 = vmatpush1.bf16.msra.mxu1 %v12621_v51 }
 0x136   :  { %908 = vmatmul.mubr.bf16.gmra.mrb[12].mxu0 %v157_v52  ;;  %957 = vmatmul.mubr.bf16.gmra.mrb[12].mxu1 %v157_v52 }
 0x137   :  { %987 = vmatpush1.bf16.msra.mxu0 %v13910_v20  ;;  %1014 = vmatprep.mubr.bf16.mxu0 %v13786_v7 }
 0x138   :  { %988 = vmatprep.subr.bf16.mxu0 %v13920_v23  ;;  %1359 = vmatprep.subr.bf16.mxu1 %v13786_v7 }
 0x139   :  { %1360 = vmatpush1.bf16.msra.mxu1 %v12625_v48 }
 0x13a   :  { %1361 = vmatprep.subr.bf16.mxu1 %v13786_v7 }
 0x13b   :  { %989 = vmatpush1.bf16.msra.mxu0 %v13933_v27 }
 0x13c   :  { %990 = vmatprep.subr.bf16.mxu0 %v13940_v29 }
 0x13d   :  { %1362 = vmatpush1.bf16.msra.mxu1 %v12629_v53 }
 0x13e   :  { %1363 = vmatprep.subr.bf16.mxu1 %v13786_v7 }
 0x13f   :  { %991 = vmatpush1.bf16.msra.mxu0 %v13950_v32 }
 0x140   :  { %992 = vmatprep.subr.bf16.mxu0 %v13957_v34 }
 0x141   :  { %1364 = vmatpush1.bf16.msra.mxu1 %v12633_v54 }
 0x142   :  { %1365 = vmatprep.subr.bf16.mxu1 %v13786_v7 }
 0x143   :  { %993 = vmatpush1.bf16.msra.mxu0 %v13970_v38 }
 0x144   :  { %10254 = vmatprep.subr.msk.bf16.mxu0 %vm97_vm0, %v13974_v40 }
 0x145   :  { %1366 = vmatpush1.bf16.msra.mxu1 %v12637_v55 }
 0x146   :  { %1367 = vmatprep.subr.bf16.mxu1 %v13786_v7 }
 0x147   :  { %995 = vmatpush1.bf16.msra.mxu0 %v13979_v41 }
 0x148   :  { %1304 = vmatprep.subr.bf16.mxu0 %v12616_v56 }
 0x149   :  { %1368 = vmatpush1.bf16.msra.mxu1 %v12641_v57 }
 0x14a   :  { %10255 = vmatmul.mubr.msk.bf16.vlgmr.msra.gmra.mrb[16].mxu0 %vm90_vm1, %v12612_v58  ;;  %1369 = vmatprep.subr.bf16.mxu1 %v13786_v7 }
 0x14b   :  { %1024 = vmatprep.mubr.bf16.mxu0 %v13786_v7  ;;  %1305 = vmatpush1.bf16.msra.mxu0 %v12614_v59 }
 0x14c   :  { %1306 = vmatprep.subr.bf16.mxu0 %v12620_v60 }
 0x14d   :  { %1370 = vmatpush1.bf16.msra.mxu1 %v12645_v61 }
 0x14e   :  { %1371 = vmatprep.subr.bf16.mxu1 %v13786_v7 }
 0x14f   :  { %1307 = vmatpush1.bf16.msra.mxu0 %v12618_v62 }
 0x150   :  { %1308 = vmatprep.subr.bf16.mxu0 %v12624_v63 }
 0x151   :  { %1372 = vmatpush1.bf16.msra.mxu1 %v12649_v0 }
 0x152   :  { %10256 = vmatmul.mubr.msk.bf16.gmra.mrb[20].mxu0 %vm90_vm1, %v12613_v1  ;;  %1373 = vmatprep.subr.bf16.mxu1 %v13786_v7 }
 0x153   :  { %1309 = vmatpush1.bf16.msra.mxu0 %v12622_v2 }
 0x154   :  { %1310 = vmatprep.subr.bf16.mxu0 %v12628_v4 }
 0x155   :  { %1374 = vmatpush1.bf16.msra.mxu1 %v12653_v5 }
 0x156   :  { %1375 = vmatprep.subr.bf16.mxu1 %v13786_v7 }
 0x157   :  { %1311 = vmatpush1.bf16.msra.mxu0 %v12626_v6 }
 0x158   :  { %1312 = vmatprep.subr.bf16.mxu0 %v12632_v10 }
 0x159   :  { %1376 = vmatpush1.bf16.msra.mxu1 %v12657_v11 }
 0x15a   :  { %1377 = vmatprep.subr.bf16.mxu1 %v13786_v7 }
 0x15b   :  { %1313 = vmatpush1.bf16.msra.mxu0 %v12630_v12 }
 0x15c   :  { %1314 = vmatprep.subr.bf16.mxu0 %v12636_v13 }
 0x15d   :  { %1378 = vmatpush1.bf16.msra.mxu1 %v12661_v16 }
 0x15e   :  { %1379 = vmatprep.subr.bf16.mxu1 %v13786_v7 }
 0x15f   :  { %1315 = vmatpush1.bf16.msra.mxu0 %v12634_v17 }
 0x160   :  { %1316 = vmatprep.subr.bf16.mxu0 %v12640_v18 }
 0x161   :  { %1380 = vmatpush1.bf16.msra.mxu1 %v12665_v37 }
 0x162   :  { %1430 = vmatprep.subr.bf16.mxu1 %v13858_v3 }
 0x163   :  { %1317 = vmatpush1.bf16.msra.mxu0 %v12638_v19 }
 0x164   :  { %1318 = vmatprep.subr.bf16.mxu0 %v12644_v21 }
 0x167   :  { %1319 = vmatpush1.bf16.msra.mxu0 %v12642_v22 }
 0x168   :  { %1320 = vmatprep.subr.bf16.mxu0 %v12648_v24 }
 0x16b   :  { %1321 = vmatpush1.bf16.msra.mxu0 %v12646_v25 }
 0x16c   :  { %1322 = vmatprep.subr.bf16.mxu0 %v12652_v26 }
 0x16f   :  { %1323 = vmatpush1.bf16.msra.mxu0 %v12650_v28 }
 0x170   :  { %1324 = vmatprep.subr.bf16.mxu0 %v12656_v30 }
 0x173   :  { %1325 = vmatpush1.bf16.msra.mxu0 %v12654_v31 }
 0x174   :  { %1326 = vmatprep.subr.bf16.mxu0 %v12660_v33 }
 0x177   :  { %1327 = vmatpush1.bf16.msra.mxu0 %v12658_v35 }
 0x178   :  { %1328 = vmatprep.subr.bf16.mxu0 %v12664_v36 }
 0x17b   :  { %1329 = vmatpush1.bf16.msra.mxu0 %v12662_v39 }
 0x17c   :  { %15 = vsyncpa [#allocation3], 0  ;;  %v12670_v42 = vld [vmem:[%s17548_s2 + $0x3ac] ss:$12 sps:$4 sm:$0xff]   ;;  %v12668_v50 = vld [vmem:[%s17548_s2 + $0x3a8] ss:$12 sps:$4 sm:$0xff]  }
 0x17d   :  { %1752 = vmatprep.subr.bf16.mxu0 %v12670_v42  ;;  %v12674_v51 = vld [vmem:[%s17548_s2 + $0x3c4] ss:$12 sps:$4 sm:$0xff]   ;;  %v12672_v55 = vld [vmem:[%s17548_s2 + $0x3c0] ss:$12 sps:$4 sm:$0xff]   ;;  %v12678_v58 = vld [vmem:[%s17548_s2 + $0x3dc] ss:$12 sps:$4 sm:$0xff]  }
 0x17e   :  { %v12676_v59 = vld [vmem:[%s17548_s2 + $0x3d8] ss:$12 sps:$4 sm:$0xff]   ;;  %v12682_v60 = vld [vmem:[%s17548_s2 + $0x3f4] ss:$12 sps:$4 sm:$0xff]   ;;  %v12680_v61 = vld [vmem:[%s17548_s2 + $0x3f0] ss:$12 sps:$4 sm:$0xff]  }
 0x17f   :  { %v12686_v62 = vld [vmem:[%s17548_s2 + $0x40c] ss:$12 sps:$4 sm:$0xff]   ;;  %v12684_v63 = vld [vmem:[%s17548_s2 + $0x408] ss:$12 sps:$4 sm:$0xff]   ;;  %v12690_v0 = vld [vmem:[%s17548_s2 + $0x424] ss:$12 sps:$4 sm:$0xff]  }
 0x180   :  { %v12688_v1 = vld [vmem:[%s17548_s2 + $0x420] ss:$12 sps:$4 sm:$0xff]   ;;  %v12694_v2 = vld [vmem:[%s17548_s2 + $0x43c] ss:$12 sps:$4 sm:$0xff]   ;;  %v12692_v4 = vld [vmem:[%s17548_s2 + $0x438] ss:$12 sps:$4 sm:$0xff]  }
 0x181   :  { %v12666_v5 = vld [vmem:[%s17547_s1 + $0x24] sm:$0xff]   ;;  %v12698_v6 = vld [vmem:[%s17548_s2 + $0x454] ss:$12 sps:$4 sm:$0xff]   ;;  %v12671_v10 = vld [vmem:[%s17548_s2 + $0x3b0] ss:$12 sps:$4 sm:$0xff]   ;;  %s13788_s27 = smov 96  }
 0x182   :  { %v12696_v11 = vld [vmem:[%s17548_s2 + $0x450] ss:$12 sps:$4 sm:$0xff]   ;;  %v12702_v12 = vld [vmem:[%s17548_s2 + $0x46c] ss:$12 sps:$4 sm:$0xff]   ;;  %v12675_v13 = vld [vmem:[%s17548_s2 + $0x3c8] ss:$12 sps:$4 sm:$0xff]  }
 0x183   :  { %v12700_v16 = vld [vmem:[%s17548_s2 + $0x468] ss:$12 sps:$4 sm:$0xff]   ;;  %v12667_v17 = vld [vmem:[%s17547_s1 + $0x2c] ss:$0 sps:$4 sm:$0xff]   ;;  %v12706_v18 = vld [vmem:[%s17548_s2 + $0x484] ss:$12 sps:$4 sm:$0xff]  }
 0x184   :  { %v12679_v19 = vld [vmem:[%s17548_s2 + $0x3e0] ss:$12 sps:$4 sm:$0xff]   ;;  %v12710_v22 = vld [vmem:[%s17548_s2 + $0x49c] ss:$12 sps:$4 sm:$0xff]   ;;  %v12683_v24 = vld [vmem:[%s17548_s2 + $0x3f8] ss:$12 sps:$4 sm:$0xff]  }
 0x185   :  { %v12704_v21 = vld [vmem:[%s17548_s2 + $0x480] ss:$12 sps:$4 sm:$0xff]   ;;  %v12708_v25 = vld [vmem:[%s17548_s2 + $0x498] ss:$12 sps:$4 sm:$0xff]   ;;  %v12687_v28 = vld [vmem:[%s17548_s2 + $0x410] ss:$12 sps:$4 sm:$0xff]  }
 0x186   :  { %v12714_v26 = vld [vmem:[%s17548_s2 + $0x4b4] ss:$12 sps:$4 sm:$0xff]   ;;  %v12712_v30 = vld [vmem:[%s17548_s2 + $0x4b0] ss:$12 sps:$4 sm:$0xff]   ;;  %v12699_v35 = vld [vmem:[%s17548_s2 + $0x458] ss:$12 sps:$4 sm:$0xff]  }
 0x187   :  { %v12691_v31 = vld [vmem:[%s17548_s2 + $0x428] ss:$12 sps:$4 sm:$0xff]   ;;  %v12695_v33 = vld [vmem:[%s17548_s2 + $0x440] ss:$12 sps:$4 sm:$0xff]   ;;  %v12703_v36 = vld [vmem:[%s17548_s2 + $0x470] ss:$12 sps:$4 sm:$0xff]  }
 0x188   :  { %v12707_v37 = vld [vmem:[%s17548_s2 + $0x488] ss:$12 sps:$4 sm:$0xff]   ;;  %v12711_v39 = vld [vmem:[%s17548_s2 + $0x4a0] ss:$12 sps:$4 sm:$0xff]   ;;  %v12715_v42 = vld [vmem:[%s17548_s2 + $0x4b8] ss:$12 sps:$4 sm:$0xff]  }
 0x189   :  { %s13789_s28 = smov 32   ;;  %vm3811_vm3 = vcmask 261120   ;;  %vm3813_vm4 = vcmask 523264   ;;  %vm3815_vm5 = vcmask 785408   ;;  %vm3880_vm6 = vcmask 195584  }
 0x18a   :  { %vm13791_vm7 = vmmov 0   ;;  %vm6881_vm8 = vcmask 1041408   ;;  %vm6899_vm9 = vcmask 517120   ;;  %vm7027_vm10 = vcmask 1044480  }
 0x18b   :  { %vm7023_vm11 = vcmask 80896   ;;  %vm8278_vm12 = vcmask 1045504   ;;  %vm8286_vm13 = vcmask 521216   ;;  %vm8371_vm14 = vcmask 1042432  }
 0x18c   :  { %vm8367_vm15 = vcmask 48128  }
 0x21d   :  { %v1016_v43 = vpop.f32.mrb[16].mxu0 }
 0x21e   :  { %v1018_v44 = vpop.f32.mrb[17].mxu0 }
 0x21f   :  { %v1020_v45 = vpop.f32.mrb[18].mxu0 }
 0x220   :  { %v1033_v46 = vpack.c.bf16 %v1020_v45, %v1016_v43  ;;  %v1022_v47 = vpop.f32.mrb[19].mxu0  ;;  %v12718_v43 = vld [vmem:[%s17548_s2 + $0x4cc] ss:$12 sps:$4 sm:$0xff]   ;;  %v12719_v45 = vld [vmem:[%s17548_s2 + $0x4d0] ss:$12 sps:$4 sm:$0xff]  }
 0x221   :  { %v1034_v49 = vpack.c.bf16 %v1022_v47, %v1018_v44  ;;  %v12716_v44 = vld [vmem:[%s17548_s2 + $0x4c8] ss:$12 sps:$4 sm:$0xff]  }
 0x223   :  { %10348 = vmatprep.mubr.msk.bf16.mxu0 %vm545_vm2, %v1034_v49  ;;  %10350 = vmatprep.mubr.msk.bf16.mxu1 %vm545_vm2, %v1034_v49 }
 0x224   :  { %1337 = vmatmul.mubr.bf16.vlgmr.msra.gmra.mrb[8].mxu0 %v1033_v46  ;;  %1388 = vmatmul.mubr.bf16.vlgmr.msra.gmra.mrb[8].mxu1 %v1033_v46 }
 0x225   :  { %1431 = vmatpush1.bf16.msra.mxu1 %v13871_v8  ;;  %v1026_v52 = vpop.f32.mrb[20].mxu0  ;;  %1753 = vmatpush1.bf16.msra.mxu0 %v12668_v50 }
 0x226   :  { %1432 = vmatprep.subr.bf16.mxu1 %v13873_v9  ;;  %v1028_v48 = vpop.f32.mrb[21].mxu0  ;;  %1754 = vmatprep.subr.bf16.mxu0 %v12674_v51  ;;  %v1035_v56 = vpack.c.bf16 %v1026_v52, %v1026_v52 }
 0x227   :  { %v1036_v53 = vpack.c.bf16 %v1028_v48, %v1028_v48  ;;  %v1030_v54 = vpop.f32.mrb[22].mxu0  ;;  %v12725_v48 = vld [vmem:[%s17548_s2 + $0x4e8] ss:$12 sps:$4 sm:$0xff]  }
 0x228   :  { %v1031_v57 = vpop.f32.mrb[23].mxu0 }
 0x229   :  { %1433 = vmatpush1.bf16.msra.mxu1 %v13890_v14  ;;  %10349 = vmatprep.mubr.msk.bf16.mxu0 %vm545_vm2, %v1036_v53  ;;  %v12729_v57 = vld [vmem:[%s17548_s2 + $0x500] ss:$12 sps:$4 sm:$0xff]  }
 0x22a   :  { %1434 = vmatprep.subr.bf16.mxu1 %v13894_v15  ;;  %10351 = vmatprep.mubr.msk.bf16.mxu1 %vm545_vm2, %v1036_v53 }
 0x22b   :  { %1755 = vmatpush1.bf16.msra.mxu0 %v12672_v55 }
 0x22c   :  { %1347 = vmatmul.mubr.bf16.gmra.mrb[12].mxu0 %v1035_v56  ;;  %1396 = vmatmul.mubr.bf16.gmra.mrb[12].mxu1 %v1035_v56 }
 0x22d   :  { %1435 = vmatpush1.bf16.msra.mxu1 %v13910_v20  ;;  %1462 = vmatprep.mubr.bf16.mxu1 %v13786_v7 }
 0x22e   :  { %1436 = vmatprep.subr.bf16.mxu1 %v13920_v23  ;;  %1756 = vmatprep.subr.bf16.mxu0 %v12678_v58 }
 0x22f   :  { %1757 = vmatpush1.bf16.msra.mxu0 %v12676_v59 }
 0x230   :  { %1758 = vmatprep.subr.bf16.mxu0 %v12682_v60  ;;  %v12733_v60 = vld [vmem:[%s17548_s2 + $0x518] ss:$12 sps:$4 sm:$0xff]  }
 0x231   :  { %1437 = vmatpush1.bf16.msra.mxu1 %v13933_v27 }
 0x232   :  { %1438 = vmatprep.subr.bf16.mxu1 %v13940_v29 }
 0x233   :  { %1759 = vmatpush1.bf16.msra.mxu0 %v12680_v61  ;;  %v12737_v61 = vld [vmem:[%s17548_s2 + $0x530] ss:$12 sps:$4 sm:$0xff]  }
 0x234   :  { %1760 = vmatprep.subr.bf16.mxu0 %v12686_v62  ;;  %v12741_v62 = vld [vmem:[%s17548_s2 + $0x548] ss:$12 sps:$4 sm:$0xff]  }
 0x235   :  { %1439 = vmatpush1.bf16.msra.mxu1 %v13950_v32 }
 0x236   :  { %1440 = vmatprep.subr.bf16.mxu1 %v13957_v34 }
 0x237   :  { %1761 = vmatpush1.bf16.msra.mxu0 %v12684_v63  ;;  %v12745_v63 = vld [vmem:[%s17548_s2 + $0x560] ss:$12 sps:$4 sm:$0xff]  }
 0x238   :  { %1762 = vmatprep.subr.bf16.mxu0 %v12690_v0  ;;  %v12724_v0 = vld [vmem:[%s17548_s2 + $0x4e4] ss:$12 sps:$4 sm:$0xff]  }
 0x239   :  { %1441 = vmatpush1.bf16.msra.mxu1 %v13970_v38 }
 0x23a   :  { %10357 = vmatprep.subr.msk.bf16.mxu1 %vm97_vm0, %v13974_v40 }
 0x23b   :  { %1763 = vmatpush1.bf16.msra.mxu0 %v12688_v1  ;;  %v12749_v1 = vld [vmem:[%s17548_s2 + $0x578] ss:$12 sps:$4 sm:$0xff]  }
 0x23c   :  { %1764 = vmatprep.subr.bf16.mxu0 %v12694_v2  ;;  %v12720_v2 = vld [vmem:[%s17547_s1 + $0x30] sm:$0xff]  }
 0x23d   :  { %1443 = vmatpush1.bf16.msra.mxu1 %v13979_v41 }
 0x23e   :  { %1803 = vmatprep.subr.bf16.mxu1 %v13786_v7 }
 0x23f   :  { %1765 = vmatpush1.bf16.msra.mxu0 %v12692_v4  ;;  %v12722_v4 = vld [vmem:[%s17548_s2 + $0x4e0] ss:$12 sps:$4 sm:$0xff]  }
 0x240   :  { %10358 = vmatmul.mubr.msk.bf16.vlgmr.msra.gmra.mrb[16].mxu1 %vm90_vm1, %v12666_v5  ;;  %1766 = vmatprep.subr.bf16.mxu0 %v12698_v6  ;;  %v12728_v5 = vld [vmem:[%s17548_s2 + $0x4fc] ss:$12 sps:$4 sm:$0xff]  }
 0x241   :  { %1472 = vmatprep.mubr.bf16.mxu1 %v13786_v7  ;;  %1804 = vmatpush1.bf16.msra.mxu1 %v12671_v10  ;;  %v12753_v6 = vld [vmem:[%s17548_s2 + $0x590] ss:$12 sps:$4 sm:$0xff]   ;;  %v12726_v10 = vld [vmem:[%s17548_s2 + $0x4f8] ss:$12 sps:$4 sm:$0xff]  }
 0x242   :  { %1805 = vmatprep.subr.bf16.mxu1 %v13786_v7 }
 0x243   :  { %1767 = vmatpush1.bf16.msra.mxu0 %v12696_v11  ;;  %v12732_v11 = vld [vmem:[%s17548_s2 + $0x514] ss:$12 sps:$4 sm:$0xff]  }
 0x244   :  { %1768 = vmatprep.subr.bf16.mxu0 %v12702_v12  ;;  %v12757_v12 = vld [vmem:[%s17548_s2 + $0x5a8] ss:$12 sps:$4 sm:$0xff]  }
 0x245   :  { %1806 = vmatpush1.bf16.msra.mxu1 %v12675_v13  ;;  %v12721_v13 = vld [vmem:[%s17547_s1 + $0x38] ss:$0 sps:$4 sm:$0xff]  }
 0x246   :  { %1807 = vmatprep.subr.bf16.mxu1 %v13786_v7 }
 0x247   :  { %1769 = vmatpush1.bf16.msra.mxu0 %v12700_v16  ;;  %v12730_v16 = vld [vmem:[%s17548_s2 + $0x510] ss:$12 sps:$4 sm:$0xff]  }
 0x248   :  { %10359 = vmatmul.mubr.msk.bf16.gmra.mrb[20].mxu1 %vm90_vm1, %v12667_v17  ;;  %1770 = vmatprep.subr.bf16.mxu0 %v12706_v18  ;;  %v12736_v17 = vld [vmem:[%s17548_s2 + $0x52c] ss:$12 sps:$4 sm:$0xff]  }
 0x249   :  { %1808 = vmatpush1.bf16.msra.mxu1 %v12679_v19  ;;  %v12761_v18 = vld [vmem:[%s17548_s2 + $0x5c0] ss:$12 sps:$4 sm:$0xff]   ;;  %v12734_v19 = vld [vmem:[%s17548_s2 + $0x528] ss:$12 sps:$4 sm:$0xff]  }
 0x24a   :  { %1809 = vmatprep.subr.bf16.mxu1 %v13786_v7 }
 0x24b   :  { %1771 = vmatpush1.bf16.msra.mxu0 %v12704_v21  ;;  %v12740_v21 = vld [vmem:[%s17548_s2 + $0x544] ss:$12 sps:$4 sm:$0xff]  }
 0x24c   :  { %1772 = vmatprep.subr.bf16.mxu0 %v12710_v22  ;;  %v12765_v22 = vld [vmem:[%s17548_s2 + $0x5d8] ss:$12 sps:$4 sm:$0xff]  }
 0x24d   :  { %1810 = vmatpush1.bf16.msra.mxu1 %v12683_v24  ;;  %v12738_v24 = vld [vmem:[%s17548_s2 + $0x540] ss:$12 sps:$4 sm:$0xff]  }
 0x24e   :  { %1811 = vmatprep.subr.bf16.mxu1 %v13786_v7 }
 0x24f   :  { %1773 = vmatpush1.bf16.msra.mxu0 %v12708_v25  ;;  %v12744_v25 = vld [vmem:[%s17548_s2 + $0x55c] ss:$12 sps:$4 sm:$0xff]  }
 0x250   :  { %1774 = vmatprep.subr.bf16.mxu0 %v12714_v26  ;;  %v12769_v26 = vld [vmem:[%s17548_s2 + $0x5f0] ss:$12 sps:$4 sm:$0xff]  }
 0x251   :  { %1812 = vmatpush1.bf16.msra.mxu1 %v12687_v28  ;;  %v12742_v28 = vld [vmem:[%s17548_s2 + $0x558] ss:$12 sps:$4 sm:$0xff]  }
 0x252   :  { %1813 = vmatprep.subr.bf16.mxu1 %v13786_v7 }
 0x253   :  { %1775 = vmatpush1.bf16.msra.mxu0 %v12712_v30  ;;  %v12748_v30 = vld [vmem:[%s17548_s2 + $0x574] ss:$12 sps:$4 sm:$0xff]  }
 0x254   :  { %1776 = vmatprep.subr.bf16.mxu0 %v12718_v43  ;;  %v12764_v43 = vld [vmem:[%s17548_s2 + $0x5d4] ss:$12 sps:$4 sm:$0xff]  }
 0x255   :  { %1814 = vmatpush1.bf16.msra.mxu1 %v12691_v31  ;;  %v12746_v31 = vld [vmem:[%s17548_s2 + $0x570] ss:$12 sps:$4 sm:$0xff]  }
 0x256   :  { %1815 = vmatprep.subr.bf16.mxu1 %v13786_v7 }
 0x257   :  { %1777 = vmatpush1.bf16.msra.mxu0 %v12716_v44  ;;  %v12762_v44 = vld [vmem:[%s17548_s2 + $0x5d0] ss:$12 sps:$4 sm:$0xff]  }
 0x258   :  { %1878 = vmatprep.subr.bf16.mxu0 %v13858_v3 }
 0x259   :  { %1816 = vmatpush1.bf16.msra.mxu1 %v12695_v33  ;;  %v12752_v33 = vld [vmem:[%s17548_s2 + $0x58c] ss:$12 sps:$4 sm:$0xff]  }
 0x25a   :  { %1817 = vmatprep.subr.bf16.mxu1 %v13786_v7 }
 0x25d   :  { %1818 = vmatpush1.bf16.msra.mxu1 %v12699_v35  ;;  %v12750_v35 = vld [vmem:[%s17548_s2 + $0x588] ss:$12 sps:$4 sm:$0xff]  }
 0x25e   :  { %1819 = vmatprep.subr.bf16.mxu1 %v13786_v7 }
 0x261   :  { %1820 = vmatpush1.bf16.msra.mxu1 %v12703_v36  ;;  %v12756_v36 = vld [vmem:[%s17548_s2 + $0x5a4] ss:$12 sps:$4 sm:$0xff]  }
 0x262   :  { %1821 = vmatprep.subr.bf16.mxu1 %v13786_v7 }
 0x265   :  { %1822 = vmatpush1.bf16.msra.mxu1 %v12707_v37  ;;  %v12754_v37 = vld [vmem:[%s17548_s2 + $0x5a0] ss:$12 sps:$4 sm:$0xff]  }
 0x266   :  { %1823 = vmatprep.subr.bf16.mxu1 %v13786_v7 }
 0x269   :  { %1824 = vmatpush1.bf16.msra.mxu1 %v12711_v39  ;;  %v12760_v39 = vld [vmem:[%s17548_s2 + $0x5bc] ss:$12 sps:$4 sm:$0xff]  }
 0x26a   :  { %1825 = vmatprep.subr.bf16.mxu1 %v13786_v7 }
 0x26d   :  { %1826 = vmatpush1.bf16.msra.mxu1 %v12715_v42  ;;  %v12758_v42 = vld [vmem:[%s17548_s2 + $0x5b8] ss:$12 sps:$4 sm:$0xff]  }
 0x26e   :  { %1827 = vmatprep.subr.bf16.mxu1 %v13786_v7 }
 0x271   :  { %1828 = vmatpush1.bf16.msra.mxu1 %v12719_v45  ;;  %v12768_v45 = vld [vmem:[%s17548_s2 + $0x5ec] ss:$12 sps:$4 sm:$0xff]  }
 0x272   :  { %2251 = vmatprep.subr.bf16.mxu1 %v13786_v7 }
 0x313   :  { %v1464_v46 = vpop.f32.mrb[16].mxu1 }
 0x314   :  { %v1466_v47 = vpop.f32.mrb[17].mxu1 }
 0x315   :  { %v1468_v49 = vpop.f32.mrb[18].mxu1 }
 0x316   :  { %v1481_v50 = vpack.c.bf16 %v1468_v49, %v1464_v46  ;;  %v1470_v51 = vpop.f32.mrb[19].mxu1  ;;  %v12766_v46 = vld [vmem:[%s17548_s2 + $0x5e8] ss:$12 sps:$4 sm:$0xff]  }
 0x317   :  { %v1482_v52 = vpack.c.bf16 %v1470_v51, %v1466_v47  ;;  %v12772_v47 = vld [vmem:[%s17548_s2 + $0x604] ss:$12 sps:$4 sm:$0xff]   ;;  %v12773_v49 = vld [vmem:[%s17548_s2 + $0x608] ss:$12 sps:$4 sm:$0xff]  }
 0x318   :  { %v12778_v51 = vld [vmem:[%s17548_s2 + $0x61c] ss:$12 sps:$4 sm:$0xff]  }
 0x319   :  { %10451 = vmatprep.mubr.msk.bf16.mxu0 %vm545_vm2, %v1482_v52  ;;  %10453 = vmatprep.mubr.msk.bf16.mxu1 %vm545_vm2, %v1482_v52 }
 0x31a   :  { %1785 = vmatmul.mubr.bf16.vlgmr.msra.gmra.mrb[8].mxu0 %v1481_v50  ;;  %1836 = vmatmul.mubr.bf16.vlgmr.msra.gmra.mrb[8].mxu1 %v1481_v50  ;;  %v12770_v50 = vld [vmem:[%s17548_s2 + $0x600] ss:$12 sps:$4 sm:$0xff]  }
 0x31b   :  { %1879 = vmatpush1.bf16.msra.mxu0 %v13871_v8  ;;  %v1474_v53 = vpop.f32.mrb[20].mxu1  ;;  %2252 = vmatpush1.bf16.msra.mxu1 %v12725_v48 }
 0x31c   :  { %1880 = vmatprep.subr.bf16.mxu0 %v13873_v9  ;;  %v1476_v54 = vpop.f32.mrb[21].mxu1  ;;  %2253 = vmatprep.subr.bf16.mxu1 %v13786_v7  ;;  %v1483_v58 = vpack.c.bf16 %v1474_v53, %v1474_v53 }
 0x31d   :  { %v1484_v55 = vpack.c.bf16 %v1476_v54, %v1476_v54  ;;  %v1478_v56 = vpop.f32.mrb[22].mxu1 }
 0x31e   :  { %v1479_v59 = vpop.f32.mrb[23].mxu1 }
 0x31f   :  { %1881 = vmatpush1.bf16.msra.mxu0 %v13890_v14  ;;  %10452 = vmatprep.mubr.msk.bf16.mxu0 %vm545_vm2, %v1484_v55 }
 0x320   :  { %1882 = vmatprep.subr.bf16.mxu0 %v13894_v15  ;;  %10454 = vmatprep.mubr.msk.bf16.mxu1 %vm545_vm2, %v1484_v55 }
 0x321   :  { %2254 = vmatpush1.bf16.msra.mxu1 %v12729_v57  ;;  %v12776_v57 = vld [vmem:[%s17548_s2 + $0x618] ss:$12 sps:$4 sm:$0xff]  }
 0x322   :  { %1795 = vmatmul.mubr.bf16.gmra.mrb[12].mxu0 %v1483_v58  ;;  %1844 = vmatmul.mubr.bf16.gmra.mrb[12].mxu1 %v1483_v58  ;;  %v12782_v58 = vld [vmem:[%s17548_s2 + $0x634] ss:$12 sps:$4 sm:$0xff]  }
 0x323   :  { %1883 = vmatpush1.bf16.msra.mxu0 %v13910_v20  ;;  %1910 = vmatprep.mubr.bf16.mxu0 %v13786_v7 }
 0x324   :  { %1884 = vmatprep.subr.bf16.mxu0 %v13920_v23  ;;  %2255 = vmatprep.subr.bf16.mxu1 %v13786_v7 }
 0x325   :  { %2256 = vmatpush1.bf16.msra.mxu1 %v12733_v60 }
 0x326   :  { %2257 = vmatprep.subr.bf16.mxu1 %v13786_v7 }
 0x327   :  { %1885 = vmatpush1.bf16.msra.mxu0 %v13933_v27 }
 0x328   :  { %1886 = vmatprep.subr.bf16.mxu0 %v13940_v29 }
 0x329   :  { %2258 = vmatpush1.bf16.msra.mxu1 %v12737_v61 }
 0x32a   :  { %2259 = vmatprep.subr.bf16.mxu1 %v13786_v7 }
 0x32b   :  { %1887 = vmatpush1.bf16.msra.mxu0 %v13950_v32 }
 0x32c   :  { %1888 = vmatprep.subr.bf16.mxu0 %v13957_v34 }
 0x32d   :  { %2260 = vmatpush1.bf16.msra.mxu1 %v12741_v62 }
 0x32e   :  { %2261 = vmatprep.subr.bf16.mxu1 %v13786_v7 }
 0x32f   :  { %1889 = vmatpush1.bf16.msra.mxu0 %v13970_v38 }
 0x330   :  { %10460 = vmatprep.subr.msk.bf16.mxu0 %vm97_vm0, %v13974_v40 }
 0x331   :  { %2262 = vmatpush1.bf16.msra.mxu1 %v12745_v63  ;;  %v12780_v63 = vld [vmem:[%s17548_s2 + $0x630] ss:$12 sps:$4 sm:$0xff]  }
 0x332   :  { %2263 = vmatprep.subr.bf16.mxu1 %v13786_v7 }
 0x333   :  { %1891 = vmatpush1.bf16.msra.mxu0 %v13979_v41 }
 0x334   :  { %2200 = vmatprep.subr.bf16.mxu0 %v12724_v0 }
 0x335   :  { %2264 = vmatpush1.bf16.msra.mxu1 %v12749_v1 }
 0x336   :  { %10461 = vmatmul.mubr.msk.bf16.vlgmr.msra.gmra.mrb[24].mxu0 %vm90_vm1, %v12720_v2  ;;  %2265 = vmatprep.subr.bf16.mxu1 %v13786_v7  ;;  %v12786_v2 = vld [vmem:[%s17548_s2 + $0x64c] ss:$12 sps:$4 sm:$0xff]  }
 0x337   :  { %1920 = vmatprep.mubr.bf16.mxu0 %v13786_v7  ;;  %2201 = vmatpush1.bf16.msra.mxu0 %v12722_v4  ;;  %v12784_v4 = vld [vmem:[%s17548_s2 + $0x648] ss:$12 sps:$4 sm:$0xff]  }
 0x338   :  { %2202 = vmatprep.subr.bf16.mxu0 %v12728_v5  ;;  %v12790_v5 = vld [vmem:[%s17548_s2 + $0x664] ss:$12 sps:$4 sm:$0xff]  }
 0x339   :  { %2266 = vmatpush1.bf16.msra.mxu1 %v12753_v6  ;;  %v12788_v6 = vld [vmem:[%s17548_s2 + $0x660] ss:$12 sps:$4 sm:$0xff]  }
 0x33a   :  { %2267 = vmatprep.subr.bf16.mxu1 %v13786_v7 }
 0x33b   :  { %2203 = vmatpush1.bf16.msra.mxu0 %v12726_v10  ;;  %v12794_v10 = vld [vmem:[%s17548_s2 + $0x67c] ss:$12 sps:$4 sm:$0xff]  }
 0x33c   :  { %2204 = vmatprep.subr.bf16.mxu0 %v12732_v11  ;;  %v12792_v11 = vld [vmem:[%s17548_s2 + $0x678] ss:$12 sps:$4 sm:$0xff]  }
 0x33d   :  { %2268 = vmatpush1.bf16.msra.mxu1 %v12757_v12  ;;  %v12798_v12 = vld [vmem:[%s17548_s2 + $0x694] ss:$12 sps:$4 sm:$0xff]  }
 0x33e   :  { %10462 = vmatmul.mubr.msk.bf16.gmra.mrb[28].mxu0 %vm90_vm1, %v12721_v13  ;;  %2269 = vmatprep.subr.bf16.mxu1 %v13786_v7  ;;  %v12796_v13 = vld [vmem:[%s17548_s2 + $0x690] ss:$12 sps:$4 sm:$0xff]  }
 0x33f   :  { %2205 = vmatpush1.bf16.msra.mxu0 %v12730_v16  ;;  %v12802_v16 = vld [vmem:[%s17548_s2 + $0x6ac] ss:$12 sps:$4 sm:$0xff]  }
 0x340   :  { %2206 = vmatprep.subr.bf16.mxu0 %v12736_v17  ;;  %v12800_v17 = vld [vmem:[%s17548_s2 + $0x6a8] ss:$12 sps:$4 sm:$0xff]  }
 0x341   :  { %2270 = vmatpush1.bf16.msra.mxu1 %v12761_v18  ;;  %v12774_v18 = vld [vmem:[%s17547_s1 + $0x3c] sm:$0xff]  }
 0x342   :  { %2271 = vmatprep.subr.bf16.mxu1 %v13786_v7 }
 0x343   :  { %2207 = vmatpush1.bf16.msra.mxu0 %v12734_v19  ;;  %v12806_v19 = vld [vmem:[%s17548_s2 + $0x6c4] ss:$12 sps:$4 sm:$0xff]  }
 0x344   :  { %2208 = vmatprep.subr.bf16.mxu0 %v12740_v21  ;;  %v12779_v21 = vld [vmem:[%s17548_s2 + $0x620] ss:$12 sps:$4 sm:$0xff]  }
 0x345   :  { %2272 = vmatpush1.bf16.msra.mxu1 %v12765_v22  ;;  %v12804_v22 = vld [vmem:[%s17548_s2 + $0x6c0] ss:$12 sps:$4 sm:$0xff]  }
 0x346   :  { %2273 = vmatprep.subr.bf16.mxu1 %v13786_v7 }
 0x347   :  { %2209 = vmatpush1.bf16.msra.mxu0 %v12738_v24  ;;  %v12810_v24 = vld [vmem:[%s17548_s2 + $0x6dc] ss:$12 sps:$4 sm:$0xff]  }
 0x348   :  { %2210 = vmatprep.subr.bf16.mxu0 %v12744_v25  ;;  %v12783_v25 = vld [vmem:[%s17548_s2 + $0x638] ss:$12 sps:$4 sm:$0xff]  }
 0x349   :  { %2274 = vmatpush1.bf16.msra.mxu1 %v12769_v26  ;;  %v12808_v26 = vld [vmem:[%s17548_s2 + $0x6d8] ss:$12 sps:$4 sm:$0xff]  }
 0x34a   :  { %2275 = vmatprep.subr.bf16.mxu1 %v13786_v7 }
 0x34b   :  { %2211 = vmatpush1.bf16.msra.mxu0 %v12742_v28  ;;  %v12775_v28 = vld [vmem:[%s17547_s1 + $0x44] ss:$0 sps:$4 sm:$0xff]  }
 0x34c   :  { %2212 = vmatprep.subr.bf16.mxu0 %v12748_v30  ;;  %v12814_v30 = vld [vmem:[%s17548_s2 + $0x6f4] ss:$12 sps:$4 sm:$0xff]  }
 0x34d   :  { %2276 = vmatpush1.bf16.msra.mxu1 %v12773_v49  ;;  %v12815_v49 = vld [vmem:[%s17548_s2 + $0x6f8] ss:$12 sps:$4 sm:$0xff]  }
 0x34e   :  { %2326 = vmatprep.subr.bf16.mxu1 %v13858_v3 }
 0x34f   :  { %2213 = vmatpush1.bf16.msra.mxu0 %v12746_v31  ;;  %v12787_v31 = vld [vmem:[%s17548_s2 + $0x650] ss:$12 sps:$4 sm:$0xff]  }
 0x350   :  { %2214 = vmatprep.subr.bf16.mxu0 %v12752_v33  ;;  %v12812_v33 = vld [vmem:[%s17548_s2 + $0x6f0] ss:$12 sps:$4 sm:$0xff]  }
 0x353   :  { %2215 = vmatpush1.bf16.msra.mxu0 %v12750_v35  ;;  %v12818_v35 = vld [vmem:[%s17548_s2 + $0x70c] ss:$12 sps:$4 sm:$0xff]  }
 0x354   :  { %2216 = vmatprep.subr.bf16.mxu0 %v12756_v36  ;;  %v12791_v36 = vld [vmem:[%s17548_s2 + $0x668] ss:$12 sps:$4 sm:$0xff]  }
 0x357   :  { %2217 = vmatpush1.bf16.msra.mxu0 %v12754_v37  ;;  %v12816_v37 = vld [vmem:[%s17548_s2 + $0x708] ss:$12 sps:$4 sm:$0xff]  }
 0x358   :  { %2218 = vmatprep.subr.bf16.mxu0 %v12760_v39  ;;  %v12822_v39 = vld [vmem:[%s17548_s2 + $0x724] ss:$12 sps:$4 sm:$0xff]  }
 0x35b   :  { %2219 = vmatpush1.bf16.msra.mxu0 %v12758_v42  ;;  %v12795_v42 = vld [vmem:[%s17548_s2 + $0x680] ss:$12 sps:$4 sm:$0xff]  }
 0x35c   :  { %2220 = vmatprep.subr.bf16.mxu0 %v12764_v43  ;;  %v12820_v43 = vld [vmem:[%s17548_s2 + $0x720] ss:$12 sps:$4 sm:$0xff]  }
 0x35f   :  { %2221 = vmatpush1.bf16.msra.mxu0 %v12762_v44  ;;  %v12799_v44 = vld [vmem:[%s17548_s2 + $0x698] ss:$12 sps:$4 sm:$0xff]  }
 0x360   :  { %2222 = vmatprep.subr.bf16.mxu0 %v12768_v45  ;;  %v12803_v45 = vld [vmem:[%s17548_s2 + $0x6b0] ss:$12 sps:$4 sm:$0xff]  }
 0x363   :  { %2223 = vmatpush1.bf16.msra.mxu0 %v12766_v46  ;;  %v12807_v46 = vld [vmem:[%s17548_s2 + $0x6c8] ss:$12 sps:$4 sm:$0xff]  }
 0x364   :  { %2224 = vmatprep.subr.bf16.mxu0 %v12772_v47  ;;  %v12811_v47 = vld [vmem:[%s17548_s2 + $0x6e0] ss:$12 sps:$4 sm:$0xff]  }
 0x367   :  { %2225 = vmatpush1.bf16.msra.mxu0 %v12770_v50  ;;  %v12819_v50 = vld [vmem:[%s17548_s2 + $0x710] ss:$12 sps:$4 sm:$0xff]  }
 0x368   :  { %2648 = vmatprep.subr.bf16.mxu0 %v12778_v51  ;;  %v12823_v51 = vld [vmem:[%s17548_s2 + $0x728] ss:$12 sps:$4 sm:$0xff]  }
 0x409   :  { %v1912_v52 = vpop.f32.mrb[24].mxu0 }
 0x40a   :  { %v1914_v48 = vpop.f32.mrb[25].mxu0 }
 0x40b   :  { %v1916_v53 = vpop.f32.mrb[26].mxu0 }
 0x40c   :  { %v1929_v54 = vpack.c.bf16 %v1916_v53, %v1912_v52  ;;  %v1918_v55 = vpop.f32.mrb[27].mxu0  ;;  %v12826_v52 = vld [vmem:[%s17548_s2 + $0x73c] ss:$12 sps:$4 sm:$0xff]   ;;  %v12827_v53 = vld [vmem:[%s17548_s2 + $0x740] ss:$12 sps:$4 sm:$0xff]  }
 0x40d   :  { %v1930_v56 = vpack.c.bf16 %v1918_v55, %v1914_v48  ;;  %v12824_v48 = vld [vmem:[%s17548_s2 + $0x738] ss:$12 sps:$4 sm:$0xff]  }
 0x40f   :  { %10554 = vmatprep.mubr.msk.bf16.mxu0 %vm545_vm2, %v1930_v56  ;;  %10556 = vmatprep.mubr.msk.bf16.mxu1 %vm545_vm2, %v1930_v56 }
 0x410   :  { %2233 = vmatmul.mubr.bf16.vlgmr.msra.gmra.mrb[8].mxu0 %v1929_v54  ;;  %2284 = vmatmul.mubr.bf16.vlgmr.msra.gmra.mrb[8].mxu1 %v1929_v54 }
 0x411   :  { %2327 = vmatpush1.bf16.msra.mxu1 %v13871_v8  ;;  %v1922_v59 = vpop.f32.mrb[28].mxu0  ;;  %2649 = vmatpush1.bf16.msra.mxu0 %v12776_v57 }
 0x412   :  { %2328 = vmatprep.subr.bf16.mxu1 %v13873_v9  ;;  %v1924_v60 = vpop.f32.mrb[29].mxu0  ;;  %2650 = vmatprep.subr.bf16.mxu0 %v12782_v58  ;;  %v1931_v0 = vpack.c.bf16 %v1922_v59, %v1922_v59 }
 0x413   :  { %v1932_v61 = vpack.c.bf16 %v1924_v60, %v1924_v60  ;;  %v1926_v62 = vpop.f32.mrb[30].mxu0  ;;  %v12833_v60 = vld [vmem:[%s17548_s2 + $0x758] ss:$12 sps:$4 sm:$0xff]  }
 0x414   :  { %v1927_v1 = vpop.f32.mrb[31].mxu0 }
 0x415   :  { %2329 = vmatpush1.bf16.msra.mxu1 %v13890_v14  ;;  %10555 = vmatprep.mubr.msk.bf16.mxu0 %vm545_vm2, %v1932_v61  ;;  %v12837_v1 = vld [vmem:[%s17548_s2 + $0x770] ss:$12 sps:$4 sm:$0xff]  }
 0x416   :  { %2330 = vmatprep.subr.bf16.mxu1 %v13894_v15  ;;  %10557 = vmatprep.mubr.msk.bf16.mxu1 %vm545_vm2, %v1932_v61 }
 0x417   :  { %2651 = vmatpush1.bf16.msra.mxu0 %v12780_v63 }
 0x418   :  { %2243 = vmatmul.mubr.bf16.gmra.mrb[12].mxu0 %v1931_v0  ;;  %2292 = vmatmul.mubr.bf16.gmra.mrb[12].mxu1 %v1931_v0 }
 0x419   :  { %2331 = vmatpush1.bf16.msra.mxu1 %v13910_v20  ;;  %2358 = vmatprep.mubr.bf16.mxu1 %v13786_v7 }
 0x41a   :  { %2332 = vmatprep.subr.bf16.mxu1 %v13920_v23  ;;  %2652 = vmatprep.subr.bf16.mxu0 %v12786_v2 }
 0x41b   :  { %2653 = vmatpush1.bf16.msra.mxu0 %v12784_v4 }
 0x41c   :  { %2654 = vmatprep.subr.bf16.mxu0 %v12790_v5  ;;  %v12841_v5 = vld [vmem:[%s17548_s2 + $0x788] ss:$12 sps:$4 sm:$0xff]  }
 0x41d   :  { %2333 = vmatpush1.bf16.msra.mxu1 %v13933_v27 }
 0x41e   :  { %2334 = vmatprep.subr.bf16.mxu1 %v13940_v29 }
 0x41f   :  { %2655 = vmatpush1.bf16.msra.mxu0 %v12788_v6  ;;  %v12845_v6 = vld [vmem:[%s17548_s2 + $0x7a0] ss:$12 sps:$4 sm:$0xff]  }
 0x420   :  { %2656 = vmatprep.subr.bf16.mxu0 %v12794_v10  ;;  %v12849_v10 = vld [vmem:[%s17548_s2 + $0x7b8] ss:$12 sps:$4 sm:$0xff]  }
 0x421   :  { %2335 = vmatpush1.bf16.msra.mxu1 %v13950_v32 }
 0x422   :  { %2336 = vmatprep.subr.bf16.mxu1 %v13957_v34 }
 0x423   :  { %2657 = vmatpush1.bf16.msra.mxu0 %v12792_v11  ;;  %v12853_v11 = vld [vmem:[%s17548_s2 + $0x7d0] ss:$12 sps:$4 sm:$0xff]  }
 0x424   :  { %2658 = vmatprep.subr.bf16.mxu0 %v12798_v12  ;;  %v12832_v12 = vld [vmem:[%s17548_s2 + $0x754] ss:$12 sps:$4 sm:$0xff]  }
 0x425   :  { %2337 = vmatpush1.bf16.msra.mxu1 %v13970_v38 }
 0x426   :  { %10563 = vmatprep.subr.msk.bf16.mxu1 %vm97_vm0, %v13974_v40 }
 0x427   :  { %2659 = vmatpush1.bf16.msra.mxu0 %v12796_v13  ;;  %v12857_v13 = vld [vmem:[%s17548_s2 + $0x7e8] ss:$12 sps:$4 sm:$0xff]  }
 0x428   :  { %2660 = vmatprep.subr.bf16.mxu0 %v12802_v16  ;;  %v12828_v16 = vld [vmem:[%s17547_s1 + $0x48] sm:$0xff]  }
 0x429   :  { %2339 = vmatpush1.bf16.msra.mxu1 %v13979_v41 }
 0x42a   :  { %2699 = vmatprep.subr.bf16.mxu1 %v13786_v7 }
 0x42b   :  { %2661 = vmatpush1.bf16.msra.mxu0 %v12800_v17  ;;  %v12830_v17 = vld [vmem:[%s17548_s2 + $0x750] ss:$12 sps:$4 sm:$0xff]  }
 0x42c   :  { %10564 = vmatmul.mubr.msk.bf16.vlgmr.msra.gmra.mrb[24].mxu1 %vm90_vm1, %v12774_v18  ;;  %2662 = vmatprep.subr.bf16.mxu0 %v12806_v19  ;;  %v12836_v18 = vld [vmem:[%s17548_s2 + $0x76c] ss:$12 sps:$4 sm:$0xff]  }
 0x42d   :  { %2368 = vmatprep.mubr.bf16.mxu1 %v13786_v7  ;;  %2700 = vmatpush1.bf16.msra.mxu1 %v12779_v21  ;;  %v12861_v19 = vld [vmem:[%s17548_s2 + $0x800] ss:$12 sps:$4 sm:$0xff]   ;;  %v12834_v21 = vld [vmem:[%s17548_s2 + $0x768] ss:$12 sps:$4 sm:$0xff]  }
 0x42e   :  { %2701 = vmatprep.subr.bf16.mxu1 %v13786_v7 }
 0x42f   :  { %2663 = vmatpush1.bf16.msra.mxu0 %v12804_v22  ;;  %v12840_v22 = vld [vmem:[%s17548_s2 + $0x784] ss:$12 sps:$4 sm:$0xff]  }
 0x430   :  { %2664 = vmatprep.subr.bf16.mxu0 %v12810_v24  ;;  %v12865_v24 = vld [vmem:[%s17548_s2 + $0x818] ss:$12 sps:$4 sm:$0xff]  }
 0x431   :  { %2702 = vmatpush1.bf16.msra.mxu1 %v12783_v25  ;;  %v12829_v25 = vld [vmem:[%s17547_s1 + $0x50] ss:$0 sps:$4 sm:$0xff]  }
 0x432   :  { %2703 = vmatprep.subr.bf16.mxu1 %v13786_v7 }
 0x433   :  { %2665 = vmatpush1.bf16.msra.mxu0 %v12808_v26  ;;  %v12838_v26 = vld [vmem:[%s17548_s2 + $0x780] ss:$12 sps:$4 sm:$0xff]  }
 0x434   :  { %10565 = vmatmul.mubr.msk.bf16.gmra.mrb[28].mxu1 %vm90_vm1, %v12775_v28  ;;  %2666 = vmatprep.subr.bf16.mxu0 %v12814_v30  ;;  %v12844_v28 = vld [vmem:[%s17548_s2 + $0x79c] ss:$12 sps:$4 sm:$0xff]  }
 0x435   :  { %2704 = vmatpush1.bf16.msra.mxu1 %v12787_v31  ;;  %v12869_v30 = vld [vmem:[%s17548_s2 + $0x830] ss:$12 sps:$4 sm:$0xff]   ;;  %v12842_v31 = vld [vmem:[%s17548_s2 + $0x798] ss:$12 sps:$4 sm:$0xff]  }
 0x436   :  { %2705 = vmatprep.subr.bf16.mxu1 %v13786_v7 }
 0x437   :  { %2667 = vmatpush1.bf16.msra.mxu0 %v12812_v33  ;;  %v12848_v33 = vld [vmem:[%s17548_s2 + $0x7b4] ss:$12 sps:$4 sm:$0xff]  }
 0x438   :  { %2668 = vmatprep.subr.bf16.mxu0 %v12818_v35  ;;  %v12873_v35 = vld [vmem:[%s17548_s2 + $0x848] ss:$12 sps:$4 sm:$0xff]  }
 0x439   :  { %2706 = vmatpush1.bf16.msra.mxu1 %v12791_v36  ;;  %v12846_v36 = vld [vmem:[%s17548_s2 + $0x7b0] ss:$12 sps:$4 sm:$0xff]  }
 0x43a   :  { %2707 = vmatprep.subr.bf16.mxu1 %v13786_v7 }
 0x43b   :  { %2669 = vmatpush1.bf16.msra.mxu0 %v12816_v37  ;;  %v12852_v37 = vld [vmem:[%s17548_s2 + $0x7cc] ss:$12 sps:$4 sm:$0xff]  }
 0x43c   :  { %2670 = vmatprep.subr.bf16.mxu0 %v12822_v39  ;;  %v12877_v39 = vld [vmem:[%s17548_s2 + $0x860] ss:$12 sps:$4 sm:$0xff]  }
 0x43d   :  { %2708 = vmatpush1.bf16.msra.mxu1 %v12795_v42  ;;  %v12850_v42 = vld [vmem:[%s17548_s2 + $0x7c8] ss:$12 sps:$4 sm:$0xff]  }
 0x43e   :  { %2709 = vmatprep.subr.bf16.mxu1 %v13786_v7 }
 0x43f   :  { %2671 = vmatpush1.bf16.msra.mxu0 %v12820_v43  ;;  %v12856_v43 = vld [vmem:[%s17548_s2 + $0x7e4] ss:$12 sps:$4 sm:$0xff]  }
 0x440   :  { %2672 = vmatprep.subr.bf16.mxu0 %v12826_v52  ;;  %v12872_v52 = vld [vmem:[%s17548_s2 + $0x844] ss:$12 sps:$4 sm:$0xff]  }
 0x441   :  { %2710 = vmatpush1.bf16.msra.mxu1 %v12799_v44  ;;  %v12854_v44 = vld [vmem:[%s17548_s2 + $0x7e0] ss:$12 sps:$4 sm:$0xff]  }
 0x442   :  { %2711 = vmatprep.subr.bf16.mxu1 %v13786_v7 }
 0x443   :  { %2673 = vmatpush1.bf16.msra.mxu0 %v12824_v48  ;;  %v12870_v48 = vld [vmem:[%s17548_s2 + $0x840] ss:$12 sps:$4 sm:$0xff]  }
 0x444   :  { %2774 = vmatprep.subr.bf16.mxu0 %v13858_v3 }
 0x445   :  { %2712 = vmatpush1.bf16.msra.mxu1 %v12803_v45  ;;  %v12860_v45 = vld [vmem:[%s17548_s2 + $0x7fc] ss:$12 sps:$4 sm:$0xff]  }
 0x446   :  { %2713 = vmatprep.subr.bf16.mxu1 %v13786_v7 }
 0x449   :  { %2714 = vmatpush1.bf16.msra.mxu1 %v12807_v46  ;;  %v12858_v46 = vld [vmem:[%s17548_s2 + $0x7f8] ss:$12 sps:$4 sm:$0xff]  }
 0x44a   :  { %2715 = vmatprep.subr.bf16.mxu1 %v13786_v7 }
 0x44d   :  { %2716 = vmatpush1.bf16.msra.mxu1 %v12811_v47  ;;  %v12864_v47 = vld [vmem:[%s17548_s2 + $0x814] ss:$12 sps:$4 sm:$0xff]  }
 0x44e   :  { %2717 = vmatprep.subr.bf16.mxu1 %v13786_v7 }
 0x451   :  { %2718 = vmatpush1.bf16.msra.mxu1 %v12815_v49  ;;  %v12862_v49 = vld [vmem:[%s17548_s2 + $0x810] ss:$12 sps:$4 sm:$0xff]  }
 0x452   :  { %2719 = vmatprep.subr.bf16.mxu1 %v13786_v7 }
 0x455   :  { %2720 = vmatpush1.bf16.msra.mxu1 %v12819_v50  ;;  %v12868_v50 = vld [vmem:[%s17548_s2 + $0x82c] ss:$12 sps:$4 sm:$0xff]  }
 0x456   :  { %2721 = vmatprep.subr.bf16.mxu1 %v13786_v7 }
 0x459   :  { %2722 = vmatpush1.bf16.msra.mxu1 %v12823_v51  ;;  %v12866_v51 = vld [vmem:[%s17548_s2 + $0x828] ss:$12 sps:$4 sm:$0xff]  }
 0x45a   :  { %2723 = vmatprep.subr.bf16.mxu1 %v13786_v7 }
 0x45d   :  { %2724 = vmatpush1.bf16.msra.mxu1 %v12827_v53  ;;  %v12876_v53 = vld [vmem:[%s17548_s2 + $0x85c] ss:$12 sps:$4 sm:$0xff]  }
 0x45e   :  { %3147 = vmatprep.subr.bf16.mxu1 %v13786_v7 }
 0x4ff   :  { %v2360_v54 = vpop.f32.mrb[24].mxu1 }
 0x500   :  { %v2362_v55 = vpop.f32.mrb[25].mxu1 }
 0x501   :  { %v2364_v56 = vpop.f32.mrb[26].mxu1 }
 0x502   :  { %v2377_v57 = vpack.c.bf16 %v2364_v56, %v2360_v54  ;;  %v2366_v58 = vpop.f32.mrb[27].mxu1  ;;  %v12874_v54 = vld [vmem:[%s17548_s2 + $0x858] ss:$12 sps:$4 sm:$0xff]  }
 0x503   :  { %v2378_v59 = vpack.c.bf16 %v2366_v58, %v2362_v55  ;;  %v12880_v55 = vld [vmem:[%s17548_s2 + $0x874] ss:$12 sps:$4 sm:$0xff]   ;;  %v12881_v56 = vld [vmem:[%s17548_s2 + $0x878] ss:$12 sps:$4 sm:$0xff]  }
 0x504   :  { %v12886_v58 = vld [vmem:[%s17548_s2 + $0x88c] ss:$12 sps:$4 sm:$0xff]  }
 0x505   :  { %10657 = vmatprep.mubr.msk.bf16.mxu0 %vm545_vm2, %v2378_v59  ;;  %10659 = vmatprep.mubr.msk.bf16.mxu1 %vm545_vm2, %v2378_v59 }
 0x506   :  { %2681 = vmatmul.mubr.bf16.vlgmr.msra.gmra.mrb[8].mxu0 %v2377_v57  ;;  %2732 = vmatmul.mubr.bf16.vlgmr.msra.gmra.mrb[8].mxu1 %v2377_v57  ;;  %v12878_v57 = vld [vmem:[%s17548_s2 + $0x870] ss:$12 sps:$4 sm:$0xff]  }
 0x507   :  { %2775 = vmatpush1.bf16.msra.mxu0 %v13871_v8  ;;  %v2370_v61 = vpop.f32.mrb[28].mxu1  ;;  %3148 = vmatpush1.bf16.msra.mxu1 %v12833_v60 }
 0x508   :  { %2776 = vmatprep.subr.bf16.mxu0 %v13873_v9  ;;  %v2372_v62 = vpop.f32.mrb[29].mxu1  ;;  %3149 = vmatprep.subr.bf16.mxu1 %v13786_v7  ;;  %v2379_v2 = vpack.c.bf16 %v2370_v61, %v2370_v61 }
 0x509   :  { %v2380_v63 = vpack.c.bf16 %v2372_v62, %v2372_v62  ;;  %v2374_v0 = vpop.f32.mrb[30].mxu1 }
 0x50a   :  { %v2375_v4 = vpop.f32.mrb[31].mxu1 }
 0x50b   :  { %2777 = vmatpush1.bf16.msra.mxu0 %v13890_v14  ;;  %10658 = vmatprep.mubr.msk.bf16.mxu0 %vm545_vm2, %v2380_v63 }
 0x50c   :  { %2778 = vmatprep.subr.bf16.mxu0 %v13894_v15  ;;  %10660 = vmatprep.mubr.msk.bf16.mxu1 %vm545_vm2, %v2380_v63 }
 0x50d   :  { %3150 = vmatpush1.bf16.msra.mxu1 %v12837_v1  ;;  %v12884_v1 = vld [vmem:[%s17548_s2 + $0x888] ss:$12 sps:$4 sm:$0xff]  }
 0x50e   :  { %2691 = vmatmul.mubr.bf16.gmra.mrb[12].mxu0 %v2379_v2  ;;  %2740 = vmatmul.mubr.bf16.gmra.mrb[12].mxu1 %v2379_v2  ;;  %v12890_v2 = vld [vmem:[%s17548_s2 + $0x8a4] ss:$12 sps:$4 sm:$0xff]  }
 0x50f   :  { %2779 = vmatpush1.bf16.msra.mxu0 %v13910_v20  ;;  %2806 = vmatprep.mubr.bf16.mxu0 %v13786_v7 }
 0x510   :  { %2780 = vmatprep.subr.bf16.mxu0 %v13920_v23  ;;  %3151 = vmatprep.subr.bf16.mxu1 %v13786_v7 }
 0x511   :  { %3152 = vmatpush1.bf16.msra.mxu1 %v12841_v5 }
 0x512   :  { %3153 = vmatprep.subr.bf16.mxu1 %v13786_v7 }
 0x513   :  { %2781 = vmatpush1.bf16.msra.mxu0 %v13933_v27 }
 0x514   :  { %2782 = vmatprep.subr.bf16.mxu0 %v13940_v29 }
 0x515   :  { %3154 = vmatpush1.bf16.msra.mxu1 %v12845_v6 }
 0x516   :  { %3155 = vmatprep.subr.bf16.mxu1 %v13786_v7 }
 0x517   :  { %2783 = vmatpush1.bf16.msra.mxu0 %v13950_v32 }
 0x518   :  { %2784 = vmatprep.subr.bf16.mxu0 %v13957_v34 }
 0x519   :  { %3156 = vmatpush1.bf16.msra.mxu1 %v12849_v10  ;;  %v12888_v10 = vld [vmem:[%s17548_s2 + $0x8a0] ss:$12 sps:$4 sm:$0xff]  }
 0x51a   :  { %3157 = vmatprep.subr.bf16.mxu1 %v13786_v7 }
 0x51b   :  { %2785 = vmatpush1.bf16.msra.mxu0 %v13970_v38 }
 0x51c   :  { %10666 = vmatprep.subr.msk.bf16.mxu0 %vm97_vm0, %v13974_v40 }
 0x51d   :  { %3158 = vmatpush1.bf16.msra.mxu1 %v12853_v11 }
 0x51e   :  { %3159 = vmatprep.subr.bf16.mxu1 %v13786_v7 }
 0x51f   :  { %2787 = vmatpush1.bf16.msra.mxu0 %v13979_v41 }
 0x520   :  { %3096 = vmatprep.subr.bf16.mxu0 %v12832_v12 }
 0x521   :  { %3160 = vmatpush1.bf16.msra.mxu1 %v12857_v13  ;;  %v12902_v13 = vld [vmem:[%s17548_s2 + $0x8ec] ss:$12 sps:$4 sm:$0xff]  }
 0x522   :  { %10667 = vmatmul.mubr.msk.bf16.vlgmr.msra.gmra.mrb[32].mxu0 %vm90_vm1, %v12828_v16  ;;  %3161 = vmatprep.subr.bf16.mxu1 %v13786_v7  ;;  %v12914_v16 = vld [vmem:[%s17548_s2 + $0x934] ss:$12 sps:$4 sm:$0xff]  }
 0x523   :  { %2816 = vmatprep.mubr.bf16.mxu0 %v13786_v7  ;;  %3097 = vmatpush1.bf16.msra.mxu0 %v12830_v17  ;;  %v12918_v17 = vld [vmem:[%s17548_s2 + $0x94c] ss:$12 sps:$4 sm:$0xff]  }
 0x524   :  { %3098 = vmatprep.subr.bf16.mxu0 %v12836_v18  ;;  %v12916_v18 = vld [vmem:[%s17548_s2 + $0x948] ss:$12 sps:$4 sm:$0xff]  }
 0x525   :  { %3162 = vmatpush1.bf16.msra.mxu1 %v12861_v19  ;;  %v12883_v19 = vld [vmem:[%s17547_s1 + $0x5c] ss:$0 sps:$4 sm:$0xff]  }
 0x526   :  { %3163 = vmatprep.subr.bf16.mxu1 %v13786_v7 }
 0x527   :  { %3099 = vmatpush1.bf16.msra.mxu0 %v12834_v21  ;;  %v12922_v21 = vld [vmem:[%s17548_s2 + $0x964] ss:$12 sps:$4 sm:$0xff]  }
 0x528   :  { %3100 = vmatprep.subr.bf16.mxu0 %v12840_v22  ;;  %v12895_v22 = vld [vmem:[%s17548_s2 + $0x8c0] ss:$12 sps:$4 sm:$0xff]  }
 0x529   :  { %3164 = vmatpush1.bf16.msra.mxu1 %v12865_v24  ;;  %v12920_v24 = vld [vmem:[%s17548_s2 + $0x960] ss:$12 sps:$4 sm:$0xff]  }
 0x52a   :  { %10668 = vmatmul.mubr.msk.bf16.gmra.mrb[36].mxu0 %vm90_vm1, %v12829_v25  ;;  %3165 = vmatprep.subr.bf16.mxu1 %v13786_v7  ;;  %v12926_v25 = vld [vmem:[%s17548_s2 + $0x97c] ss:$12 sps:$4 sm:$0xff]  }
 0x52b   :  { %3101 = vmatpush1.bf16.msra.mxu0 %v12838_v26  ;;  %v12899_v26 = vld [vmem:[%s17548_s2 + $0x8d8] ss:$12 sps:$4 sm:$0xff]  }
 0x52c   :  { %3102 = vmatprep.subr.bf16.mxu0 %v12844_v28  ;;  %v12924_v28 = vld [vmem:[%s17548_s2 + $0x978] ss:$12 sps:$4 sm:$0xff]  }
 0x52d   :  { %3166 = vmatpush1.bf16.msra.mxu1 %v12869_v30  ;;  %v12930_v30 = vld [vmem:[%s17548_s2 + $0x994] ss:$12 sps:$4 sm:$0xff]  }
 0x52e   :  { %3167 = vmatprep.subr.bf16.mxu1 %v13786_v7 }
 0x52f   :  { %3103 = vmatpush1.bf16.msra.mxu0 %v12842_v31  ;;  %v12903_v31 = vld [vmem:[%s17548_s2 + $0x8f0] ss:$12 sps:$4 sm:$0xff]  }
 0x530   :  { %3104 = vmatprep.subr.bf16.mxu0 %v12848_v33  ;;  %v12928_v33 = vld [vmem:[%s17548_s2 + $0x990] ss:$12 sps:$4 sm:$0xff]  }
 0x531   :  { %3168 = vmatpush1.bf16.msra.mxu1 %v12873_v35  ;;  %v12907_v35 = vld [vmem:[%s17548_s2 + $0x908] ss:$12 sps:$4 sm:$0xff]  }
 0x532   :  { %3169 = vmatprep.subr.bf16.mxu1 %v13786_v7 }
 0x533   :  { %3105 = vmatpush1.bf16.msra.mxu0 %v12846_v36  ;;  %v12911_v36 = vld [vmem:[%s17548_s2 + $0x920] ss:$12 sps:$4 sm:$0xff]  }
 0x534   :  { %3106 = vmatprep.subr.bf16.mxu0 %v12852_v37  ;;  %v12915_v37 = vld [vmem:[%s17548_s2 + $0x938] ss:$12 sps:$4 sm:$0xff]  }
 0x535   :  { %3170 = vmatpush1.bf16.msra.mxu1 %v12877_v39  ;;  %v12919_v39 = vld [vmem:[%s17548_s2 + $0x950] ss:$12 sps:$4 sm:$0xff]  }
 0x536   :  { %3171 = vmatprep.subr.bf16.mxu1 %v13786_v7 }
 0x537   :  { %3107 = vmatpush1.bf16.msra.mxu0 %v12850_v42  ;;  %v12923_v42 = vld [vmem:[%s17548_s2 + $0x968] ss:$12 sps:$4 sm:$0xff]  }
 0x538   :  { %3108 = vmatprep.subr.bf16.mxu0 %v12856_v43  ;;  %v12927_v43 = vld [vmem:[%s17548_s2 + $0x980] ss:$12 sps:$4 sm:$0xff]  }
 0x539   :  { %3172 = vmatpush1.bf16.msra.mxu1 %v12881_v56 }
 0x53a   :  { %3222 = vmatprep.subr.bf16.mxu1 %v13858_v3 }
 0x53b   :  { %3109 = vmatpush1.bf16.msra.mxu0 %v12854_v44  ;;  %v12931_v44 = vld [vmem:[%s17548_s2 + $0x998] ss:$12 sps:$4 sm:$0xff]  }
 0x53c   :  { %3110 = vmatprep.subr.bf16.mxu0 %v12860_v45  ;;  %v12934_v45 = vld [vmem:[%s17548_s2 + $0x9ac] ss:$12 sps:$4 sm:$0xff]  }
 0x53f   :  { %3111 = vmatpush1.bf16.msra.mxu0 %v12858_v46  ;;  %v12932_v46 = vld [vmem:[%s17548_s2 + $0x9a8] ss:$12 sps:$4 sm:$0xff]  }
 0x540   :  { %3112 = vmatprep.subr.bf16.mxu0 %v12864_v47  ;;  %v12935_v47 = vld [vmem:[%s17548_s2 + $0x9b0] ss:$12 sps:$4 sm:$0xff]  }
 0x543   :  { %3113 = vmatpush1.bf16.msra.mxu0 %v12862_v49 }
 0x544   :  { %3114 = vmatprep.subr.bf16.mxu0 %v12868_v50 }
 0x547   :  { %3115 = vmatpush1.bf16.msra.mxu0 %v12866_v51 }
 0x548   :  { %3116 = vmatprep.subr.bf16.mxu0 %v12872_v52 }
 0x54b   :  { %3117 = vmatpush1.bf16.msra.mxu0 %v12870_v48 }
 0x54c   :  { %3118 = vmatprep.subr.bf16.mxu0 %v12876_v53 }
 0x54f   :  { %3119 = vmatpush1.bf16.msra.mxu0 %v12874_v54 }
 0x550   :  { %3120 = vmatprep.subr.bf16.mxu0 %v12880_v55 }
 0x553   :  { %3121 = vmatpush1.bf16.msra.mxu0 %v12878_v57 }
 0x554   :  { %3544 = vmatprep.subr.bf16.mxu0 %v12886_v58 }
 0x5f5   :  { %v2808_v59 = vpop.f32.mrb[32].mxu0 }
 0x5f6   :  { %v2810_v60 = vpop.f32.mrb[33].mxu0 }
 0x5f7   :  { %v2812_v61 = vpop.f32.mrb[34].mxu0 }
 0x5f8   :  { %v2825_v62 = vpack.c.bf16 %v2812_v61, %v2808_v59  ;;  %v2814_v63 = vpop.f32.mrb[35].mxu0 }
 0x5f9   :  { %v2826_v0 = vpack.c.bf16 %v2814_v63, %v2810_v60 }
 0x5fb   :  { %10760 = vmatprep.mubr.msk.bf16.mxu0 %vm545_vm2, %v2826_v0  ;;  %10762 = vmatprep.mubr.msk.bf16.mxu1 %vm545_vm2, %v2826_v0 }
 0x5fc   :  { %3129 = vmatmul.mubr.bf16.vlgmr.msra.gmra.mrb[8].mxu0 %v2825_v62  ;;  %3180 = vmatmul.mubr.bf16.vlgmr.msra.gmra.mrb[8].mxu1 %v2825_v62 }
 0x5fd   :  { %3223 = vmatpush1.bf16.msra.mxu1 %v13871_v8  ;;  %v2818_v3 = vpop.f32.mrb[36].mxu0  ;;  %3545 = vmatpush1.bf16.msra.mxu0 %v12884_v1  ;;  %v12894_v8 = vld [vmem:[%s17548_s2 + $0x8bc] ss:$12 sps:$4 sm:$0xff]  }
 0x5fe   :  { %3224 = vmatprep.subr.bf16.mxu1 %v13873_v9  ;;  %v2820_v4 = vpop.f32.mrb[37].mxu0  ;;  %3546 = vmatprep.subr.bf16.mxu0 %v12890_v2  ;;  %v2827_v11 = vpack.c.bf16 %v2818_v3, %v2818_v3  ;;  %v12892_v9 = vld [vmem:[%s17548_s2 + $0x8b8] ss:$12 sps:$4 sm:$0xff]  }
 0x5ff   :  { %v2828_v5 = vpack.c.bf16 %v2820_v4, %v2820_v4  ;;  %v2822_v6 = vpop.f32.mrb[38].mxu0 }
 0x600   :  { %v2823_v12 = vpop.f32.mrb[39].mxu0 }
 0x601   :  { %3225 = vmatpush1.bf16.msra.mxu1 %v13890_v14  ;;  %10761 = vmatprep.mubr.msk.bf16.mxu0 %vm545_vm2, %v2828_v5  ;;  %v12898_v14 = vld [vmem:[%s17548_s2 + $0x8d4] ss:$12 sps:$4 sm:$0xff]  }
 0x602   :  { %3226 = vmatprep.subr.bf16.mxu1 %v13894_v15  ;;  %10763 = vmatprep.mubr.msk.bf16.mxu1 %vm545_vm2, %v2828_v5  ;;  %v12896_v15 = vld [vmem:[%s17548_s2 + $0x8d0] ss:$12 sps:$4 sm:$0xff]  }
 0x603   :  { %3547 = vmatpush1.bf16.msra.mxu0 %v12888_v10 }
 0x604   :  { %3139 = vmatmul.mubr.bf16.gmra.mrb[12].mxu0 %v2827_v11  ;;  %3188 = vmatmul.mubr.bf16.gmra.mrb[12].mxu1 %v2827_v11 }
 0x605   :  { %3227 = vmatpush1.bf16.msra.mxu1 %v13910_v20  ;;  %3254 = vmatprep.mubr.bf16.mxu1 %v13786_v7  ;;  %v12900_v20 = vld [vmem:[%s17548_s2 + $0x8e8] ss:$12 sps:$4 sm:$0xff]  }
 0x606   :  { %3228 = vmatprep.subr.bf16.mxu1 %v13920_v23  ;;  %3548 = vmatprep.subr.bf16.mxu0 %v12894_v8  ;;  %v12906_v23 = vld [vmem:[%s17548_s2 + $0x904] ss:$12 sps:$4 sm:$0xff]  }
 0x607   :  { %3549 = vmatpush1.bf16.msra.mxu0 %v12892_v9 }
 0x608   :  { %3550 = vmatprep.subr.bf16.mxu0 %v12898_v14 }
 0x609   :  { %3229 = vmatpush1.bf16.msra.mxu1 %v13933_v27  ;;  %v12904_v27 = vld [vmem:[%s17548_s2 + $0x900] ss:$12 sps:$4 sm:$0xff]  }
 0x60a   :  { %3230 = vmatprep.subr.bf16.mxu1 %v13940_v29  ;;  %v12910_v29 = vld [vmem:[%s17548_s2 + $0x91c] ss:$12 sps:$4 sm:$0xff]  }
 0x60b   :  { %3551 = vmatpush1.bf16.msra.mxu0 %v12896_v15 }
 0x60c   :  { %3552 = vmatprep.subr.bf16.mxu0 %v12902_v13 }
 0x60d   :  { %3231 = vmatpush1.bf16.msra.mxu1 %v13950_v32  ;;  %v12908_v32 = vld [vmem:[%s17548_s2 + $0x918] ss:$12 sps:$4 sm:$0xff]  }
 0x60e   :  { %3232 = vmatprep.subr.bf16.mxu1 %v13957_v34  ;;  %v12882_v34 = vld [vmem:[%s17547_s1 + $0x54] sm:$0xff]  }
 0x60f   :  { %3553 = vmatpush1.bf16.msra.mxu0 %v12900_v20 }
 0x610   :  { %3554 = vmatprep.subr.bf16.mxu0 %v12906_v23 }
 0x611   :  { %3233 = vmatpush1.bf16.msra.mxu1 %v13970_v38  ;;  %v12887_v38 = vld [vmem:[%s17548_s2 + $0x890] ss:$12 sps:$4 sm:$0xff]  }
 0x612   :  { %10769 = vmatprep.subr.msk.bf16.mxu1 %vm97_vm0, %v13974_v40  ;;  %v12912_v40 = vld [vmem:[%s17548_s2 + $0x930] ss:$12 sps:$4 sm:$0xff]  }
 0x613   :  { %3555 = vmatpush1.bf16.msra.mxu0 %v12904_v27 }
 0x614   :  { %3556 = vmatprep.subr.bf16.mxu0 %v12910_v29 }
 0x615   :  { %3235 = vmatpush1.bf16.msra.mxu1 %v13979_v41  ;;  %v12891_v41 = vld [vmem:[%s17548_s2 + $0x8a8] ss:$12 sps:$4 sm:$0xff]   ;;  %s13787_s2 = smov 64  }
 0x616   :  { %3595 = vmatprep.subr.bf16.mxu1 %v13786_v7 }
 0x617   :  { %3557 = vmatpush1.bf16.msra.mxu0 %v12908_v32 }
 0x618   :  { %10770 = vmatmul.mubr.msk.bf16.vlgmr.msra.gmra.mrb[32].mxu1 %vm90_vm1, %v12882_v34  ;;  %3558 = vmatprep.subr.bf16.mxu0 %v12914_v16 }
 0x619   :  { %3264 = vmatprep.mubr.bf16.mxu1 %v13786_v7  ;;  %3596 = vmatpush1.bf16.msra.mxu1 %v12887_v38 }
 0x61a   :  { %3597 = vmatprep.subr.bf16.mxu1 %v13786_v7 }
 0x61b   :  { %3559 = vmatpush1.bf16.msra.mxu0 %v12912_v40 }
 0x61c   :  { %3560 = vmatprep.subr.bf16.mxu0 %v12918_v17 }
 0x61d   :  { %3598 = vmatpush1.bf16.msra.mxu1 %v12891_v41 }
 0x61e   :  { %3599 = vmatprep.subr.bf16.mxu1 %v13786_v7 }
 0x61f   :  { %3561 = vmatpush1.bf16.msra.mxu0 %v12916_v18 }
 0x620   :  { %10771 = vmatmul.mubr.msk.bf16.gmra.mrb[36].mxu1 %vm90_vm1, %v12883_v19  ;;  %3562 = vmatprep.subr.bf16.mxu0 %v12922_v21 }
 0x621   :  { %3600 = vmatpush1.bf16.msra.mxu1 %v12895_v22 }
 0x622   :  { %3601 = vmatprep.subr.bf16.mxu1 %v13786_v7 }
 0x623   :  { %3563 = vmatpush1.bf16.msra.mxu0 %v12920_v24 }
 0x624   :  { %3564 = vmatprep.subr.bf16.mxu0 %v12926_v25 }
 0x625   :  { %3602 = vmatpush1.bf16.msra.mxu1 %v12899_v26 }
 0x626   :  { %3603 = vmatprep.subr.bf16.mxu1 %v13786_v7 }
 0x627   :  { %3565 = vmatpush1.bf16.msra.mxu0 %v12924_v28 }
 0x628   :  { %3566 = vmatprep.subr.bf16.mxu0 %v12930_v30 }
 0x629   :  { %3604 = vmatpush1.bf16.msra.mxu1 %v12903_v31 }
 0x62a   :  { %3605 = vmatprep.subr.bf16.mxu1 %v13786_v7 }
 0x62b   :  { %3567 = vmatpush1.bf16.msra.mxu0 %v12928_v33 }
 0x62c   :  { %3568 = vmatprep.subr.bf16.mxu0 %v12934_v45 }
 0x62d   :  { %3606 = vmatpush1.bf16.msra.mxu1 %v12907_v35 }
 0x62e   :  { %3607 = vmatprep.subr.bf16.mxu1 %v13786_v7 }
 0x62f   :  { %3569 = vmatpush1.bf16.msra.mxu0 %v12932_v46 }
 0x631   :  { %3608 = vmatpush1.bf16.msra.mxu1 %v12911_v36 }
 0x632   :  { %3609 = vmatprep.subr.bf16.mxu1 %v13786_v7 }
 0x635   :  { %3610 = vmatpush1.bf16.msra.mxu1 %v12915_v37 }
 0x636   :  { %3611 = vmatprep.subr.bf16.mxu1 %v13786_v7 }
 0x639   :  { %3612 = vmatpush1.bf16.msra.mxu1 %v12919_v39 }
 0x63a   :  { %3613 = vmatprep.subr.bf16.mxu1 %v13786_v7 }
 0x63d   :  { %3614 = vmatpush1.bf16.msra.mxu1 %v12923_v42 }
 0x63e   :  { %3615 = vmatprep.subr.bf16.mxu1 %v13786_v7 }
 0x641   :  { %3616 = vmatpush1.bf16.msra.mxu1 %v12927_v43 }
 0x642   :  { %3617 = vmatprep.subr.bf16.mxu1 %v13786_v7 }
 0x645   :  { %3618 = vmatpush1.bf16.msra.mxu1 %v12931_v44 }
 0x646   :  { %3619 = vmatprep.subr.bf16.mxu1 %v13786_v7 }
 0x649   :  { %3620 = vmatpush1.bf16.msra.mxu1 %v12935_v47 }
 0x6eb   :  { %v3256_v49 = vpop.f32.mrb[32].mxu1 }
 0x6ec   :  { %v3258_v50 = vpop.f32.mrb[33].mxu1 }
 0x6ed   :  { %v3260_v51 = vpop.f32.mrb[34].mxu1 }
 0x6ee   :  { %v3273_v52 = vpack.c.bf16 %v3260_v51, %v3256_v49  ;;  %v3262_v48 = vpop.f32.mrb[35].mxu1 }
 0x6ef   :  { %v3274_v53 = vpack.c.bf16 %v3262_v48, %v3258_v50 }
 0x6f1   :  { %10863 = vmatprep.mubr.msk.bf16.mxu0 %vm545_vm2, %v3274_v53  ;;  %10865 = vmatprep.mubr.msk.bf16.mxu1 %vm545_vm2, %v3274_v53 }
 0x6f2   :  { %3577 = vmatmul.mubr.bf16.vlgmr.msra.gmra.mrb[8].mxu0 %v3273_v52  ;;  %3628 = vmatmul.mubr.bf16.vlgmr.msra.gmra.mrb[8].mxu1 %v3273_v52 }
 0x6f3   :  { %v3266_v54 = vpop.f32.mrb[36].mxu1 }
 0x6f4   :  { %v3268_v55 = vpop.f32.mrb[37].mxu1  ;;  %v3275_v59 = vpack.c.bf16 %v3266_v54, %v3266_v54 }
 0x6f5   :  { %v3276_v56 = vpack.c.bf16 %v3268_v55, %v3268_v55  ;;  %v3270_v57 = vpop.f32.mrb[38].mxu1 }
 0x6f6   :  { %v3271_v58 = vpop.f32.mrb[39].mxu1 }
 0x6f7   :  { %10864 = vmatprep.mubr.msk.bf16.mxu0 %vm545_vm2, %v3276_v56  ;;  %10866 = vmatprep.mubr.msk.bf16.mxu1 %vm545_vm2, %v3276_v56 }
 0x6fa   :  { %3587 = vmatmul.mubr.bf16.gmra.mrb[12].mxu0 %v3275_v59  ;;  %3636 = vmatmul.mubr.bf16.gmra.mrb[12].mxu1 %v3275_v59 }
 0x6fb   :  { %3925 = vmatprep.mubr.bf16.mxu1 %v13786_v7  ;;  %4119 = vmatprep.mubr.bf16.mxu0 %v13786_v7 }
 0x7c5   :  { %v15242_v60 = vpop.f32.mrb[8].mxu0  ;;  %v15244_v61 = vpop.f32.mrb[8].mxu1 }
 0x7c6   :  { %v15246_v62 = vpop.f32.mrb[9].mxu0  ;;  %v3631_v63 = vpop.f32.mrb[9].mxu1  ;;  %v3676_v0 = vmul.f32 %v15242_v60, %v15242_v60  ;;  %v3678_v1 = vmul.f32 %v15244_v61, %v15244_v61 }
 0x7c7   :  { %v15252_v2 = vpop.f32.mrb[10].mxu0  ;;  %v15254_v3 = vpop.f32.mrb[10].mxu1  ;;  %v3677_v8 = vmul.f32 %v15246_v62, %v15246_v62 }
 0x7c8   :  { %v3652_v4 = vadd.f32 %v15252_v2, %v15242_v60  ;;  %v3679_v5 = vmul.f32 %v15252_v2, %v15252_v2  ;;  %v3668_v6 = vadd.f32 %v15254_v3, %v15244_v61  ;;  %v3681_v10 = vmul.f32 %v15254_v3, %v15254_v3  ;;  %v15264_v11 = vpop.f32.mrb[11].mxu0  ;;  %v3634_v12 = vpop.f32.mrb[11].mxu1 }
 0x7c9   :  { %v3660_v9 = vadd.f32 %v15264_v11, %v15246_v62  ;;  %v3680_v14 = vmul.f32 %v15264_v11, %v15264_v11 }
 0x7ca   :  { %v3685_v15 = vadd.f32 %v3679_v5, %v3676_v0  ;;  %v3701_v13 = vadd.f32 %v3681_v10, %v3678_v1 }
 0x7cb   :  { %v3693_v20 = vadd.f32 %v3680_v14, %v3677_v8 }
 0x7cd   :  { %v15272_v23 = vpop.f32.mrb[12].mxu0  ;;  %v15274_v27 = vpop.f32.mrb[12].mxu1 }
 0x7ce   :  { %v3653_v29 = vadd.f32 %v3652_v4, %v15272_v23  ;;  %v3682_v32 = vmul.f32 %v15272_v23, %v15272_v23  ;;  %v3669_v34 = vadd.f32 %v3668_v6, %v15274_v27  ;;  %v3684_v16 = vmul.f32 %v15274_v27, %v15274_v27  ;;  %v15282_v38 = vpop.f32.mrb[13].mxu0  ;;  %v3639_v40 = vpop.f32.mrb[13].mxu1 }
 0x7cf   :  { %v3661_v17 = vadd.f32 %v3660_v9, %v15282_v38  ;;  %v3683_v41 = vmul.f32 %v15282_v38, %v15282_v38  ;;  %v3592_v18 = vpop.f32.mrb[14].mxu0  ;;  %v3640_v19 = vpop.f32.mrb[14].mxu1 }
 0x7d0   :  { %v3654_v21 = vrot.slane %v3653_v29, 4  ;;  %v3686_v22 = vadd.f32 %v3685_v15, %v3682_v32  ;;  %v3702_v24 = vadd.f32 %v3701_v13, %v3684_v16  ;;  %v3593_v25 = vpop.f32.mrb[15].mxu0  ;;  %v3641_v26 = vpop.f32.mrb[15].mxu1  ;;  %v3670_v54 = vrot.slane %v3669_v34, 4 }
 0x7d1   :  { %v3662_v28 = vrot.slane %v3661_v17, 4  ;;  %v3694_v30 = vadd.f32 %v3693_v20, %v3683_v41 }
 0x7d2   :  { %v3655_v31 = vadd.f32 %v3654_v21, %v3653_v29  ;;  %v3687_v33 = vrot.slane %v3686_v22, 4  ;;  %v3703_v35 = vrot.slane %v3702_v24, 4  ;;  %v3671_v59 = vadd.f32 %v3670_v54, %v3669_v34 }
 0x7d3   :  { %v3663_v36 = vadd.f32 %v3662_v28, %v3661_v17  ;;  %v3695_v42 = vrot.slane %v3694_v30, 4 }
 0x7d4   :  { %v3656_v37 = vrot.slane %v3655_v31, 2  ;;  %v3688_v39 = vadd.f32 %v3687_v33, %v3686_v22  ;;  %v3704_v45 = vadd.f32 %v3703_v35, %v3702_v24  ;;  %v3672_v4 = vrot.slane %v3671_v59, 2 }
 0x7d5   :  { %v3664_v46 = vrot.slane %v3663_v36, 2  ;;  %v3696_v50 = vadd.f32 %v3695_v42, %v3694_v30 }
 0x7d6   :  { %v3657_v43 = vadd.f32 %v3656_v37, %v3655_v31  ;;  %v3689_v44 = vrot.slane %v3688_v39, 2  ;;  %v3705_v51 = vrot.slane %v3704_v45, 2  ;;  %v3673_v10 = vadd.f32 %v3672_v4, %v3671_v59 }
 0x7d7   :  { %v3665_v52 = vadd.f32 %v3664_v46, %v3663_v36  ;;  %v3697_v55 = vrot.slane %v3696_v50, 2 }
 0x7d8   :  { %v3658_v47 = vrot.slane %v3657_v43, 1  ;;  %v3690_v49 = vadd.f32 %v3689_v44, %v3688_v39  ;;  %v3706_v58 = vadd.f32 %v3705_v51, %v3704_v45  ;;  %v3674_v8 = vrot.slane %v3673_v10, 1 }
 0x7d9   :  { %v3666_v57 = vrot.slane %v3665_v52, 1  ;;  %v3698_v1 = vadd.f32 %v3697_v55, %v3696_v50 }
 0x7da   :  { %v3659_v48 = vadd.f32 %v3658_v47, %v3657_v43  ;;  %v3691_v53 = vrot.slane %v3690_v49, 1  ;;  %v3707_v0 = vrot.slane %v3706_v58, 1  ;;  %v3675_v9 = vadd.f32 %v3674_v8, %v3673_v10 }
 0x7db   :  { %v3667_v63 = vadd.f32 %v3666_v57, %v3665_v52  ;;  %v3699_v6 = vrot.slane %v3698_v1, 1 }
 0x7dc   :  { %3719 = vrot.lane.b32.xlu1 %v3659_v48, %s13787_s2  ;;  %3710 = vrot.lane.b32.xlu0 %v3659_v48, %s13788_s27  ;;  %v3692_v56 = vadd.f32 %v3691_v53, %v3690_v49  ;;  %v3708_v5 = vadd.f32 %v3707_v0, %v3706_v58  ;;  %v77_v0 = vld [vmem:[%s17555_s9] sm:$0x1] }
 0x7dd   :  { %v3700_v12 = vadd.f32 %v3699_v6, %v3698_v1 }
 0x7e0   :  { %3723 = vrot.lane.b32.xlu1 %v3692_v56, %s13787_s2  ;;  %3727 = vrot.lane.b32.xlu0 %v3659_v48, %s13789_s28 }
 0x7e4   :  { %3731 = vrot.lane.b32.xlu1 %v3692_v56, %s13789_s28  ;;  %3738 = vrot.lane.b32.xlu0 %v3667_v63, %s13788_s27 }
 0x7e8   :  { %3771 = vrot.lane.b32.xlu1 %v3708_v5, %s13788_s27  ;;  %3715 = vrot.lane.b32.xlu0 %v3692_v56, %s13788_s27 }
 0x7ec   :  { %3743 = vrot.lane.b32.xlu1 %v3700_v12, %s13788_s27  ;;  %3747 = vrot.lane.b32.xlu0 %v3667_v63, %s13787_s2 }
 0x7f0   :  { %3751 = vrot.lane.b32.xlu1 %v3700_v12, %s13787_s2  ;;  %3755 = vrot.lane.b32.xlu0 %v3667_v63, %s13789_s28 }
 0x7f4   :  { %3759 = vrot.lane.b32.xlu1 %v3700_v12, %s13789_s28  ;;  %3766 = vrot.lane.b32.xlu0 %v3675_v9, %s13788_s27 }
 0x7f8   :  { %3779 = vrot.lane.b32.xlu1 %v3708_v5, %s13787_s2  ;;  %3775 = vrot.lane.b32.xlu0 %v3675_v9, %s13787_s2 }
 0x7fc   :  { %3787 = vrot.lane.b32.xlu1 %v3708_v5, %s13789_s28  ;;  %3783 = vrot.lane.b32.xlu0 %v3675_v9, %s13789_s28 }
 0x84e   :  { %v3720_v14 = vpop.permute.xlu1 %3719  ;;  %v3711_v15 = vpop.permute.xlu0 %3710 }
 0x84f   :  { %v3713_v13 = vadd.f32 %v3711_v15, %v3659_v48 }
 0x851   :  { %v3722_v32 = vadd.f32 %v3720_v14, %v3713_v13 }
 0x852   :  { %v3724_v20 = vpop.permute.xlu1 %3723  ;;  %v3728_v29 = vpop.permute.xlu0 %3727 }
 0x853   :  { %v3730_v40 = vadd.f32 %v3728_v29, %v3722_v32 }
 0x855   :  { %v3735_v18 = vadd.f32 %v3730_v40, %v3667_v63 }
 0x856   :  { %v3732_v34 = vpop.permute.xlu1 %3731  ;;  %v3739_v16 = vpop.permute.xlu0 %3738 }
 0x857   :  { %v3741_v25 = vadd.f32 %v3739_v16, %v3735_v18 }
 0x85a   :  { %v3772_v17 = vpop.permute.xlu1 %3771  ;;  %v3716_v41 = vpop.permute.xlu0 %3715 }
 0x85b   :  { %v3718_v19 = vadd.f32 %v3716_v41, %v3692_v56 }
 0x85d   :  { %v3726_v21 = vadd.f32 %v3724_v20, %v3718_v19 }
 0x85e   :  { %v3744_v22 = vpop.permute.xlu1 %3743  ;;  %v3748_v24 = vpop.permute.xlu0 %3747 }
 0x85f   :  { %v3734_v26 = vadd.f32 %v3732_v34, %v3726_v21  ;;  %v3750_v30 = vadd.f32 %v3748_v24, %v3741_v25 }
 0x861   :  { %v3736_v28 = vadd.f32 %v3734_v26, %v3700_v12  ;;  %v3830_v12 = vlaneseq }
 0x862   :  { %v3752_v31 = vpop.permute.xlu1 %3751  ;;  %v3756_v33 = vpop.permute.xlu0 %3755 }
 0x863   :  { %v3746_v35 = vadd.f32 %v3744_v22, %v3736_v28  ;;  %v3758_v36 = vadd.f32 %v3756_v33, %v3750_v30  ;;  %v15317_v8 = vshrl.u32 %v3830_v12, 7  ;;  %v12943_v12 = vld [vmem:[%s17550_s4 + $0x25c] ss:$12 sps:$4 sm:$0xff]  }
 0x865   :  { %v3754_v37 = vadd.f32 %v3752_v31, %v3746_v35  ;;  %v3763_v44 = vadd.f32 %v3758_v36, %v3675_v9  ;;  %v15320_v13 = vsub.s32 0, %v15317_v8 }
 0x866   :  { %v3760_v39 = vpop.permute.xlu1 %3759  ;;  %v3767_v42 = vpop.permute.xlu0 %3766 }
 0x867   :  { %v3762_v43 = vadd.f32 %v3760_v39, %v3754_v37  ;;  %v3769_v49 = vadd.f32 %v3767_v42, %v3763_v44 }
 0x869   :  { %v3764_v45 = vadd.f32 %v3762_v43, %v3708_v5  ;;  %v78_v5 = vld [vmem:[%s17555_s9 + $0x1] sm:$0x1] }
 0x86a   :  { %v3780_v46 = vpop.permute.xlu1 %3779  ;;  %v3776_v47 = vpop.permute.xlu0 %3775 }
 0x86b   :  { %v3774_v50 = vadd.f32 %v3772_v17, %v3764_v45  ;;  %v3778_v52 = vadd.f32 %v3776_v47, %v3769_v49 }
 0x86d   :  { %v3782_v51 = vadd.f32 %v3780_v46, %v3774_v50 }
 0x86e   :  { %v3788_v48 = vpop.permute.xlu1 %3787  ;;  %v3784_v53 = vpop.permute.xlu0 %3783 }
 0x86f   :  { %v3790_v54 = vadd.f32 %v3788_v48, %v3782_v51  ;;  %v3786_v55 = vadd.f32 %v3784_v53, %v3778_v52 }
 0x871   :  { %v3792_v56 = vmul.f32 0.0034722222, %v3786_v55  ;;  %v3793_v57 = vmul.f32 0.0034722222, %v3790_v54  ;;  %v12936_v54 = vld [vmem:[%s17549_s3] sm:$0x1f]  }
 0x872   :  { %v12937_v55 = vld [vmem:[%s17549_s3 + $0x8] sm:$0x1f]  }
 0x873   :  { %v3794_v58 = vmul.f32 %v3792_v56, %v3792_v56 }
 0x875   :  { %v3795_v59 = vsub.f32 %v3793_v57, %v3794_v58  ;;  %v13790_v57 = vmov 0.0   ;;  %v12974_v58 = vld [vmem:[%s17550_s4 + $0x3c0] ss:$12 sps:$4 sm:$0xff]  }
 0x877   :  { %v3796_v63 = vadd.f32 1e-05, %v3795_v59  ;;  %v12982_v59 = vld [vmem:[%s17550_s4 + $0x3dc] ss:$12 sps:$4 sm:$0xff]  }
 0x879   :  { %13756 = vrsqrt.f32 %v3796_v63 }
 0x883   :  { %v13757_v1 = vpop.eup %13756 }
 0x884   :  { %v3798_v4 = vmul.f32 %v13757_v1, %v77_v0  ;;  %v12980_v0 = vld [vmem:[%s17550_s4 + $0x3d8] ss:$12 sps:$4 sm:$0xff]   ;;  %v12988_v1 = vld [vmem:[%s17550_s4 + $0x3f4] ss:$12 sps:$4 sm:$0xff]  }
 0x886   :  { %v3799_v6 = vmul.f32 %v3798_v4, %v3792_v56  ;;  %3805 = vrot.lane.b32.xlu1 %v3798_v4, %s13787_s2  ;;  %3802 = vrot.lane.b32.xlu0 %v3798_v4, %s13789_s28 }
 0x888   :  { %v3800_v10 = vsub.f32 %v78_v5, %v3799_v6  ;;  %v12986_v5 = vld [vmem:[%s17550_s4 + $0x3f0] ss:$12 sps:$4 sm:$0xff]  }
 0x889   :  { %v12940_v6 = vld [vmem:[%s17550_s4 + $0x244] ss:$12 sps:$4 sm:$0xff]  }
 0x88a   :  { %3808 = vrot.lane.b32.xlu0 %v3798_v4, %s13788_s27  ;;  %3818 = vrot.lane.b32.xlu1 %v3800_v10, %s13789_s28 }
 0x88e   :  { %3821 = vrot.lane.b32.xlu0 %v3800_v10, %s13787_s2  ;;  %3824 = vrot.lane.b32.xlu1 %v3800_v10, %s13788_s27 }
 0x8f8   :  { %v3806_v9 = vpop.permute.xlu1 %3805  ;;  %v3803_v14 = vpop.permute.xlu0 %3802 }
 0x8f9   :  { %v3812_v15 = vsel %vm3811_vm3, %v3798_v4, %v3803_v14  ;;  %v12946_v14 = vld [vmem:[%s17550_s4 + $0x274] ss:$12 sps:$4 sm:$0xff]  }
 0x8fa   :  { %v3814_v20 = vsel %vm3813_vm4, %v3812_v15, %v3806_v9  ;;  %v12941_v9 = vld [vmem:[%s17550_s4 + $0x258] ss:$12 sps:$4 sm:$0xff]   ;;  %v12944_v15 = vld [vmem:[%s17550_s4 + $0x270] ss:$12 sps:$4 sm:$0xff]  }
 0x8fc   :  { %v3809_v29 = vpop.permute.xlu0 %3808  ;;  %v3819_v32 = vpop.permute.xlu1 %3818 }
 0x8fd   :  { %v3816_v34 = vsel %vm3815_vm5, %v3814_v20, %v3809_v29  ;;  %v3827_v40 = vsel %vm3811_vm3, %v3800_v10, %v3819_v32  ;;  %v12938_v10 = vld [vmem:[%s17550_s4 + $0x240] ss:$12 sps:$4 sm:$0xff]   ;;  %v12947_v29 = vld [vmem:[%s17550_s4 + $0x288] ss:$12 sps:$4 sm:$0xff]   ;;  %v12952_v32 = vld [vmem:[%s17550_s4 + $0x2a4] ss:$12 sps:$4 sm:$0xff]  }
 0x8fe   :  { %v3833_v16 = vrot.slane %v3816_v34, %v15320_v13  ;;  %v12949_v20 = vld [vmem:[%s17550_s4 + $0x28c] ss:$12 sps:$4 sm:$0xff]  }
 0x8ff   :  { %v12950_v34 = vld [vmem:[%s17550_s4 + $0x2a0] ss:$12 sps:$4 sm:$0xff]  }
 0x900   :  { %v3822_v17 = vpop.permute.xlu0 %3821  ;;  %v3825_v41 = vpop.permute.xlu1 %3824  ;;  %v3835_v21 = vmul.f32 %v3833_v16, %v15246_v62  ;;  %v3838_v24 = vmul.f32 %v3833_v16, %v15264_v11  ;;  %v3834_v25 = vmul.f32 %v3833_v16, %v15242_v60  ;;  %v3837_v26 = vmul.f32 %v3833_v16, %v15252_v2 }
 0x901   :  { %v3828_v18 = vsel %vm3813_vm4, %v3827_v40, %v3822_v17  ;;  %v3841_v28 = vmul.f32 %v3833_v16, %v15282_v38  ;;  %v3840_v30 = vmul.f32 %v3833_v16, %v15272_v23  ;;  %v3836_v31 = vmul.f32 %v3833_v16, %v15244_v61  ;;  %v12953_v40 = vld [vmem:[%s17550_s4 + $0x2b8] ss:$12 sps:$4 sm:$0xff]   ;;  %v12958_v17 = vld [vmem:[%s17550_s4 + $0x2d4] ss:$12 sps:$4 sm:$0xff]  }
 0x902   :  { %v3829_v19 = vsel %vm3815_vm5, %v3828_v18, %v3825_v41  ;;  %v3839_v33 = vmul.f32 %v3833_v16, %v15254_v3  ;;  %v3842_v3 = vmul.f32 %v3833_v16, %v15274_v27  ;;  %v12976_v27 = vld [vmem:[%s17550_s4 + $0x3c4] ss:$12 sps:$4 sm:$0xff]   ;;  %v12955_v16 = vld [vmem:[%s17550_s4 + $0x2bc] ss:$12 sps:$4 sm:$0xff]   ;;  %v12961_v18 = vld [vmem:[%s17550_s4 + $0x2ec] ss:$12 sps:$4 sm:$0xff]  }
 0x903   :  { %v3846_v22 = vrot.slane %v3829_v19, %v15320_v13  ;;  %v12956_v41 = vld [vmem:[%s17550_s4 + $0x2d0] ss:$12 sps:$4 sm:$0xff]   ;;  %v12959_v19 = vld [vmem:[%s17550_s4 + $0x2e8] ss:$12 sps:$4 sm:$0xff]  }
 0x905   :  { %v3848_v35 = vadd.f32 %v3846_v22, %v3835_v21  ;;  %v3851_v36 = vadd.f32 %v3846_v22, %v3838_v24  ;;  %v3847_v37 = vadd.f32 %v3846_v22, %v3834_v25  ;;  %v3850_v62 = vadd.f32 %v3846_v22, %v3837_v26  ;;  %v12964_v21 = vld [vmem:[%s17550_s4 + $0x304] ss:$12 sps:$4 sm:$0xff]   ;;  %v12967_v24 = vld [vmem:[%s17550_s4 + $0x31c] ss:$12 sps:$4 sm:$0xff]   ;;  %v12970_v26 = vld [vmem:[%s17550_s4 + $0x334] ss:$12 sps:$4 sm:$0xff]  }
 0x906   :  { %v3854_v39 = vadd.f32 %v3846_v22, %v3841_v28  ;;  %v3853_v42 = vadd.f32 %v3846_v22, %v3840_v30  ;;  %v3849_v43 = vadd.f32 %v3846_v22, %v3836_v31  ;;  %v3852_v11 = vadd.f32 %v3846_v22, %v3839_v33  ;;  %v12965_v25 = vld [vmem:[%s17550_s4 + $0x318] ss:$12 sps:$4 sm:$0xff]   ;;  %v12968_v28 = vld [vmem:[%s17550_s4 + $0x330] ss:$12 sps:$4 sm:$0xff]   ;;  %v12971_v31 = vld [vmem:[%s17550_s4 + $0x348] ss:$12 sps:$4 sm:$0xff]  }
 0x907   :  { %v3857_v44 = vmax.f32 %v3848_v35, 0.0  ;;  %v3860_v60 = vmax.f32 %v3851_v36, 0.0  ;;  %v3856_v45 = vmax.f32 %v3847_v37, 0.0  ;;  %v3859_v2 = vmax.f32 %v3850_v62, 0.0  ;;  %v12973_v30 = vld [vmem:[%s17550_s4 + $0x34c] ss:$12 sps:$4 sm:$0xff]  }
 0x908   :  { %v3863_v46 = vmax.f32 %v3854_v39, 0.0  ;;  %v3862_v38 = vmax.f32 %v3853_v42, 0.0  ;;  %v3858_v47 = vmax.f32 %v3849_v43, 0.0  ;;  %v3861_v23 = vmax.f32 %v3852_v11, 0.0  ;;  %v12979_v33 = vld [vmem:[%s17550_s4 + $0x364] ss:$12 sps:$4 sm:$0xff]  }
 0x909   :  { %v15334_v49 = vpack.c.bf16 %v3860_v60, %v3857_v44  ;;  %v15336_v61 = vpack.c.bf16 %v3859_v2, %v3856_v45  ;;  %v3855_v48 = vadd.f32 %v3846_v22, %v3842_v3  ;;  %v12962_v22 = vld [vmem:[%s17550_s4 + $0x300] ss:$12 sps:$4 sm:$0xff]   ;;  %v12985_v36 = vld [vmem:[%s17550_s4 + $0x37c] ss:$12 sps:$4 sm:$0xff]   ;;  %v12983_v37 = vld [vmem:[%s17550_s4 + $0x378] ss:$12 sps:$4 sm:$0xff]  }
 0x90a   :  { %v15339_v50 = vpack.c.bf16 %v3861_v23, %v3858_v47  ;;  %v15343_v51 = vpack.c.bf16 %v3863_v46, %v3863_v46  ;;  %v3868_v52 = vpack.c.bf16 %v3862_v38, %v3862_v38  ;;  %v12977_v35 = vld [vmem:[%s17550_s4 + $0x360] ss:$12 sps:$4 sm:$0xff]   ;;  %v12989_v39 = vld [vmem:[%s17550_s4 + $0x390] ss:$12 sps:$4 sm:$0xff]   ;;  %v12992_v42 = vld [vmem:[%s17550_s4 + $0x408] ss:$12 sps:$4 sm:$0xff]  }
 0x90b   :  { %3893 = vmatprep.subr.bf16.mxu1 %v15334_v49  ;;  %4087 = vmatprep.subr.bf16.mxu0 %v15334_v49  ;;  %v3864_v56 = vmax.f32 %v3855_v48, 0.0  ;;  %v12991_v62 = vld [vmem:[%s17550_s4 + $0x394] ss:$12 sps:$4 sm:$0xff]   ;;  %v12994_v43 = vld [vmem:[%s17550_s4 + $0x40c] ss:$12 sps:$4 sm:$0xff]  }
 0x90c   :  { %3894 = vmatpush1.bf16.msra.mxu1 %v15336_v61  ;;  %4088 = vmatpush1.bf16.msra.mxu0 %v15336_v61  ;;  %v15355_v53 = vsel %vm97_vm0, %v3868_v52, 0  ;;  %v12995_v11 = vld [vmem:[%s17550_s4 + $0x3a8] ss:$12 sps:$4 sm:$0xff]   ;;  %v12997_v44 = vld [vmem:[%s17550_s4 + $0x3ac] ss:$12 sps:$4 sm:$0xff]  }
 0x90d   :  { %10868 = vmatprep.subr.msk.bf16.mxu1 %vm97_vm0, %v15343_v51  ;;  %10874 = vmatprep.subr.msk.bf16.mxu0 %vm97_vm0, %v15343_v51  ;;  %v3870_v63 = vpack.c.bf16 %v3864_v56, %v3864_v56  ;;  %v12998_v60 = vld [vmem:[%s17550_s4 + $0x420] ss:$12 sps:$4 sm:$0xff]   ;;  %v13000_v45 = vld [vmem:[%s17550_s4 + $0x424] ss:$12 sps:$4 sm:$0xff]   ;;  %v13001_v2 = vld [vmem:[%s17550_s4 + $0x308] ss:$12 sps:$4 sm:$0xff]  }
 0x90e   :  { %v13003_v46 = vld [vmem:[%s17550_s4 + $0x438] ss:$12 sps:$4 sm:$0xff]   ;;  %v13005_v38 = vld [vmem:[%s17550_s4 + $0x43c] ss:$12 sps:$4 sm:$0xff]   ;;  %v13010_v23 = vld [vmem:[%s17550_s4 + $0x454] ss:$12 sps:$4 sm:$0xff]  }
 0x90f   :  { %v15386_v4 = vsel %vm97_vm0, %v3870_v63, 0  ;;  %v13008_v47 = vld [vmem:[%s17550_s4 + $0x450] ss:$12 sps:$4 sm:$0xff]   ;;  %v13013_v3 = vld [vmem:[%s17550_s4 + $0x468] ss:$12 sps:$4 sm:$0xff]  }
 0x910   :  { %3896 = vmatpush1.bf16.msra.mxu1 %v15355_v53  ;;  %4090 = vmatpush1.bf16.msra.mxu0 %v15355_v53  ;;  %v13015_v52 = vld [vmem:[%s17550_s4 + $0x46c] ss:$12 sps:$4 sm:$0xff]   ;;  %v13026_v48 = vld [vmem:[%s17550_s4 + $0x184] ss:$12 sps:$4 sm:$0xff]  }
 0x911   :  { %12162 = vmatprep.subr.bf16.mxu1 %v13790_v57  ;;  %4698 = vmatprep.subr.bf16.mxu0 %v12976_v27 }
 0x913   :  { %10869 = vmatmul.mubr.msk.bf16.vlgmr.msra.gmra.mrb[40].mxu1 %vm3880_vm6, %v12936_v54  ;;  %10875 = vmatmul.mubr.msk.bf16.vlgmr.msra.gmra.mrb[40].mxu0 %vm3880_vm6, %v12937_v55 }
 0x914   :  { %12163 = vmatpush3.bf16.msra.mxu1 %v15339_v50  ;;  %12166 = vmatprep.mubr.msk.bf16.mxu1 %vm13791_vm7, %v13790_v57 }
 0x915   :  { %12164 = vmatprep.subr.bf16.mxu1 %v13790_v57  ;;  %4699 = vmatpush1.bf16.msra.mxu0 %v12974_v58 }
 0x916   :  { %4700 = vmatprep.subr.bf16.mxu0 %v12982_v59  ;;  %4730 = vmatprep.mubr.bf16.mxu0 %v13786_v7 }
 0x918   :  { %12165 = vmatpush3.bf16.msra.mxu1 %v15386_v4 }
 0x919   :  { %12170 = vmatprep.subr.bf16.mxu1 %v13790_v57  ;;  %4701 = vmatpush1.bf16.msra.mxu0 %v12980_v0 }
 0x91a   :  { %4702 = vmatprep.subr.bf16.mxu0 %v12988_v1 }
 0x91b   :  { %12167 = vmatmul.mubr.msk.bf16.vlgmr.msra.gmra.mrb[44].mxu1 %vm3880_vm6, %v12936_v54 }
 0x91c   :  { %12171 = vmatpush3.bf16.msra.mxu1 %v15339_v50  ;;  %12174 = vmatprep.mubr.msk.bf16.mxu1 %vm13791_vm7, %v13790_v57 }
 0x91d   :  { %12172 = vmatprep.subr.bf16.mxu1 %v13790_v57  ;;  %4703 = vmatpush1.bf16.msra.mxu0 %v12986_v5 }
 0x91e   :  { %4704 = vmatprep.subr.bf16.mxu0 %v12994_v43  ;;  %v13027_v43 = vld [vmem:[%s17550_s4 + $0x3b0] ss:$12 sps:$4 sm:$0xff]  }
 0x920   :  { %12173 = vmatpush3.bf16.msra.mxu1 %v15386_v4 }
 0x921   :  { %4655 = vmatprep.subr.bf16.mxu1 %v12940_v6  ;;  %4705 = vmatpush1.bf16.msra.mxu0 %v12992_v42  ;;  %v13023_v42 = vld [vmem:[%s17550_s4 + $0x2d8] ss:$12 sps:$4 sm:$0xff]  }
 0x922   :  { %4706 = vmatprep.subr.bf16.mxu0 %v13000_v45  ;;  %v13041_v45 = vld [vmem:[%s17550_s4 + $0x1e0] ss:$12 sps:$4 sm:$0xff]  }
 0x923   :  { %12175 = vmatmul.mubr.msk.bf16.vlgmr.msra.gmra.mrb[48].mxu1 %vm3880_vm6, %v12937_v55 }
 0x924   :  { %4656 = vmatpush1.bf16.msra.mxu1 %v12938_v10  ;;  %v13002_v10 = vld [vmem:[%s17550_s4 + $0x248] ss:$12 sps:$4 sm:$0xff]  }
 0x925   :  { %4657 = vmatprep.subr.bf16.mxu1 %v12943_v12  ;;  %4707 = vmatpush1.bf16.msra.mxu0 %v12998_v60  ;;  %v13028_v60 = vld [vmem:[%s17550_s4 + $0x2f0] ss:$12 sps:$4 sm:$0xff]  }
 0x926   :  { %4708 = vmatprep.subr.bf16.mxu0 %v13005_v38  ;;  %v13045_v38 = vld [vmem:[%s17550_s4 + $0x1f8] ss:$12 sps:$4 sm:$0xff]  }
 0x928   :  { %4658 = vmatpush1.bf16.msra.mxu1 %v12941_v9  ;;  %v13006_v9 = vld [vmem:[%s17550_s4 + $0x320] ss:$12 sps:$4 sm:$0xff]  }
 0x929   :  { %4659 = vmatprep.subr.bf16.mxu1 %v12946_v14  ;;  %4709 = vmatpush1.bf16.msra.mxu0 %v13003_v46  ;;  %v13007_v14 = vld [vmem:[%s17550_s4 + $0x260] ss:$12 sps:$4 sm:$0xff]   ;;  %v13032_v46 = vld [vmem:[%s17550_s4 + $0x3c8] ss:$12 sps:$4 sm:$0xff]  }
 0x92a   :  { %4710 = vmatprep.subr.bf16.mxu0 %v13010_v23  ;;  %v13036_v23 = vld [vmem:[%s17550_s4 + $0x3e0] ss:$12 sps:$4 sm:$0xff]  }
 0x92c   :  { %4660 = vmatpush1.bf16.msra.mxu1 %v12944_v15 }
 0x92d   :  { %4661 = vmatprep.subr.bf16.mxu1 %v12949_v20  ;;  %4711 = vmatpush1.bf16.msra.mxu0 %v13008_v47  ;;  %v13051_v47 = vld [vmem:[%s17550_s4 + $0x214] ss:$12 sps:$4 sm:$0xff]  }
 0x92e   :  { %4712 = vmatprep.subr.bf16.mxu0 %v13015_v52  ;;  %v13055_v52 = vld [vmem:[%s17550_s4 + $0x22c] ss:$12 sps:$4 sm:$0xff]  }
 0x930   :  { %4662 = vmatpush1.bf16.msra.mxu1 %v12947_v29  ;;  %v13011_v29 = vld [vmem:[%s17550_s4 + $0x338] ss:$12 sps:$4 sm:$0xff]  }
 0x931   :  { %4663 = vmatprep.subr.bf16.mxu1 %v12952_v32  ;;  %4713 = vmatpush1.bf16.msra.mxu0 %v13013_v3  ;;  %v13049_v3 = vld [vmem:[%s17550_s4 + $0x210] ss:$12 sps:$4 sm:$0xff]  }
 0x932   :  { %5250 = vmatprep.subr.bf16.mxu0 %v13026_v48  ;;  %v13040_v48 = vld [vmem:[%s17550_s4 + $0x3f8] ss:$12 sps:$4 sm:$0xff]  }
 0x934   :  { %4664 = vmatpush1.bf16.msra.mxu1 %v12950_v34 }
 0x935   :  { %4665 = vmatprep.subr.bf16.mxu1 %v12955_v16 }
 0x938   :  { %4666 = vmatpush1.bf16.msra.mxu1 %v12953_v40  ;;  %v13012_v40 = vld [vmem:[%s17550_s4 + $0x278] ss:$12 sps:$4 sm:$0xff]  }
 0x939   :  { %4667 = vmatprep.subr.bf16.mxu1 %v12958_v17  ;;  %v13016_v17 = vld [vmem:[%s17550_s4 + $0x350] ss:$12 sps:$4 sm:$0xff]  }
 0x93c   :  { %4668 = vmatpush1.bf16.msra.mxu1 %v12956_v41 }
 0x93d   :  { %4669 = vmatprep.subr.bf16.mxu1 %v12961_v18  ;;  %v13017_v18 = vld [vmem:[%s17550_s4 + $0x290] ss:$12 sps:$4 sm:$0xff]  }
 0x940   :  { %4670 = vmatpush1.bf16.msra.mxu1 %v12959_v19 }
 0x941   :  { %4671 = vmatprep.subr.bf16.mxu1 %v12964_v21  ;;  %v13018_v21 = vld [vmem:[%s17550_s4 + $0x368] ss:$12 sps:$4 sm:$0xff]  }
 0x944   :  { %4672 = vmatpush1.bf16.msra.mxu1 %v12962_v22 }
 0x945   :  { %4673 = vmatprep.subr.bf16.mxu1 %v12967_v24  ;;  %v13024_v24 = vld [vmem:[%s17550_s4 + $0x180] ss:$12 sps:$4 sm:$0xff]  }
 0x948   :  { %4674 = vmatpush1.bf16.msra.mxu1 %v12965_v25 }
 0x949   :  { %4675 = vmatprep.subr.bf16.mxu1 %v12970_v26  ;;  %v13031_v26 = vld [vmem:[%s17550_s4 + $0x19c] ss:$12 sps:$4 sm:$0xff]  }
 0x94c   :  { %4676 = vmatpush1.bf16.msra.mxu1 %v12968_v28 }
 0x94d   :  { %4677 = vmatprep.subr.bf16.mxu1 %v12973_v30  ;;  %v13019_v30 = vld [vmem:[%s17550_s4 + $0x2a8] ss:$12 sps:$4 sm:$0xff]  }
 0x950   :  { %4678 = vmatpush1.bf16.msra.mxu1 %v12971_v31  ;;  %v13020_v31 = vld [vmem:[%s17550_s4 + $0x380] ss:$12 sps:$4 sm:$0xff]  }
 0x951   :  { %4679 = vmatprep.subr.bf16.mxu1 %v12979_v33  ;;  %v13029_v33 = vld [vmem:[%s17550_s4 + $0x198] ss:$12 sps:$4 sm:$0xff]  }
 0x954   :  { %4680 = vmatpush1.bf16.msra.mxu1 %v12977_v35  ;;  %v13035_v35 = vld [vmem:[%s17550_s4 + $0x1b4] ss:$12 sps:$4 sm:$0xff]  }
 0x955   :  { %4681 = vmatprep.subr.bf16.mxu1 %v12985_v36  ;;  %v13021_v36 = vld [vmem:[%s17550_s4 + $0x2c0] ss:$12 sps:$4 sm:$0xff]  }
 0x958   :  { %4682 = vmatpush1.bf16.msra.mxu1 %v12983_v37  ;;  %v13022_v37 = vld [vmem:[%s17550_s4 + $0x398] ss:$12 sps:$4 sm:$0xff]  }
 0x959   :  { %4683 = vmatprep.subr.bf16.mxu1 %v12991_v62  ;;  %v13033_v62 = vld [vmem:[%s17550_s4 + $0x1b0] ss:$12 sps:$4 sm:$0xff]  }
 0x95c   :  { %4684 = vmatpush1.bf16.msra.mxu1 %v12989_v39  ;;  %v13039_v39 = vld [vmem:[%s17550_s4 + $0x1cc] ss:$12 sps:$4 sm:$0xff]  }
 0x95d   :  { %4685 = vmatprep.subr.bf16.mxu1 %v12997_v44  ;;  %v13043_v44 = vld [vmem:[%s17550_s4 + $0x1e4] ss:$12 sps:$4 sm:$0xff]  }
 0x960   :  { %4686 = vmatpush1.bf16.msra.mxu1 %v12995_v11  ;;  %v13037_v11 = vld [vmem:[%s17550_s4 + $0x1c8] ss:$12 sps:$4 sm:$0xff]  }
 0x961   :  { %12026 = vmatprep.subr.bf16.mxu1 %v13001_v2  ;;  %v13047_v2 = vld [vmem:[%s17550_s4 + $0x1fc] ss:$12 sps:$4 sm:$0xff]  }
 0x9e6   :  { %v4121_v27 = vpop.f32.mrb[40].mxu0  ;;  %v3927_v54 = vpop.f32.mrb[40].mxu1 }
 0x9e7   :  { %v4123_v55 = vpop.f32.mrb[41].mxu0  ;;  %v3929_v56 = vpop.f32.mrb[41].mxu1 }
 0x9e8   :  { %v4125_v58 = vpop.f32.mrb[42].mxu0  ;;  %v3931_v59 = vpop.f32.mrb[42].mxu1 }
 0x9e9   :  { %v15532_v63 = vpack.c.bf16 %v4125_v58, %v4121_v27  ;;  %v4127_v0 = vpop.f32.mrb[43].mxu0  ;;  %v15534_v1 = vpack.c.bf16 %v3931_v59, %v3927_v54  ;;  %v3933_v5 = vpop.f32.mrb[43].mxu1  ;;  %v13053_v27 = vld [vmem:[%s17550_s4 + $0x228] ss:$12 sps:$4 sm:$0xff]   ;;  %v13044_v54 = vld [vmem:[%s17550_s4 + $0x410] ss:$12 sps:$4 sm:$0xff]  }
 0x9ea   :  { %v4172_v6 = vpack.c.bf16 %v4127_v0, %v4123_v55  ;;  %v15539_v12 = vpack.c.bf16 %v3933_v5, %v3929_v56  ;;  %v13048_v55 = vld [vmem:[%s17550_s4 + $0x428] ss:$12 sps:$4 sm:$0xff]   ;;  %v13052_v56 = vld [vmem:[%s17550_s4 + $0x440] ss:$12 sps:$4 sm:$0xff]   ;;  %v13056_v58 = vld [vmem:[%s17550_s4 + $0x458] ss:$12 sps:$4 sm:$0xff]  }
 0x9eb   :  { %v13057_v59 = vld [vmem:[%s17550_s4 + $0x470] ss:$12 sps:$4 sm:$0xff]   ;;  %v13058_v0 = vld [vmem:[%s17550_s4] ss:$12 sps:$4 sm:$0xff]  }
 0x9ec   :  { %4687 = vmatprep.mubr.bf16.mxu1 %v4172_v6  ;;  %v13063_v5 = vld [vmem:[%s17550_s4 + $0x1c] ss:$12 sps:$4 sm:$0xff]  }
 0x9ed   :  { %4688 = vmatmul.mubr.bf16.vlgmr.msra.gmra.mrb[52].mxu1 %v15532_v63 }
 0x9ee   :  { %12027 = vmatpush3.bf16.msra.mxu1 %v13002_v10  ;;  %4773 = vmatprep.mubr.bf16.mxu1 %v4172_v6  ;;  %v3970_v15 = vpop.f32.mrb[44].mxu1  ;;  %v13061_v6 = vld [vmem:[%s17550_s4 + $0x18] ss:$12 sps:$4 sm:$0xff]   ;;  %v13066_v10 = vld [vmem:[%s17550_s4 + $0x34] ss:$12 sps:$4 sm:$0xff]  }
 0x9ef   :  { %12028 = vmatprep.subr.bf16.mxu1 %v13006_v9  ;;  %v12168_v20 = vpop.f32.mrb[45].mxu1  ;;  %v13064_v9 = vld [vmem:[%s17550_s4 + $0x30] ss:$12 sps:$4 sm:$0xff]  }
 0x9f0   :  { %v3973_v32 = vpop.f32.mrb[46].mxu1  ;;  %v13072_v20 = vld [vmem:[%s17550_s4 + $0x64] ss:$12 sps:$4 sm:$0xff]  }
 0x9f1   :  { %v15551_v34 = vpack.c.bf16 %v3973_v32, %v3970_v15  ;;  %v12169_v16 = vpop.f32.mrb[47].mxu1  ;;  %v13067_v15 = vld [vmem:[%s17550_s4 + $0x48] ss:$12 sps:$4 sm:$0xff]  }
 0x9f2   :  { %12029 = vmatpush3.bf16.msra.mxu1 %v13007_v14  ;;  %v13069_v14 = vld [vmem:[%s17550_s4 + $0x4c] ss:$12 sps:$4 sm:$0xff]   ;;  %v13075_v32 = vld [vmem:[%s17550_s4 + $0x7c] ss:$12 sps:$4 sm:$0xff]  }
 0x9f3   :  { %12030 = vmatprep.subr.bf16.mxu1 %v13011_v29  ;;  %v13070_v29 = vld [vmem:[%s17550_s4 + $0x60] ss:$12 sps:$4 sm:$0xff]   ;;  %v13073_v16 = vld [vmem:[%s17550_s4 + $0x78] ss:$12 sps:$4 sm:$0xff]  }
 0x9f6   :  { %12031 = vmatpush3.bf16.msra.mxu1 %v13012_v40  ;;  %v4164_v41 = vpop.f32.mrb[48].mxu1  ;;  %v13078_v40 = vld [vmem:[%s17550_s4 + $0x94] ss:$12 sps:$4 sm:$0xff]  }
 0x9f7   :  { %v12176_v19 = vpop.f32.mrb[49].mxu1  ;;  %12032 = vmatprep.subr.bf16.mxu1 %v13016_v17  ;;  %v13076_v17 = vld [vmem:[%s17550_s4 + $0x90] ss:$12 sps:$4 sm:$0xff]  }
 0x9f8   :  { %v4167_v22 = vpop.f32.mrb[50].mxu1  ;;  %v13084_v19 = vld [vmem:[%s17550_s4 + $0xc4] ss:$12 sps:$4 sm:$0xff]  }
 0x9f9   :  { %v15568_v25 = vpack.c.bf16 %v4167_v22, %v4164_v41  ;;  %v12177_v28 = vpop.f32.mrb[51].mxu1  ;;  %v13081_v41 = vld [vmem:[%s17550_s4 + $0xac] ss:$12 sps:$4 sm:$0xff]   ;;  %v13087_v22 = vld [vmem:[%s17550_s4 + $0xdc] ss:$12 sps:$4 sm:$0xff]  }
 0x9fa   :  { %12033 = vmatpush3.bf16.msra.mxu1 %v13017_v18  ;;  %v13079_v18 = vld [vmem:[%s17550_s4 + $0xa8] ss:$12 sps:$4 sm:$0xff]   ;;  %v13093_v28 = vld [vmem:[%s17550_s4 + $0x10c] ss:$12 sps:$4 sm:$0xff]  }
 0x9fb   :  { %4731 = vmatmul.mubr.bf16.vlgmr.msra.gmra.mrb[44].mxu0 %v15568_v25  ;;  %12034 = vmatprep.subr.bf16.mxu1 %v13018_v21  ;;  %v13082_v21 = vld [vmem:[%s17550_s4 + $0xc0] ss:$12 sps:$4 sm:$0xff]  }
 0x9fc   :  { %5251 = vmatpush1.bf16.msra.mxu0 %v13024_v24  ;;  %5282 = vmatprep.mubr.bf16.mxu0 %v13786_v7  ;;  %v13085_v24 = vld [vmem:[%s17550_s4 + $0xd8] ss:$12 sps:$4 sm:$0xff]  }
 0x9fd   :  { %5252 = vmatprep.subr.bf16.mxu0 %v13031_v26  ;;  %v13088_v26 = vld [vmem:[%s17550_s4 + $0xf0] ss:$12 sps:$4 sm:$0xff]  }
 0x9fe   :  { %12035 = vmatpush3.bf16.msra.mxu1 %v13019_v30  ;;  %v13091_v30 = vld [vmem:[%s17550_s4 + $0x108] ss:$12 sps:$4 sm:$0xff]  }
 0x9ff   :  { %12036 = vmatprep.subr.bf16.mxu1 %v13020_v31  ;;  %v13096_v31 = vld [vmem:[%s17550_s4 + $0x124] ss:$12 sps:$4 sm:$0xff]  }
 0xa00   :  { %5253 = vmatpush1.bf16.msra.mxu0 %v13029_v33  ;;  %v13094_v33 = vld [vmem:[%s17550_s4 + $0x120] ss:$12 sps:$4 sm:$0xff]  }
 0xa01   :  { %5254 = vmatprep.subr.bf16.mxu0 %v13035_v35  ;;  %v13099_v35 = vld [vmem:[%s17550_s4 + $0x13c] ss:$12 sps:$4 sm:$0xff]  }
 0xa02   :  { %12037 = vmatpush3.bf16.msra.mxu1 %v13021_v36  ;;  %v13097_v36 = vld [vmem:[%s17550_s4 + $0x138] ss:$12 sps:$4 sm:$0xff]  }
 0xa03   :  { %12038 = vmatprep.subr.bf16.mxu1 %v13022_v37  ;;  %v13102_v37 = vld [vmem:[%s17550_s4 + $0x154] ss:$12 sps:$4 sm:$0xff]  }
 0xa04   :  { %5255 = vmatpush1.bf16.msra.mxu0 %v13033_v62  ;;  %v13100_v62 = vld [vmem:[%s17550_s4 + $0x150] ss:$12 sps:$4 sm:$0xff]  }
 0xa05   :  { %5256 = vmatprep.subr.bf16.mxu0 %v13039_v39  ;;  %v13105_v39 = vld [vmem:[%s17550_s4 + $0x16c] ss:$12 sps:$4 sm:$0xff]  }
 0xa06   :  { %12039 = vmatpush3.bf16.msra.mxu1 %v13023_v42  ;;  %v13103_v42 = vld [vmem:[%s17550_s4 + $0x168] ss:$12 sps:$4 sm:$0xff]  }
 0xa07   :  { %12040 = vmatprep.subr.bf16.mxu1 %v13027_v43  ;;  %v13106_v43 = vld [vmem:[%s17550_s4 + $0xc8] ss:$12 sps:$4 sm:$0xff]  }
 0xa08   :  { %5257 = vmatpush1.bf16.msra.mxu0 %v13037_v11  ;;  %v13107_v11 = vld [vmem:[%s17550_s4 + $0x8] ss:$12 sps:$4 sm:$0xff]  }
 0xa09   :  { %5258 = vmatprep.subr.bf16.mxu0 %v13043_v44  ;;  %v13108_v44 = vld [vmem:[%s17550_s4 + $0xe0] ss:$12 sps:$4 sm:$0xff]  }
 0xa0a   :  { %12041 = vmatpush3.bf16.msra.mxu1 %v13028_v60  ;;  %v13109_v60 = vld [vmem:[%s17550_s4 + $0x20] ss:$12 sps:$4 sm:$0xff]  }
 0xa0b   :  { %12178 = vmatprep.subr.bf16.mxu1 %v13790_v57 }
 0xa0c   :  { %5259 = vmatpush1.bf16.msra.mxu0 %v13041_v45  ;;  %v13110_v45 = vld [vmem:[%s17550_s4 + $0xf8] ss:$12 sps:$4 sm:$0xff]  }
 0xa0d   :  { %4774 = vmatmul.mubr.bf16.vlgmr.msra.gmra.mrb[56].mxu1 %v15532_v63  ;;  %5260 = vmatprep.subr.bf16.mxu0 %v13047_v2  ;;  %v13060_v63 = vld [vmem:[%s17550_s4 + $0x4] ss:$12 sps:$4 sm:$0xff]  }
 0xa0e   :  { %12179 = vmatpush3.bf16.msra.mxu1 %v13032_v46  ;;  %12194 = vmatprep.mubr.msk.bf16.mxu1 %vm13791_vm7, %v13790_v57  ;;  %v13111_v2 = vld [vmem:[%s17550_s4 + $0x38] ss:$12 sps:$4 sm:$0xff]   ;;  %v13112_v46 = vld [vmem:[%s17550_s4 + $0x110] ss:$12 sps:$4 sm:$0xff]  }
 0xa0f   :  { %12180 = vmatprep.subr.bf16.mxu1 %v13790_v57 }
 0xa10   :  { %5261 = vmatpush1.bf16.msra.mxu0 %v13045_v38  ;;  %v13114_v38 = vld [vmem:[%s17550_s4 + $0x128] ss:$12 sps:$4 sm:$0xff]  }
 0xa11   :  { %5262 = vmatprep.subr.bf16.mxu0 %v13051_v47  ;;  %v13115_v47 = vld [vmem:[%s17550_s4 + $0x68] ss:$12 sps:$4 sm:$0xff]  }
 0xa12   :  { %12181 = vmatpush3.bf16.msra.mxu1 %v13036_v23  ;;  %v13116_v23 = vld [vmem:[%s17550_s4 + $0x140] ss:$12 sps:$4 sm:$0xff]  }
 0xa13   :  { %12182 = vmatprep.subr.bf16.mxu1 %v13790_v57 }
 0xa14   :  { %5263 = vmatpush1.bf16.msra.mxu0 %v13049_v3  ;;  %v13117_v3 = vld [vmem:[%s17550_s4 + $0x80] ss:$12 sps:$4 sm:$0xff]  }
 0xa15   :  { %5264 = vmatprep.subr.bf16.mxu0 %v13055_v52  ;;  %v13118_v52 = vld [vmem:[%s17550_s4 + $0x158] ss:$12 sps:$4 sm:$0xff]  }
 0xa16   :  { %12183 = vmatpush3.bf16.msra.mxu1 %v13040_v48  ;;  %v13119_v48 = vld [vmem:[%s17550_s4 + $0x98] ss:$12 sps:$4 sm:$0xff]  }
 0xa17   :  { %12184 = vmatprep.subr.bf16.mxu1 %v13790_v57 }
 0xa18   :  { %5265 = vmatpush1.bf16.msra.mxu0 %v13053_v27  ;;  %v13120_v27 = vld [vmem:[%s17550_s4 + $0x170] ss:$12 sps:$4 sm:$0xff]  }
 0xa1a   :  { %12185 = vmatpush3.bf16.msra.mxu1 %v13044_v54  ;;  %v13121_v54 = vld [vmem:[%s17550_s4 + $0xb0] ss:$12 sps:$4 sm:$0xff]  }
 0xa1b   :  { %12186 = vmatprep.subr.bf16.mxu1 %v13790_v57  ;;  %5283 = vmatmul.mubr.bf16.vlgmr.msra.gmra.mrb[48].mxu0 %v15551_v34 }
 0xa1e   :  { %12187 = vmatpush3.bf16.msra.mxu1 %v13048_v55  ;;  %v13122_v55 = vld [vmem:[%s17550_s4 + $0x188] ss:$12 sps:$4 sm:$0xff]  }
 0xa1f   :  { %12188 = vmatprep.subr.bf16.mxu1 %v13790_v57 }
 0xa22   :  { %12189 = vmatpush3.bf16.msra.mxu1 %v13052_v56  ;;  %v13123_v56 = vld [vmem:[%s17550_s4 + $0x1a0] ss:$12 sps:$4 sm:$0xff]  }
 0xa23   :  { %12190 = vmatprep.subr.bf16.mxu1 %v13790_v57 }
 0xa26   :  { %12191 = vmatpush3.bf16.msra.mxu1 %v13056_v58  ;;  %v13124_v58 = vld [vmem:[%s17550_s4 + $0x1b8] ss:$12 sps:$4 sm:$0xff]  }
 0xa27   :  { %12192 = vmatprep.subr.bf16.mxu1 %v13790_v57 }
 0xa2a   :  { %12193 = vmatpush3.bf16.msra.mxu1 %v13057_v59  ;;  %v13126_v59 = vld [vmem:[%s17550_s4 + $0x1e8] ss:$12 sps:$4 sm:$0xff]  }
 0xa2b   :  { %5207 = vmatprep.subr.bf16.mxu1 %v13060_v63  ;;  %v13127_v63 = vld [vmem:[%s17550_s4 + $0x200] ss:$12 sps:$4 sm:$0xff]  }
 0xa2d   :  { %12195 = vmatmul.mubr.bf16.vlgmr.msra.gmra.mrb[60].mxu1 %v15568_v25  ;;  %v13090_v25 = vld [vmem:[%s17550_s4 + $0xf4] ss:$12 sps:$4 sm:$0xff]  }
 0xa2e   :  { %5208 = vmatpush1.bf16.msra.mxu1 %v13058_v0  ;;  %5239 = vmatprep.mubr.bf16.mxu1 %v15539_v12  ;;  %v13128_v0 = vld [vmem:[%s17550_s4 + $0x218] ss:$12 sps:$4 sm:$0xff]  }
 0xa2f   :  { %5209 = vmatprep.subr.bf16.mxu1 %v13063_v5  ;;  %v13129_v5 = vld [vmem:[%s17550_s4 + $0x230] ss:$12 sps:$4 sm:$0xff]  }
 0xa32   :  { %5210 = vmatpush1.bf16.msra.mxu1 %v13061_v6  ;;  %v13130_v6 = vld [vmem:[%s17549_s3 + $0x10] sm:$0x1f]  }
 0xa33   :  { %5211 = vmatprep.subr.bf16.mxu1 %v13066_v10 }
 0xa36   :  { %5212 = vmatpush1.bf16.msra.mxu1 %v13064_v9 }
 0xa37   :  { %5213 = vmatprep.subr.bf16.mxu1 %v13069_v14 }
 0xa3a   :  { %5214 = vmatpush1.bf16.msra.mxu1 %v13067_v15  ;;  %v13131_v15 = vld [vmem:[%s17550_s4 + $0x480] ss:$12 sps:$4 sm:$0xff]  }
 0xa3b   :  { %5215 = vmatprep.subr.bf16.mxu1 %v13072_v20  ;;  %v13133_v20 = vld [vmem:[%s17550_s4 + $0x484] ss:$12 sps:$4 sm:$0xff]  }
 0xa3c   :  { %5954 = vmatprep.subr.bf16.mxu0 %v13133_v20  ;;  %v13181_v20 = vld [vmem:[%s17550_s4 + $0x5b8] ss:$12 sps:$4 sm:$0xff]  }
 0xa3d   :  { %5955 = vmatpush1.bf16.msra.mxu0 %v13131_v15  ;;  %v13183_v15 = vld [vmem:[%s17550_s4 + $0x5bc] ss:$12 sps:$4 sm:$0xff]  }
 0xa3e   :  { %5216 = vmatpush1.bf16.msra.mxu1 %v13070_v29  ;;  %v13136_v29 = vld [vmem:[%s17550_s4 + $0x49c] ss:$12 sps:$4 sm:$0xff]  }
 0xa3f   :  { %5217 = vmatprep.subr.bf16.mxu1 %v13075_v32  ;;  %v13134_v32 = vld [vmem:[%s17550_s4 + $0x498] ss:$12 sps:$4 sm:$0xff]   ;;  %5956 = vmatprep.subr.bf16.mxu0 %v13136_v29  ;;  %v13188_v29 = vld [vmem:[%s17550_s4 + $0x5d4] ss:$12 sps:$4 sm:$0xff]  }
 0xa41   :  { %5957 = vmatpush1.bf16.msra.mxu0 %v13134_v32  ;;  %v13186_v32 = vld [vmem:[%s17550_s4 + $0x5d0] ss:$12 sps:$4 sm:$0xff]  }
 0xa42   :  { %5218 = vmatpush1.bf16.msra.mxu1 %v13073_v16  ;;  %v13139_v16 = vld [vmem:[%s17550_s4 + $0x4b4] ss:$12 sps:$4 sm:$0xff]  }
 0xa43   :  { %5219 = vmatprep.subr.bf16.mxu1 %v13078_v40  ;;  %v13137_v40 = vld [vmem:[%s17550_s4 + $0x4b0] ss:$12 sps:$4 sm:$0xff]   ;;  %5958 = vmatprep.subr.bf16.mxu0 %v13139_v16 }
 0xa44   :  { %v13190_v16 = vld [vmem:[%s17550_s4 + $0x5f0] ss:$12 sps:$4 sm:$0xff]  }
 0xa45   :  { %5959 = vmatpush1.bf16.msra.mxu0 %v13137_v40  ;;  %v13193_v40 = vld [vmem:[%s17550_s4 + $0x5ec] ss:$12 sps:$4 sm:$0xff]  }
 0xa46   :  { %5220 = vmatpush1.bf16.msra.mxu1 %v13076_v17  ;;  %v13142_v17 = vld [vmem:[%s17550_s4 + $0x4cc] ss:$12 sps:$4 sm:$0xff]  }
 0xa47   :  { %5221 = vmatprep.subr.bf16.mxu1 %v13081_v41  ;;  %5960 = vmatprep.subr.bf16.mxu0 %v13142_v17  ;;  %v13191_v17 = vld [vmem:[%s17550_s4 + $0x5e8] ss:$12 sps:$4 sm:$0xff]  }
 0xa4a   :  { %5222 = vmatpush1.bf16.msra.mxu1 %v13079_v18 }
 0xa4b   :  { %5223 = vmatprep.subr.bf16.mxu1 %v13084_v19 }
 0xa4e   :  { %5224 = vmatpush1.bf16.msra.mxu1 %v13082_v21  ;;  %v13140_v21 = vld [vmem:[%s17550_s4 + $0x4c8] ss:$12 sps:$4 sm:$0xff]  }
 0xa4f   :  { %5225 = vmatprep.subr.bf16.mxu1 %v13087_v22  ;;  %5961 = vmatpush1.bf16.msra.mxu0 %v13140_v21 }
 0xa52   :  { %5226 = vmatpush1.bf16.msra.mxu1 %v13085_v24 }
 0xa53   :  { %5227 = vmatprep.subr.bf16.mxu1 %v13090_v25  ;;  %v13145_v25 = vld [vmem:[%s17550_s4 + $0x4e4] ss:$12 sps:$4 sm:$0xff]  }
 0xa54   :  { %5962 = vmatprep.subr.bf16.mxu0 %v13145_v25 }
 0xa56   :  { %5228 = vmatpush1.bf16.msra.mxu1 %v13088_v26 }
 0xa57   :  { %5229 = vmatprep.subr.bf16.mxu1 %v13093_v28 }
 0xa5a   :  { %5230 = vmatpush1.bf16.msra.mxu1 %v13091_v30 }
 0xa5b   :  { %5231 = vmatprep.subr.bf16.mxu1 %v13096_v31  ;;  %v13143_v31 = vld [vmem:[%s17550_s4 + $0x4e0] ss:$12 sps:$4 sm:$0xff]  }
 0xa5c   :  { %5963 = vmatpush1.bf16.msra.mxu0 %v13143_v31 }
 0xa5e   :  { %5232 = vmatpush1.bf16.msra.mxu1 %v13094_v33 }
 0xa5f   :  { %5233 = vmatprep.subr.bf16.mxu1 %v13099_v35 }
 0xa62   :  { %5234 = vmatpush1.bf16.msra.mxu1 %v13097_v36 }
 0xa63   :  { %5235 = vmatprep.subr.bf16.mxu1 %v13102_v37 }
 0xa66   :  { %5236 = vmatpush1.bf16.msra.mxu1 %v13100_v62 }
 0xa67   :  { %5237 = vmatprep.subr.bf16.mxu1 %v13105_v39  ;;  %v13148_v39 = vld [vmem:[%s17550_s4 + $0x4fc] ss:$12 sps:$4 sm:$0xff]  }
 0xa68   :  { %5964 = vmatprep.subr.bf16.mxu0 %v13148_v39 }
 0xa6a   :  { %5238 = vmatpush1.bf16.msra.mxu1 %v13103_v42 }
 0xa6b   :  { %12057 = vmatprep.subr.bf16.mxu1 %v13106_v43  ;;  %v13146_v43 = vld [vmem:[%s17550_s4 + $0x4f8] ss:$12 sps:$4 sm:$0xff]  }
 0xa6c   :  { %5965 = vmatpush1.bf16.msra.mxu0 %v13146_v43 }
 0xa6d   :  { %5240 = vmatmul.mubr.bf16.vlgmr.msra.gmra.mrb[64].mxu1 %v15534_v1 }
 0xa6e   :  { %12058 = vmatpush3.bf16.msra.mxu1 %v13107_v11  ;;  %5325 = vmatprep.mubr.bf16.mxu1 %v15539_v12  ;;  %v13113_v12 = vld [vmem:[%s17550_s4 + $0x50] ss:$12 sps:$4 sm:$0xff]  }
 0xa6f   :  { %12059 = vmatprep.subr.bf16.mxu1 %v13108_v44  ;;  %v13149_v11 = vld [vmem:[%s17550_s4 + $0x510] ss:$12 sps:$4 sm:$0xff]   ;;  %v13151_v44 = vld [vmem:[%s17550_s4 + $0x514] ss:$12 sps:$4 sm:$0xff]  }
 0xa70   :  { %5966 = vmatprep.subr.bf16.mxu0 %v13151_v44 }
 0xa71   :  { %5967 = vmatpush1.bf16.msra.mxu0 %v13149_v11 }
 0xa72   :  { %12060 = vmatpush3.bf16.msra.mxu1 %v13109_v60  ;;  %v13154_v60 = vld [vmem:[%s17550_s4 + $0x52c] ss:$12 sps:$4 sm:$0xff]  }
 0xa73   :  { %12061 = vmatprep.subr.bf16.mxu1 %v13110_v45  ;;  %v13155_v45 = vld [vmem:[%s17550_s4 + $0x548] ss:$12 sps:$4 sm:$0xff]   ;;  %5968 = vmatprep.subr.bf16.mxu0 %v13154_v60 }
 0xa76   :  { %12062 = vmatpush3.bf16.msra.mxu1 %v13111_v2  ;;  %v13159_v2 = vld [vmem:[%s17550_s4 + $0x488] ss:$12 sps:$4 sm:$0xff]  }
 0xa77   :  { %12063 = vmatprep.subr.bf16.mxu1 %v13112_v46  ;;  %v13160_v46 = vld [vmem:[%s17550_s4 + $0x560] ss:$12 sps:$4 sm:$0xff]  }
 0xa7a   :  { %12064 = vmatpush3.bf16.msra.mxu1 %v13113_v12  ;;  %v13152_v12 = vld [vmem:[%s17550_s4 + $0x528] ss:$12 sps:$4 sm:$0xff]  }
 0xa7b   :  { %12065 = vmatprep.subr.bf16.mxu1 %v13114_v38  ;;  %v13164_v38 = vld [vmem:[%s17550_s4 + $0x4a0] ss:$12 sps:$4 sm:$0xff]   ;;  %5969 = vmatpush1.bf16.msra.mxu0 %v13152_v12 }
 0xa7e   :  { %12066 = vmatpush3.bf16.msra.mxu1 %v13115_v47  ;;  %v13158_v47 = vld [vmem:[%s17550_s4 + $0x544] ss:$12 sps:$4 sm:$0xff]  }
 0xa7f   :  { %12067 = vmatprep.subr.bf16.mxu1 %v13116_v23  ;;  %v13165_v23 = vld [vmem:[%s17550_s4 + $0x578] ss:$12 sps:$4 sm:$0xff]   ;;  %5970 = vmatprep.subr.bf16.mxu0 %v13158_v47  ;;  %v13196_v47 = vld [vmem:[%s17550_s4 + $0x600] ss:$12 sps:$4 sm:$0xff]  }
 0xa82   :  { %12068 = vmatpush3.bf16.msra.mxu1 %v13117_v3  ;;  %v13156_v3 = vld [vmem:[%s17550_s4 + $0x540] ss:$12 sps:$4 sm:$0xff]  }
 0xa83   :  { %12069 = vmatprep.subr.bf16.mxu1 %v13118_v52  ;;  %v13169_v52 = vld [vmem:[%s17550_s4 + $0x4b8] ss:$12 sps:$4 sm:$0xff]   ;;  %5971 = vmatpush1.bf16.msra.mxu0 %v13156_v3 }
 0xa86   :  { %12070 = vmatpush3.bf16.msra.mxu1 %v13119_v48  ;;  %v13163_v48 = vld [vmem:[%s17550_s4 + $0x55c] ss:$12 sps:$4 sm:$0xff]  }
 0xa87   :  { %12071 = vmatprep.subr.bf16.mxu1 %v13120_v27  ;;  %v13170_v27 = vld [vmem:[%s17550_s4 + $0x590] ss:$12 sps:$4 sm:$0xff]   ;;  %5972 = vmatprep.subr.bf16.mxu0 %v13163_v48 }
 0xa8a   :  { %12072 = vmatpush3.bf16.msra.mxu1 %v13121_v54  ;;  %v13161_v54 = vld [vmem:[%s17550_s4 + $0x558] ss:$12 sps:$4 sm:$0xff]  }
 0xa8b   :  { %12198 = vmatprep.subr.bf16.mxu1 %v13790_v57  ;;  %5973 = vmatpush1.bf16.msra.mxu0 %v13161_v54 }
 0xa8d   :  { %5326 = vmatmul.mubr.bf16.vlgmr.msra.gmra.mrb[68].mxu1 %v15534_v1  ;;  %v13125_v1 = vld [vmem:[%s17550_s4 + $0x1d0] ss:$12 sps:$4 sm:$0xff]  }
 0xa8e   :  { %12199 = vmatpush3.bf16.msra.mxu1 %v13122_v55  ;;  %12214 = vmatprep.mubr.msk.bf16.mxu1 %vm13791_vm7, %v13790_v57  ;;  %v13174_v55 = vld [vmem:[%s17550_s4 + $0x4d0] ss:$12 sps:$4 sm:$0xff]  }
 0xa8f   :  { %12200 = vmatprep.subr.bf16.mxu1 %v13790_v57 }
 0xa92   :  { %12201 = vmatpush3.bf16.msra.mxu1 %v13123_v56  ;;  %v13168_v56 = vld [vmem:[%s17550_s4 + $0x574] ss:$12 sps:$4 sm:$0xff]  }
 0xa93   :  { %12202 = vmatprep.subr.bf16.mxu1 %v13790_v57  ;;  %5974 = vmatprep.subr.bf16.mxu0 %v13168_v56  ;;  %v13203_v56 = vld [vmem:[%s17550_s4 + $0x638] ss:$12 sps:$4 sm:$0xff]  }
 0xa96   :  { %12203 = vmatpush3.bf16.msra.mxu1 %v13124_v58  ;;  %v13175_v58 = vld [vmem:[%s17550_s4 + $0x5a8] ss:$12 sps:$4 sm:$0xff]  }
 0xa97   :  { %12204 = vmatprep.subr.bf16.mxu1 %v13790_v57 }
 0xa9a   :  { %12205 = vmatpush3.bf16.msra.mxu1 %v13125_v1  ;;  %v13166_v1 = vld [vmem:[%s17550_s4 + $0x570] ss:$12 sps:$4 sm:$0xff]  }
 0xa9b   :  { %12206 = vmatprep.subr.bf16.mxu1 %v13790_v57  ;;  %5975 = vmatpush1.bf16.msra.mxu0 %v13166_v1  ;;  %v13210_v1 = vld [vmem:[%s17550_s4 + $0x64c] ss:$12 sps:$4 sm:$0xff]  }
 0xa9e   :  { %12207 = vmatpush3.bf16.msra.mxu1 %v13126_v59  ;;  %v13179_v59 = vld [vmem:[%s17550_s4 + $0x4e8] ss:$12 sps:$4 sm:$0xff]  }
 0xa9f   :  { %12208 = vmatprep.subr.bf16.mxu1 %v13790_v57 }
 0xaa2   :  { %12209 = vmatpush3.bf16.msra.mxu1 %v13127_v63  ;;  %v13173_v63 = vld [vmem:[%s17550_s4 + $0x58c] ss:$12 sps:$4 sm:$0xff]  }
 0xaa3   :  { %12210 = vmatprep.subr.bf16.mxu1 %v13790_v57  ;;  %5976 = vmatprep.subr.bf16.mxu0 %v13173_v63  ;;  %v13208_v63 = vld [vmem:[%s17550_s4 + $0x648] ss:$12 sps:$4 sm:$0xff]  }
 0xaa6   :  { %12211 = vmatpush3.bf16.msra.mxu1 %v13128_v0  ;;  %v13180_v0 = vld [vmem:[%s17550_s4 + $0x5c0] ss:$12 sps:$4 sm:$0xff]  }
 0xaa7   :  { %12212 = vmatprep.subr.bf16.mxu1 %v13790_v57 }
 0xaaa   :  { %12213 = vmatpush3.bf16.msra.mxu1 %v13129_v5  ;;  %v13171_v5 = vld [vmem:[%s17550_s4 + $0x588] ss:$12 sps:$4 sm:$0xff]  }
 0xaab   :  { %5386 = vmatprep.subr.bf16.mxu1 %v15334_v49  ;;  %5977 = vmatpush1.bf16.msra.mxu0 %v13171_v5  ;;  %v13211_v5 = vld [vmem:[%s17550_s4 + $0x668] ss:$12 sps:$4 sm:$0xff]  }
 0xaad   :  { %12215 = vmatmul.mubr.bf16.vlgmr.msra.gmra.mrb[60].mxu1 %v15551_v34 }
 0xaae   :  { %5387 = vmatpush1.bf16.msra.mxu1 %v15336_v61  ;;  %5418 = vmatprep.mubr.bf16.mxu1 %v13786_v7 }
 0xaaf   :  { %11120 = vmatprep.subr.msk.bf16.mxu1 %vm97_vm0, %v15343_v51 }
 0xab2   :  { %5389 = vmatpush1.bf16.msra.mxu1 %v15355_v53 }
 0xab3   :  { %12218 = vmatprep.subr.bf16.mxu1 %v13790_v57 }
 0xab5   :  { %11121 = vmatmul.mubr.msk.bf16.vlgmr.msra.gmra.mrb[72].mxu1 %vm3880_vm6, %v13130_v6 }
 0xab6   :  { %12219 = vmatpush3.bf16.msra.mxu1 %v15339_v50  ;;  %12222 = vmatprep.mubr.msk.bf16.mxu1 %vm13791_vm7, %v13790_v57 }
 0xab7   :  { %12220 = vmatprep.subr.bf16.mxu1 %v13790_v57 }
 0xaba   :  { %12221 = vmatpush3.bf16.msra.mxu1 %v15386_v4 }
 0xabb   :  { %12091 = vmatprep.subr.bf16.mxu1 %v13155_v45 }
 0xabd   :  { %12223 = vmatmul.mubr.msk.bf16.vlgmr.msra.gmra.mrb[76].mxu1 %vm3880_vm6, %v13130_v6  ;;  %v13184_v6 = vld [vmem:[%s17550_s4 + $0x500] ss:$12 sps:$4 sm:$0xff]  }
 0xabe   :  { %12092 = vmatpush3.bf16.msra.mxu1 %v13159_v2 }
 0xabf   :  { %12093 = vmatprep.subr.bf16.mxu1 %v13160_v46 }
 0xac0   :  { %v4689_v34 = vpop.f32.mrb[52].mxu1 }
 0xac1   :  { %v4691_v10 = vpop.f32.mrb[53].mxu1 }
 0xac2   :  { %v4693_v9 = vpop.f32.mrb[54].mxu1  ;;  %12094 = vmatpush3.bf16.msra.mxu1 %v13164_v38 }
 0xac3   :  { %v4695_v14 = vpop.f32.mrb[55].mxu1  ;;  %12095 = vmatprep.subr.bf16.mxu1 %v13165_v23  ;;  %v13200_v23 = vld [vmem:[%s17550_s4 + $0x618] ss:$12 sps:$4 sm:$0xff]  }
 0xac6   :  { %12096 = vmatpush3.bf16.msra.mxu1 %v13169_v52  ;;  %v13206_v52 = vld [vmem:[%s17550_s4 + $0x634] ss:$12 sps:$4 sm:$0xff]  }
 0xac7   :  { %12097 = vmatprep.subr.bf16.mxu1 %v13170_v27 }
 0xaca   :  { %12098 = vmatpush3.bf16.msra.mxu1 %v13174_v55 }
 0xacb   :  { %12099 = vmatprep.subr.bf16.mxu1 %v13175_v58  ;;  %v13204_v58 = vld [vmem:[%s17550_s4 + $0x630] ss:$12 sps:$4 sm:$0xff]  }
 0xace   :  { %v4732_v41 = vpop.f32.mrb[44].mxu0  ;;  %12100 = vmatpush3.bf16.msra.mxu1 %v13179_v59  ;;  %v13207_v59 = vld [vmem:[%s17550_s4 + $0x650] ss:$12 sps:$4 sm:$0xff]  }
 0xacf   :  { %v15893_v18 = vadd.f32 %v4732_v41, %v4689_v34  ;;  %v4734_v19 = vpop.f32.mrb[45].mxu0  ;;  %v13178_v34 = vld [vmem:[%s17550_s4 + $0x5a4] ss:$12 sps:$4 sm:$0xff]   ;;  %12101 = vmatprep.subr.bf16.mxu1 %v13180_v0 }
 0xad0   :  { %v15898_v22 = vadd.f32 %v4734_v19, %v4691_v10  ;;  %v4736_v24 = vpop.f32.mrb[46].mxu0  ;;  %v13185_v10 = vld [vmem:[%s17550_s4 + $0x5d8] ss:$12 sps:$4 sm:$0xff]   ;;  %5978 = vmatprep.subr.bf16.mxu0 %v13178_v34  ;;  %v13194_v41 = vld [vmem:[%s17550_s4 + $0x530] ss:$12 sps:$4 sm:$0xff]  }
 0xad1   :  { %v15903_v26 = vadd.f32 %v4736_v24, %v4693_v9  ;;  %v4738_v28 = vpop.f32.mrb[47].mxu0  ;;  %v13176_v9 = vld [vmem:[%s17550_s4 + $0x5a0] ss:$12 sps:$4 sm:$0xff]   ;;  %v13198_v19 = vld [vmem:[%s17550_s4 + $0x604] ss:$12 sps:$4 sm:$0xff]  }
 0xad2   :  { %v15905_v30 = vadd.f32 %v4738_v28, %v4695_v14  ;;  %12102 = vmatpush3.bf16.msra.mxu1 %v13184_v6  ;;  %v13189_v14 = vld [vmem:[%s17550_s4 + $0x518] ss:$12 sps:$4 sm:$0xff]   ;;  %5979 = vmatpush1.bf16.msra.mxu0 %v13176_v9  ;;  %v13212_v6 = vld [vmem:[%s17550_s4 + $0x660] ss:$12 sps:$4 sm:$0xff]   ;;  %v13218_v34 = vld [vmem:[%s17550_s4 + $0x67c] ss:$12 sps:$4 sm:$0xff]  }
 0xad3   :  { %12103 = vmatprep.subr.bf16.mxu1 %v13185_v10  ;;  %5980 = vmatprep.subr.bf16.mxu0 %v13183_v15  ;;  %v13214_v0 = vld [vmem:[%s17550_s4 + $0x664] ss:$12 sps:$4 sm:$0xff]   ;;  %v13215_v10 = vld [vmem:[%s17550_s4 + $0x680] ss:$12 sps:$4 sm:$0xff]  }
 0xad4   :  { %v13216_v9 = vld [vmem:[%s17550_s4 + $0x678] ss:$12 sps:$4 sm:$0xff]  }
 0xad5   :  { %v13219_v15 = vld [vmem:[%s17550_s4 + $0x698] ss:$12 sps:$4 sm:$0xff]  }
 0xad6   :  { %12104 = vmatpush3.bf16.msra.mxu1 %v13189_v14  ;;  %5981 = vmatpush1.bf16.msra.mxu0 %v13181_v20  ;;  %v13222_v14 = vld [vmem:[%s17550_s4 + $0x694] ss:$12 sps:$4 sm:$0xff]   ;;  %v13220_v20 = vld [vmem:[%s17550_s4 + $0x690] ss:$12 sps:$4 sm:$0xff]  }
 0xad7   :  { %5982 = vmatprep.subr.bf16.mxu0 %v13188_v29  ;;  %12105 = vmatprep.subr.bf16.mxu1 %v13190_v16  ;;  %v13226_v29 = vld [vmem:[%s17550_s4 + $0x6ac] ss:$12 sps:$4 sm:$0xff]   ;;  %v13224_v16 = vld [vmem:[%s17550_s4 + $0x6a8] ss:$12 sps:$4 sm:$0xff]  }
 0xada   :  { %5983 = vmatpush1.bf16.msra.mxu0 %v13186_v32  ;;  %12106 = vmatpush3.bf16.msra.mxu1 %v13194_v41  ;;  %v13223_v32 = vld [vmem:[%s17550_s4 + $0x6b0] ss:$12 sps:$4 sm:$0xff]  }
 0xadb   :  { %5984 = vmatprep.subr.bf16.mxu0 %v13193_v40  ;;  %12226 = vmatprep.subr.bf16.mxu1 %v13790_v57  ;;  %v13230_v40 = vld [vmem:[%s17550_s4 + $0x6c4] ss:$12 sps:$4 sm:$0xff]   ;;  %v13233_v41 = vld [vmem:[%s17550_s4 + $0x6dc] ss:$12 sps:$4 sm:$0xff]  }
 0xade   :  { %5985 = vmatpush1.bf16.msra.mxu0 %v13191_v17  ;;  %v13228_v17 = vld [vmem:[%s17550_s4 + $0x6c0] ss:$12 sps:$4 sm:$0xff]  }
 0xadf   :  { %5997 = vmatprep.subr.bf16.mxu0 %v13198_v19  ;;  %v13236_v19 = vld [vmem:[%s17550_s4 + $0x6f4] ss:$12 sps:$4 sm:$0xff]  }
 0xae0   :  { %v12042_v33 = vpop.f32.mrb[56].mxu1 }
 0xae1   :  { %v12043_v35 = vpop.f32.mrb[57].mxu1 }
 0xae2   :  { %v15910_v36 = vadd.f32 %v12043_v35, %v12042_v33  ;;  %v12045_v37 = vpop.f32.mrb[58].mxu1 }
 0xae3   :  { %v12046_v62 = vpop.f32.mrb[59].mxu1 }
 0xae4   :  { %v15915_v42 = vadd.f32 %v12046_v62, %v12045_v37 }
 0xb40   :  { %v5241_v21 = vpop.f32.mrb[64].mxu1 }
 0xb41   :  { %v16033_v24 = vadd.f32 %v5241_v21, %v15893_v18  ;;  %v5243_v25 = vpop.f32.mrb[65].mxu1  ;;  %v13227_v21 = vld [vmem:[%s17549_s3 + $0x18] sm:$0x1f]  }
 0xb42   :  { %v16036_v28 = vadd.f32 %v5243_v25, %v15898_v22  ;;  %v5245_v31 = vpop.f32.mrb[66].mxu1  ;;  %v13242_v25 = vld [vmem:[%s17550_s4 + $0x724] ss:$12 sps:$4 sm:$0xff]  }
 0xb43   :  { %v16039_v33 = vadd.f32 %v5245_v31, %v15903_v26  ;;  %v5247_v35 = vpop.f32.mrb[67].mxu1  ;;  %v13245_v31 = vld [vmem:[%s17550_s4 + $0x73c] ss:$12 sps:$4 sm:$0xff]  }
 0xb44   :  { %v16042_v37 = vadd.f32 %v5247_v35, %v15905_v30  ;;  %v13195_v30 = vld [vmem:[%s17550_s4 + $0x608] ss:$12 sps:$4 sm:$0xff]   ;;  %v13243_v35 = vld [vmem:[%s17550_s4 + $0x738] ss:$12 sps:$4 sm:$0xff]  }
 0xb60   :  { %v12073_v62 = vpop.f32.mrb[68].mxu1 }
 0xb61   :  { %v12074_v39 = vpop.f32.mrb[69].mxu1 }
 0xb62   :  { %v12075_v43 = vadd.f32 %v12074_v39, %v12073_v62  ;;  %v12076_v11 = vpop.f32.mrb[70].mxu1  ;;  %v13248_v62 = vld [vmem:[%s17550_s4 + $0x754] ss:$12 sps:$4 sm:$0xff]   ;;  %v13251_v39 = vld [vmem:[%s17550_s4 + $0x76c] ss:$12 sps:$4 sm:$0xff]  }
 0xb63   :  { %v12077_v44 = vpop.f32.mrb[71].mxu1 }
 0xb64   :  { %v16045_v18 = vadd.f32 %v12075_v43, %v15910_v36  ;;  %v12078_v60 = vadd.f32 %v12077_v44, %v12076_v11  ;;  %v13202_v36 = vld [vmem:[%s17550_s4 + $0x61c] ss:$12 sps:$4 sm:$0xff]  }
 0xb65   :  { %v13255_v43 = vld [vmem:[%s17550_s4 + $0x788] ss:$12 sps:$4 sm:$0xff]  }
 0xb66   :  { %v16048_v22 = vadd.f32 %v12078_v60, %v15915_v42  ;;  %v13199_v42 = vld [vmem:[%s17550_s4 + $0x620] ss:$12 sps:$4 sm:$0xff]   ;;  %v13256_v11 = vld [vmem:[%s17550_s4 + $0x6c8] ss:$12 sps:$4 sm:$0xff]  }
 0xb67   :  { %v13249_v44 = vld [vmem:[%s17550_s4 + $0x768] ss:$12 sps:$4 sm:$0xff]   ;;  %v13260_v60 = vld [vmem:[%s17550_s4 + $0x7a0] ss:$12 sps:$4 sm:$0xff]  }
 0xb88   :  { %v5420_v45 = vpop.f32.mrb[72].mxu1 }
 0xb89   :  { %v5422_v2 = vpop.f32.mrb[73].mxu1 }
 0xb8a   :  { %v5424_v26 = vpop.f32.mrb[74].mxu1 }
 0xb8b   :  { %v5470_v46 = vpack.c.bf16 %v5424_v26, %v5420_v45  ;;  %v5426_v12 = vpop.f32.mrb[75].mxu1  ;;  %v13254_v45 = vld [vmem:[%s17550_s4 + $0x784] ss:$12 sps:$4 sm:$0xff]  }
 0xb8c   :  { %v5471_v38 = vpack.c.bf16 %v5426_v12, %v5422_v2  ;;  %v13261_v2 = vld [vmem:[%s17550_s4 + $0x6e0] ss:$12 sps:$4 sm:$0xff]   ;;  %v13265_v26 = vld [vmem:[%s17550_s4 + $0x7b8] ss:$12 sps:$4 sm:$0xff]   ;;  %v13259_v12 = vld [vmem:[%s17550_s4 + $0x79c] ss:$12 sps:$4 sm:$0xff]  }
 0xb8e   :  { %5986 = vmatprep.mubr.bf16.mxu0 %v5471_v38  ;;  %6072 = vmatprep.mubr.bf16.mxu1 %v5471_v38  ;;  %v13266_v38 = vld [vmem:[%s17550_s4 + $0x6f8] ss:$12 sps:$4 sm:$0xff]  }
 0xb8f   :  { %5987 = vmatmul.mubr.bf16.vlgmr.msra.gmra.mrb[48].mxu0 %v5470_v46  ;;  %6073 = vmatmul.mubr.bf16.vlgmr.msra.gmra.mrb[80].mxu1 %v5470_v46  ;;  %v13252_v46 = vld [vmem:[%s17550_s4 + $0x780] ss:$12 sps:$4 sm:$0xff]  }
 0xb90   :  { %12227 = vmatpush3.bf16.msra.mxu1 %v13195_v30  ;;  %5998 = vmatpush1.bf16.msra.mxu0 %v13196_v47  ;;  %v5463_v3 = vpop.f32.mrb[76].mxu1  ;;  %v13270_v30 = vld [vmem:[%s17550_s4 + $0x7d0] ss:$12 sps:$4 sm:$0xff]   ;;  %v13257_v47 = vld [vmem:[%s17550_s4 + $0x798] ss:$12 sps:$4 sm:$0xff]  }
 0xb91   :  { %12228 = vmatprep.subr.bf16.mxu1 %v13790_v57  ;;  %5999 = vmatprep.subr.bf16.mxu0 %v13202_v36  ;;  %v12224_v48 = vpop.f32.mrb[77].mxu1  ;;  %v13264_v36 = vld [vmem:[%s17550_s4 + $0x7b4] ss:$12 sps:$4 sm:$0xff]  }
 0xb92   :  { %v5466_v27 = vpop.f32.mrb[78].mxu1  ;;  %12242 = vmatprep.mubr.msk.bf16.mxu1 %vm13791_vm7, %v13790_v57  ;;  %6029 = vmatprep.mubr.bf16.mxu0 %v13786_v7  ;;  %v13276_v48 = vld [vmem:[%s17550_s4 + $0x728] ss:$12 sps:$4 sm:$0xff]  }
 0xb93   :  { %v5472_v54 = vpack.c.bf16 %v5466_v27, %v5463_v3  ;;  %v12225_v55 = vpop.f32.mrb[79].mxu1  ;;  %v13262_v3 = vld [vmem:[%s17550_s4 + $0x7b0] ss:$12 sps:$4 sm:$0xff]   ;;  %v13280_v27 = vld [vmem:[%s17550_s4 + $0x800] ss:$12 sps:$4 sm:$0xff]  }
 0xb94   :  { %12229 = vmatpush3.bf16.msra.mxu1 %v13199_v42  ;;  %6000 = vmatpush1.bf16.msra.mxu0 %v13200_v23  ;;  %v13271_v42 = vld [vmem:[%s17550_s4 + $0x710] ss:$12 sps:$4 sm:$0xff]   ;;  %v13275_v23 = vld [vmem:[%s17550_s4 + $0x7e8] ss:$12 sps:$4 sm:$0xff]  }
 0xb95   :  { %12230 = vmatprep.subr.bf16.mxu1 %v13790_v57  ;;  %6001 = vmatprep.subr.bf16.mxu0 %v13206_v52  ;;  %v13269_v52 = vld [vmem:[%s17550_s4 + $0x7cc] ss:$12 sps:$4 sm:$0xff]   ;;  %v13274_v55 = vld [vmem:[%s17550_s4 + $0x7e4] ss:$12 sps:$4 sm:$0xff]  }
 0xb98   :  { %12231 = vmatpush3.bf16.msra.mxu1 %v13203_v56  ;;  %6002 = vmatpush1.bf16.msra.mxu0 %v13204_v58  ;;  %v13281_v56 = vld [vmem:[%s17550_s4 + $0x740] ss:$12 sps:$4 sm:$0xff]   ;;  %v13285_v58 = vld [vmem:[%s17550_s4 + $0x818] ss:$12 sps:$4 sm:$0xff]  }
 0xb99   :  { %12232 = vmatprep.subr.bf16.mxu1 %v13790_v57  ;;  %6003 = vmatprep.subr.bf16.mxu0 %v13210_v1  ;;  %v13272_v1 = vld [vmem:[%s17550_s4 + $0x7e0] ss:$12 sps:$4 sm:$0xff]  }
 0xb9c   :  { %12233 = vmatpush3.bf16.msra.mxu1 %v13207_v59  ;;  %6004 = vmatpush1.bf16.msra.mxu0 %v13208_v63  ;;  %v13279_v59 = vld [vmem:[%s17550_s4 + $0x7fc] ss:$12 sps:$4 sm:$0xff]   ;;  %v13286_v63 = vld [vmem:[%s17550_s4 + $0x758] ss:$12 sps:$4 sm:$0xff]  }
 0xb9d   :  { %12234 = vmatprep.subr.bf16.mxu1 %v13790_v57  ;;  %6005 = vmatprep.subr.bf16.mxu0 %v13214_v0  ;;  %v13277_v0 = vld [vmem:[%s17550_s4 + $0x7f8] ss:$12 sps:$4 sm:$0xff]  }
 0xba0   :  { %12235 = vmatpush3.bf16.msra.mxu1 %v13211_v5  ;;  %6006 = vmatpush1.bf16.msra.mxu0 %v13212_v6  ;;  %v13284_v5 = vld [vmem:[%s17550_s4 + $0x814] ss:$12 sps:$4 sm:$0xff]   ;;  %v13282_v6 = vld [vmem:[%s17550_s4 + $0x810] ss:$12 sps:$4 sm:$0xff]  }
 0xba1   :  { %12236 = vmatprep.subr.bf16.mxu1 %v13790_v57  ;;  %6007 = vmatprep.subr.bf16.mxu0 %v13218_v34  ;;  %v13289_v34 = vld [vmem:[%s17550_s4 + $0x82c] ss:$12 sps:$4 sm:$0xff]  }
 0xba4   :  { %12237 = vmatpush3.bf16.msra.mxu1 %v13215_v10  ;;  %6008 = vmatpush1.bf16.msra.mxu0 %v13216_v9  ;;  %v13290_v10 = vld [vmem:[%s17550_s4 + $0x830] ss:$12 sps:$4 sm:$0xff]   ;;  %v13287_v9 = vld [vmem:[%s17550_s4 + $0x828] ss:$12 sps:$4 sm:$0xff]  }
 0xba5   :  { %12238 = vmatprep.subr.bf16.mxu1 %v13790_v57  ;;  %6009 = vmatprep.subr.bf16.mxu0 %v13222_v14  ;;  %v13291_v14 = vld [vmem:[%s17550_s4 + $0x770] ss:$12 sps:$4 sm:$0xff]  }
 0xba8   :  { %12239 = vmatpush3.bf16.msra.mxu1 %v13219_v15  ;;  %6010 = vmatpush1.bf16.msra.mxu0 %v13220_v20  ;;  %v13294_v15 = vld [vmem:[%s17550_s4 + $0x844] ss:$12 sps:$4 sm:$0xff]  }
 0xba9   :  { %12240 = vmatprep.subr.bf16.mxu1 %v13790_v57  ;;  %6011 = vmatprep.subr.bf16.mxu0 %v13226_v29 }
 0xbac   :  { %12241 = vmatpush3.bf16.msra.mxu1 %v13223_v32  ;;  %6012 = vmatpush1.bf16.msra.mxu0 %v13224_v16 }
 0xbad   :  { %6139 = vmatprep.subr.bf16.mxu1 %v15334_v49  ;;  %6707 = vmatprep.subr.bf16.mxu0 %v13230_v40  ;;  %v13231_v49 = vld [vmem:[%s17550_s4 + $0x6d8] ss:$12 sps:$4 sm:$0xff]  }
 0xbaf   :  { %12243 = vmatmul.mubr.bf16.vlgmr.msra.gmra.mrb[60].mxu1 %v5472_v54  ;;  %6030 = vmatmul.mubr.bf16.vlgmr.msra.gmra.mrb[48].mxu0 %v5472_v54  ;;  %v13267_v54 = vld [vmem:[%s17550_s4 + $0x7c8] ss:$12 sps:$4 sm:$0xff]  }
 0xbb0   :  { %6140 = vmatpush1.bf16.msra.mxu1 %v15336_v61  ;;  %6171 = vmatprep.mubr.bf16.mxu1 %v13786_v7  ;;  %v13234_v61 = vld [vmem:[%s17550_s4 + $0x6f0] ss:$12 sps:$4 sm:$0xff]  }
 0xbb1   :  { %11294 = vmatprep.subr.msk.bf16.mxu1 %vm97_vm0, %v15343_v51  ;;  %6708 = vmatpush1.bf16.msra.mxu0 %v13228_v17  ;;  %v13239_v51 = vld [vmem:[%s17550_s4 + $0x70c] ss:$12 sps:$4 sm:$0xff]  }
 0xbb2   :  { %6709 = vmatprep.subr.bf16.mxu0 %v13233_v41 }
 0xbb4   :  { %6142 = vmatpush1.bf16.msra.mxu1 %v15355_v53  ;;  %v13237_v53 = vld [vmem:[%s17550_s4 + $0x708] ss:$12 sps:$4 sm:$0xff]  }
 0xbb5   :  { %12246 = vmatprep.subr.bf16.mxu1 %v13790_v57  ;;  %6710 = vmatpush1.bf16.msra.mxu0 %v13231_v49 }
 0xbb6   :  { %6711 = vmatprep.subr.bf16.mxu0 %v13236_v19 }
 0xbb7   :  { %11295 = vmatmul.mubr.msk.bf16.vlgmr.msra.gmra.mrb[84].mxu1 %vm3880_vm6, %v13227_v21 }
 0xbb8   :  { %12247 = vmatpush3.bf16.msra.mxu1 %v15339_v50  ;;  %12250 = vmatprep.mubr.msk.bf16.mxu1 %vm13791_vm7, %v13790_v57  ;;  %v13240_v50 = vld [vmem:[%s17550_s4 + $0x720] ss:$12 sps:$4 sm:$0xff]  }
 0xbb9   :  { %12248 = vmatprep.subr.bf16.mxu1 %v13790_v57  ;;  %6712 = vmatpush1.bf16.msra.mxu0 %v13234_v61 }
 0xbba   :  { %6713 = vmatprep.subr.bf16.mxu0 %v13239_v51 }
 0xbbc   :  { %12249 = vmatpush3.bf16.msra.mxu1 %v15386_v4  ;;  %v13246_v4 = vld [vmem:[%s17550_s4 + $0x750] ss:$12 sps:$4 sm:$0xff]  }
 0xbbd   :  { %6714 = vmatpush1.bf16.msra.mxu0 %v13237_v53  ;;  %12125 = vmatprep.subr.bf16.mxu1 %v13255_v43 }
 0xbbe   :  { %6715 = vmatprep.subr.bf16.mxu0 %v13242_v25 }
 0xbbf   :  { %12251 = vmatmul.mubr.msk.bf16.vlgmr.msra.gmra.mrb[88].mxu1 %vm3880_vm6, %v13227_v21 }
 0xbc0   :  { %12126 = vmatpush3.bf16.msra.mxu1 %v13256_v11 }
 0xbc1   :  { %6716 = vmatpush1.bf16.msra.mxu0 %v13240_v50  ;;  %12127 = vmatprep.subr.bf16.mxu1 %v13260_v60  ;;  %v13292_v50 = vld [vmem:[%s17550_s4 + $0x840] ss:$12 sps:$4 sm:$0xff]   ;;  %v13300_v60 = vld [vmem:[%s17550_s4 + $0x870] ss:$12 sps:$4 sm:$0xff]  }
 0xbc2   :  { %6717 = vmatprep.subr.bf16.mxu0 %v13245_v31  ;;  %v13295_v31 = vld [vmem:[%s17550_s4 + $0x848] ss:$12 sps:$4 sm:$0xff]  }
 0xbc4   :  { %12128 = vmatpush3.bf16.msra.mxu1 %v13261_v2  ;;  %v13306_v2 = vld [vmem:[%s17550_s4 + $0x88c] ss:$12 sps:$4 sm:$0xff]  }
 0xbc5   :  { %6718 = vmatpush1.bf16.msra.mxu0 %v13243_v35  ;;  %12129 = vmatprep.subr.bf16.mxu1 %v13265_v26  ;;  %v13299_v35 = vld [vmem:[%s17550_s4 + $0x860] ss:$12 sps:$4 sm:$0xff]   ;;  %v13304_v26 = vld [vmem:[%s17550_s4 + $0x888] ss:$12 sps:$4 sm:$0xff]  }
 0xbc6   :  { %6719 = vmatprep.subr.bf16.mxu0 %v13248_v62  ;;  %v13302_v62 = vld [vmem:[%s17550_s4 + $0x874] ss:$12 sps:$4 sm:$0xff]  }
 0xbc8   :  { %12130 = vmatpush3.bf16.msra.mxu1 %v13266_v38  ;;  %v13308_v38 = vld [vmem:[%s17550_s4 + $0x8a0] ss:$12 sps:$4 sm:$0xff]  }
 0xbc9   :  { %6720 = vmatpush1.bf16.msra.mxu0 %v13246_v4  ;;  %12131 = vmatprep.subr.bf16.mxu1 %v13270_v30  ;;  %v13311_v30 = vld [vmem:[%s17550_s4 + $0x8a8] ss:$12 sps:$4 sm:$0xff]  }
 0xbca   :  { %6721 = vmatprep.subr.bf16.mxu0 %v13251_v39 }
 0xbcc   :  { %12132 = vmatpush3.bf16.msra.mxu1 %v13271_v42  ;;  %v13315_v42 = vld [vmem:[%s17550_s4 + $0x8c0] ss:$12 sps:$4 sm:$0xff]  }
 0xbcd   :  { %6722 = vmatpush1.bf16.msra.mxu0 %v13249_v44  ;;  %12133 = vmatprep.subr.bf16.mxu1 %v13275_v23  ;;  %v13318_v23 = vld [vmem:[%s17550_s4 + $0x8d4] ss:$12 sps:$4 sm:$0xff]  }
 0xbce   :  { %6723 = vmatprep.subr.bf16.mxu0 %v13254_v45  ;;  %v13303_v45 = vld [vmem:[%s17550_s4 + $0x878] ss:$12 sps:$4 sm:$0xff]  }
 0xbd0   :  { %12134 = vmatpush3.bf16.msra.mxu1 %v13276_v48  ;;  %v13322_v48 = vld [vmem:[%s17550_s4 + $0x8ec] ss:$12 sps:$4 sm:$0xff]  }
 0xbd1   :  { %6724 = vmatpush1.bf16.msra.mxu0 %v13252_v46  ;;  %12135 = vmatprep.subr.bf16.mxu1 %v13280_v27  ;;  %v13307_v46 = vld [vmem:[%s17550_s4 + $0x890] ss:$12 sps:$4 sm:$0xff]   ;;  %v13320_v27 = vld [vmem:[%s17550_s4 + $0x8e8] ss:$12 sps:$4 sm:$0xff]  }
 0xbd2   :  { %6725 = vmatprep.subr.bf16.mxu0 %v13259_v12  ;;  %v13310_v12 = vld [vmem:[%s17550_s4 + $0x8a4] ss:$12 sps:$4 sm:$0xff]  }
 0xbd4   :  { %12136 = vmatpush3.bf16.msra.mxu1 %v13281_v56 }
 0xbd5   :  { %6726 = vmatpush1.bf16.msra.mxu0 %v13257_v47  ;;  %12137 = vmatprep.subr.bf16.mxu1 %v13285_v58  ;;  %v13314_v47 = vld [vmem:[%s17550_s4 + $0x8bc] ss:$12 sps:$4 sm:$0xff]  }
 0xbd6   :  { %6727 = vmatprep.subr.bf16.mxu0 %v13264_v36  ;;  %v13312_v36 = vld [vmem:[%s17550_s4 + $0x8b8] ss:$12 sps:$4 sm:$0xff]  }
 0xbd8   :  { %12138 = vmatpush3.bf16.msra.mxu1 %v13286_v63 }
 0xbd9   :  { %6728 = vmatpush1.bf16.msra.mxu0 %v13262_v3  ;;  %12139 = vmatprep.subr.bf16.mxu1 %v13290_v10  ;;  %v13316_v3 = vld [vmem:[%s17550_s4 + $0x8d0] ss:$12 sps:$4 sm:$0xff]  }
 0xbda   :  { %6729 = vmatprep.subr.bf16.mxu0 %v13269_v52  ;;  %v13319_v52 = vld [vmem:[%s17550_s4 + $0x8d8] ss:$12 sps:$4 sm:$0xff]  }
 0xbdc   :  { %12140 = vmatpush3.bf16.msra.mxu1 %v13291_v14 }
 0xbdd   :  { %6730 = vmatpush1.bf16.msra.mxu0 %v13267_v54  ;;  %12254 = vmatprep.subr.bf16.mxu1 %v13790_v57  ;;  %v13323_v54 = vld [vmem:[%s17550_s4 + $0x8f0] ss:$12 sps:$4 sm:$0xff]  }
 0xbde   :  { %6731 = vmatprep.subr.bf16.mxu0 %v13274_v55 }
 0xbe1   :  { %6732 = vmatpush1.bf16.msra.mxu0 %v13272_v1 }
 0xbe2   :  { %6733 = vmatprep.subr.bf16.mxu0 %v13279_v59 }
 0xbe5   :  { %6734 = vmatpush1.bf16.msra.mxu0 %v13277_v0 }
 0xbe6   :  { %6735 = vmatprep.subr.bf16.mxu0 %v13284_v5 }
 0xbe9   :  { %6736 = vmatpush1.bf16.msra.mxu0 %v13282_v6 }
 0xbea   :  { %6737 = vmatprep.subr.bf16.mxu0 %v13289_v34 }
 0xbed   :  { %6738 = vmatpush1.bf16.msra.mxu0 %v13287_v9 }
 0xbee   :  { %6750 = vmatprep.subr.bf16.mxu0 %v13294_v15 }
 0xc62   :  { %v12107_v20 = vpop.f32.mrb[80].mxu1 }
 0xc63   :  { %v12108_v29 = vpop.f32.mrb[81].mxu1 }
 0xc64   :  { %v12109_v32 = vadd.f32 %v12108_v29, %v12107_v20  ;;  %v12110_v16 = vpop.f32.mrb[82].mxu1 }
 0xc65   :  { %v12111_v40 = vpop.f32.mrb[83].mxu1 }
 0xc66   :  { %v16295_v17 = vadd.f32 %v16045_v18, %v12109_v32  ;;  %v12112_v41 = vadd.f32 %v12111_v40, %v12110_v16  ;;  %v13298_v18 = vld [vmem:[%s17550_s4 + $0x85c] ss:$12 sps:$4 sm:$0xff]  }
 0xc68   :  { %v16298_v49 = vadd.f32 %v16048_v22, %v12112_v41  ;;  %v13296_v22 = vld [vmem:[%s17550_s4 + $0x858] ss:$12 sps:$4 sm:$0xff]  }
 0xc8a   :  { %v6173_v19 = vpop.f32.mrb[84].mxu1 }
 0xc8b   :  { %v6175_v21 = vpop.f32.mrb[85].mxu1 }
 0xc8c   :  { %v6177_v61 = vpop.f32.mrb[86].mxu1 }
 0xc8d   :  { %v6223_v51 = vpack.c.bf16 %v6177_v61, %v6173_v19  ;;  %v6179_v53 = vpop.f32.mrb[87].mxu1 }
 0xc8e   :  { %v6224_v25 = vpack.c.bf16 %v6179_v53, %v6175_v21 }
 0xc90   :  { %6739 = vmatprep.mubr.bf16.mxu0 %v6224_v25  ;;  %6825 = vmatprep.mubr.bf16.mxu1 %v6224_v25 }
 0xc91   :  { %6740 = vmatmul.mubr.bf16.vlgmr.msra.gmra.mrb[48].mxu0 %v6223_v51  ;;  %6826 = vmatmul.mubr.bf16.vlgmr.msra.gmra.mrb[92].mxu1 %v6223_v51 }
 0xc92   :  { %6751 = vmatpush1.bf16.msra.mxu0 %v13292_v50  ;;  %12255 = vmatpush3.bf16.msra.mxu1 %v13295_v31  ;;  %v6216_v4 = vpop.f32.mrb[88].mxu1 }
 0xc93   :  { %6752 = vmatprep.subr.bf16.mxu0 %v13298_v18  ;;  %12256 = vmatprep.subr.bf16.mxu1 %v13790_v57  ;;  %v12252_v39 = vpop.f32.mrb[89].mxu1 }
 0xc94   :  { %v6219_v43 = vpop.f32.mrb[90].mxu1  ;;  %6782 = vmatprep.mubr.bf16.mxu0 %v13786_v7  ;;  %12270 = vmatprep.mubr.msk.bf16.mxu1 %vm13791_vm7, %v13790_v57 }
 0xc95   :  { %v6225_v11 = vpack.c.bf16 %v6219_v43, %v6216_v4  ;;  %v12253_v44 = vpop.f32.mrb[91].mxu1 }
 0xc96   :  { %6753 = vmatpush1.bf16.msra.mxu0 %v13296_v22  ;;  %12257 = vmatpush3.bf16.msra.mxu1 %v13299_v35 }
 0xc97   :  { %6754 = vmatprep.subr.bf16.mxu0 %v13302_v62  ;;  %12258 = vmatprep.subr.bf16.mxu1 %v13790_v57 }
 0xc9a   :  { %6755 = vmatpush1.bf16.msra.mxu0 %v13300_v60  ;;  %12259 = vmatpush3.bf16.msra.mxu1 %v13303_v45 }
 0xc9b   :  { %6756 = vmatprep.subr.bf16.mxu0 %v13306_v2  ;;  %12260 = vmatprep.subr.bf16.mxu1 %v13790_v57 }
 0xc9e   :  { %6757 = vmatpush1.bf16.msra.mxu0 %v13304_v26  ;;  %12261 = vmatpush3.bf16.msra.mxu1 %v13307_v46 }
 0xc9f   :  { %6758 = vmatprep.subr.bf16.mxu0 %v13310_v12  ;;  %12262 = vmatprep.subr.bf16.mxu1 %v13790_v57 }
 0xca2   :  { %6759 = vmatpush1.bf16.msra.mxu0 %v13308_v38  ;;  %12263 = vmatpush3.bf16.msra.mxu1 %v13311_v30 }
 0xca3   :  { %6760 = vmatprep.subr.bf16.mxu0 %v13314_v47  ;;  %12264 = vmatprep.subr.bf16.mxu1 %v13790_v57 }
 0xca6   :  { %6761 = vmatpush1.bf16.msra.mxu0 %v13312_v36  ;;  %12265 = vmatpush3.bf16.msra.mxu1 %v13315_v42 }
 0xca7   :  { %6762 = vmatprep.subr.bf16.mxu0 %v13318_v23  ;;  %12266 = vmatprep.subr.bf16.mxu1 %v13790_v57 }
 0xcaa   :  { %6763 = vmatpush1.bf16.msra.mxu0 %v13316_v3  ;;  %12267 = vmatpush3.bf16.msra.mxu1 %v13319_v52 }
 0xcab   :  { %6764 = vmatprep.subr.bf16.mxu0 %v13322_v48  ;;  %12268 = vmatprep.subr.bf16.mxu1 %v13790_v57 }
 0xcae   :  { %6765 = vmatpush1.bf16.msra.mxu0 %v13320_v27  ;;  %12269 = vmatpush3.bf16.msra.mxu1 %v13323_v54 }
 0xcb1   :  { %6783 = vmatmul.mubr.bf16.vlgmr.msra.gmra.mrb[48].mxu0 %v6225_v11  ;;  %12271 = vmatmul.mubr.bf16.vlgmr.msra.gmra.mrb[60].mxu1 %v6225_v11 }
 0xcb2   :  { %7069 = vmatprep.mubr.bf16.mxu1 %v13786_v7  ;;  %7898 = vmatprep.mubr.bf16.mxu0 %v13786_v7 }
 0xd64   :  { %v12141_v55 = vpop.f32.mrb[92].mxu1 }
 0xd65   :  { %v12142_v56 = vpop.f32.mrb[93].mxu1 }
 0xd66   :  { %v12143_v58 = vadd.f32 %v12142_v56, %v12141_v55  ;;  %v12144_v1 = vpop.f32.mrb[94].mxu1 }
 0xd67   :  { %v12145_v59 = vpop.f32.mrb[95].mxu1 }
 0xd68   :  { %v12146_v63 = vadd.f32 %v12145_v59, %v12144_v1  ;;  %v12306_v0 = vadd.f32 %v16295_v17, %v12143_v58 }
 0xd6a   :  { %v12310_v5 = vadd.f32 %v16298_v49, %v12146_v63 }
 0xd84   :  { %v6784_v6 = vpop.f32.mrb[48].mxu0  ;;  %v6868_v34 = vpop.f32.mrb[60].mxu1 }
 0xd85   :  { %v16384_v10 = vadd.f32 %v6784_v6, %v16033_v24  ;;  %v16386_v9 = vadd.f32 %v12306_v0, %v6868_v34  ;;  %v6786_v14 = vpop.f32.mrb[49].mxu0  ;;  %v12272_v15 = vpop.f32.mrb[61].mxu1 }
 0xd86   :  { %v16389_v20 = vadd.f32 %v6786_v14, %v16036_v28  ;;  %v6788_v29 = vpop.f32.mrb[50].mxu0  ;;  %v6871_v32 = vpop.f32.mrb[62].mxu1 }
 0xd87   :  { %v16392_v16 = vadd.f32 %v6788_v29, %v16039_v33  ;;  %v6790_v40 = vpop.f32.mrb[51].mxu0  ;;  %v12273_v17 = vpop.f32.mrb[63].mxu1  ;;  %v16394_v41 = vadd.f32 %v12310_v5, %v6871_v32  ;;  %v6908_v19 = vmul.f32 %v16384_v10, %v16384_v10  ;;  %v6910_v54 = vmul.f32 %v16386_v9, %v16386_v9 }
 0xd88   :  { %v16397_v24 = vadd.f32 %v6790_v40, %v16042_v37  ;;  %v6909_v53 = vmul.f32 %v16389_v20, %v16389_v20  ;;  %v6898_v56 = vsel %vm3813_vm4, %v16386_v9, 0.0 }
 0xd89   :  { %v6882_v49 = vsel %vm6881_vm8, %v16392_v16, 0.0  ;;  %v6911_v28 = vmul.f32 %v16392_v16, %v16392_v16  ;;  %v6913_v27 = vmul.f32 %v16394_v41, %v16394_v41  ;;  %v6900_v55 = vsel %vm6899_vm9, %v16394_v41, 0.0 }
 0xd8a   :  { %v6883_v21 = vadd.f32 %v16384_v10, %v6882_v49  ;;  %v6890_v33 = vsel %vm6881_vm8, %v16397_v24, 0.0  ;;  %v6912_v37 = vmul.f32 %v16397_v24, %v16397_v24  ;;  %v6901_v1 = vadd.f32 %v6900_v55, %v6898_v56 }
 0xd8b   :  { %v6914_v61 = vsel %vm6881_vm8, %v6911_v28, 0.0  ;;  %v6891_v51 = vadd.f32 %v16389_v20, %v6890_v33  ;;  %v6931_v58 = vsel %vm6899_vm9, %v6913_v27, 0.0  ;;  %v6930_v59 = vsel %vm3813_vm4, %v6910_v54, 0.0 }
 0xd8c   :  { %v6884_v25 = vrot.slane %v6883_v21, 4  ;;  %v6915_v50 = vadd.f32 %v6914_v61, %v6908_v19  ;;  %v6922_v18 = vsel %vm6881_vm8, %v6912_v37, 0.0  ;;  %v6932_v63 = vadd.f32 %v6931_v58, %v6930_v59 }
 0xd8d   :  { %v6892_v31 = vrot.slane %v6891_v51, 4  ;;  %v6923_v22 = vadd.f32 %v6922_v18, %v6909_v53  ;;  %v6902_v0 = vrot.slane %v6901_v1, 4 }
 0xd8e   :  { %v6885_v35 = vadd.f32 %v6884_v25, %v6883_v21  ;;  %v6916_v4 = vrot.slane %v6915_v50, 4  ;;  %v6933_v5 = vrot.slane %v6932_v63, 4 }
 0xd8f   :  { %v6893_v62 = vadd.f32 %v6892_v31, %v6891_v51  ;;  %v6924_v11 = vrot.slane %v6923_v22, 4  ;;  %v6903_v6 = vadd.f32 %v6902_v0, %v6901_v1 }
 0xd90   :  { %v6886_v39 = vrot.slane %v6885_v35, 2  ;;  %v6917_v43 = vadd.f32 %v6916_v4, %v6915_v50  ;;  %v6934_v34 = vadd.f32 %v6933_v5, %v6932_v63 }
 0xd91   :  { %v6894_v44 = vrot.slane %v6893_v62, 2  ;;  %v6925_v2 = vadd.f32 %v6924_v11, %v6923_v22  ;;  %v6904_v14 = vrot.slane %v6903_v6, 2  ;;  %v3871_v11 = vld [vmem:[%s17555_s9 + $0x2] sm:$0x1] }
 0xd92   :  { %v6887_v60 = vadd.f32 %v6886_v39, %v6885_v35  ;;  %v6918_v45 = vrot.slane %v6917_v43, 2  ;;  %v6935_v15 = vrot.slane %v6934_v34, 2 }
 0xd93   :  { %v6895_v26 = vadd.f32 %v6894_v44, %v6893_v62  ;;  %v6926_v38 = vrot.slane %v6925_v2, 2  ;;  %v6905_v29 = vadd.f32 %v6904_v14, %v6903_v6 }
 0xd94   :  { %v6888_v46 = vrot.slane %v6887_v60, 1  ;;  %v6919_v12 = vadd.f32 %v6918_v45, %v6917_v43  ;;  %v6936_v32 = vadd.f32 %v6935_v15, %v6934_v34  ;;  %v3872_v45 = vld [vmem:[%s17555_s9 + $0x3] sm:$0x1] }
 0xd95   :  { %v6896_v36 = vrot.slane %v6895_v26, 1  ;;  %v6927_v42 = vadd.f32 %v6926_v38, %v6925_v2  ;;  %v6906_v49 = vrot.slane %v6905_v29, 1 }
 0xd96   :  { %v6889_v30 = vadd.f32 %v6888_v46, %v6887_v60  ;;  %v6920_v47 = vrot.slane %v6919_v12, 1  ;;  %v6937_v33 = vrot.slane %v6936_v32, 1 }
 0xd97   :  { %v6928_v3 = vrot.slane %v6927_v42, 1  ;;  %v6897_v52 = vadd.f32 %v6896_v36, %v6895_v26  ;;  %v6907_v51 = vadd.f32 %v6906_v49, %v6905_v29  ;;  %v11594_v29 = vld [vmem:[%s17551_s5 + $0x8] sm:$0x7] }
 0xd98   :  { %6940 = vrot.lane.b32.xlu0 %v6889_v30, %s13787_s2  ;;  %v6921_v23 = vadd.f32 %v6920_v47, %v6919_v12  ;;  %v6938_v31 = vadd.f32 %v6937_v33, %v6936_v32  ;;  %v13324_v49 = vld [vmem:[%s17552_s6 + $0x140] ss:$8 sps:$4 sm:$0xff]   ;;  %v13335_v33 = vld [vmem:[%s17552_s6 + $0x174] ss:$8 sps:$4 sm:$0xff]  }
 0xd99   :  { %v6929_v48 = vadd.f32 %v6928_v3, %v6927_v42 }
 0xd9a   :  { %6945 = vrot.lane.b32.xlu1 %v6921_v23, %s13787_s2 }
 0xd9c   :  { %6952 = vrot.lane.b32.xlu0 %v6897_v52, %s13787_s2 }
 0xd9e   :  { %6957 = vrot.lane.b32.xlu1 %v6929_v48, %s13787_s2 }
 0xe0a   :  { %v6941_v40 = vpop.permute.xlu0 %6940 }
 0xe0b   :  { %v6943_v17 = vadd.f32 %v6941_v40, %v6889_v30  ;;  %v11468_v40 = vld [vmem:[%s17551_s5 + $0x4] sm:$0x7] }
 0xe0c   :  { %v6946_v28 = vpop.permute.xlu1 %6945 }
 0xe0d   :  { %v6948_v19 = vadd.f32 %v6946_v28, %v6921_v23  ;;  %v6949_v21 = vadd.f32 %v6943_v17, %v6897_v52  ;;  %v13326_v17 = vld [vmem:[%s17552_s6 + $0x144] ss:$8 sps:$4 sm:$0xff]   ;;  %v13329_v28 = vld [vmem:[%s17552_s6 + $0x154] ss:$8 sps:$4 sm:$0xff]  }
 0xe0e   :  { %v6953_v61 = vpop.permute.xlu0 %6952 }
 0xe0f   :  { %v6955_v37 = vadd.f32 %v6953_v61, %v6949_v21  ;;  %v6950_v53 = vadd.f32 %v6948_v19, %v6929_v48  ;;  %v13327_v19 = vld [vmem:[%s17552_s6 + $0x150] ss:$8 sps:$4 sm:$0xff]   ;;  %v13330_v21 = vld [vmem:[%s17552_s6 + $0x160] ss:$8 sps:$4 sm:$0xff]  }
 0xe10   :  { %v6958_v25 = vpop.permute.xlu1 %6957  ;;  %v13333_v61 = vld [vmem:[%s17552_s6 + $0x170] ss:$8 sps:$4 sm:$0xff]  }
 0xe11   :  { %v6961_v50 = vadd.f32 %v6955_v37, %v6907_v51  ;;  %v6960_v18 = vadd.f32 %v6958_v25, %v6950_v53  ;;  %v13338_v51 = vld [vmem:[%s17552_s6 + $0x184] ss:$8 sps:$4 sm:$0xff]   ;;  %v13336_v37 = vld [vmem:[%s17552_s6 + $0x180] ss:$8 sps:$4 sm:$0xff]   ;;  %v13341_v53 = vld [vmem:[%s17552_s6 + $0x194] ss:$8 sps:$4 sm:$0xff]  }
 0xe12   :  { %v13339_v25 = vld [vmem:[%s17552_s6 + $0x190] ss:$8 sps:$4 sm:$0xff]  }
 0xe13   :  { %v6964_v22 = vmul.f32 0.02, %v6961_v50  ;;  %v6962_v35 = vadd.f32 %v6960_v18, %v6938_v31  ;;  %v13344_v50 = vld [vmem:[%s17552_s6 + $0x1a4] ss:$8 sps:$4 sm:$0xff]   ;;  %v13342_v31 = vld [vmem:[%s17552_s6 + $0x1a0] ss:$8 sps:$4 sm:$0xff]  }
 0xe14   :  { %v13347_v18 = vld [vmem:[%s17552_s6 + $0x1b4] ss:$8 sps:$4 sm:$0xff]  }
 0xe15   :  { %v6966_v4 = vmul.f32 %v6964_v22, %v6964_v22  ;;  %v6965_v62 = vmul.f32 0.02, %v6962_v35  ;;  %v13350_v35 = vld [vmem:[%s17552_s6 + $0x1c4] ss:$8 sps:$4 sm:$0xff]  }
 0xe17   :  { %v6967_v39 = vsub.f32 %v6965_v62, %v6966_v4  ;;  %v13348_v4 = vld [vmem:[%s17552_s6 + $0x1c0] ss:$8 sps:$4 sm:$0xff]   ;;  %v13353_v62 = vld [vmem:[%s17552_s6 + $0x1d4] ss:$8 sps:$4 sm:$0xff]  }
 0xe19   :  { %v6968_v43 = vadd.f32 1e-05, %v6967_v39  ;;  %v13351_v39 = vld [vmem:[%s17552_s6 + $0x1d0] ss:$8 sps:$4 sm:$0xff]  }
 0xe1b   :  { %13758 = vrsqrt.f32 %v6968_v43  ;;  %v13356_v43 = vld [vmem:[%s17552_s6 + $0x1e4] ss:$8 sps:$4 sm:$0xff]  }
 0xe25   :  { %v13759_v44 = vpop.eup %13758 }
 0xe26   :  { %v6970_v60 = vmul.f32 %v13759_v44, %v3871_v11  ;;  %v13354_v11 = vld [vmem:[%s17552_s6 + $0x1e0] ss:$8 sps:$4 sm:$0xff]   ;;  %v13359_v44 = vld [vmem:[%s17552_s6 + $0x1f4] ss:$8 sps:$4 sm:$0xff]  }
 0xe28   :  { %6974 = vrot.lane.b32.xlu0 %v6970_v60, %s13787_s2  ;;  %v6971_v2 = vmul.f32 %v6970_v60, %v6964_v22  ;;  %v6990_v46 = vrot.slane %v6970_v60, %v15320_v13  ;;  %v13345_v22 = vld [vmem:[%s17552_s6 + $0x1b0] ss:$8 sps:$4 sm:$0xff]  }
 0xe2a   :  { %v6972_v26 = vsub.f32 %v3872_v45, %v6971_v2  ;;  %v6993_v36 = vmul.f32 %v16386_v9, %v6990_v46  ;;  %v6996_v42 = vmul.f32 %v16394_v41, %v6990_v46  ;;  %v13360_v45 = vld [vmem:[%s17552_s6 + $0x200] ss:$8 sps:$4 sm:$0xff]   ;;  %v13362_v2 = vld [vmem:[%s17552_s6 + $0x204] ss:$8 sps:$4 sm:$0xff]   ;;  %v13363_v46 = vld [vmem:[%s17552_s6 + $0x210] ss:$8 sps:$4 sm:$0xff]  }
 0xe2c   :  { %6979 = vrot.lane.b32.xlu1 %v6972_v26, %s13787_s2  ;;  %v7004_v38 = vrot.slane %v6972_v26, %v15320_v13 }
 0xe2e   :  { %v7007_v48 = vadd.f32 %v7004_v38, %v6993_v36  ;;  %v7010_v27 = vadd.f32 %v7004_v38, %v6996_v42  ;;  %v13368_v38 = vld [vmem:[%s17552_s6 + $0x224] ss:$8 sps:$4 sm:$0xff]  }
 0xe2f   :  { %v13374_v36 = vld [vmem:[%s17552_s6 + $0x244] ss:$8 sps:$4 sm:$0xff]  }
 0xe30   :  { %v7013_v41 = vmax.f32 %v7007_v48, 0.0  ;;  %v7016_v0 = vmax.f32 %v7010_v27, 0.0 }
 0xe9a   :  { %v6975_v12 = vpop.permute.xlu0 %6974 }
 0xe9b   :  { %v6977_v30 = vsel %vm3813_vm4, %v6970_v60, %v6975_v12  ;;  %v13357_v60 = vld [vmem:[%s17552_s6 + $0x1f0] ss:$8 sps:$4 sm:$0xff]   ;;  %v13366_v12 = vld [vmem:[%s17552_s6 + $0x220] ss:$8 sps:$4 sm:$0xff]  }
 0xe9c   :  { %v6986_v47 = vrot.slane %v6977_v30, %v15320_v13  ;;  %v13371_v30 = vld [vmem:[%s17552_s6 + $0x234] ss:$8 sps:$4 sm:$0xff]  }
 0xe9e   :  { %v6980_v23 = vpop.permute.xlu1 %6979  ;;  %v6992_v3 = vmul.f32 %v16389_v20, %v6986_v47  ;;  %v6995_v54 = vmul.f32 %v16397_v24, %v6986_v47  ;;  %v6991_v56 = vmul.f32 %v16384_v10, %v6986_v47  ;;  %v6994_v58 = vmul.f32 %v16392_v16, %v6986_v47  ;;  %v7022_v24 = vld [vmem:[%s17551_s5] sm:$0x7]  ;;  %v13369_v47 = vld [vmem:[%s17552_s6 + $0x230] ss:$8 sps:$4 sm:$0xff]  }
 0xe9f   :  { %v6982_v52 = vsel %vm3813_vm4, %v6972_v26, %v6980_v23  ;;  %v7019_v16 = vpack.c.bf16 %v7016_v0, %v7013_v41  ;;  %v13365_v26 = vld [vmem:[%s17552_s6 + $0x214] ss:$8 sps:$4 sm:$0xff]  }
 0xea0   :  { %v7000_v55 = vrot.slane %v6982_v52, %v15320_v13  ;;  %v13377_v0 = vld [vmem:[%s17552_s6 + $0x254] ss:$8 sps:$4 sm:$0xff]  }
 0xea1   :  { %v7035_v32 = vsel %vm7027_vm10, %v7019_v16, 0 }
 0xea2   :  { %v7006_v1 = vadd.f32 %v7000_v55, %v6992_v3  ;;  %v7009_v59 = vadd.f32 %v7000_v55, %v6995_v54  ;;  %v7005_v9 = vadd.f32 %v7000_v55, %v6991_v56  ;;  %v7008_v63 = vadd.f32 %v7000_v55, %v6994_v58 }
 0xea4   :  { %v7012_v5 = vmax.f32 %v7006_v1, 0.0  ;;  %v7015_v20 = vmax.f32 %v7009_v59, 0.0  ;;  %v7011_v6 = vmax.f32 %v7005_v9, 0.0  ;;  %v7014_v34 = vmax.f32 %v7008_v63, 0.0  ;;  %v13372_v9 = vld [vmem:[%s17552_s6 + $0x240] ss:$8 sps:$4 sm:$0xff]  }
 0xea6   :  { %v7018_v14 = vpack.c.bf16 %v7015_v20, %v7012_v5  ;;  %v7017_v15 = vpack.c.bf16 %v7014_v34, %v7011_v6  ;;  %v13375_v5 = vld [vmem:[%s17552_s6 + $0x250] ss:$8 sps:$4 sm:$0xff]   ;;  %v13380_v20 = vld [vmem:[%s17552_s6 + $0x264] ss:$8 sps:$4 sm:$0xff]  }
 0xea8   :  { %11465 = vmatprep.subr.msk.bf16.mxu1 %vm7027_vm10, %v7018_v14  ;;  %11595 = vmatprep.subr.msk.bf16.mxu0 %vm7027_vm10, %v7018_v14  ;;  %v7029_v10 = vsel %vm7027_vm10, %v7017_v15, 0 }
 0xea9   :  { %7038 = vmatpush1.bf16.msra.mxu1 %v7029_v10  ;;  %7867 = vmatpush1.bf16.msra.mxu0 %v7029_v10 }
 0xeaa   :  { %12274 = vmatprep.subr.bf16.mxu1 %v13790_v57  ;;  %12286 = vmatprep.subr.bf16.mxu0 %v13790_v57 }
 0xeac   :  { %11466 = vmatmul.mubr.msk.bf16.vlgmr.msra.gmra.mrb[96].mxu1 %vm7023_vm11, %v7022_v24  ;;  %11596 = vmatmul.mubr.msk.bf16.vlgmr.msra.gmra.mrb[52].mxu0 %vm7023_vm11, %v11594_v29 }
 0xead   :  { %12275 = vmatpush3.bf16.msra.mxu1 %v7035_v32  ;;  %12287 = vmatpush3.bf16.msra.mxu0 %v7035_v32 }
 0xeae   :  { %11469 = vmatprep.subr.msk.bf16.mxu1 %vm7027_vm10, %v7018_v14  ;;  %12276 = vmatprep.mubr.msk.bf16.mxu1 %vm13791_vm7, %v13790_v57  ;;  %v13378_v14 = vld [vmem:[%s17552_s6 + $0x260] ss:$8 sps:$4 sm:$0xff]  }
 0xeaf   :  { %12288 = vmatprep.mubr.msk.bf16.mxu0 %vm13791_vm7, %v13790_v57 }
 0xeb4   :  { %12277 = vmatmul.mubr.msk.bf16.vlgmr.msra.gmra.mrb[100].mxu1 %vm7023_vm11, %v7022_v24  ;;  %12289 = vmatmul.mubr.msk.bf16.vlgmr.msra.gmra.mrb[56].mxu0 %vm7023_vm11, %v11594_v29  ;;  %v13381_v24 = vld [vmem:[%s17552_s6 + $0x270] ss:$8 sps:$4 sm:$0xff]   ;;  %v13386_v29 = vld [vmem:[%s17552_s6 + $0x4] ss:$8 sps:$4 sm:$0xff]  }
 0xeb5   :  { %7167 = vmatpush1.bf16.msra.mxu1 %v7029_v10  ;;  %7198 = vmatprep.mubr.bf16.mxu1 %v13786_v7  ;;  %v13383_v10 = vld [vmem:[%s17552_s6 + $0x274] ss:$8 sps:$4 sm:$0xff]  }
 0xeb6   :  { %12280 = vmatprep.subr.bf16.mxu1 %v13790_v57  ;;  %8410 = vmatprep.mubr.bf16.mxu0 %v13786_v7 }
 0xebc   :  { %11470 = vmatmul.mubr.msk.bf16.vlgmr.msra.gmra.mrb[104].mxu1 %vm7023_vm11, %v11468_v40 }
 0xebd   :  { %12281 = vmatpush3.bf16.msra.mxu1 %v7035_v32  ;;  %12282 = vmatprep.mubr.msk.bf16.mxu1 %vm13791_vm7, %v13790_v57  ;;  %v13332_v57 = vld [vmem:[%s17552_s6 + $0x164] ss:$8 sps:$4 sm:$0xff]  }
 0xebe   :  { %7494 = vmatprep.subr.bf16.mxu1 %v13326_v17  ;;  %v13389_v17 = vld [vmem:[%s17552_s6 + $0x14] ss:$8 sps:$4 sm:$0xff]  }
 0xec4   :  { %12283 = vmatmul.mubr.msk.bf16.vlgmr.msra.gmra.mrb[108].mxu1 %vm7023_vm11, %v11468_v40  ;;  %v13384_v40 = vld [vmem:[%s17552_s6] ss:$8 sps:$4 sm:$0xff]  }
 0xec5   :  { %7495 = vmatpush1.bf16.msra.mxu1 %v13324_v49 }
 0xec6   :  { %7496 = vmatprep.subr.bf16.mxu1 %v13329_v28  ;;  %v13387_v28 = vld [vmem:[%s17552_s6 + $0x10] ss:$8 sps:$4 sm:$0xff]  }
 0xec9   :  { %7497 = vmatpush1.bf16.msra.mxu1 %v13327_v19  ;;  %v13392_v19 = vld [vmem:[%s17552_s6 + $0x24] ss:$8 sps:$4 sm:$0xff]  }
 0xeca   :  { %7498 = vmatprep.subr.bf16.mxu1 %v13332_v57  ;;  %v13390_v57 = vld [vmem:[%s17552_s6 + $0x20] ss:$8 sps:$4 sm:$0xff]  }
 0xecd   :  { %7499 = vmatpush1.bf16.msra.mxu1 %v13330_v21  ;;  %v13395_v21 = vld [vmem:[%s17552_s6 + $0x34] ss:$8 sps:$4 sm:$0xff]  }
 0xece   :  { %7500 = vmatprep.subr.bf16.mxu1 %v13335_v33  ;;  %v13393_v33 = vld [vmem:[%s17552_s6 + $0x30] ss:$8 sps:$4 sm:$0xff]  }
 0xed1   :  { %7501 = vmatpush1.bf16.msra.mxu1 %v13333_v61 }
 0xed2   :  { %7502 = vmatprep.subr.bf16.mxu1 %v13338_v51  ;;  %v13398_v51 = vld [vmem:[%s17552_s6 + $0x44] ss:$8 sps:$4 sm:$0xff]  }
 0xed5   :  { %7503 = vmatpush1.bf16.msra.mxu1 %v13336_v37 }
 0xed6   :  { %7504 = vmatprep.subr.bf16.mxu1 %v13341_v53 }
 0xed9   :  { %7505 = vmatpush1.bf16.msra.mxu1 %v13339_v25 }
 0xeda   :  { %7506 = vmatprep.subr.bf16.mxu1 %v13344_v50  ;;  %v13396_v50 = vld [vmem:[%s17552_s6 + $0x40] ss:$8 sps:$4 sm:$0xff]  }
 0xedd   :  { %7507 = vmatpush1.bf16.msra.mxu1 %v13342_v31  ;;  %v13401_v31 = vld [vmem:[%s17552_s6 + $0x54] ss:$8 sps:$4 sm:$0xff]  }
 0xede   :  { %7508 = vmatprep.subr.bf16.mxu1 %v13347_v18  ;;  %v13399_v18 = vld [vmem:[%s17552_s6 + $0x50] ss:$8 sps:$4 sm:$0xff]  }
 0xee1   :  { %7509 = vmatpush1.bf16.msra.mxu1 %v13345_v22  ;;  %v13404_v22 = vld [vmem:[%s17552_s6 + $0x64] ss:$8 sps:$4 sm:$0xff]  }
 0xee2   :  { %7510 = vmatprep.subr.bf16.mxu1 %v13350_v35  ;;  %v13402_v35 = vld [vmem:[%s17552_s6 + $0x60] ss:$8 sps:$4 sm:$0xff]  }
 0xee5   :  { %7511 = vmatpush1.bf16.msra.mxu1 %v13348_v4  ;;  %v13407_v4 = vld [vmem:[%s17552_s6 + $0x74] ss:$8 sps:$4 sm:$0xff]  }
 0xee6   :  { %7512 = vmatprep.subr.bf16.mxu1 %v13353_v62  ;;  %v13405_v62 = vld [vmem:[%s17552_s6 + $0x70] ss:$8 sps:$4 sm:$0xff]  }
 0xee9   :  { %7513 = vmatpush1.bf16.msra.mxu1 %v13351_v39  ;;  %v13410_v39 = vld [vmem:[%s17552_s6 + $0x84] ss:$8 sps:$4 sm:$0xff]  }
 0xeea   :  { %7514 = vmatprep.subr.bf16.mxu1 %v13356_v43 }
 0xeed   :  { %7515 = vmatpush1.bf16.msra.mxu1 %v13354_v11 }
 0xeee   :  { %7516 = vmatprep.subr.bf16.mxu1 %v13359_v44 }
 0xef1   :  { %7517 = vmatpush1.bf16.msra.mxu1 %v13357_v60  ;;  %v13408_v60 = vld [vmem:[%s17552_s6 + $0x80] ss:$8 sps:$4 sm:$0xff]  }
 0xef2   :  { %7518 = vmatprep.subr.bf16.mxu1 %v13362_v2  ;;  %v13413_v2 = vld [vmem:[%s17552_s6 + $0x94] ss:$8 sps:$4 sm:$0xff]  }
 0xef5   :  { %7519 = vmatpush1.bf16.msra.mxu1 %v13360_v45 }
 0xef6   :  { %7520 = vmatprep.subr.bf16.mxu1 %v13365_v26  ;;  %v13411_v26 = vld [vmem:[%s17552_s6 + $0x90] ss:$8 sps:$4 sm:$0xff]  }
 0xef9   :  { %7521 = vmatpush1.bf16.msra.mxu1 %v13363_v46  ;;  %v13416_v46 = vld [vmem:[%s17552_s6 + $0xa4] ss:$8 sps:$4 sm:$0xff]  }
 0xefa   :  { %7522 = vmatprep.subr.bf16.mxu1 %v13368_v38  ;;  %v13419_v38 = vld [vmem:[%s17552_s6 + $0xb4] ss:$8 sps:$4 sm:$0xff]  }
 0xefd   :  { %7523 = vmatpush1.bf16.msra.mxu1 %v13366_v12  ;;  %v13414_v12 = vld [vmem:[%s17552_s6 + $0xa0] ss:$8 sps:$4 sm:$0xff]  }
 0xefe   :  { %7524 = vmatprep.subr.bf16.mxu1 %v13371_v30  ;;  %v13417_v30 = vld [vmem:[%s17552_s6 + $0xb0] ss:$8 sps:$4 sm:$0xff]  }
 0xf01   :  { %7525 = vmatpush1.bf16.msra.mxu1 %v13369_v47  ;;  %v13422_v47 = vld [vmem:[%s17552_s6 + $0xc4] ss:$8 sps:$4 sm:$0xff]  }
 0xf02   :  { %7535 = vmatprep.subr.bf16.mxu1 %v13374_v36  ;;  %v13420_v36 = vld [vmem:[%s17552_s6 + $0xc0] ss:$8 sps:$4 sm:$0xff]  }
 0xf7f   :  { %v16579_v42 = vpop.f32.mrb[96].mxu1  ;;  %v16630_v61 = vpop.f32.mrb[52].mxu0 }
 0xf80   :  { %v7073_v23 = vpop.f32.mrb[97].mxu1  ;;  %v16635_v37 = vpop.f32.mrb[53].mxu0 }
 0xf81   :  { %v7075_v3 = vpop.f32.mrb[98].mxu1  ;;  %v7119_v49 = vpack.c.bf16 %v7073_v23, %v7073_v23  ;;  %v7904_v53 = vpop.f32.mrb[54].mxu0  ;;  %v13425_v23 = vld [vmem:[%s17552_s6 + $0xd4] ss:$8 sps:$4 sm:$0xff]  }
 0xf82   :  { %v7076_v52 = vpop.f32.mrb[99].mxu1  ;;  %v7905_v25 = vpop.f32.mrb[55].mxu0  ;;  %v13423_v3 = vld [vmem:[%s17552_s6 + $0xd0] ss:$8 sps:$4 sm:$0xff]   ;;  %v13476_v53 = vld [vmem:[%s17552_s6 + $0x324] ss:$8 sps:$4 sm:$0xff]  }
 0xf83   :  { %v13428_v52 = vld [vmem:[%s17552_s6 + $0xe4] ss:$8 sps:$4 sm:$0xff]   ;;  %v13474_v25 = vld [vmem:[%s17552_s6 + $0x320] ss:$8 sps:$4 sm:$0xff]  }
 0xf87   :  { %v16581_v48 = vpop.f32.mrb[100].mxu1  ;;  %v16661_v43 = vpop.f32.mrb[56].mxu0 }
 0xf88   :  { %v12278_v27 = vpop.f32.mrb[101].mxu1  ;;  %v12290_v11 = vpop.f32.mrb[57].mxu0 }
 0xf89   :  { %v7115_v54 = vpop.f32.mrb[102].mxu1  ;;  %v7944_v44 = vpop.f32.mrb[58].mxu0  ;;  %v13426_v27 = vld [vmem:[%s17552_s6 + $0xe0] ss:$8 sps:$4 sm:$0xff]   ;;  %v13491_v11 = vld [vmem:[%s17552_s6 + $0x374] ss:$8 sps:$4 sm:$0xff]  }
 0xf8a   :  { %v12279_v55 = vpop.f32.mrb[103].mxu1  ;;  %v12291_v45 = vpop.f32.mrb[59].mxu0  ;;  %v13431_v54 = vld [vmem:[%s17552_s6 + $0xf4] ss:$8 sps:$4 sm:$0xff]   ;;  %v13489_v44 = vld [vmem:[%s17552_s6 + $0x370] ss:$8 sps:$4 sm:$0xff]  }
 0xf8b   :  { %v13429_v55 = vld [vmem:[%s17552_s6 + $0xf0] ss:$8 sps:$4 sm:$0xff]   ;;  %v7947_v45 = vpack.c.bf16 %v16630_v61, %v16630_v61  ;;  %v13500_v61 = vld [vmem:[%s17552_s6 + $0x3a4] ss:$8 sps:$4 sm:$0xff]  }
 0xf8f   :  { %v7200_v56 = vpop.f32.mrb[104].mxu1 }
 0xf90   :  { %v7202_v58 = vpop.f32.mrb[105].mxu1  ;;  %v7247_v63 = vpack.c.bf16 %v7200_v56, %v7200_v56  ;;  %v13434_v56 = vld [vmem:[%s17552_s6 + $0x104] ss:$8 sps:$4 sm:$0xff]  }
 0xf91   :  { %v7248_v1 = vpack.c.bf16 %v7202_v58, %v7202_v58  ;;  %v7204_v59 = vpop.f32.mrb[106].mxu1  ;;  %v13432_v58 = vld [vmem:[%s17552_s6 + $0x100] ss:$8 sps:$4 sm:$0xff]  }
 0xf92   :  { %v7205_v41 = vpop.f32.mrb[107].mxu1  ;;  %v13437_v59 = vld [vmem:[%s17552_s6 + $0x114] ss:$8 sps:$4 sm:$0xff]  }
 0xf93   :  { %7526 = vmatprep.mubr.bf16.mxu1 %v7248_v1  ;;  %v7118_v1 = vpack.c.bf16 %v16579_v42, %v16579_v42  ;;  %v13438_v42 = vld [vmem:[%s17552_s6 + $0x120] ss:$8 sps:$4 sm:$0xff]   ;;  %v13443_v41 = vld [vmem:[%s17552_s6 + $0x134] ss:$8 sps:$4 sm:$0xff]  }
 0xf94   :  { %7527 = vmatmul.mubr.bf16.vlgmr.msra.gmra.mrb[112].mxu1 %v7247_v63  ;;  %v13440_v63 = vld [vmem:[%s17552_s6 + $0x124] ss:$8 sps:$4 sm:$0xff]  }
 0xf95   :  { %7536 = vmatpush1.bf16.msra.mxu1 %v13372_v9  ;;  %7567 = vmatprep.mubr.bf16.mxu1 %v13786_v7  ;;  %v13435_v9 = vld [vmem:[%s17552_s6 + $0x110] ss:$8 sps:$4 sm:$0xff]  }
 0xf96   :  { %7537 = vmatprep.subr.bf16.mxu1 %v13377_v0  ;;  %v13441_v0 = vld [vmem:[%s17552_s6 + $0x130] ss:$8 sps:$4 sm:$0xff]  }
 0xf97   :  { %v7241_v6 = vpop.f32.mrb[108].mxu1 }
 0xf98   :  { %v12284_v34 = vpop.f32.mrb[109].mxu1  ;;  %v7249_v32 = vpack.c.bf16 %v7241_v6, %v7241_v6  ;;  %v7948_v6 = vpack.c.bf16 %v16635_v37, %v16635_v37  ;;  %v13471_v37 = vld [vmem:[%s17552_s6 + $0x310] ss:$8 sps:$4 sm:$0xff]  }
 0xf99   :  { %7538 = vmatpush1.bf16.msra.mxu1 %v13375_v5  ;;  %v7244_v15 = vpop.f32.mrb[110].mxu1  ;;  %v13446_v5 = vld [vmem:[%s17552_s6 + $0x284] ss:$8 sps:$4 sm:$0xff]   ;;  %v7120_v34 = vpack.c.bf16 %v16581_v48, %v16581_v48  ;;  %v13450_v48 = vld [vmem:[%s17552_s6 + $0x2a0] ss:$8 sps:$4 sm:$0xff]  }
 0xf9a   :  { %7539 = vmatprep.subr.bf16.mxu1 %v13380_v20  ;;  %v12285_v16 = vpop.f32.mrb[111].mxu1  ;;  %v13444_v20 = vld [vmem:[%s17552_s6 + $0x280] ss:$8 sps:$4 sm:$0xff]   ;;  %v13447_v15 = vld [vmem:[%s17552_s6 + $0x290] ss:$8 sps:$4 sm:$0xff]  }
 0xf9b   :  { %v13455_v16 = vld [vmem:[%s17552_s6 + $0x2b4] ss:$8 sps:$4 sm:$0xff]  }
 0xf9d   :  { %7540 = vmatpush1.bf16.msra.mxu1 %v13378_v14  ;;  %v13449_v14 = vld [vmem:[%s17552_s6 + $0x294] ss:$8 sps:$4 sm:$0xff]  }
 0xf9e   :  { %7541 = vmatprep.subr.bf16.mxu1 %v13383_v10  ;;  %v13452_v10 = vld [vmem:[%s17552_s6 + $0x2a4] ss:$8 sps:$4 sm:$0xff]  }
 0xfa1   :  { %7542 = vmatpush1.bf16.msra.mxu1 %v13381_v24  ;;  %v13453_v24 = vld [vmem:[%s17552_s6 + $0x2b0] ss:$8 sps:$4 sm:$0xff]  }
 0xfa2   :  { %7779 = vmatprep.subr.bf16.mxu1 %v13386_v29  ;;  %v13458_v29 = vld [vmem:[%s17552_s6 + $0x2c4] ss:$8 sps:$4 sm:$0xff]  }
 0xfa4   :  { %11552 = vmatmul.mubr.msk.bf16.vlgmr.msra.gmra.mrb[112].mxu1 %vm3813_vm4, %v7249_v32  ;;  %v13456_v32 = vld [vmem:[%s17552_s6 + $0x2c0] ss:$8 sps:$4 sm:$0xff]  }
 0xfa5   :  { %7780 = vmatpush1.bf16.msra.mxu1 %v13384_v40  ;;  %7811 = vmatprep.mubr.bf16.mxu1 %v7119_v49  ;;  %v13461_v40 = vld [vmem:[%s17552_s6 + $0x2d4] ss:$8 sps:$4 sm:$0xff]   ;;  %v13464_v49 = vld [vmem:[%s17552_s6 + $0x2e4] ss:$8 sps:$4 sm:$0xff]  }
 0xfa6   :  { %7781 = vmatprep.subr.bf16.mxu1 %v13389_v17  ;;  %v13459_v17 = vld [vmem:[%s17552_s6 + $0x2d0] ss:$8 sps:$4 sm:$0xff]  }
 0xfa9   :  { %7782 = vmatpush1.bf16.msra.mxu1 %v13387_v28  ;;  %v13462_v28 = vld [vmem:[%s17552_s6 + $0x2e0] ss:$8 sps:$4 sm:$0xff]  }
 0xfaa   :  { %7783 = vmatprep.subr.bf16.mxu1 %v13392_v19  ;;  %v13467_v19 = vld [vmem:[%s17552_s6 + $0x2f4] ss:$8 sps:$4 sm:$0xff]  }
 0xfad   :  { %7784 = vmatpush1.bf16.msra.mxu1 %v13390_v57  ;;  %v13465_v57 = vld [vmem:[%s17552_s6 + $0x2f0] ss:$8 sps:$4 sm:$0xff]  }
 0xfae   :  { %7785 = vmatprep.subr.bf16.mxu1 %v13395_v21  ;;  %v13470_v21 = vld [vmem:[%s17552_s6 + $0x304] ss:$8 sps:$4 sm:$0xff]  }
 0xfb1   :  { %7786 = vmatpush1.bf16.msra.mxu1 %v13393_v33  ;;  %v13468_v33 = vld [vmem:[%s17552_s6 + $0x300] ss:$8 sps:$4 sm:$0xff]  }
 0xfb2   :  { %7787 = vmatprep.subr.bf16.mxu1 %v13398_v51  ;;  %v13473_v51 = vld [vmem:[%s17552_s6 + $0x314] ss:$8 sps:$4 sm:$0xff]  }
 0xfb5   :  { %7788 = vmatpush1.bf16.msra.mxu1 %v13396_v50  ;;  %v13479_v50 = vld [vmem:[%s17552_s6 + $0x334] ss:$8 sps:$4 sm:$0xff]  }
 0xfb6   :  { %7789 = vmatprep.subr.bf16.mxu1 %v13401_v31  ;;  %v13477_v31 = vld [vmem:[%s17552_s6 + $0x330] ss:$8 sps:$4 sm:$0xff]  }
 0xfb9   :  { %7790 = vmatpush1.bf16.msra.mxu1 %v13399_v18  ;;  %v13482_v18 = vld [vmem:[%s17552_s6 + $0x344] ss:$8 sps:$4 sm:$0xff]  }
 0xfba   :  { %7791 = vmatprep.subr.bf16.mxu1 %v13404_v22  ;;  %v13480_v22 = vld [vmem:[%s17552_s6 + $0x340] ss:$8 sps:$4 sm:$0xff]  }
 0xfbd   :  { %7792 = vmatpush1.bf16.msra.mxu1 %v13402_v35  ;;  %v13485_v35 = vld [vmem:[%s17552_s6 + $0x354] ss:$8 sps:$4 sm:$0xff]  }
 0xfbe   :  { %7793 = vmatprep.subr.bf16.mxu1 %v13407_v4  ;;  %v13483_v4 = vld [vmem:[%s17552_s6 + $0x350] ss:$8 sps:$4 sm:$0xff]  }
 0xfc1   :  { %7794 = vmatpush1.bf16.msra.mxu1 %v13405_v62  ;;  %v13488_v62 = vld [vmem:[%s17552_s6 + $0x364] ss:$8 sps:$4 sm:$0xff]  }
 0xfc2   :  { %7795 = vmatprep.subr.bf16.mxu1 %v13410_v39  ;;  %v13486_v39 = vld [vmem:[%s17552_s6 + $0x360] ss:$8 sps:$4 sm:$0xff]  }
 0xfc5   :  { %7796 = vmatpush1.bf16.msra.mxu1 %v13408_v60  ;;  %v13494_v60 = vld [vmem:[%s17552_s6 + $0x384] ss:$8 sps:$4 sm:$0xff]  }
 0xfc6   :  { %7797 = vmatprep.subr.bf16.mxu1 %v13413_v2  ;;  %v13492_v2 = vld [vmem:[%s17552_s6 + $0x380] ss:$8 sps:$4 sm:$0xff]  }
 0xfc9   :  { %7798 = vmatpush1.bf16.msra.mxu1 %v13411_v26  ;;  %v13497_v26 = vld [vmem:[%s17552_s6 + $0x394] ss:$8 sps:$4 sm:$0xff]  }
 0xfca   :  { %7799 = vmatprep.subr.bf16.mxu1 %v13416_v46  ;;  %v13495_v46 = vld [vmem:[%s17552_s6 + $0x390] ss:$8 sps:$4 sm:$0xff]  }
 0xfcd   :  { %7800 = vmatpush1.bf16.msra.mxu1 %v13414_v12  ;;  %v13498_v12 = vld [vmem:[%s17552_s6 + $0x3a0] ss:$8 sps:$4 sm:$0xff]  }
 0xfce   :  { %7801 = vmatprep.subr.bf16.mxu1 %v13419_v38  ;;  %v13503_v38 = vld [vmem:[%s17552_s6 + $0x3b4] ss:$8 sps:$4 sm:$0xff]  }
 0xfd1   :  { %7802 = vmatpush1.bf16.msra.mxu1 %v13417_v30  ;;  %v13501_v30 = vld [vmem:[%s17552_s6 + $0x3b0] ss:$8 sps:$4 sm:$0xff]  }
 0xfd2   :  { %7803 = vmatprep.subr.bf16.mxu1 %v13422_v47  ;;  %v7949_v47 = vpack.c.bf16 %v16661_v43, %v16661_v43 }
 0xfd5   :  { %7804 = vmatpush1.bf16.msra.mxu1 %v13420_v36 }
 0xfd6   :  { %7805 = vmatprep.subr.bf16.mxu1 %v13425_v23 }
 0xfd9   :  { %7806 = vmatpush1.bf16.msra.mxu1 %v13423_v3 }
 0xfda   :  { %7807 = vmatprep.subr.bf16.mxu1 %v13428_v52 }
 0xfdd   :  { %7808 = vmatpush1.bf16.msra.mxu1 %v13426_v27 }
 0xfde   :  { %7809 = vmatprep.subr.bf16.mxu1 %v13431_v54 }
 0xfe1   :  { %7810 = vmatpush1.bf16.msra.mxu1 %v13429_v55 }
 0xfe2   :  { %7820 = vmatprep.subr.bf16.mxu1 %v13434_v56 }
 0xfe4   :  { %7812 = vmatmul.mubr.bf16.vlgmr.msra.gmra.mrb[112].mxu1 %v7118_v1 }
 0xfe5   :  { %7821 = vmatpush1.bf16.msra.mxu1 %v13432_v58  ;;  %7852 = vmatprep.mubr.bf16.mxu1 %v13786_v7 }
 0xfe6   :  { %7822 = vmatprep.subr.bf16.mxu1 %v13437_v59 }
 0xfe9   :  { %7823 = vmatpush1.bf16.msra.mxu1 %v13435_v9 }
 0xfea   :  { %7824 = vmatprep.subr.bf16.mxu1 %v13440_v63 }
 0xfed   :  { %7825 = vmatpush1.bf16.msra.mxu1 %v13438_v42 }
 0xfee   :  { %7826 = vmatprep.subr.bf16.mxu1 %v13443_v41 }
 0xff1   :  { %7827 = vmatpush1.bf16.msra.mxu1 %v13441_v0 }
 0xff2   :  { %8194 = vmatprep.subr.bf16.mxu1 %v13446_v5 }
 0xff4   :  { %11593 = vmatmul.mubr.msk.bf16.vlgmr.msra.gmra.mrb[112].mxu1 %vm3813_vm4, %v7120_v34 }
 0xff5   :  { %8195 = vmatpush1.bf16.msra.mxu1 %v13444_v20  ;;  %8226 = vmatprep.mubr.bf16.mxu1 %v7948_v6 }
 0xff6   :  { %8196 = vmatprep.subr.bf16.mxu1 %v13449_v14 }
 0xff9   :  { %8197 = vmatpush1.bf16.msra.mxu1 %v13447_v15 }
 0xffa   :  { %8198 = vmatprep.subr.bf16.mxu1 %v13452_v10 }
 0xffd   :  { %8199 = vmatpush1.bf16.msra.mxu1 %v13450_v48 }
 0xffe   :  { %8200 = vmatprep.subr.bf16.mxu1 %v13455_v16 }
0x1001   :  { %8201 = vmatpush1.bf16.msra.mxu1 %v13453_v24 }
0x1002   :  { %8202 = vmatprep.subr.bf16.mxu1 %v13458_v29 }
0x1005   :  { %8203 = vmatpush1.bf16.msra.mxu1 %v13456_v32 }
0x1006   :  { %8204 = vmatprep.subr.bf16.mxu1 %v13461_v40 }
0x1009   :  { %8205 = vmatpush1.bf16.msra.mxu1 %v13459_v17 }
0x100a   :  { %8206 = vmatprep.subr.bf16.mxu1 %v13464_v49 }
0x100d   :  { %8207 = vmatpush1.bf16.msra.mxu1 %v13462_v28 }
0x100e   :  { %8208 = vmatprep.subr.bf16.mxu1 %v13467_v19 }
0x1011   :  { %8209 = vmatpush1.bf16.msra.mxu1 %v13465_v57 }
0x1012   :  { %8210 = vmatprep.subr.bf16.mxu1 %v13470_v21 }
0x1015   :  { %8211 = vmatpush1.bf16.msra.mxu1 %v13468_v33 }
0x1016   :  { %8212 = vmatprep.subr.bf16.mxu1 %v13473_v51 }
0x1019   :  { %8213 = vmatpush1.bf16.msra.mxu1 %v13471_v37 }
0x101a   :  { %8214 = vmatprep.subr.bf16.mxu1 %v13476_v53 }
0x101d   :  { %8215 = vmatpush1.bf16.msra.mxu1 %v13474_v25 }
0x101e   :  { %8216 = vmatprep.subr.bf16.mxu1 %v13479_v50 }
0x1021   :  { %8217 = vmatpush1.bf16.msra.mxu1 %v13477_v31 }
0x1022   :  { %8218 = vmatprep.subr.bf16.mxu1 %v13482_v18 }
0x1025   :  { %8219 = vmatpush1.bf16.msra.mxu1 %v13480_v22 }
0x1026   :  { %8220 = vmatprep.subr.bf16.mxu1 %v13485_v35  ;;  %v7020_v35 = vld [vmem:[%s17555_s9 + $0x4] sm:$0x1] }
0x1029   :  { %8221 = vmatpush1.bf16.msra.mxu1 %v13483_v4 }
0x102a   :  { %8222 = vmatprep.subr.bf16.mxu1 %v13488_v62 }
0x102d   :  { %8223 = vmatpush1.bf16.msra.mxu1 %v13486_v39  ;;  %v7021_v39 = vld [vmem:[%s17555_s9 + $0x5] sm:$0x1] }
0x102e   :  { %8224 = vmatprep.subr.bf16.mxu1 %v13491_v11 }
0x1031   :  { %8225 = vmatpush1.bf16.msra.mxu1 %v13489_v44 }
0x1032   :  { %8235 = vmatprep.subr.bf16.mxu1 %v13494_v60 }
0x1034   :  { %8227 = vmatmul.mubr.bf16.vlgmr.msra.gmra.mrb[112].mxu1 %v7947_v45 }
0x1035   :  { %8236 = vmatpush1.bf16.msra.mxu1 %v13492_v2  ;;  %8267 = vmatprep.mubr.bf16.mxu1 %v13786_v7 }
0x1036   :  { %8237 = vmatprep.subr.bf16.mxu1 %v13497_v26 }
0x1039   :  { %8238 = vmatpush1.bf16.msra.mxu1 %v13495_v46 }
0x103a   :  { %8239 = vmatprep.subr.bf16.mxu1 %v13500_v61 }
0x103d   :  { %8240 = vmatpush1.bf16.msra.mxu1 %v13498_v12 }
0x103e   :  { %8241 = vmatprep.subr.bf16.mxu1 %v13503_v38 }
0x1041   :  { %8242 = vmatpush1.bf16.msra.mxu1 %v13501_v30 }
0x1044   :  { %11678 = vmatmul.mubr.msk.bf16.vlgmr.msra.gmra.mrb[112].mxu1 %vm3813_vm4, %v7949_v47 }
0x1045   :  { %9525 = vmatprep.mubr.bf16.mxu1 %v13786_v7 }
0x1117   :  { %v16867_v36 = vpop.f32.mrb[112].mxu1 }
0x1118   :  { %v8279_v23 = vsel %vm8278_vm12, %v16867_v36, 0.0  ;;  %v8294_v3 = vmul.f32 %v16867_v36, %v16867_v36  ;;  %v8271_v52 = vpop.f32.mrb[113].mxu1 }
0x1119   :  { %v8280_v27 = vrot.slane %v8279_v23, 4  ;;  %v8273_v54 = vpop.f32.mrb[114].mxu1  ;;  %v8295_v6 = vmul.f32 %v8271_v52, %v8271_v52  ;;  %v8287_v34 = vsel %vm8286_vm13, %v8271_v52, 0.0 }
0x111a   :  { %v8296_v55 = vsel %vm8278_vm12, %v8294_v3, 0.0  ;;  %v8274_v56 = vpop.f32.mrb[115].mxu1  ;;  %v8288_v15 = vrot.slane %v8287_v34, 4 }
0x111b   :  { %v8281_v58 = vadd.f32 %v8280_v27, %v8279_v23  ;;  %v8297_v43 = vrot.slane %v8296_v55, 4  ;;  %v8303_v14 = vsel %vm8286_vm13, %v8295_v6, 0.0  ;;  %v13519_v6 = vld [vmem:[%s17554_s8 + $0x2a8] ss:$20 sps:$4 sm:$0xff]  }
0x111c   :  { %v8304_v10 = vrot.slane %v8303_v14, 4  ;;  %v8289_v48 = vadd.f32 %v8288_v15, %v8287_v34  ;;  %v13524_v34 = vld [vmem:[%s17554_s8 + $0x2d4] ss:$20 sps:$4 sm:$0xff]   ;;  %v13527_v15 = vld [vmem:[%s17554_s8 + $0x2fc] ss:$20 sps:$4 sm:$0xff]  }
0x111d   :  { %v8282_v1 = vrot.slane %v8281_v58, 2  ;;  %v8298_v59 = vadd.f32 %v8297_v43, %v8296_v55  ;;  %v13504_v43 = vld [vmem:[%s17554_s8 + $0x1e0] ss:$20 sps:$4 sm:$0xff]  }
0x111e   :  { %v8305_v16 = vadd.f32 %v8304_v10, %v8303_v14  ;;  %v8290_v24 = vrot.slane %v8289_v48, 2  ;;  %v13522_v14 = vld [vmem:[%s17554_s8 + $0x2d0] ss:$20 sps:$4 sm:$0xff]   ;;  %v13525_v10 = vld [vmem:[%s17554_s8 + $0x2f8] ss:$20 sps:$4 sm:$0xff]  }
0x111f   :  { %v8283_v9 = vadd.f32 %v8282_v1, %v8281_v58  ;;  %v8299_v63 = vrot.slane %v8298_v59, 2  ;;  %v8366_v58 = vld [vmem:[%s17553_s7] sm:$0x1] }
0x1120   :  { %v8306_v29 = vrot.slane %v8305_v16, 2  ;;  %v8291_v32 = vadd.f32 %v8290_v24, %v8289_v48  ;;  %v13509_v1 = vld [vmem:[%s17554_s8 + $0x20c] ss:$20 sps:$4 sm:$0xff]   ;;  %v13530_v48 = vld [vmem:[%s17554_s8 + $0x324] ss:$20 sps:$4 sm:$0xff]  }
0x1121   :  { %v8284_v42 = vrot.slane %v8283_v9, 1  ;;  %v8300_v41 = vadd.f32 %v8299_v63, %v8298_v59  ;;  %v13507_v59 = vld [vmem:[%s17554_s8 + $0x208] ss:$20 sps:$4 sm:$0xff]   ;;  %v13510_v63 = vld [vmem:[%s17554_s8 + $0x230] ss:$20 sps:$4 sm:$0xff]  }
0x1122   :  { %v8307_v40 = vadd.f32 %v8306_v29, %v8305_v16  ;;  %v8292_v17 = vrot.slane %v8291_v32, 1  ;;  %v13528_v16 = vld [vmem:[%s17554_s8 + $0x320] ss:$20 sps:$4 sm:$0xff]   ;;  %v13531_v29 = vld [vmem:[%s17554_s8 + $0x348] ss:$20 sps:$4 sm:$0xff]  }
0x1123   :  { %v8285_v0 = vadd.f32 %v8284_v42, %v8283_v9  ;;  %v8301_v5 = vrot.slane %v8300_v41, 1  ;;  %v13512_v9 = vld [vmem:[%s17554_s8 + $0x234] ss:$20 sps:$4 sm:$0xff]   ;;  %v13515_v42 = vld [vmem:[%s17554_s8 + $0x25c] ss:$20 sps:$4 sm:$0xff]  }
0x1124   :  { %v8308_v49 = vrot.slane %v8307_v40, 1  ;;  %v8293_v19 = vadd.f32 %v8292_v17, %v8291_v32  ;;  %v13533_v24 = vld [vmem:[%s17554_s8 + $0x34c] ss:$20 sps:$4 sm:$0xff]   ;;  %v13534_v32 = vld [vmem:[%s17554_s8 + $0x370] ss:$20 sps:$4 sm:$0xff]  }
0x1125   :  { %8311 = vrot.lane.b32.xlu0 %v8285_v0, %s13787_s2  ;;  %v8302_v20 = vadd.f32 %v8301_v5, %v8300_v41  ;;  %v13513_v41 = vld [vmem:[%s17554_s8 + $0x258] ss:$20 sps:$4 sm:$0xff]   ;;  %v13516_v5 = vld [vmem:[%s17554_s8 + $0x280] ss:$20 sps:$4 sm:$0xff]   ;;  %v13539_v17 = vld [vmem:[%s17554_s8 + $0x39c] ss:$20 sps:$4 sm:$0xff]  }
0x1126   :  { %v8309_v51 = vadd.f32 %v8308_v49, %v8307_v40  ;;  %v13536_v40 = vld [vmem:[%s17554_s8 + $0x374] ss:$20 sps:$4 sm:$0xff]   ;;  %v13537_v49 = vld [vmem:[%s17554_s8 + $0x398] ss:$20 sps:$4 sm:$0xff]  }
0x1127   :  { %8316 = vrot.lane.b32.xlu1 %v8302_v20, %s13787_s2 }
0x1197   :  { %v8312_v28 = vpop.permute.xlu0 %8311 }
0x1198   :  { %v8314_v57 = vadd.f32 %v8312_v28, %v8285_v0  ;;  %v13518_v0 = vld [vmem:[%s17554_s8 + $0x284] ss:$20 sps:$4 sm:$0xff]   ;;  %v13542_v28 = vld [vmem:[%s17554_s8 + $0x1ec] ss:$20 sps:$4 sm:$0xff]  }
0x1199   :  { %v8317_v21 = vpop.permute.xlu1 %8316 }
0x119a   :  { %v8320_v33 = vadd.f32 %v8314_v57, %v8293_v19  ;;  %v8319_v37 = vadd.f32 %v8317_v21, %v8302_v20  ;;  %v13521_v20 = vld [vmem:[%s17554_s8 + $0x2ac] ss:$20 sps:$4 sm:$0xff]  }
0x119b   :  { %v11882_v19 = vld [vmem:[%s17553_s7 + $0x2] sm:$0x1] }
0x119c   :  { %v8323_v53 = vmul.f32 0.055555556, %v8320_v33  ;;  %v8321_v25 = vadd.f32 %v8319_v37, %v8309_v51 }
0x119e   :  { %v8325_v50 = vmul.f32 %v8323_v53, %v8323_v53  ;;  %v8324_v31 = vmul.f32 0.055555556, %v8321_v25 }
0x11a0   :  { %v8326_v18 = vsub.f32 %v8324_v31, %v8325_v50  ;;  %v13540_v50 = vld [vmem:[%s17554_s8 + $0x1e8] ss:$20 sps:$4 sm:$0xff]  }
0x11a2   :  { %v8327_v22 = vadd.f32 1e-05, %v8326_v18 }
0x11a4   :  { %13760 = vrsqrt.f32 %v8327_v22  ;;  %v13545_v22 = vld [vmem:[%s17554_s8 + $0x214] ss:$20 sps:$4 sm:$0xff]  }
0x11ae   :  { %v13761_v4 = vpop.eup %13760 }
0x11af   :  { %v8329_v62 = vmul.f32 %v13761_v4, %v7020_v35  ;;  %v13543_v4 = vld [vmem:[%s17554_s8 + $0x210] ss:$20 sps:$4 sm:$0xff]  }
0x11b1   :  { %8333 = vrot.lane.b32.xlu0 %v8329_v62, %s13787_s2  ;;  %v8330_v11 = vmul.f32 %v8329_v62, %v8323_v53  ;;  %v8349_v44 = vrot.slane %v8329_v62, %v15320_v13 }
0x11b3   :  { %v8331_v60 = vsub.f32 %v7021_v39, %v8330_v11  ;;  %v8351_v2 = vmul.f32 %v8349_v44, %v8271_v52  ;;  %v13546_v39 = vld [vmem:[%s17554_s8 + $0x238] ss:$20 sps:$4 sm:$0xff]   ;;  %v13549_v44 = vld [vmem:[%s17554_s8 + $0x260] ss:$20 sps:$4 sm:$0xff]  }
0x11b4   :  { %v13551_v11 = vld [vmem:[%s17554_s8 + $0x264] ss:$20 sps:$4 sm:$0xff]  }
0x11b5   :  { %8338 = vrot.lane.b32.xlu1 %v8331_v60, %s13787_s2  ;;  %v8359_v45 = vrot.slane %v8331_v60, %v15320_v13 }
0x11b7   :  { %v8361_v26 = vadd.f32 %v8359_v45, %v8351_v2  ;;  %v13552_v45 = vld [vmem:[%s17554_s8 + $0x288] ss:$20 sps:$4 sm:$0xff]  }
0x11b8   :  { %v13557_v2 = vld [vmem:[%s17554_s8 + $0x2b4] ss:$20 sps:$4 sm:$0xff]  }
0x11b9   :  { %v8363_v46 = vmax.f32 %v8361_v26, 0.0  ;;  %v13555_v26 = vld [vmem:[%s17554_s8 + $0x2b0] ss:$20 sps:$4 sm:$0xff]  }
0x11bb   :  { %v8365_v61 = vpack.c.bf16 %v8363_v46, %v8363_v46  ;;  %v13560_v46 = vld [vmem:[%s17554_s8 + $0x2dc] ss:$20 sps:$4 sm:$0xff]  }
0x11bd   :  { %11679 = vmatprep.subr.msk.bf16.mxu0 %vm8371_vm14, %v8365_v61  ;;  %11883 = vmatprep.subr.msk.bf16.mxu1 %vm8371_vm14, %v8365_v61 }
0x1223   :  { %v8334_v12 = vpop.permute.xlu0 %8333 }
0x1224   :  { %v8336_v38 = vsel %vm3813_vm4, %v8329_v62, %v8334_v12  ;;  %v13548_v62 = vld [vmem:[%s17554_s8 + $0x23c] ss:$20 sps:$4 sm:$0xff]   ;;  %v13563_v12 = vld [vmem:[%s17554_s8 + $0x304] ss:$20 sps:$4 sm:$0xff]  }
0x1225   :  { %v8345_v30 = vrot.slane %v8336_v38, %v15320_v13  ;;  %v13561_v38 = vld [vmem:[%s17554_s8 + $0x300] ss:$20 sps:$4 sm:$0xff]  }
0x1227   :  { %v8339_v47 = vpop.permute.xlu1 %8338  ;;  %v8350_v3 = vmul.f32 %v8345_v30, %v16867_v36  ;;  %v13506_v36 = vld [vmem:[%s17554_s8 + $0x1e4] ss:$20 sps:$4 sm:$0xff]   ;;  %v13566_v30 = vld [vmem:[%s17554_s8 + $0x32c] ss:$20 sps:$4 sm:$0xff]  }
0x1228   :  { %v8341_v23 = vsel %vm3813_vm4, %v8331_v60, %v8339_v47  ;;  %v13554_v60 = vld [vmem:[%s17554_s8 + $0x28c] ss:$20 sps:$4 sm:$0xff]   ;;  %v13564_v47 = vld [vmem:[%s17554_s8 + $0x328] ss:$20 sps:$4 sm:$0xff]  }
0x1229   :  { %v8355_v52 = vrot.slane %v8341_v23, %v15320_v13  ;;  %v11681_v13 = vld [vmem:[%s17553_s7 + $0x1] sm:$0x1]  ;;  %v13569_v23 = vld [vmem:[%s17554_s8 + $0x354] ss:$20 sps:$4 sm:$0xff]  }
0x122b   :  { %v8360_v27 = vadd.f32 %v8355_v52, %v8350_v3  ;;  %v13567_v3 = vld [vmem:[%s17554_s8 + $0x350] ss:$20 sps:$4 sm:$0xff]  }
0x122c   :  { %v13572_v52 = vld [vmem:[%s17554_s8 + $0x37c] ss:$20 sps:$4 sm:$0xff]  }
0x122d   :  { %v8362_v54 = vmax.f32 %v8360_v27, 0.0  ;;  %v13570_v27 = vld [vmem:[%s17554_s8 + $0x378] ss:$20 sps:$4 sm:$0xff]  }
0x122f   :  { %v8364_v55 = vpack.c.bf16 %v8362_v54, %v8362_v54  ;;  %v13575_v54 = vld [vmem:[%s17554_s8 + $0x3a4] ss:$20 sps:$4 sm:$0xff]  }
0x1231   :  { %v8373_v56 = vsel %vm8371_vm14, %v8364_v55, 0  ;;  %v13573_v55 = vld [vmem:[%s17554_s8 + $0x3a0] ss:$20 sps:$4 sm:$0xff]  }
0x1232   :  { %8379 = vmatpush1.bf16.msra.mxu0 %v8373_v56  ;;  %9494 = vmatpush1.bf16.msra.mxu1 %v8373_v56 }
0x1233   :  { %11682 = vmatprep.subr.msk.bf16.mxu0 %vm8371_vm14, %v8365_v61  ;;  %v13558_v61 = vld [vmem:[%s17554_s8 + $0x2d8] ss:$20 sps:$4 sm:$0xff]  }
0x1235   :  { %11680 = vmatmul.mubr.msk.bf16.vlgmr.msra.gmra.mrb[60].mxu0 %vm8367_vm15, %v8366_v58  ;;  %11884 = vmatmul.mubr.msk.bf16.vlgmr.msra.gmra.mrb[116].mxu1 %vm8367_vm15, %v11882_v19  ;;  %v13577_v58 = vld [vmem:[%s17554_s8 + $0x218] ss:$20 sps:$4 sm:$0xff]  }
0x1236   :  { %8499 = vmatpush1.bf16.msra.mxu0 %v8373_v56  ;;  %8530 = vmatprep.mubr.bf16.mxu0 %v13786_v7  ;;  %v13576_v56 = vld [vmem:[%s17554_s8 + $0x1f0] ss:$20 sps:$4 sm:$0xff]   ;;  %v13609_v19 = vld [vmem:[%s17554_s8 + $0x118] ss:$20 sps:$4 sm:$0xff]  }
0x1237   :  { %8929 = vmatprep.subr.bf16.mxu0 %v13506_v36  ;;  %v13578_v36 = vld [vmem:[%s17554_s8 + $0x240] ss:$20 sps:$4 sm:$0xff]  }
0x123d   :  { %11683 = vmatmul.mubr.msk.bf16.vlgmr.msra.gmra.mrb[64].mxu0 %vm8367_vm15, %v11681_v13  ;;  %v13579_v13 = vld [vmem:[%s17554_s8 + $0x268] ss:$20 sps:$4 sm:$0xff]  }
0x123e   :  { %8930 = vmatpush1.bf16.msra.mxu0 %v13504_v43  ;;  %v13580_v43 = vld [vmem:[%s17554_s8 + $0x290] ss:$20 sps:$4 sm:$0xff]  }
0x123f   :  { %8931 = vmatprep.subr.bf16.mxu0 %v13509_v1  ;;  %v13581_v1 = vld [vmem:[%s17554_s8 + $0x2b8] ss:$20 sps:$4 sm:$0xff]  }
0x1242   :  { %8932 = vmatpush1.bf16.msra.mxu0 %v13507_v59  ;;  %v13582_v59 = vld [vmem:[%s17554_s8 + $0x2e0] ss:$20 sps:$4 sm:$0xff]  }
0x1243   :  { %8933 = vmatprep.subr.bf16.mxu0 %v13512_v9  ;;  %v13583_v9 = vld [vmem:[%s17554_s8 + $0x308] ss:$20 sps:$4 sm:$0xff]  }
0x1246   :  { %8934 = vmatpush1.bf16.msra.mxu0 %v13510_v63  ;;  %v13584_v63 = vld [vmem:[%s17554_s8 + $0x330] ss:$20 sps:$4 sm:$0xff]  }
0x1247   :  { %8935 = vmatprep.subr.bf16.mxu0 %v13515_v42  ;;  %v13585_v42 = vld [vmem:[%s17554_s8 + $0x358] ss:$20 sps:$4 sm:$0xff]  }
0x124a   :  { %8936 = vmatpush1.bf16.msra.mxu0 %v13513_v41  ;;  %v13586_v41 = vld [vmem:[%s17554_s8 + $0x380] ss:$20 sps:$4 sm:$0xff]  }
0x124b   :  { %8937 = vmatprep.subr.bf16.mxu0 %v13518_v0  ;;  %v13587_v0 = vld [vmem:[%s17554_s8 + $0x3a8] ss:$20 sps:$4 sm:$0xff]  }
0x124e   :  { %8938 = vmatpush1.bf16.msra.mxu0 %v13516_v5  ;;  %v13590_v5 = vld [vmem:[%s17554_s8 + $0x4] ss:$20 sps:$4 sm:$0xff]  }
0x124f   :  { %8939 = vmatprep.subr.bf16.mxu0 %v13521_v20  ;;  %v13588_v20 = vld [vmem:[%s17554_s8] ss:$20 sps:$4 sm:$0xff]  }
0x1252   :  { %8940 = vmatpush1.bf16.msra.mxu0 %v13519_v6  ;;  %v13593_v6 = vld [vmem:[%s17554_s8 + $0x2c] ss:$20 sps:$4 sm:$0xff]  }
0x1253   :  { %8941 = vmatprep.subr.bf16.mxu0 %v13524_v34 }
0x1256   :  { %8942 = vmatpush1.bf16.msra.mxu0 %v13522_v14  ;;  %v13591_v14 = vld [vmem:[%s17554_s8 + $0x28] ss:$20 sps:$4 sm:$0xff]  }
0x1257   :  { %8943 = vmatprep.subr.bf16.mxu0 %v13527_v15  ;;  %v13596_v15 = vld [vmem:[%s17554_s8 + $0x54] ss:$20 sps:$4 sm:$0xff]  }
0x125a   :  { %8944 = vmatpush1.bf16.msra.mxu0 %v13525_v10  ;;  %v13594_v10 = vld [vmem:[%s17554_s8 + $0x50] ss:$20 sps:$4 sm:$0xff]  }
0x125b   :  { %8945 = vmatprep.subr.bf16.mxu0 %v13530_v48  ;;  %v13599_v48 = vld [vmem:[%s17554_s8 + $0x7c] ss:$20 sps:$4 sm:$0xff]  }
0x125e   :  { %8946 = vmatpush1.bf16.msra.mxu0 %v13528_v16  ;;  %v13597_v16 = vld [vmem:[%s17554_s8 + $0x78] ss:$20 sps:$4 sm:$0xff]  }
0x125f   :  { %8947 = vmatprep.subr.bf16.mxu0 %v13533_v24  ;;  %v13602_v24 = vld [vmem:[%s17554_s8 + $0xa4] ss:$20 sps:$4 sm:$0xff]  }
0x1262   :  { %8948 = vmatpush1.bf16.msra.mxu0 %v13531_v29  ;;  %v13600_v29 = vld [vmem:[%s17554_s8 + $0xa0] ss:$20 sps:$4 sm:$0xff]  }
0x1263   :  { %8949 = vmatprep.subr.bf16.mxu0 %v13536_v40  ;;  %v13603_v40 = vld [vmem:[%s17554_s8 + $0xc8] ss:$20 sps:$4 sm:$0xff]  }
0x1266   :  { %8950 = vmatpush1.bf16.msra.mxu0 %v13534_v32  ;;  %v13605_v32 = vld [vmem:[%s17554_s8 + $0xcc] ss:$20 sps:$4 sm:$0xff]  }
0x1267   :  { %8951 = vmatprep.subr.bf16.mxu0 %v13539_v17  ;;  %v13608_v17 = vld [vmem:[%s17554_s8 + $0xf4] ss:$20 sps:$4 sm:$0xff]  }
0x126a   :  { %8952 = vmatpush1.bf16.msra.mxu0 %v13537_v49  ;;  %v13606_v49 = vld [vmem:[%s17554_s8 + $0xf0] ss:$20 sps:$4 sm:$0xff]  }
0x126b   :  { %8970 = vmatprep.subr.bf16.mxu0 %v13542_v28  ;;  %v13611_v28 = vld [vmem:[%s17554_s8 + $0x11c] ss:$20 sps:$4 sm:$0xff]  }
0x1308   :  { %v16981_v57 = vpop.f32.mrb[60].mxu0 }
0x1309   :  { %v16983_v21 = vpop.f32.mrb[61].mxu0 }
0x130a   :  { %v8416_v33 = vpop.f32.mrb[62].mxu0  ;;  %v17120_v34 = vpack.c.bf16 %v16983_v21, %v16983_v21  ;;  %v13614_v21 = vld [vmem:[%s17554_s8 + $0x144] ss:$20 sps:$4 sm:$0xff]  }
0x130b   :  { %v8417_v51 = vpop.f32.mrb[63].mxu0  ;;  %v13612_v33 = vld [vmem:[%s17554_s8 + $0x140] ss:$20 sps:$4 sm:$0xff]  }
0x130c   :  { %v13617_v51 = vld [vmem:[%s17554_s8 + $0x16c] ss:$20 sps:$4 sm:$0xff]  }
0x1310   :  { %v8532_v37 = vpop.f32.mrb[64].mxu0 }
0x1311   :  { %v8534_v53 = vpop.f32.mrb[65].mxu0  ;;  %v16988_v18 = vpack.c.bf16 %v8532_v37, %v8532_v37  ;;  %v13615_v37 = vld [vmem:[%s17554_s8 + $0x168] ss:$20 sps:$4 sm:$0xff]  }
0x1312   :  { %v8540_v25 = vpack.c.bf16 %v8534_v53, %v8534_v53  ;;  %v8536_v31 = vpop.f32.mrb[66].mxu0  ;;  %v13620_v53 = vld [vmem:[%s17554_s8 + $0x194] ss:$20 sps:$4 sm:$0xff]  }
0x1313   :  { %v8537_v35 = vpop.f32.mrb[67].mxu0  ;;  %v13621_v31 = vld [vmem:[%s17554_s8 + $0x1b8] ss:$20 sps:$4 sm:$0xff]  }
0x1314   :  { %11816 = vmatprep.mubr.msk.bf16.mxu0 %vm3813_vm4, %v8540_v25  ;;  %v17196_v35 = vpack.c.bf16 %v16981_v57, %v16981_v57  ;;  %v13632_v57 = vld [vmem:[%s17554_s8 + $0x5c] ss:$20 sps:$4 sm:$0xff]  }
0x1315   :  { %8962 = vmatmul.mubr.bf16.vlgmr.msra.gmra.mrb[68].mxu0 %v16988_v18 }
0x1316   :  { %8971 = vmatpush1.bf16.msra.mxu0 %v13540_v50  ;;  %11817 = vmatprep.mubr.msk.bf16.mxu0 %vm3813_vm4, %v8540_v25  ;;  %v13623_v50 = vld [vmem:[%s17554_s8 + $0x1bc] ss:$20 sps:$4 sm:$0xff]  }
0x1317   :  { %8972 = vmatprep.subr.bf16.mxu0 %v13545_v22  ;;  %v13624_v22 = vld [vmem:[%s17554_s8 + $0x8] ss:$20 sps:$4 sm:$0xff]  }
0x131a   :  { %8973 = vmatpush1.bf16.msra.mxu0 %v13543_v4  ;;  %v13629_v4 = vld [vmem:[%s17554_s8 + $0x34] ss:$20 sps:$4 sm:$0xff]  }
0x131b   :  { %8974 = vmatprep.subr.bf16.mxu0 %v13548_v62  ;;  %v13627_v62 = vld [vmem:[%s17554_s8 + $0x30] ss:$20 sps:$4 sm:$0xff]  }
0x131e   :  { %8975 = vmatpush1.bf16.msra.mxu0 %v13546_v39  ;;  %v13630_v39 = vld [vmem:[%s17554_s8 + $0x58] ss:$20 sps:$4 sm:$0xff]  }
0x131f   :  { %8976 = vmatprep.subr.bf16.mxu0 %v13551_v11  ;;  %v13635_v11 = vld [vmem:[%s17554_s8 + $0x84] ss:$20 sps:$4 sm:$0xff]  }
0x1322   :  { %8977 = vmatpush1.bf16.msra.mxu0 %v13549_v44  ;;  %v13633_v44 = vld [vmem:[%s17554_s8 + $0x80] ss:$20 sps:$4 sm:$0xff]  }
0x1323   :  { %8978 = vmatprep.subr.bf16.mxu0 %v13554_v60  ;;  %v17219_v60 = vpop.f32.mrb[116].mxu1 }
0x1326   :  { %8979 = vmatpush1.bf16.msra.mxu0 %v13552_v45  ;;  %v13638_v45 = vld [vmem:[%s17554_s8 + $0xac] ss:$20 sps:$4 sm:$0xff]  }
0x1327   :  { %8980 = vmatprep.subr.bf16.mxu0 %v13557_v2  ;;  %v17224_v2 = vpop.f32.mrb[117].mxu1 }
0x132a   :  { %8981 = vmatpush1.bf16.msra.mxu0 %v13555_v26  ;;  %v9531_v26 = vpop.f32.mrb[118].mxu1 }
0x132b   :  { %8982 = vmatprep.subr.bf16.mxu0 %v13560_v46  ;;  %v9532_v46 = vpop.f32.mrb[119].mxu1  ;;  %v13717_v26 = vld [vmem:[%s17554_s8 + $0x440] ss:$20 sps:$4 sm:$0xff]  }
0x132c   :  { %v13722_v46 = vld [vmem:[%s17554_s8 + $0x46c] ss:$20 sps:$4 sm:$0xff]  }
0x132e   :  { %8983 = vmatpush1.bf16.msra.mxu0 %v13558_v61  ;;  %v13636_v61 = vld [vmem:[%s17554_s8 + $0xa8] ss:$20 sps:$4 sm:$0xff]  }
0x132f   :  { %8984 = vmatprep.subr.bf16.mxu0 %v13563_v12  ;;  %v13641_v12 = vld [vmem:[%s17554_s8 + $0xd4] ss:$20 sps:$4 sm:$0xff]  }
0x1332   :  { %8985 = vmatpush1.bf16.msra.mxu0 %v13561_v38  ;;  %v13639_v38 = vld [vmem:[%s17554_s8 + $0xd0] ss:$20 sps:$4 sm:$0xff]  }
0x1333   :  { %8986 = vmatprep.subr.bf16.mxu0 %v13566_v30  ;;  %v13644_v30 = vld [vmem:[%s17554_s8 + $0xfc] ss:$20 sps:$4 sm:$0xff]  }
0x1336   :  { %8987 = vmatpush1.bf16.msra.mxu0 %v13564_v47  ;;  %v13642_v47 = vld [vmem:[%s17554_s8 + $0xf8] ss:$20 sps:$4 sm:$0xff]  }
0x1337   :  { %8988 = vmatprep.subr.bf16.mxu0 %v13569_v23  ;;  %v13647_v23 = vld [vmem:[%s17554_s8 + $0x124] ss:$20 sps:$4 sm:$0xff]  }
0x133a   :  { %8989 = vmatpush1.bf16.msra.mxu0 %v13567_v3  ;;  %v13645_v3 = vld [vmem:[%s17554_s8 + $0x120] ss:$20 sps:$4 sm:$0xff]  }
0x133b   :  { %8990 = vmatprep.subr.bf16.mxu0 %v13572_v52  ;;  %v13650_v52 = vld [vmem:[%s17554_s8 + $0x14c] ss:$20 sps:$4 sm:$0xff]  }
0x133e   :  { %8991 = vmatpush1.bf16.msra.mxu0 %v13570_v27  ;;  %v13648_v27 = vld [vmem:[%s17554_s8 + $0x148] ss:$20 sps:$4 sm:$0xff]  }
0x133f   :  { %8992 = vmatprep.subr.bf16.mxu0 %v13575_v54  ;;  %v13653_v54 = vld [vmem:[%s17554_s8 + $0x174] ss:$20 sps:$4 sm:$0xff]  }
0x1342   :  { %8993 = vmatpush1.bf16.msra.mxu0 %v13573_v55  ;;  %v13651_v55 = vld [vmem:[%s17554_s8 + $0x170] ss:$20 sps:$4 sm:$0xff]  }
0x1343   :  { %9011 = vmatprep.subr.bf16.mxu0 %v13786_v7 }
0x1345   :  { %9003 = vmatmul.mubr.bf16.vlgmr.msra.gmra.mrb[72].mxu0 %v16988_v18 }
0x1346   :  { %9012 = vmatpush1.bf16.msra.mxu0 %v13576_v56  ;;  %11818 = vmatprep.mubr.msk.bf16.mxu0 %vm3813_vm4, %v8540_v25  ;;  %v13618_v25 = vld [vmem:[%s17554_s8 + $0x190] ss:$20 sps:$4 sm:$0xff]  }
0x1347   :  { %9013 = vmatprep.subr.bf16.mxu0 %v13786_v7  ;;  %v13656_v56 = vld [vmem:[%s17554_s8 + $0x19c] ss:$20 sps:$4 sm:$0xff]  }
0x134a   :  { %9014 = vmatpush1.bf16.msra.mxu0 %v13577_v58  ;;  %v13654_v58 = vld [vmem:[%s17554_s8 + $0x198] ss:$20 sps:$4 sm:$0xff]  }
0x134b   :  { %9015 = vmatprep.subr.bf16.mxu0 %v13786_v7 }
0x134e   :  { %9016 = vmatpush1.bf16.msra.mxu0 %v13578_v36  ;;  %v13659_v36 = vld [vmem:[%s17554_s8 + $0x1c4] ss:$20 sps:$4 sm:$0xff]  }
0x134f   :  { %9017 = vmatprep.subr.bf16.mxu0 %v13786_v7 }
0x1352   :  { %9018 = vmatpush1.bf16.msra.mxu0 %v13579_v13  ;;  %v13657_v13 = vld [vmem:[%s17554_s8 + $0x1c0] ss:$20 sps:$4 sm:$0xff]  }
0x1353   :  { %9019 = vmatprep.subr.bf16.mxu0 %v13786_v7 }
0x1356   :  { %9020 = vmatpush1.bf16.msra.mxu0 %v13580_v43  ;;  %v13660_v43 = vld [vmem:[%s17554_s8 + $0x10] ss:$20 sps:$4 sm:$0xff]  }
0x1357   :  { %9021 = vmatprep.subr.bf16.mxu0 %v13786_v7 }
0x135a   :  { %9022 = vmatpush1.bf16.msra.mxu0 %v13581_v1  ;;  %v13661_v1 = vld [vmem:[%s17554_s8 + $0x38] ss:$20 sps:$4 sm:$0xff]  }
0x135b   :  { %9023 = vmatprep.subr.bf16.mxu0 %v13786_v7 }
0x135e   :  { %9024 = vmatpush1.bf16.msra.mxu0 %v13582_v59  ;;  %v13662_v59 = vld [vmem:[%s17554_s8 + $0x60] ss:$20 sps:$4 sm:$0xff]  }
0x135f   :  { %9025 = vmatprep.subr.bf16.mxu0 %v13786_v7 }
0x1362   :  { %9026 = vmatpush1.bf16.msra.mxu0 %v13583_v9  ;;  %v13663_v9 = vld [vmem:[%s17554_s8 + $0x88] ss:$20 sps:$4 sm:$0xff]  }
0x1363   :  { %9027 = vmatprep.subr.bf16.mxu0 %v13786_v7 }
0x1366   :  { %9028 = vmatpush1.bf16.msra.mxu0 %v13584_v63  ;;  %v13664_v63 = vld [vmem:[%s17554_s8 + $0xb0] ss:$20 sps:$4 sm:$0xff]  }
0x1367   :  { %9029 = vmatprep.subr.bf16.mxu0 %v13786_v7 }
0x136a   :  { %9030 = vmatpush1.bf16.msra.mxu0 %v13585_v42  ;;  %v13665_v42 = vld [vmem:[%s17554_s8 + $0xd8] ss:$20 sps:$4 sm:$0xff]  }
0x136b   :  { %9031 = vmatprep.subr.bf16.mxu0 %v13786_v7 }
0x136e   :  { %9032 = vmatpush1.bf16.msra.mxu0 %v13586_v41  ;;  %v13666_v41 = vld [vmem:[%s17554_s8 + $0x100] ss:$20 sps:$4 sm:$0xff]  }
0x136f   :  { %9033 = vmatprep.subr.bf16.mxu0 %v13786_v7 }
0x1372   :  { %9034 = vmatpush1.bf16.msra.mxu0 %v13587_v0  ;;  %v13667_v0 = vld [vmem:[%s17554_s8 + $0x128] ss:$20 sps:$4 sm:$0xff]  }
0x1373   :  { %9366 = vmatprep.subr.bf16.mxu0 %v13590_v5  ;;  %v13668_v5 = vld [vmem:[%s17554_s8 + $0x150] ss:$20 sps:$4 sm:$0xff]  }
0x1375   :  { %9044 = vmatmul.mubr.bf16.vlgmr.msra.gmra.mrb[76].mxu0 %v16988_v18  ;;  %v13626_v18 = vld [vmem:[%s17554_s8 + $0xc] ss:$20 sps:$4 sm:$0xff]  }
0x1376   :  { %9367 = vmatpush1.bf16.msra.mxu0 %v13588_v20  ;;  %11879 = vmatprep.mubr.msk.bf16.mxu0 %vm3813_vm4, %v17120_v34  ;;  %v13669_v20 = vld [vmem:[%s17554_s8 + $0x178] ss:$20 sps:$4 sm:$0xff]  }
0x1377   :  { %9368 = vmatprep.subr.bf16.mxu0 %v13593_v6  ;;  %v13670_v6 = vld [vmem:[%s17554_s8 + $0x1a0] ss:$20 sps:$4 sm:$0xff]  }
0x137a   :  { %9369 = vmatpush1.bf16.msra.mxu0 %v13591_v14  ;;  %v13674_v14 = vld [vmem:[%s17554_s8 + $0x3c4] ss:$20 sps:$4 sm:$0xff]  }
0x137b   :  { %9370 = vmatprep.subr.bf16.mxu0 %v13596_v15  ;;  %v13672_v15 = vld [vmem:[%s17554_s8 + $0x3c0] ss:$20 sps:$4 sm:$0xff]  }
0x137e   :  { %9371 = vmatpush1.bf16.msra.mxu0 %v13594_v10  ;;  %v17330_v10 = vpack.c.bf16 %v17224_v2, %v17224_v2  ;;  %v13719_v2 = vld [vmem:[%s17554_s8 + $0x444] ss:$20 sps:$4 sm:$0xff]  }
0x137f   :  { %9372 = vmatprep.subr.bf16.mxu0 %v13599_v48  ;;  %v13677_v48 = vld [vmem:[%s17554_s8 + $0x3ec] ss:$20 sps:$4 sm:$0xff]  }
0x1382   :  { %9373 = vmatpush1.bf16.msra.mxu0 %v13597_v16  ;;  %v13675_v16 = vld [vmem:[%s17554_s8 + $0x3e8] ss:$20 sps:$4 sm:$0xff]  }
0x1383   :  { %9374 = vmatprep.subr.bf16.mxu0 %v13602_v24  ;;  %v13680_v24 = vld [vmem:[%s17554_s8 + $0x414] ss:$20 sps:$4 sm:$0xff]  }
0x1386   :  { %9375 = vmatpush1.bf16.msra.mxu0 %v13600_v29  ;;  %v13678_v29 = vld [vmem:[%s17554_s8 + $0x410] ss:$20 sps:$4 sm:$0xff]  }
0x1387   :  { %9376 = vmatprep.subr.bf16.mxu0 %v13605_v32  ;;  %v13683_v32 = vld [vmem:[%s17554_s8 + $0x43c] ss:$20 sps:$4 sm:$0xff]  }
0x138a   :  { %9377 = vmatpush1.bf16.msra.mxu0 %v13603_v40  ;;  %v13681_v40 = vld [vmem:[%s17554_s8 + $0x438] ss:$20 sps:$4 sm:$0xff]  }
0x138b   :  { %9378 = vmatprep.subr.bf16.mxu0 %v13608_v17  ;;  %v13686_v17 = vld [vmem:[%s17554_s8 + $0x464] ss:$20 sps:$4 sm:$0xff]  }
0x138e   :  { %9379 = vmatpush1.bf16.msra.mxu0 %v13606_v49  ;;  %v13684_v49 = vld [vmem:[%s17554_s8 + $0x460] ss:$20 sps:$4 sm:$0xff]  }
0x138f   :  { %9380 = vmatprep.subr.bf16.mxu0 %v13611_v28  ;;  %v13689_v28 = vld [vmem:[%s17554_s8 + $0x48c] ss:$20 sps:$4 sm:$0xff]  }
0x1392   :  { %9381 = vmatpush1.bf16.msra.mxu0 %v13609_v19  ;;  %v13687_v19 = vld [vmem:[%s17554_s8 + $0x488] ss:$20 sps:$4 sm:$0xff]  }
0x1393   :  { %9382 = vmatprep.subr.bf16.mxu0 %v13614_v21  ;;  %v13692_v21 = vld [vmem:[%s17554_s8 + $0x4b4] ss:$20 sps:$4 sm:$0xff]  }
0x1396   :  { %9383 = vmatpush1.bf16.msra.mxu0 %v13612_v33  ;;  %v13690_v33 = vld [vmem:[%s17554_s8 + $0x4b0] ss:$20 sps:$4 sm:$0xff]  }
0x1397   :  { %9384 = vmatprep.subr.bf16.mxu0 %v13617_v51  ;;  %v13695_v51 = vld [vmem:[%s17554_s8 + $0x4dc] ss:$20 sps:$4 sm:$0xff]  }
0x139a   :  { %9385 = vmatpush1.bf16.msra.mxu0 %v13615_v37  ;;  %v13693_v37 = vld [vmem:[%s17554_s8 + $0x4d8] ss:$20 sps:$4 sm:$0xff]  }
0x139b   :  { %9386 = vmatprep.subr.bf16.mxu0 %v13620_v53  ;;  %v13698_v53 = vld [vmem:[%s17554_s8 + $0x504] ss:$20 sps:$4 sm:$0xff]  }
0x139e   :  { %9387 = vmatpush1.bf16.msra.mxu0 %v13618_v25  ;;  %v13696_v25 = vld [vmem:[%s17554_s8 + $0x500] ss:$20 sps:$4 sm:$0xff]  }
0x139f   :  { %9388 = vmatprep.subr.bf16.mxu0 %v13623_v50  ;;  %v13701_v50 = vld [vmem:[%s17554_s8 + $0x52c] ss:$20 sps:$4 sm:$0xff]  }
0x13a2   :  { %9389 = vmatpush1.bf16.msra.mxu0 %v13621_v31  ;;  %v13699_v31 = vld [vmem:[%s17554_s8 + $0x528] ss:$20 sps:$4 sm:$0xff]  }
0x13a3   :  { %9407 = vmatprep.subr.bf16.mxu0 %v13626_v18  ;;  %v13704_v18 = vld [vmem:[%s17554_s8 + $0x554] ss:$20 sps:$4 sm:$0xff]  }
0x13a5   :  { %9399 = vmatmul.mubr.bf16.vlgmr.msra.gmra.mrb[68].mxu0 %v17196_v35 }
0x13a6   :  { %9408 = vmatpush1.bf16.msra.mxu0 %v13624_v22  ;;  %11880 = vmatprep.mubr.msk.bf16.mxu0 %vm3813_vm4, %v17120_v34  ;;  %v13702_v22 = vld [vmem:[%s17554_s8 + $0x550] ss:$20 sps:$4 sm:$0xff]  }
0x13a7   :  { %9409 = vmatprep.subr.bf16.mxu0 %v13629_v4  ;;  %v13705_v4 = vld [vmem:[%s17554_s8 + $0x578] ss:$20 sps:$4 sm:$0xff]  }
0x13aa   :  { %9410 = vmatpush1.bf16.msra.mxu0 %v13627_v62  ;;  %v13710_v62 = vld [vmem:[%s17554_s8 + $0x3cc] ss:$20 sps:$4 sm:$0xff]  }
0x13ab   :  { %9411 = vmatprep.subr.bf16.mxu0 %v13632_v57  ;;  %v17406_v57 = vpack.c.bf16 %v17219_v60, %v17219_v60  ;;  %v13716_v60 = vld [vmem:[%s17554_s8 + $0x41c] ss:$20 sps:$4 sm:$0xff]  }
0x13ae   :  { %9412 = vmatpush1.bf16.msra.mxu0 %v13630_v39  ;;  %v13708_v39 = vld [vmem:[%s17554_s8 + $0x3c8] ss:$20 sps:$4 sm:$0xff]  }
0x13af   :  { %9413 = vmatprep.subr.bf16.mxu0 %v13635_v11  ;;  %v13713_v11 = vld [vmem:[%s17554_s8 + $0x3f4] ss:$20 sps:$4 sm:$0xff]  }
0x13b2   :  { %9414 = vmatpush1.bf16.msra.mxu0 %v13633_v44  ;;  %v13711_v44 = vld [vmem:[%s17554_s8 + $0x3f0] ss:$20 sps:$4 sm:$0xff]  }
0x13b3   :  { %9415 = vmatprep.subr.bf16.mxu0 %v13638_v45  ;;  %v13714_v45 = vld [vmem:[%s17554_s8 + $0x418] ss:$20 sps:$4 sm:$0xff]  }
0x13b6   :  { %9416 = vmatpush1.bf16.msra.mxu0 %v13636_v61  ;;  %v13720_v61 = vld [vmem:[%s17554_s8 + $0x468] ss:$20 sps:$4 sm:$0xff]  }
0x13b7   :  { %9417 = vmatprep.subr.bf16.mxu0 %v13641_v12  ;;  %v13725_v12 = vld [vmem:[%s17554_s8 + $0x494] ss:$20 sps:$4 sm:$0xff]  }
0x13ba   :  { %9418 = vmatpush1.bf16.msra.mxu0 %v13639_v38  ;;  %v13723_v38 = vld [vmem:[%s17554_s8 + $0x490] ss:$20 sps:$4 sm:$0xff]  }
0x13bb   :  { %9419 = vmatprep.subr.bf16.mxu0 %v13644_v30  ;;  %v13728_v30 = vld [vmem:[%s17554_s8 + $0x4bc] ss:$20 sps:$4 sm:$0xff]  }
0x13be   :  { %9420 = vmatpush1.bf16.msra.mxu0 %v13642_v47  ;;  %v13726_v47 = vld [vmem:[%s17554_s8 + $0x4b8] ss:$20 sps:$4 sm:$0xff]  }
0x13bf   :  { %9421 = vmatprep.subr.bf16.mxu0 %v13647_v23  ;;  %v13731_v23 = vld [vmem:[%s17554_s8 + $0x4e4] ss:$20 sps:$4 sm:$0xff]  }
0x13c2   :  { %9422 = vmatpush1.bf16.msra.mxu0 %v13645_v3  ;;  %v13729_v3 = vld [vmem:[%s17554_s8 + $0x4e0] ss:$20 sps:$4 sm:$0xff]  }
0x13c3   :  { %9423 = vmatprep.subr.bf16.mxu0 %v13650_v52  ;;  %v13734_v52 = vld [vmem:[%s17554_s8 + $0x50c] ss:$20 sps:$4 sm:$0xff]  }
0x13c6   :  { %9424 = vmatpush1.bf16.msra.mxu0 %v13648_v27  ;;  %v13732_v27 = vld [vmem:[%s17554_s8 + $0x508] ss:$20 sps:$4 sm:$0xff]  }
0x13c7   :  { %9425 = vmatprep.subr.bf16.mxu0 %v13653_v54  ;;  %v13737_v54 = vld [vmem:[%s17554_s8 + $0x534] ss:$20 sps:$4 sm:$0xff]  }
0x13ca   :  { %9426 = vmatpush1.bf16.msra.mxu0 %v13651_v55  ;;  %v13735_v55 = vld [vmem:[%s17554_s8 + $0x530] ss:$20 sps:$4 sm:$0xff]  }
0x13cb   :  { %9427 = vmatprep.subr.bf16.mxu0 %v13656_v56  ;;  %v13740_v56 = vld [vmem:[%s17554_s8 + $0x55c] ss:$20 sps:$4 sm:$0xff]  }
0x13ce   :  { %9428 = vmatpush1.bf16.msra.mxu0 %v13654_v58  ;;  %v13738_v58 = vld [vmem:[%s17554_s8 + $0x558] ss:$20 sps:$4 sm:$0xff]  }
0x13cf   :  { %9429 = vmatprep.subr.bf16.mxu0 %v13659_v36  ;;  %v13743_v36 = vld [vmem:[%s17554_s8 + $0x584] ss:$20 sps:$4 sm:$0xff]  }
0x13d2   :  { %9430 = vmatpush1.bf16.msra.mxu0 %v13657_v13  ;;  %v13741_v13 = vld [vmem:[%s17554_s8 + $0x580] ss:$20 sps:$4 sm:$0xff]  }
0x13d3   :  { %9448 = vmatprep.subr.bf16.mxu0 %v13786_v7 }
0x13d5   :  { %9440 = vmatmul.mubr.bf16.vlgmr.msra.gmra.mrb[72].mxu0 %v17196_v35 }
0x13d6   :  { %9449 = vmatpush1.bf16.msra.mxu0 %v13660_v43  ;;  %11881 = vmatprep.mubr.msk.bf16.mxu0 %vm3813_vm4, %v17120_v34  ;;  %v13671_v34 = vld [vmem:[%s17554_s8 + $0x1c8] ss:$20 sps:$4 sm:$0xff]   ;;  %v13744_v43 = vld [vmem:[%s17554_s8 + $0x3d0] ss:$20 sps:$4 sm:$0xff]  }
0x13d7   :  { %9450 = vmatprep.subr.bf16.mxu0 %v13786_v7 }
0x13da   :  { %9451 = vmatpush1.bf16.msra.mxu0 %v13661_v1  ;;  %v13745_v1 = vld [vmem:[%s17554_s8 + $0x3f8] ss:$20 sps:$4 sm:$0xff]  }
0x13db   :  { %9452 = vmatprep.subr.bf16.mxu0 %v13786_v7 }
0x13de   :  { %9453 = vmatpush1.bf16.msra.mxu0 %v13662_v59  ;;  %v13746_v59 = vld [vmem:[%s17554_s8 + $0x420] ss:$20 sps:$4 sm:$0xff]  }
0x13df   :  { %9454 = vmatprep.subr.bf16.mxu0 %v13786_v7 }
0x13e2   :  { %9455 = vmatpush1.bf16.msra.mxu0 %v13663_v9  ;;  %v13747_v9 = vld [vmem:[%s17554_s8 + $0x448] ss:$20 sps:$4 sm:$0xff]  }
0x13e3   :  { %9456 = vmatprep.subr.bf16.mxu0 %v13786_v7 }
0x13e6   :  { %9457 = vmatpush1.bf16.msra.mxu0 %v13664_v63  ;;  %v13748_v63 = vld [vmem:[%s17554_s8 + $0x470] ss:$20 sps:$4 sm:$0xff]  }
0x13e7   :  { %9458 = vmatprep.subr.bf16.mxu0 %v13786_v7 }
0x13ea   :  { %9459 = vmatpush1.bf16.msra.mxu0 %v13665_v42  ;;  %v13749_v42 = vld [vmem:[%s17554_s8 + $0x498] ss:$20 sps:$4 sm:$0xff]  }
0x13eb   :  { %9460 = vmatprep.subr.bf16.mxu0 %v13786_v7 }
0x13ee   :  { %9461 = vmatpush1.bf16.msra.mxu0 %v13666_v41  ;;  %v13750_v41 = vld [vmem:[%s17554_s8 + $0x4c0] ss:$20 sps:$4 sm:$0xff]  }
0x13ef   :  { %9462 = vmatprep.subr.bf16.mxu0 %v13786_v7 }
0x13f2   :  { %9463 = vmatpush1.bf16.msra.mxu0 %v13667_v0  ;;  %v13751_v0 = vld [vmem:[%s17554_s8 + $0x4e8] ss:$20 sps:$4 sm:$0xff]  }
0x13f3   :  { %9464 = vmatprep.subr.bf16.mxu0 %v13786_v7 }
0x13f6   :  { %9465 = vmatpush1.bf16.msra.mxu0 %v13668_v5  ;;  %v13752_v5 = vld [vmem:[%s17554_s8 + $0x510] ss:$20 sps:$4 sm:$0xff]  }
0x13f7   :  { %9466 = vmatprep.subr.bf16.mxu0 %v13786_v7 }
0x13fa   :  { %9467 = vmatpush1.bf16.msra.mxu0 %v13669_v20  ;;  %v13753_v20 = vld [vmem:[%s17554_s8 + $0x538] ss:$20 sps:$4 sm:$0xff]  }
0x13fb   :  { %9468 = vmatprep.subr.bf16.mxu0 %v13786_v7 }
0x13fe   :  { %9469 = vmatpush1.bf16.msra.mxu0 %v13670_v6  ;;  %v13754_v6 = vld [vmem:[%s17554_s8 + $0x560] ss:$20 sps:$4 sm:$0xff]  }
0x13ff   :  { %9470 = vmatprep.subr.bf16.mxu0 %v13786_v7 }
0x1402   :  { %9471 = vmatpush1.bf16.msra.mxu0 %v13671_v34  ;;  %v13755_v34 = vld [vmem:[%s17554_s8 + $0x588] ss:$20 sps:$4 sm:$0xff]  }
0x1403   :  { %9924 = vmatprep.subr.bf16.mxu0 %v13674_v14 }
0x1405   :  { %9481 = vmatmul.mubr.bf16.vlgmr.msra.gmra.mrb[76].mxu0 %v17196_v35  ;;  %v13707_v35 = vld [vmem:[%s17554_s8 + $0x57c] ss:$20 sps:$4 sm:$0xff]   ;;  %s13793_s8 = smov [#allocation2]  }
0x1406   :  { %9925 = vmatpush1.bf16.msra.mxu0 %v13672_v15  ;;  %12017 = vmatprep.mubr.msk.bf16.mxu0 %vm3813_vm4, %v17330_v10  ;;  %s10090_s14 = sshll.u32 %s13793_s8, 4  ;;  %s10091_s14 = int_to_ptr.vmem [resolvable:$true] %s10090_s14 }
0x1407   :  { %9926 = vmatprep.subr.bf16.mxu0 %v13677_v48  ;;  %s13762_s15 = scalar_lea.vmem %s10091_s14, 160  ;;  %p13767_p1 = scmp.lt.s32.totalorder %s10091_s14, %s10091_s14 }
0x1408   :  { %p13763_p0 = scmp.ne.s32.totalorder %s10091_s14, %s13762_s15  ;;  %p13768_p2 = scmp.lt.s32.totalorder %s13762_s15, %s13762_s15 }
0x140a   :  { %9927 = vmatpush1.bf16.msra.mxu0 %v13675_v16  ;;  %p13769_p3 = por %p13768_p2, %p13767_p1 }
0x140b   :  { %9928 = vmatprep.subr.bf16.mxu0 %v13680_v24  ;;  %v13792_v24 = vmov 1983009808  }
0x140c   :  { %p13770_p4 = pnand %p13769_p3, %p13763_p0 }
0x140e   :  { %9929 = vmatpush1.bf16.msra.mxu0 %v13678_v29  ;;  %v10059_v29 = vunpack.c.l.s4 %v13792_v24 }
0x140f   :  { %9930 = vmatprep.subr.bf16.mxu0 %v13683_v32 }
0x1410   :  { %v10060_v32 = vunpack.c.0.s8 %v10059_v29 }
0x1412   :  { %9931 = vmatpush1.bf16.msra.mxu0 %v13681_v40  ;;  %v10063_v40 = vsub.s32 %v10060_v32, %v15317_v8 }
0x1413   :  { %9932 = vmatprep.subr.bf16.mxu0 %v13686_v17 }
0x1416   :  { %9933 = vmatpush1.bf16.msra.mxu0 %v13684_v49 }
0x1417   :  { %9934 = vmatprep.subr.bf16.mxu0 %v13689_v28 }
0x141a   :  { %9935 = vmatpush1.bf16.msra.mxu0 %v13687_v19 }
0x141b   :  { %9936 = vmatprep.subr.bf16.mxu0 %v13692_v21 }
0x141e   :  { %9937 = vmatpush1.bf16.msra.mxu0 %v13690_v33 }
0x141f   :  { %9938 = vmatprep.subr.bf16.mxu0 %v13695_v51 }
0x1422   :  { %9939 = vmatpush1.bf16.msra.mxu0 %v13693_v37 }
0x1423   :  { %9940 = vmatprep.subr.bf16.mxu0 %v13698_v53 }
0x1426   :  { %9941 = vmatpush1.bf16.msra.mxu0 %v13696_v25 }
0x1427   :  { %9942 = vmatprep.subr.bf16.mxu0 %v13701_v50 }
0x142a   :  { %9943 = vmatpush1.bf16.msra.mxu0 %v13699_v31 }
0x142b   :  { %9944 = vmatprep.subr.bf16.mxu0 %v13704_v18 }
0x142e   :  { %9945 = vmatpush1.bf16.msra.mxu0 %v13702_v22 }
0x142f   :  { %9946 = vmatprep.subr.bf16.mxu0 %v13707_v35 }
0x1432   :  { %9947 = vmatpush1.bf16.msra.mxu0 %v13705_v4 }
0x1433   :  { %9965 = vmatprep.subr.bf16.mxu0 %v13710_v62 }
0x1435   :  { %9957 = vmatmul.mubr.bf16.vlgmr.msra.gmra.mrb[68].mxu0 %v17406_v57 }
0x1436   :  { %9966 = vmatpush1.bf16.msra.mxu0 %v13708_v39  ;;  %12018 = vmatprep.mubr.msk.bf16.mxu0 %vm3813_vm4, %v17330_v10 }
0x1437   :  { %9967 = vmatprep.subr.bf16.mxu0 %v13713_v11 }
0x143a   :  { %9968 = vmatpush1.bf16.msra.mxu0 %v13711_v44 }
0x143b   :  { %9969 = vmatprep.subr.bf16.mxu0 %v13716_v60 }
0x143e   :  { %9970 = vmatpush1.bf16.msra.mxu0 %v13714_v45 }
0x143f   :  { %9971 = vmatprep.subr.bf16.mxu0 %v13719_v2 }
0x1442   :  { %9972 = vmatpush1.bf16.msra.mxu0 %v13717_v26 }
0x1443   :  { %9973 = vmatprep.subr.bf16.mxu0 %v13722_v46 }
0x1446   :  { %9974 = vmatpush1.bf16.msra.mxu0 %v13720_v61 }
0x1447   :  { %9975 = vmatprep.subr.bf16.mxu0 %v13725_v12 }
0x144a   :  { %9976 = vmatpush1.bf16.msra.mxu0 %v13723_v38 }
0x144b   :  { %9977 = vmatprep.subr.bf16.mxu0 %v13728_v30 }
0x144e   :  { %9978 = vmatpush1.bf16.msra.mxu0 %v13726_v47 }
0x144f   :  { %9979 = vmatprep.subr.bf16.mxu0 %v13731_v23 }
0x1452   :  { %9980 = vmatpush1.bf16.msra.mxu0 %v13729_v3 }
0x1453   :  { %9981 = vmatprep.subr.bf16.mxu0 %v13734_v52 }
0x1456   :  { %9982 = vmatpush1.bf16.msra.mxu0 %v13732_v27 }
0x1457   :  { %9983 = vmatprep.subr.bf16.mxu0 %v13737_v54 }
0x145a   :  { %9984 = vmatpush1.bf16.msra.mxu0 %v13735_v55 }
0x145b   :  { %9985 = vmatprep.subr.bf16.mxu0 %v13740_v56 }
0x145e   :  { %9986 = vmatpush1.bf16.msra.mxu0 %v13738_v58 }
0x145f   :  { %9987 = vmatprep.subr.bf16.mxu0 %v13743_v36 }
0x1462   :  { %9988 = vmatpush1.bf16.msra.mxu0 %v13741_v13 }
0x1463   :  { %10006 = vmatprep.subr.bf16.mxu0 %v13786_v7 }
0x1465   :  { %9998 = vmatmul.mubr.bf16.vlgmr.msra.gmra.mrb[72].mxu0 %v17406_v57 }
0x1466   :  { %10007 = vmatpush1.bf16.msra.mxu0 %v13744_v43  ;;  %12019 = vmatprep.mubr.msk.bf16.mxu0 %vm3813_vm4, %v17330_v10 }
0x1467   :  { %10008 = vmatprep.subr.bf16.mxu0 %v13786_v7 }
0x146a   :  { %10009 = vmatpush1.bf16.msra.mxu0 %v13745_v1 }
0x146b   :  { %10010 = vmatprep.subr.bf16.mxu0 %v13786_v7 }
0x146e   :  { %10011 = vmatpush1.bf16.msra.mxu0 %v13746_v59 }
0x146f   :  { %10012 = vmatprep.subr.bf16.mxu0 %v13786_v7 }
0x1472   :  { %10013 = vmatpush1.bf16.msra.mxu0 %v13747_v9 }
0x1473   :  { %10014 = vmatprep.subr.bf16.mxu0 %v13786_v7 }
0x1476   :  { %10015 = vmatpush1.bf16.msra.mxu0 %v13748_v63 }
0x1477   :  { %10016 = vmatprep.subr.bf16.mxu0 %v13786_v7 }
0x147a   :  { %10017 = vmatpush1.bf16.msra.mxu0 %v13749_v42 }
0x147b   :  { %10018 = vmatprep.subr.bf16.mxu0 %v13786_v7 }
0x147e   :  { %10019 = vmatpush1.bf16.msra.mxu0 %v13750_v41 }
0x147f   :  { %10020 = vmatprep.subr.bf16.mxu0 %v13786_v7 }
0x1482   :  { %10021 = vmatpush1.bf16.msra.mxu0 %v13751_v0 }
0x1483   :  { %10022 = vmatprep.subr.bf16.mxu0 %v13786_v7 }
0x1486   :  { %10023 = vmatpush1.bf16.msra.mxu0 %v13752_v5 }
0x1487   :  { %10024 = vmatprep.subr.bf16.mxu0 %v13786_v7 }
0x148a   :  { %10025 = vmatpush1.bf16.msra.mxu0 %v13753_v20 }
0x148b   :  { %10026 = vmatprep.subr.bf16.mxu0 %v13786_v7 }
0x148e   :  { %10027 = vmatpush1.bf16.msra.mxu0 %v13754_v6 }
0x148f   :  { %10028 = vmatprep.subr.bf16.mxu0 %v13786_v7 }
0x1492   :  { %10029 = vmatpush1.bf16.msra.mxu0 %v13755_v34 }
0x1495   :  { %10039 = vmatmul.mubr.bf16.vlgmr.msra.gmra.mrb[76].mxu0 %v17406_v57 }
0x1508   :  { %v9958_v14 = vpop.f32.mrb[68].mxu0 }
0x1509   :  { %v9960_v15 = vpop.f32.mrb[69].mxu0 }
0x150a   :  { %v10056_v10 = vcombine.low %v9958_v14, %v9960_v15  ;;  %v9962_v48 = vpop.f32.mrb[70].mxu0 }
0x150b   :  { %v9963_v16 = vpop.f32.mrb[71].mxu0 }
0x150c   :  { %v10064_v33 = vrot.slane %v10056_v10, %v10063_v40 }
0x1538   :  { %v9999_v17 = vpop.f32.mrb[72].mxu0 }
0x1539   :  { %v10001_v49 = vpop.f32.mrb[73].mxu0 }
0x153a   :  { %v10057_v28 = vcombine.low %v9999_v17, %v10001_v49  ;;  %v10003_v19 = vpop.f32.mrb[74].mxu0 }
0x153b   :  { %v10004_v21 = vpop.f32.mrb[75].mxu0 }
0x153c   :  { %v10071_v7 = vrot.slane %v10057_v28, %v10063_v40 }
0x153e   :  { %v10072_v51 = vcombine.low %v10064_v33, %v10071_v7 }
0x1540   :  { %10082 = vst [vmem:[#allocation2] sm:$0xff] %v10072_v51 }
0x1568   :  { %v10040_v37 = vpop.f32.mrb[76].mxu0 }
0x1569   :  { %v10079_v53 = vrot.slane %v10040_v37, %v10063_v40  ;;  %v10042_v25 = vpop.f32.mrb[77].mxu0 }
0x156a   :  { %v10043_v50 = vpop.f32.mrb[78].mxu0 }
0x156b   :  { %10083 = vst.msk [vmem:[#allocation2 + $0x8] sm:$0x3] %vm6899_vm9, %v10079_v53  ;;  %v10044_v31 = vpop.f32.mrb[79].mxu0 }
0x156c   :  { %13773 = shalt.err (!%p13770_p4)
}
0x156d   :  { %s13774_s18 = scalar_lea.hbm %s17556_s10, 160 }
0x156e   :  { %p13775_p5 = scmp.ne.s32.totalorder %s17556_s10, %s13774_s18  ;;  %p13778_p6 = scmp.lt.u32.totalorder %s13774_s18, %s17556_s10 }
0x1570   :  { %p13780_p7 = pnand %p13778_p6, %p13775_p5 }
0x1572   :  { %13783 = shalt.err (!%p13780_p7)
}
0x1573   :  { %10093 = dma.vmem_to_hbm [thread:$0]  %s10091_s14, 160, %s17556_s10, [#allocation3]  }
0x1574   :  { %13784 = dma.done.wait [#allocation3], 160  }
0x1575   :  { %13785 = vsyncadd [#allocation3], 4294967136 }
0x1576   :  { %10097 = vsyncpa [#allocation3], 1 }

</bundles_post_ra>
